<compile_context>
chip_gen: v7x
topology: tpu7x:2x2x1
jax: 0.10.0
libtpu: 0.0.40
codegen_flags: <defaults>
</compile_context>

<pallas_src>
import jax
import jax.numpy as jnp
from jax.experimental import pallas as pl
from jax.experimental.pallas import tpu as pltpu

KS = (9, 19, 39)           # inception kernel sizes (odd, "same" padding)
K_MAX = max(KS)            # 39
PMAX = K_MAX // 2          # 19
PADL = 128                 # lane-aligned interior start for padded scratch bufs
BN_EPS = 1e-5
N_FILTERS = 32
BNECK = 32
C_OUT = 4 * N_FILTERS      # 128
DSTACK = K_MAX * BNECK     # 1248  (tap-stacked im2col rows)
TAP_CHUNK = 16             # taps per accumulated MXU chunk (16*32 = 512 lanes)


# ----------------------------------------------------------------------------
# Fused forward kernel (whole network).  One grid step processes Bb samples
# packed side-by-side along the lane axis:
#   sample b occupies output columns [b*S, b*S + T), S = T + 2*PMAX,
#   the 2*PMAX gap columns between samples carry the per-sample conv zero
#   padding (bottleneck path) / -inf padding (maxpool path).
# ----------------------------------------------------------------------------
def _make_fused_call(G, Bb, C_in_p, T, W, S, L):
    C_MAXROW = max(C_OUT, C_in_p)
    NEG_INF = float("-inf")

    def kernel(x_ref, vmask_ref, pool_ref,
               wb1_ref, wall1_ref, sc1_ref, sh1_ref,
               wb2_ref, wall2_ref, sc2_ref, sh2_ref,
               wb3_ref, wall3_ref, sc3_ref, sh3_ref,
               wres_ref, rsc_ref, rsh_ref, wlin_ref, blin_ref,
               out_ref, feat_ref,
               zbpad_ref, stack_ref, xpad_ref, xs_ref):

        vmaskb = vmask_ref[...] > 0.5          # (1, W) bool: valid (non-gap)

        # Re-write only the small pad regions each step (cheap; keeps the
        # kernel stateless across steps -> safe under megacore sharding).
        zbpad_ref[:, PADL - PMAX:PADL] = jnp.zeros((BNECK, PMAX), jnp.bfloat16)
        zbpad_ref[:, PADL + W:PADL + W + PMAX] = jnp.zeros((BNECK, PMAX),
                                                           jnp.bfloat16)
        xpad_ref[:, PADL - 1:PADL] = jnp.full((C_MAXROW, 1), NEG_INF,
                                              jnp.bfloat16)
        xpad_ref[:, PADL + W:PADL + W + 1] = jnp.full((C_MAXROW, 1), NEG_INF,
                                                      jnp.bfloat16)
        xs_ref[...] = jnp.zeros((C_in_p, W), jnp.bfloat16)

        # NaN-column zeroing + pack the Bb samples on the lane axis (bf16).
        for b in range(Bb):
            xb = x_ref[b]                                        # (C_in_p, T)
            bad = jnp.any(jnp.isnan(xb), axis=0, keepdims=True)  # (1, T)
            xb = jnp.where(bad, 0.0, xb)
            xs_ref[:, b * S:b * S + T] = xb.astype(jnp.bfloat16)

        def inception_module(h, C, wb_ref, wall_ref, s_ref, b_ref):
            # h: (C, W) bf16 module input.
            # bottleneck 1x1 conv; gap columns are zeroed so they act as the
            # per-sample "same"-conv zero padding in the im2col reads below.
            zb = jnp.dot(wb_ref[...], h, preferred_element_type=jnp.float32)
            zbpad_ref[:, PADL:PADL + W] = jnp.where(vmaskb, zb, 0.0
                                                    ).astype(jnp.bfloat16)
            # maxpool input (lane-aligned store); -inf at gaps / sequence ends
            # so 3-wide windows never cross sample boundaries.
            xpad_ref[0:C, PADL:PADL + W] = jnp.where(vmaskb, h, NEG_INF)

            # Tap-stacked im2col, chunked + accumulated over the MXU so the
            # copy of chunk i+1 overlaps the matmul of chunk i.
            z = jnp.zeros((C_OUT, W), jnp.float32)
            for c0 in range(0, K_MAX, TAP_CHUNK):
                c1 = min(K_MAX, c0 + TAP_CHUNK)
                for d in range(c0, c1):
                    s = PADL - PMAX + d
                    stack_ref[d * BNECK:(d + 1) * BNECK, :] = \
                        zbpad_ref[:, s:s + W]
                z = z + jnp.dot(wall_ref[:, c0 * BNECK:c1 * BNECK],
                                stack_ref[c0 * BNECK:c1 * BNECK, :],
                                preferred_element_type=jnp.float32)

            # MaxPool1d(kernel=3, stride=1, padding=1) branch.
            zmp = jnp.maximum(
                jnp.maximum(xpad_ref[0:C, PADL - 1:PADL - 1 + W],
                            xpad_ref[0:C, PADL:PADL + W]),
                xpad_ref[0:C, PADL + 1:PADL + 1 + W])
            stack_ref[DSTACK:DSTACK + C, :] = jnp.where(vmaskb, zmp, 0.0
                                                        ).astype(jnp.bfloat16)
            z = z + jnp.dot(wall_ref[:, DSTACK:DSTACK + C],
                            stack_ref[DSTACK:DSTACK + C, :],
                            preferred_element_type=jnp.float32)

            # fused BatchNorm (inference affine) + ReLU
            return jnp.maximum(z * s_ref[...] + b_ref[...], 0.0)   # (128, W)

        h1 = xs_ref[...]                                           # (C_in_p, W)
        z = inception_module(h1, C_in_p, wb1_ref, wall1_ref, sc1_ref, sh1_ref)
        z = inception_module(z.astype(jnp.bfloat16), C_OUT,
                             wb2_ref, wall2_ref, sc2_ref, sh2_ref)
        z = inception_module(z.astype(jnp.bfloat16), C_OUT,
                             wb3_ref, wall3_ref, sc3_ref, sh3_ref)

        # residual 1x1 conv + BN (conv bias folded into rsh), add + ReLU
        res = jnp.dot(wres_ref[...], h1, preferred_element_type=jnp.float32)
        z = jnp.maximum(z + res * rsc_ref[...] + rsh_ref[...], 0.0)  # (128, W)

        # AdaptiveAvgPool1d(1) over each sample's valid columns via one small
        # matmul with the precomputed (W, Bb) selection/averaging matrix.
        pooled = jnp.dot(z, pool_ref[...],
                         preferred_element_type=jnp.float32)        # (128, Bb)
        feat_ref[0] = pooled
        out_ref[0] = jnp.dot(wlin_ref[...], pooled,
                             preferred_element_type=jnp.float32) + blin_ref[...]

    def w2d(shape):
        return pl.BlockSpec(shape, lambda g: (0, 0))

    grid_spec = pltpu.PrefetchScalarGridSpec(
        num_scalar_prefetch=0,
        grid=(G,),
        in_specs=[
            pl.BlockSpec((Bb, C_in_p, T), lambda g: (g, 0, 0)),   # x batch blk
            w2d((1, W)),                                          # valid mask
            w2d((W, Bb)),                                         # avg-pool mat
            # inception module 1
            w2d((BNECK, C_in_p)), w2d((C_OUT, DSTACK + C_in_p)),
            w2d((C_OUT, 1)), w2d((C_OUT, 1)),
            # inception module 2
            w2d((BNECK, C_OUT)), w2d((C_OUT, DSTACK + C_OUT)),
            w2d((C_OUT, 1)), w2d((C_OUT, 1)),
            # inception module 3
            w2d((BNECK, C_OUT)), w2d((C_OUT, DSTACK + C_OUT)),
            w2d((C_OUT, 1)), w2d((C_OUT, 1)),
            # residual + head
            w2d((C_OUT, C_in_p)), w2d((C_OUT, 1)), w2d((C_OUT, 1)),
            w2d((L, C_OUT)), w2d((L, 1)),
        ],
        out_specs=(
            pl.BlockSpec((1, L, Bb), lambda g: (g, 0, 0)),
            pl.BlockSpec((1, C_OUT, Bb), lambda g: (g, 0, 0)),
        ),
        scratch_shapes=[
            pltpu.VMEM((BNECK, PADL + W + PMAX), jnp.bfloat16),   # padded bneck
            pltpu.VMEM((DSTACK + C_MAXROW, W), jnp.bfloat16),     # im2col stack
            pltpu.VMEM((C_MAXROW, PADL + W + 1), jnp.bfloat16),   # maxpool pad
            pltpu.VMEM((C_in_p, W), jnp.bfloat16),                # packed x
        ],
    )
    return pl.pallas_call(
        kernel,
        out_shape=(jax.ShapeDtypeStruct((G, L, Bb), jnp.float32),
                   jax.ShapeDtypeStruct((G, C_OUT, Bb), jnp.float32)),
        grid_spec=grid_spec,
        compiler_params=pltpu.CompilerParams(
            dimension_semantics=("parallel",),
            # v5e's default scoped-VMEM limit is only 16 MiB; raise it so
            # longer T does not hit it (still <= v7x's 64 MiB physical VMEM).
            vmem_limit_bytes=64 * 1024 * 1024,
        ),
    )


# ----------------------------------------------------------------------------
# One-time host-side weight packing (tap-stacked conv weights, folded BN).
# Big matmul operands are cast to bf16; BN scale/shift stay f32.
# ----------------------------------------------------------------------------
def prepack_params(params, C_in):
    C_in_p = max(8, ((C_in + 7) // 8) * 8)      # sublane-friendly channel pad

    def pack_module(m, C_pad):
        C_m = m['wb'].shape[1]
        scale = m['bn_gamma'] / jnp.sqrt(m['bn_var'] + BN_EPS)
        shift = m['bn_beta'] - m['bn_mean'] * scale
        wall = jnp.zeros((C_OUT, DSTACK + C_pad), jnp.float32)
        for bi, (w, K) in enumerate(((m['w1'], KS[0]),
                                     (m['w2'], KS[1]),
                                     (m['w3'], KS[2]))):
            P = K // 2
            for j in range(K):
                d = PMAX - P + j      # tap j of a K-tap "same" conv
                wall = wall.at[bi * N_FILTERS:(bi + 1) * N_FILTERS,
                               d * BNECK:(d + 1) * BNECK].set(w[:, :, j])
        wall = wall.at[3 * N_FILTERS:, DSTACK:DSTACK + C_m].set(m['wmp'])
        wb = jnp.zeros((BNECK, C_pad), jnp.float32).at[:, :C_m].set(m['wb'])
        return dict(wb=wb.astype(jnp.bfloat16),
                    wall=wall.astype(jnp.bfloat16),
                    scale=scale.reshape(-1, 1).astype(jnp.float32),
                    shift=shift.reshape(-1, 1).astype(jnp.float32))

    rscale = params['res_bn_gamma'] / jnp.sqrt(params['res_bn_var'] + BN_EPS)
    rshift = params['res_bn_beta'] - params['res_bn_mean'] * rscale
    rshift = rshift + params['bres'] * rscale      # fold conv bias into BN shift
    wres = jnp.zeros((C_OUT, C_in_p), jnp.float32).at[:, :C_in].set(params['wres'])
    return dict(
        c_in=C_in, c_in_p=C_in_p,
        m1=pack_module(params['m1'], C_in_p),
        m2=pack_module(params['m2'], C_OUT),
        m3=pack_module(params['m3'], C_OUT),
        wres=wres.astype(jnp.bfloat16),
        rscale=rscale.reshape(-1, 1).astype(jnp.float32),
        rshift=rshift.reshape(-1, 1).astype(jnp.float32),
        wlin=params['wlin'].astype(jnp.float32),          # tiny head: keep f32
        blin=params['blin'].reshape(-1, 1).astype(jnp.float32),
    )


# ----------------------------------------------------------------------------
# Full InceptionTime forward
# ----------------------------------------------------------------------------
def _auto_batch_block(B, T):
    # Fill ~512 output lanes per grid step when T is short; one sample per
    # step once T itself fills the lanes.
    if T >= 256:
        return 1
    S = T + K_MAX - 1
    return int(max(1, min(B, 512 // S)))


def inception_time_forward(x, packed, batch_block=None):
    B, C_in, T = x.shape
    C_in_p = packed['c_in_p']
    L = packed['wlin'].shape[0]

    Bb = batch_block if batch_block is not None else _auto_batch_block(B, T)
    Bb = int(max(1, min(Bb, B)))
    S = T + K_MAX - 1                    # per-sample lane stride
    W = Bb * S - (K_MAX - 1)             # packed activation width per step
    G = (B + Bb - 1) // Bb
    B_pad = G * Bb

    x_p = jnp.pad(x, ((0, B_pad - B), (0, C_in_p - C_in), (0, 0)))

    cols = jnp.arange(W)
    within = (cols % S) < T
    vmask = within.astype(jnp.float32)[None, :]                      # (1, W)
    pool_mat = (within[:, None]
                & ((cols // S)[:, None] == jnp.arange(Bb)[None, :]))
    pool_mat = pool_mat.astype(jnp.float32) / T                      # (W, Bb)

    call = _make_fused_call(G, Bb, C_in_p, T, W, S, L)
    out3, feat3 = call(
        x_p, vmask, pool_mat,
        packed['m1']['wb'], packed['m1']['wall'],
        packed['m1']['scale'], packed['m1']['shift'],
        packed['m2']['wb'], packed['m2']['wall'],
        packed['m2']['scale'], packed['m2']['shift'],
        packed['m3']['wb'], packed['m3']['wall'],
        packed['m3']['scale'], packed['m3']['shift'],
        packed['wres'], packed['rscale'], packed['rshift'],
        packed['wlin'], packed['blin'])

    out = jnp.transpose(out3, (0, 2, 1)).reshape(B_pad, L)[:B]
    feat = jnp.transpose(feat3, (0, 2, 1)).reshape(B_pad, C_OUT)[:B]
    return dict(output=out, features=feat)


# ----------------------------------------------------------------------------
# Deterministic parameter init (shapes per the PyTorch __init__)
# ----------------------------------------------------------------------------
def init_params(key, C_in, label_dim, n_filters=N_FILTERS, bneck=BNECK):
    keys = iter(jax.random.split(key, 64))

    def nrm(shape, s):
        return s * jax.random.normal(next(keys), shape, dtype=jnp.float32)

    def module_params(cin):
        cout = 4 * n_filters
        return dict(
            wb=nrm((bneck, cin), 0.08),
            w1=nrm((n_filters, bneck, KS[0]), 0.05),
            w2=nrm((n_filters, bneck, KS[1]), 0.05),
            w3=nrm((n_filters, bneck, KS[2]), 0.05),
            wmp=nrm((n_filters, cin), 0.08),
            bn_gamma=1.0 + nrm((cout,), 0.1),
            bn_beta=nrm((cout,), 0.1),
            bn_mean=nrm((cout,), 0.1),
            bn_var=jnp.abs(1.0 + nrm((cout,), 0.1)),
        )

    cout = 4 * n_filters
    p = dict(m1=module_params(C_in),
             m2=module_params(cout),
             m3=module_params(cout))
    p.update(
        wres=nrm((cout, C_in), 0.08),
        bres=nrm((cout,), 0.1),
        res_bn_gamma=1.0 + nrm((cout,), 0.1),
        res_bn_beta=nrm((cout,), 0.1),
        res_bn_mean=nrm((cout,), 0.1),
        res_bn_var=jnp.abs(1.0 + nrm((cout,), 0.1)),
        wlin=nrm((label_dim, cout), 0.1),
        blin=nrm((label_dim,), 0.1),
    )
    return p


# ----------------------------------------------------------------------------
# Pure-JAX reference (f32, same math, independent of Pallas) for verification
# ----------------------------------------------------------------------------
def ref_forward(x, params):
    HI = jax.lax.Precision.HIGHEST
    bad = jnp.any(jnp.isnan(x), axis=1, keepdims=True)
    x = jnp.where(bad, 0.0, x)
    T = x.shape[-1]

    def conv1d_same(h, w):
        K = w.shape[-1]
        P = K // 2
        hp = jnp.pad(h, ((0, 0), (0, 0), (P, P)))
        out = jnp.zeros((h.shape[0], w.shape[0], T), jnp.float32)
        for j in range(K):
            out = out + jnp.einsum('oc,bct->bot', w[:, :, j], hp[:, :, j:j + T],
                                   precision=HI)
        return out

    def maxpool3(h):
        hp = jnp.pad(h, ((0, 0), (0, 0), (1, 1)), constant_values=-jnp.inf)
        return jnp.maximum(jnp.maximum(hp[:, :, 0:T], hp[:, :, 1:1 + T]),
                           hp[:, :, 2:2 + T])

    def module(h, m):
        zb = jnp.einsum('oc,bct->bot', m['wb'], h, precision=HI)
        z = jnp.concatenate(
            [conv1d_same(zb, m['w1']),
             conv1d_same(zb, m['w2']),
             conv1d_same(zb, m['w3']),
             jnp.einsum('oc,bct->bot', m['wmp'], maxpool3(h), precision=HI)],
            axis=1)
        scale = m['bn_gamma'] / jnp.sqrt(m['bn_var'] + BN_EPS)
        shift = m['bn_beta'] - m['bn_mean'] * scale
        return jnp.maximum(z * scale[None, :, None] + shift[None, :, None], 0.0)

    z = module(x, params['m1'])
    z = module(z, params['m2'])
    z = module(z, params['m3'])
    res = jnp.einsum('oc,bct->bot', params['wres'], x, precision=HI) \
        + params['bres'][None, :, None]
    rscale = params['res_bn_gamma'] / jnp.sqrt(params['res_bn_var'] + BN_EPS)
    rshift = params['res_bn_beta'] - params['res_bn_mean'] * rscale
    res = res * rscale[None, :, None] + rshift[None, :, None]
    z = jnp.maximum(z + res, 0.0)
    feat = jnp.mean(z, axis=-1)
    out = jnp.dot(feat, params['wlin'].T, precision=HI) + params['blin']
    return dict(output=out, features=feat)


if __name__ == "__main__":
    key = jax.random.PRNGKey(0)
    kx, kp = jax.random.split(key)
    B, C_in, T, label_dim = 5, 4, 16, 6

    x = jax.random.normal(kx, (B, C_in, T), dtype=jnp.float32)
    # a few NaNs to exercise the nan-mask zeroing path
    x = x.at[0, 1, 3].set(jnp.nan)
    x = x.at[3, 2, 7].set(jnp.nan)

    params = init_params(kp, C_in, label_dim)
    packed = prepack_params(params, C_in)

    # batch_block=2 -> grid of 3 steps, each packing 2 samples side-by-side on
    # the lane axis (batch padded 5 -> 6; the pad sample is discarded).
    res = inception_time_forward(x, packed, batch_block=2)
    jax.block_until_ready(res)

    ref = ref_forward(x, params)
    err_o = float(jnp.max(jnp.abs(res['output'] - ref['output'])))
    err_f = float(jnp.max(jnp.abs(res['features'] - ref['features'])))
    if not (jnp.all(jnp.isfinite(res['output'])) and
            jnp.all(jnp.isfinite(res['features']))):
        raise AssertionError("non-finite outputs")
    if err_o > 5e-2 or err_f > 5e-2:
        raise AssertionError(f"mismatch vs reference: output {err_o}, features {err_f}")

    print("KERNEL_OK")
</pallas_src>

<mosaic_0001>
module attributes {stable_mosaic.version = 11 : i64} {
  func.func @kernel(%arg0: i32, %arg1: memref<2x8x16xf32, #tpu.memory_space<vmem>>, %arg2: memref<1x70xf32, #tpu.memory_space<vmem>>, %arg3: memref<70x2xf32, #tpu.memory_space<vmem>>, %arg4: memref<32x8xbf16, #tpu.memory_space<vmem>>, %arg5: memref<128x1256xbf16, #tpu.memory_space<vmem>>, %arg6: memref<128x1xf32, #tpu.memory_space<vmem>>, %arg7: memref<128x1xf32, #tpu.memory_space<vmem>>, %arg8: memref<32x128xbf16, #tpu.memory_space<vmem>>, %arg9: memref<128x1376xbf16, #tpu.memory_space<vmem>>, %arg10: memref<128x1xf32, #tpu.memory_space<vmem>>, %arg11: memref<128x1xf32, #tpu.memory_space<vmem>>, %arg12: memref<32x128xbf16, #tpu.memory_space<vmem>>, %arg13: memref<128x1376xbf16, #tpu.memory_space<vmem>>, %arg14: memref<128x1xf32, #tpu.memory_space<vmem>>, %arg15: memref<128x1xf32, #tpu.memory_space<vmem>>, %arg16: memref<128x8xbf16, #tpu.memory_space<vmem>>, %arg17: memref<128x1xf32, #tpu.memory_space<vmem>>, %arg18: memref<128x1xf32, #tpu.memory_space<vmem>>, %arg19: memref<6x128xf32, #tpu.memory_space<vmem>>, %arg20: memref<6x1xf32, #tpu.memory_space<vmem>>, %arg21: memref<1x6x2xf32, #tpu.memory_space<vmem>>, %arg22: memref<1x128x2xf32, #tpu.memory_space<vmem>>, %arg23: memref<32x217xbf16, #tpu.memory_space<vmem>>, %arg24: memref<1376x70xbf16, #tpu.memory_space<vmem>>, %arg25: memref<128x199xbf16, #tpu.memory_space<vmem>>, %arg26: memref<8x70xbf16, #tpu.memory_space<vmem>>) attributes {dimension_semantics = [#tpu.dimension_semantics<parallel>], iteration_bounds = array<i64: 3>, scalar_prefetch = 0 : i64, scratch_operands = 4 : i64, tpu.core_type = #tpu.core_type<tc>, window_params = [{transform_indices = @transform_0, window_bounds = array<i64: 2, 8, 16>}, {pipeline_mode = #tpu.pipeline_mode<synchronous>, transform_indices = @transform_1, window_bounds = array<i64: 1, 70>}, {pipeline_mode = #tpu.pipeline_mode<synchronous>, transform_indices = @transform_2, window_bounds = array<i64: 70, 2>}, {pipeline_mode = #tpu.pipeline_mode<synchronous>, transform_indices = @transform_3, window_bounds = array<i64: 32, 8>}, {pipeline_mode = #tpu.pipeline_mode<synchronous>, transform_indices = @transform_4, window_bounds = array<i64: 128, 1256>}, {pipeline_mode = #tpu.pipeline_mode<synchronous>, transform_indices = @transform_5, window_bounds = array<i64: 128, 1>}, {pipeline_mode = #tpu.pipeline_mode<synchronous>, transform_indices = @transform_6, window_bounds = array<i64: 128, 1>}, {pipeline_mode = #tpu.pipeline_mode<synchronous>, transform_indices = @transform_7, window_bounds = array<i64: 32, 128>}, {pipeline_mode = #tpu.pipeline_mode<synchronous>, transform_indices = @transform_8, window_bounds = array<i64: 128, 1376>}, {pipeline_mode = #tpu.pipeline_mode<synchronous>, transform_indices = @transform_9, window_bounds = array<i64: 128, 1>}, {pipeline_mode = #tpu.pipeline_mode<synchronous>, transform_indices = @transform_10, window_bounds = array<i64: 128, 1>}, {pipeline_mode = #tpu.pipeline_mode<synchronous>, transform_indices = @transform_11, window_bounds = array<i64: 32, 128>}, {pipeline_mode = #tpu.pipeline_mode<synchronous>, transform_indices = @transform_12, window_bounds = array<i64: 128, 1376>}, {pipeline_mode = #tpu.pipeline_mode<synchronous>, transform_indices = @transform_13, window_bounds = array<i64: 128, 1>}, {pipeline_mode = #tpu.pipeline_mode<synchronous>, transform_indices = @transform_14, window_bounds = array<i64: 128, 1>}, {pipeline_mode = #tpu.pipeline_mode<synchronous>, transform_indices = @transform_15, window_bounds = array<i64: 128, 8>}, {pipeline_mode = #tpu.pipeline_mode<synchronous>, transform_indices = @transform_16, window_bounds = array<i64: 128, 1>}, {pipeline_mode = #tpu.pipeline_mode<synchronous>, transform_indices = @transform_17, window_bounds = array<i64: 128, 1>}, {pipeline_mode = #tpu.pipeline_mode<synchronous>, transform_indices = @transform_18, window_bounds = array<i64: 6, 128>}, {pipeline_mode = #tpu.pipeline_mode<synchronous>, transform_indices = @transform_19, window_bounds = array<i64: 6, 1>}, {transform_indices = @transform_20, window_bounds = array<i64: 1, 6, 2>}, {transform_indices = @transform_21, window_bounds = array<i64: 1, 128, 2>}]} {
    %c0 = arith.constant 0 : index
    %c0_0 = arith.constant 0 : index
    %0 = vector.load %arg2[%c0, %c0_0] : memref<1x70xf32, #tpu.memory_space<vmem>>, vector<1x70xf32>
    %cst = arith.constant 5.000000e-01 : f32
    %1 = vector.broadcast %cst : f32 to vector<1x70xf32>
    %2 = arith.cmpf ogt, %0, %1 : vector<1x70xf32>
    %cst_1 = arith.constant 0.000000e+00 : bf16
    %3 = vector.broadcast %cst_1 : bf16 to vector<32x19xbf16>
    %c0_2 = arith.constant 0 : index
    %c109 = arith.constant 109 : index
    %4 = vector.load %arg23[%c0_2, %c109] : memref<32x217xbf16, #tpu.memory_space<vmem>>, vector<32x19xbf16>
    tpu.vector_store %arg23[%c0_2, %c109], %3 {strides = array<i32>} : memref<32x217xbf16, #tpu.memory_space<vmem>>, vector<32x19xbf16>,
    %cst_3 = arith.constant 0.000000e+00 : bf16
    %5 = vector.broadcast %cst_3 : bf16 to vector<32x19xbf16>
    %c0_4 = arith.constant 0 : index
    %c198 = arith.constant 198 : index
    %6 = vector.load %arg23[%c0_4, %c198] : memref<32x217xbf16, #tpu.memory_space<vmem>>, vector<32x19xbf16>
    tpu.vector_store %arg23[%c0_4, %c198], %5 {strides = array<i32>} : memref<32x217xbf16, #tpu.memory_space<vmem>>, vector<32x19xbf16>,
    %cst_5 = arith.constant 0xFF80 : bf16
    %7 = vector.broadcast %cst_5 : bf16 to vector<128x1xbf16>
    %c0_6 = arith.constant 0 : index
    %c127 = arith.constant 127 : index
    %8 = vector.load %arg25[%c0_6, %c127] : memref<128x199xbf16, #tpu.memory_space<vmem>>, vector<128x1xbf16>
    tpu.vector_store %arg25[%c0_6, %c127], %7 {strides = array<i32>} : memref<128x199xbf16, #tpu.memory_space<vmem>>, vector<128x1xbf16>,
    %cst_7 = arith.constant 0xFF80 : bf16
    %9 = vector.broadcast %cst_7 : bf16 to vector<128x1xbf16>
    %c0_8 = arith.constant 0 : index
    %c198_9 = arith.constant 198 : index
    %10 = vector.load %arg25[%c0_8, %c198_9] : memref<128x199xbf16, #tpu.memory_space<vmem>>, vector<128x1xbf16>
    tpu.vector_store %arg25[%c0_8, %c198_9], %9 {strides = array<i32>} : memref<128x199xbf16, #tpu.memory_space<vmem>>, vector<128x1xbf16>,
    %cst_10 = arith.constant 0.000000e+00 : bf16
    %11 = vector.broadcast %cst_10 : bf16 to vector<8x70xbf16>
    %c0_11 = arith.constant 0 : index
    %c0_12 = arith.constant 0 : index
    %12 = vector.load %arg26[%c0_11, %c0_12] : memref<8x70xbf16, #tpu.memory_space<vmem>>, vector<8x70xbf16>
    tpu.vector_store %arg26[%c0_11, %c0_12], %11 {strides = array<i32>} : memref<8x70xbf16, #tpu.memory_space<vmem>>, vector<8x70xbf16>,
    %c0_13 = arith.constant 0 : index
    %c0_14 = arith.constant 0 : index
    %c0_15 = arith.constant 0 : index
    %13 = vector.load %arg1[%c0_13, %c0_14, %c0_15] : memref<2x8x16xf32, #tpu.memory_space<vmem>>, vector<1x8x16xf32>
    %14 = vector.shape_cast %13 : vector<1x8x16xf32> to vector<8x16xf32>
    %15 = arith.cmpf one, %14, %14 : vector<8x16xf32>
    %cst_16 = arith.constant 1.000000e+00 : f32
    %cst_17 = arith.constant 0.000000e+00 : f32
    %16 = vector.broadcast %cst_16 : f32 to vector<8x16xf32>
    %17 = vector.broadcast %cst_17 : f32 to vector<8x16xf32>
    %18 = arith.select %15, %16, %17 : vector<8x16xi1>, vector<8x16xf32>
    %cst_18 = arith.constant dense<0xFF800000> : vector<16xf32>
    %19 = vector.multi_reduction <maximumf>, %18, %cst_18 [0] : vector<8x16xf32> to vector<16xf32>
    %cst_19 = arith.constant 0.000000e+00 : f32
    %20 = vector.broadcast %cst_19 : f32 to vector<16xf32>
    %21 = arith.cmpf ogt, %19, %20 : vector<16xf32>
    %22 = vector.shape_cast %21 : vector<16xi1> to vector<1x16xi1>
    %cst_20 = arith.constant 0.000000e+00 : f32
    %23 = vector.shape_cast %22 : vector<1x16xi1> to vector<1x16xi1>
    %24 = vector.broadcast %23 : vector<1x16xi1> to vector<8x16xi1>
    %25 = vector.broadcast %cst_20 : f32 to vector<8x16xf32>
    %26 = arith.select %24, %25, %14 : vector<8x16xi1>, vector<8x16xf32>
    %27 = arith.truncf %26 : vector<8x16xf32> to vector<8x16xbf16>
    %c0_21 = arith.constant 0 : index
    %c0_22 = arith.constant 0 : index
    %28 = vector.load %arg26[%c0_21, %c0_22] : memref<8x70xbf16, #tpu.memory_space<vmem>>, vector<8x16xbf16>
    tpu.vector_store %arg26[%c0_21, %c0_22], %27 {strides = array<i32>} : memref<8x70xbf16, #tpu.memory_space<vmem>>, vector<8x16xbf16>,
    %c1 = arith.constant 1 : index
    %c0_23 = arith.constant 0 : index
    %c0_24 = arith.constant 0 : index
    %29 = vector.load %arg1[%c1, %c0_23, %c0_24] : memref<2x8x16xf32, #tpu.memory_space<vmem>>, vector<1x8x16xf32>
    %30 = vector.shape_cast %29 : vector<1x8x16xf32> to vector<8x16xf32>
    %31 = arith.cmpf one, %30, %30 : vector<8x16xf32>
    %cst_25 = arith.constant 1.000000e+00 : f32
    %cst_26 = arith.constant 0.000000e+00 : f32
    %32 = vector.broadcast %cst_25 : f32 to vector<8x16xf32>
    %33 = vector.broadcast %cst_26 : f32 to vector<8x16xf32>
    %34 = arith.select %31, %32, %33 : vector<8x16xi1>, vector<8x16xf32>
    %cst_27 = arith.constant dense<0xFF800000> : vector<16xf32>
    %35 = vector.multi_reduction <maximumf>, %34, %cst_27 [0] : vector<8x16xf32> to vector<16xf32>
    %cst_28 = arith.constant 0.000000e+00 : f32
    %36 = vector.broadcast %cst_28 : f32 to vector<16xf32>
    %37 = arith.cmpf ogt, %35, %36 : vector<16xf32>
    %38 = vector.shape_cast %37 : vector<16xi1> to vector<1x16xi1>
    %cst_29 = arith.constant 0.000000e+00 : f32
    %39 = vector.shape_cast %38 : vector<1x16xi1> to vector<1x16xi1>
    %40 = vector.broadcast %39 : vector<1x16xi1> to vector<8x16xi1>
    %41 = vector.broadcast %cst_29 : f32 to vector<8x16xf32>
    %42 = arith.select %40, %41, %30 : vector<8x16xi1>, vector<8x16xf32>
    %43 = arith.truncf %42 : vector<8x16xf32> to vector<8x16xbf16>
    %c0_30 = arith.constant 0 : index
    %c54 = arith.constant 54 : index
    %44 = vector.load %arg26[%c0_30, %c54] : memref<8x70xbf16, #tpu.memory_space<vmem>>, vector<8x16xbf16>
    tpu.vector_store %arg26[%c0_30, %c54], %43 {strides = array<i32>} : memref<8x70xbf16, #tpu.memory_space<vmem>>, vector<8x16xbf16>,
    %c0_31 = arith.constant 0 : index
    %c0_32 = arith.constant 0 : index
    %45 = vector.load %arg26[%c0_31, %c0_32] : memref<8x70xbf16, #tpu.memory_space<vmem>>, vector<8x70xbf16>
    %c0_33 = arith.constant 0 : index
    %c0_34 = arith.constant 0 : index
    %46 = vector.load %arg4[%c0_33, %c0_34] : memref<32x8xbf16, #tpu.memory_space<vmem>>, vector<32x8xbf16>
    %cst_35 = arith.constant dense<0.000000e+00> : vector<32x70xf32>
    %47 = tpu.matmul %46, %45, %cst_35 {dimension_numbers = #tpu.dot_dimension_numbers<[1], [0], [0], [1], [0, 0, 1, 1], [], []>} : vector<32x8xbf16>, vector<8x70xbf16>, vector<32x70xf32> -> vector<32x70xf32>
    %cst_36 = arith.constant 0.000000e+00 : f32
    %48 = vector.shape_cast %2 : vector<1x70xi1> to vector<1x70xi1>
    %49 = vector.broadcast %48 : vector<1x70xi1> to vector<32x70xi1>
    %50 = vector.broadcast %cst_36 : f32 to vector<32x70xf32>
    %51 = arith.select %49, %47, %50 : vector<32x70xi1>, vector<32x70xf32>
    %52 = arith.truncf %51 : vector<32x70xf32> to vector<32x70xbf16>
    %c0_37 = arith.constant 0 : index
    %c128 = arith.constant 128 : index
    %53 = vector.load %arg23[%c0_37, %c128] : memref<32x217xbf16, #tpu.memory_space<vmem>>, vector<32x70xbf16>
    tpu.vector_store %arg23[%c0_37, %c128], %52 {strides = array<i32>} : memref<32x217xbf16, #tpu.memory_space<vmem>>, vector<32x70xbf16>,
    %cst_38 = arith.constant 0xFF800000 : f32
    %54 = arith.truncf %cst_38 : f32 to bf16
    %55 = vector.shape_cast %2 : vector<1x70xi1> to vector<1x70xi1>
    %56 = vector.broadcast %55 : vector<1x70xi1> to vector<8x70xi1>
    %57 = vector.broadcast %54 : bf16 to vector<8x70xbf16>
    %58 = arith.select %56, %45, %57 : vector<8x70xi1>, vector<8x70xbf16>
    %c0_39 = arith.constant 0 : index
    %c128_40 = arith.constant 128 : index
    %59 = vector.load %arg25[%c0_39, %c128_40] : memref<128x199xbf16, #tpu.memory_space<vmem>>, vector<8x70xbf16>
    tpu.vector_store %arg25[%c0_39, %c128_40], %58 {strides = array<i32>} : memref<128x199xbf16, #tpu.memory_space<vmem>>, vector<8x70xbf16>,
    %cst_41 = arith.constant 0.000000e+00 : f32
    %60 = vector.broadcast %cst_41 : f32 to vector<128x70xf32>
    %c0_42 = arith.constant 0 : index
    %c109_43 = arith.constant 109 : index
    %61 = vector.load %arg23[%c0_42, %c109_43] : memref<32x217xbf16, #tpu.memory_space<vmem>>, vector<32x70xbf16>
    %c0_44 = arith.constant 0 : index
    %c0_45 = arith.constant 0 : index
    %62 = vector.load %arg24[%c0_44, %c0_45] : memref<1376x70xbf16, #tpu.memory_space<vmem>>, vector<32x70xbf16>
    tpu.vector_store %arg24[%c0_44, %c0_45], %61 {strides = array<i32>} : memref<1376x70xbf16, #tpu.memory_space<vmem>>, vector<32x70xbf16>,
    %c0_46 = arith.constant 0 : index
    %c110 = arith.constant 110 : index
    %63 = vector.load %arg23[%c0_46, %c110] : memref<32x217xbf16, #tpu.memory_space<vmem>>, vector<32x70xbf16>
    %c32 = arith.constant 32 : index
    %c0_47 = arith.constant 0 : index
    %64 = vector.load %arg24[%c32, %c0_47] : memref<1376x70xbf16, #tpu.memory_space<vmem>>, vector<32x70xbf16>
    tpu.vector_store %arg24[%c32, %c0_47], %63 {strides = array<i32>} : memref<1376x70xbf16, #tpu.memory_space<vmem>>, vector<32x70xbf16>,
    %c0_48 = arith.constant 0 : index
    %c111 = arith.constant 111 : index
    %65 = vector.load %arg23[%c0_48, %c111] : memref<32x217xbf16, #tpu.memory_space<vmem>>, vector<32x70xbf16>
    %c64 = arith.constant 64 : index
    %c0_49 = arith.constant 0 : index
    %66 = vector.load %arg24[%c64, %c0_49] : memref<1376x70xbf16, #tpu.memory_space<vmem>>, vector<32x70xbf16>
    tpu.vector_store %arg24[%c64, %c0_49], %65 {strides = array<i32>} : memref<1376x70xbf16, #tpu.memory_space<vmem>>, vector<32x70xbf16>,
    %c0_50 = arith.constant 0 : index
    %c112 = arith.constant 112 : index
    %67 = vector.load %arg23[%c0_50, %c112] : memref<32x217xbf16, #tpu.memory_space<vmem>>, vector<32x70xbf16>
    %c96 = arith.constant 96 : index
    %c0_51 = arith.constant 0 : index
    %68 = vector.load %arg24[%c96, %c0_51] : memref<1376x70xbf16, #tpu.memory_space<vmem>>, vector<32x70xbf16>
    tpu.vector_store %arg24[%c96, %c0_51], %67 {strides = array<i32>} : memref<1376x70xbf16, #tpu.memory_space<vmem>>, vector<32x70xbf16>,
    %c0_52 = arith.constant 0 : index
    %c113 = arith.constant 113 : index
    %69 = vector.load %arg23[%c0_52, %c113] : memref<32x217xbf16, #tpu.memory_space<vmem>>, vector<32x70xbf16>
    %c128_53 = arith.constant 128 : index
    %c0_54 = arith.constant 0 : index
    %70 = vector.load %arg24[%c128_53, %c0_54] : memref<1376x70xbf16, #tpu.memory_space<vmem>>, vector<32x70xbf16>
    tpu.vector_store %arg24[%c128_53, %c0_54], %69 {strides = array<i32>} : memref<1376x70xbf16, #tpu.memory_space<vmem>>, vector<32x70xbf16>,
    %c0_55 = arith.constant 0 : index
    %c114 = arith.constant 114 : index
    %71 = vector.load %arg23[%c0_55, %c114] : memref<32x217xbf16, #tpu.memory_space<vmem>>, vector<32x70xbf16>
    %c160 = arith.constant 160 : index
    %c0_56 = arith.constant 0 : index
    %72 = vector.load %arg24[%c160, %c0_56] : memref<1376x70xbf16, #tpu.memory_space<vmem>>, vector<32x70xbf16>
    tpu.vector_store %arg24[%c160, %c0_56], %71 {strides = array<i32>} : memref<1376x70xbf16, #tpu.memory_space<vmem>>, vector<32x70xbf16>,
    %c0_57 = arith.constant 0 : index
    %c115 = arith.constant 115 : index
    %73 = vector.load %arg23[%c0_57, %c115] : memref<32x217xbf16, #tpu.memory_space<vmem>>, vector<32x70xbf16>
    %c192 = arith.constant 192 : index
    %c0_58 = arith.constant 0 : index
    %74 = vector.load %arg24[%c192, %c0_58] : memref<1376x70xbf16, #tpu.memory_space<vmem>>, vector<32x70xbf16>
    tpu.vector_store %arg24[%c192, %c0_58], %73 {strides = array<i32>} : memref<1376x70xbf16, #tpu.memory_space<vmem>>, vector<32x70xbf16>,
    %c0_59 = arith.constant 0 : index
    %c116 = arith.constant 116 : index
    %75 = vector.load %arg23[%c0_59, %c116] : memref<32x217xbf16, #tpu.memory_space<vmem>>, vector<32x70xbf16>
    %c224 = arith.constant 224 : index
    %c0_60 = arith.constant 0 : index
    %76 = vector.load %arg24[%c224, %c0_60] : memref<1376x70xbf16, #tpu.memory_space<vmem>>, vector<32x70xbf16>
    tpu.vector_store %arg24[%c224, %c0_60], %75 {strides = array<i32>} : memref<1376x70xbf16, #tpu.memory_space<vmem>>, vector<32x70xbf16>,
    %c0_61 = arith.constant 0 : index
    %c117 = arith.constant 117 : index
    %77 = vector.load %arg23[%c0_61, %c117] : memref<32x217xbf16, #tpu.memory_space<vmem>>, vector<32x70xbf16>
    %c256 = arith.constant 256 : index
    %c0_62 = arith.constant 0 : index
    %78 = vector.load %arg24[%c256, %c0_62] : memref<1376x70xbf16, #tpu.memory_space<vmem>>, vector<32x70xbf16>
    tpu.vector_store %arg24[%c256, %c0_62], %77 {strides = array<i32>} : memref<1376x70xbf16, #tpu.memory_space<vmem>>, vector<32x70xbf16>,
    %c0_63 = arith.constant 0 : index
    %c118 = arith.constant 118 : index
    %79 = vector.load %arg23[%c0_63, %c118] : memref<32x217xbf16, #tpu.memory_space<vmem>>, vector<32x70xbf16>
    %c288 = arith.constant 288 : index
    %c0_64 = arith.constant 0 : index
    %80 = vector.load %arg24[%c288, %c0_64] : memref<1376x70xbf16, #tpu.memory_space<vmem>>, vector<32x70xbf16>
    tpu.vector_store %arg24[%c288, %c0_64], %79 {strides = array<i32>} : memref<1376x70xbf16, #tpu.memory_space<vmem>>, vector<32x70xbf16>,
    %c0_65 = arith.constant 0 : index
    %c119 = arith.constant 119 : index
    %81 = vector.load %arg23[%c0_65, %c119] : memref<32x217xbf16, #tpu.memory_space<vmem>>, vector<32x70xbf16>
    %c320 = arith.constant 320 : index
    %c0_66 = arith.constant 0 : index
    %82 = vector.load %arg24[%c320, %c0_66] : memref<1376x70xbf16, #tpu.memory_space<vmem>>, vector<32x70xbf16>
    tpu.vector_store %arg24[%c320, %c0_66], %81 {strides = array<i32>} : memref<1376x70xbf16, #tpu.memory_space<vmem>>, vector<32x70xbf16>,
    %c0_67 = arith.constant 0 : index
    %c120 = arith.constant 120 : index
    %83 = vector.load %arg23[%c0_67, %c120] : memref<32x217xbf16, #tpu.memory_space<vmem>>, vector<32x70xbf16>
    %c352 = arith.constant 352 : index
    %c0_68 = arith.constant 0 : index
    %84 = vector.load %arg24[%c352, %c0_68] : memref<1376x70xbf16, #tpu.memory_space<vmem>>, vector<32x70xbf16>
    tpu.vector_store %arg24[%c352, %c0_68], %83 {strides = array<i32>} : memref<1376x70xbf16, #tpu.memory_space<vmem>>, vector<32x70xbf16>,
    %c0_69 = arith.constant 0 : index
    %c121 = arith.constant 121 : index
    %85 = vector.load %arg23[%c0_69, %c121] : memref<32x217xbf16, #tpu.memory_space<vmem>>, vector<32x70xbf16>
    %c384 = arith.constant 384 : index
    %c0_70 = arith.constant 0 : index
    %86 = vector.load %arg24[%c384, %c0_70] : memref<1376x70xbf16, #tpu.memory_space<vmem>>, vector<32x70xbf16>
    tpu.vector_store %arg24[%c384, %c0_70], %85 {strides = array<i32>} : memref<1376x70xbf16, #tpu.memory_space<vmem>>, vector<32x70xbf16>,
    %c0_71 = arith.constant 0 : index
    %c122 = arith.constant 122 : index
    %87 = vector.load %arg23[%c0_71, %c122] : memref<32x217xbf16, #tpu.memory_space<vmem>>, vector<32x70xbf16>
    %c416 = arith.constant 416 : index
    %c0_72 = arith.constant 0 : index
    %88 = vector.load %arg24[%c416, %c0_72] : memref<1376x70xbf16, #tpu.memory_space<vmem>>, vector<32x70xbf16>
    tpu.vector_store %arg24[%c416, %c0_72], %87 {strides = array<i32>} : memref<1376x70xbf16, #tpu.memory_space<vmem>>, vector<32x70xbf16>,
    %c0_73 = arith.constant 0 : index
    %c123 = arith.constant 123 : index
    %89 = vector.load %arg23[%c0_73, %c123] : memref<32x217xbf16, #tpu.memory_space<vmem>>, vector<32x70xbf16>
    %c448 = arith.constant 448 : index
    %c0_74 = arith.constant 0 : index
    %90 = vector.load %arg24[%c448, %c0_74] : memref<1376x70xbf16, #tpu.memory_space<vmem>>, vector<32x70xbf16>
    tpu.vector_store %arg24[%c448, %c0_74], %89 {strides = array<i32>} : memref<1376x70xbf16, #tpu.memory_space<vmem>>, vector<32x70xbf16>,
    %c0_75 = arith.constant 0 : index
    %c124 = arith.constant 124 : index
    %91 = vector.load %arg23[%c0_75, %c124] : memref<32x217xbf16, #tpu.memory_space<vmem>>, vector<32x70xbf16>
    %c480 = arith.constant 480 : index
    %c0_76 = arith.constant 0 : index
    %92 = vector.load %arg24[%c480, %c0_76] : memref<1376x70xbf16, #tpu.memory_space<vmem>>, vector<32x70xbf16>
    tpu.vector_store %arg24[%c480, %c0_76], %91 {strides = array<i32>} : memref<1376x70xbf16, #tpu.memory_space<vmem>>, vector<32x70xbf16>,
    %c0_77 = arith.constant 0 : index
    %c0_78 = arith.constant 0 : index
    %93 = vector.load %arg5[%c0_77, %c0_78] : memref<128x1256xbf16, #tpu.memory_space<vmem>>, vector<128x512xbf16>
    %c0_79 = arith.constant 0 : index
    %c0_80 = arith.constant 0 : index
    %94 = vector.load %arg24[%c0_79, %c0_80] : memref<1376x70xbf16, #tpu.memory_space<vmem>>, vector<512x70xbf16>
    %cst_81 = arith.constant dense<0.000000e+00> : vector<128x70xf32>
    %95 = tpu.matmul %93, %94, %cst_81 {dimension_numbers = #tpu.dot_dimension_numbers<[1], [0], [0], [1], [0, 0, 1, 1], [], []>} : vector<128x512xbf16>, vector<512x70xbf16>, vector<128x70xf32> -> vector<128x70xf32>
    %96 = arith.addf %60, %95 : vector<128x70xf32>
    %c0_82 = arith.constant 0 : index
    %c125 = arith.constant 125 : index
    %97 = vector.load %arg23[%c0_82, %c125] : memref<32x217xbf16, #tpu.memory_space<vmem>>, vector<32x70xbf16>
    %c512 = arith.constant 512 : index
    %c0_83 = arith.constant 0 : index
    %98 = vector.load %arg24[%c512, %c0_83] : memref<1376x70xbf16, #tpu.memory_space<vmem>>, vector<32x70xbf16>
    tpu.vector_store %arg24[%c512, %c0_83], %97 {strides = array<i32>} : memref<1376x70xbf16, #tpu.memory_space<vmem>>, vector<32x70xbf16>,
    %c0_84 = arith.constant 0 : index
    %c126 = arith.constant 126 : index
    %99 = vector.load %arg23[%c0_84, %c126] : memref<32x217xbf16, #tpu.memory_space<vmem>>, vector<32x70xbf16>
    %c544 = arith.constant 544 : index
    %c0_85 = arith.constant 0 : index
    %100 = vector.load %arg24[%c544, %c0_85] : memref<1376x70xbf16, #tpu.memory_space<vmem>>, vector<32x70xbf16>
    tpu.vector_store %arg24[%c544, %c0_85], %99 {strides = array<i32>} : memref<1376x70xbf16, #tpu.memory_space<vmem>>, vector<32x70xbf16>,
    %c0_86 = arith.constant 0 : index
    %c127_87 = arith.constant 127 : index
    %101 = vector.load %arg23[%c0_86, %c127_87] : memref<32x217xbf16, #tpu.memory_space<vmem>>, vector<32x70xbf16>
    %c576 = arith.constant 576 : index
    %c0_88 = arith.constant 0 : index
    %102 = vector.load %arg24[%c576, %c0_88] : memref<1376x70xbf16, #tpu.memory_space<vmem>>, vector<32x70xbf16>
    tpu.vector_store %arg24[%c576, %c0_88], %101 {strides = array<i32>} : memref<1376x70xbf16, #tpu.memory_space<vmem>>, vector<32x70xbf16>,
    %c0_89 = arith.constant 0 : index
    %c128_90 = arith.constant 128 : index
    %103 = vector.load %arg23[%c0_89, %c128_90] : memref<32x217xbf16, #tpu.memory_space<vmem>>, vector<32x70xbf16>
    %c608 = arith.constant 608 : index
    %c0_91 = arith.constant 0 : index
    %104 = vector.load %arg24[%c608, %c0_91] : memref<1376x70xbf16, #tpu.memory_space<vmem>>, vector<32x70xbf16>
    tpu.vector_store %arg24[%c608, %c0_91], %103 {strides = array<i32>} : memref<1376x70xbf16, #tpu.memory_space<vmem>>, vector<32x70xbf16>,
    %c0_92 = arith.constant 0 : index
    %c129 = arith.constant 129 : index
    %105 = vector.load %arg23[%c0_92, %c129] : memref<32x217xbf16, #tpu.memory_space<vmem>>, vector<32x70xbf16>
    %c640 = arith.constant 640 : index
    %c0_93 = arith.constant 0 : index
    %106 = vector.load %arg24[%c640, %c0_93] : memref<1376x70xbf16, #tpu.memory_space<vmem>>, vector<32x70xbf16>
    tpu.vector_store %arg24[%c640, %c0_93], %105 {strides = array<i32>} : memref<1376x70xbf16, #tpu.memory_space<vmem>>, vector<32x70xbf16>,
    %c0_94 = arith.constant 0 : index
    %c130 = arith.constant 130 : index
    %107 = vector.load %arg23[%c0_94, %c130] : memref<32x217xbf16, #tpu.memory_space<vmem>>, vector<32x70xbf16>
    %c672 = arith.constant 672 : index
    %c0_95 = arith.constant 0 : index
    %108 = vector.load %arg24[%c672, %c0_95] : memref<1376x70xbf16, #tpu.memory_space<vmem>>, vector<32x70xbf16>
    tpu.vector_store %arg24[%c672, %c0_95], %107 {strides = array<i32>} : memref<1376x70xbf16, #tpu.memory_space<vmem>>, vector<32x70xbf16>,
    %c0_96 = arith.constant 0 : index
    %c131 = arith.constant 131 : index
    %109 = vector.load %arg23[%c0_96, %c131] : memref<32x217xbf16, #tpu.memory_space<vmem>>, vector<32x70xbf16>
    %c704 = arith.constant 704 : index
    %c0_97 = arith.constant 0 : index
    %110 = vector.load %arg24[%c704, %c0_97] : memref<1376x70xbf16, #tpu.memory_space<vmem>>, vector<32x70xbf16>
    tpu.vector_store %arg24[%c704, %c0_97], %109 {strides = array<i32>} : memref<1376x70xbf16, #tpu.memory_space<vmem>>, vector<32x70xbf16>,
    %c0_98 = arith.constant 0 : index
    %c132 = arith.constant 132 : index
    %111 = vector.load %arg23[%c0_98, %c132] : memref<32x217xbf16, #tpu.memory_space<vmem>>, vector<32x70xbf16>
    %c736 = arith.constant 736 : index
    %c0_99 = arith.constant 0 : index
    %112 = vector.load %arg24[%c736, %c0_99] : memref<1376x70xbf16, #tpu.memory_space<vmem>>, vector<32x70xbf16>
    tpu.vector_store %arg24[%c736, %c0_99], %111 {strides = array<i32>} : memref<1376x70xbf16, #tpu.memory_space<vmem>>, vector<32x70xbf16>,
    %c0_100 = arith.constant 0 : index
    %c133 = arith.constant 133 : index
    %113 = vector.load %arg23[%c0_100, %c133] : memref<32x217xbf16, #tpu.memory_space<vmem>>, vector<32x70xbf16>
    %c768 = arith.constant 768 : index
    %c0_101 = arith.constant 0 : index
    %114 = vector.load %arg24[%c768, %c0_101] : memref<1376x70xbf16, #tpu.memory_space<vmem>>, vector<32x70xbf16>
    tpu.vector_store %arg24[%c768, %c0_101], %113 {strides = array<i32>} : memref<1376x70xbf16, #tpu.memory_space<vmem>>, vector<32x70xbf16>,
    %c0_102 = arith.constant 0 : index
    %c134 = arith.constant 134 : index
    %115 = vector.load %arg23[%c0_102, %c134] : memref<32x217xbf16, #tpu.memory_space<vmem>>, vector<32x70xbf16>
    %c800 = arith.constant 800 : index
    %c0_103 = arith.constant 0 : index
    %116 = vector.load %arg24[%c800, %c0_103] : memref<1376x70xbf16, #tpu.memory_space<vmem>>, vector<32x70xbf16>
    tpu.vector_store %arg24[%c800, %c0_103], %115 {strides = array<i32>} : memref<1376x70xbf16, #tpu.memory_space<vmem>>, vector<32x70xbf16>,
    %c0_104 = arith.constant 0 : index
    %c135 = arith.constant 135 : index
    %117 = vector.load %arg23[%c0_104, %c135] : memref<32x217xbf16, #tpu.memory_space<vmem>>, vector<32x70xbf16>
    %c832 = arith.constant 832 : index
    %c0_105 = arith.constant 0 : index
    %118 = vector.load %arg24[%c832, %c0_105] : memref<1376x70xbf16, #tpu.memory_space<vmem>>, vector<32x70xbf16>
    tpu.vector_store %arg24[%c832, %c0_105], %117 {strides = array<i32>} : memref<1376x70xbf16, #tpu.memory_space<vmem>>, vector<32x70xbf16>,
    %c0_106 = arith.constant 0 : index
    %c136 = arith.constant 136 : index
    %119 = vector.load %arg23[%c0_106, %c136] : memref<32x217xbf16, #tpu.memory_space<vmem>>, vector<32x70xbf16>
    %c864 = arith.constant 864 : index
    %c0_107 = arith.constant 0 : index
    %120 = vector.load %arg24[%c864, %c0_107] : memref<1376x70xbf16, #tpu.memory_space<vmem>>, vector<32x70xbf16>
    tpu.vector_store %arg24[%c864, %c0_107], %119 {strides = array<i32>} : memref<1376x70xbf16, #tpu.memory_space<vmem>>, vector<32x70xbf16>,
    %c0_108 = arith.constant 0 : index
    %c137 = arith.constant 137 : index
    %121 = vector.load %arg23[%c0_108, %c137] : memref<32x217xbf16, #tpu.memory_space<vmem>>, vector<32x70xbf16>
    %c896 = arith.constant 896 : index
    %c0_109 = arith.constant 0 : index
    %122 = vector.load %arg24[%c896, %c0_109] : memref<1376x70xbf16, #tpu.memory_space<vmem>>, vector<32x70xbf16>
    tpu.vector_store %arg24[%c896, %c0_109], %121 {strides = array<i32>} : memref<1376x70xbf16, #tpu.memory_space<vmem>>, vector<32x70xbf16>,
    %c0_110 = arith.constant 0 : index
    %c138 = arith.constant 138 : index
    %123 = vector.load %arg23[%c0_110, %c138] : memref<32x217xbf16, #tpu.memory_space<vmem>>, vector<32x70xbf16>
    %c928 = arith.constant 928 : index
    %c0_111 = arith.constant 0 : index
    %124 = vector.load %arg24[%c928, %c0_111] : memref<1376x70xbf16, #tpu.memory_space<vmem>>, vector<32x70xbf16>
    tpu.vector_store %arg24[%c928, %c0_111], %123 {strides = array<i32>} : memref<1376x70xbf16, #tpu.memory_space<vmem>>, vector<32x70xbf16>,
    %c0_112 = arith.constant 0 : index
    %c139 = arith.constant 139 : index
    %125 = vector.load %arg23[%c0_112, %c139] : memref<32x217xbf16, #tpu.memory_space<vmem>>, vector<32x70xbf16>
    %c960 = arith.constant 960 : index
    %c0_113 = arith.constant 0 : index
    %126 = vector.load %arg24[%c960, %c0_113] : memref<1376x70xbf16, #tpu.memory_space<vmem>>, vector<32x70xbf16>
    tpu.vector_store %arg24[%c960, %c0_113], %125 {strides = array<i32>} : memref<1376x70xbf16, #tpu.memory_space<vmem>>, vector<32x70xbf16>,
    %c0_114 = arith.constant 0 : index
    %c140 = arith.constant 140 : index
    %127 = vector.load %arg23[%c0_114, %c140] : memref<32x217xbf16, #tpu.memory_space<vmem>>, vector<32x70xbf16>
    %c992 = arith.constant 992 : index
    %c0_115 = arith.constant 0 : index
    %128 = vector.load %arg24[%c992, %c0_115] : memref<1376x70xbf16, #tpu.memory_space<vmem>>, vector<32x70xbf16>
    tpu.vector_store %arg24[%c992, %c0_115], %127 {strides = array<i32>} : memref<1376x70xbf16, #tpu.memory_space<vmem>>, vector<32x70xbf16>,
    %c0_116 = arith.constant 0 : index
    %c512_117 = arith.constant 512 : index
    %129 = vector.load %arg5[%c0_116, %c512_117] : memref<128x1256xbf16, #tpu.memory_space<vmem>>, vector<128x512xbf16>
    %c512_118 = arith.constant 512 : index
    %c0_119 = arith.constant 0 : index
    %130 = vector.load %arg24[%c512_118, %c0_119] : memref<1376x70xbf16, #tpu.memory_space<vmem>>, vector<512x70xbf16>
    %cst_120 = arith.constant dense<0.000000e+00> : vector<128x70xf32>
    %131 = tpu.matmul %129, %130, %cst_120 {dimension_numbers = #tpu.dot_dimension_numbers<[1], [0], [0], [1], [0, 0, 1, 1], [], []>} : vector<128x512xbf16>, vector<512x70xbf16>, vector<128x70xf32> -> vector<128x70xf32>
    %132 = arith.addf %96, %131 : vector<128x70xf32>
    %c0_121 = arith.constant 0 : index
    %c141 = arith.constant 141 : index
    %133 = vector.load %arg23[%c0_121, %c141] : memref<32x217xbf16, #tpu.memory_space<vmem>>, vector<32x70xbf16>
    %c1024 = arith.constant 1024 : index
    %c0_122 = arith.constant 0 : index
    %134 = vector.load %arg24[%c1024, %c0_122] : memref<1376x70xbf16, #tpu.memory_space<vmem>>, vector<32x70xbf16>
    tpu.vector_store %arg24[%c1024, %c0_122], %133 {strides = array<i32>} : memref<1376x70xbf16, #tpu.memory_space<vmem>>, vector<32x70xbf16>,
    %c0_123 = arith.constant 0 : index
    %c142 = arith.constant 142 : index
    %135 = vector.load %arg23[%c0_123, %c142] : memref<32x217xbf16, #tpu.memory_space<vmem>>, vector<32x70xbf16>
    %c1056 = arith.constant 1056 : index
    %c0_124 = arith.constant 0 : index
    %136 = vector.load %arg24[%c1056, %c0_124] : memref<1376x70xbf16, #tpu.memory_space<vmem>>, vector<32x70xbf16>
    tpu.vector_store %arg24[%c1056, %c0_124], %135 {strides = array<i32>} : memref<1376x70xbf16, #tpu.memory_space<vmem>>, vector<32x70xbf16>,
    %c0_125 = arith.constant 0 : index
    %c143 = arith.constant 143 : index
    %137 = vector.load %arg23[%c0_125, %c143] : memref<32x217xbf16, #tpu.memory_space<vmem>>, vector<32x70xbf16>
    %c1088 = arith.constant 1088 : index
    %c0_126 = arith.constant 0 : index
    %138 = vector.load %arg24[%c1088, %c0_126] : memref<1376x70xbf16, #tpu.memory_space<vmem>>, vector<32x70xbf16>
    tpu.vector_store %arg24[%c1088, %c0_126], %137 {strides = array<i32>} : memref<1376x70xbf16, #tpu.memory_space<vmem>>, vector<32x70xbf16>,
    %c0_127 = arith.constant 0 : index
    %c144 = arith.constant 144 : index
    %139 = vector.load %arg23[%c0_127, %c144] : memref<32x217xbf16, #tpu.memory_space<vmem>>, vector<32x70xbf16>
    %c1120 = arith.constant 1120 : index
    %c0_128 = arith.constant 0 : index
    %140 = vector.load %arg24[%c1120, %c0_128] : memref<1376x70xbf16, #tpu.memory_space<vmem>>, vector<32x70xbf16>
    tpu.vector_store %arg24[%c1120, %c0_128], %139 {strides = array<i32>} : memref<1376x70xbf16, #tpu.memory_space<vmem>>, vector<32x70xbf16>,
    %c0_129 = arith.constant 0 : index
    %c145 = arith.constant 145 : index
    %141 = vector.load %arg23[%c0_129, %c145] : memref<32x217xbf16, #tpu.memory_space<vmem>>, vector<32x70xbf16>
    %c1152 = arith.constant 1152 : index
    %c0_130 = arith.constant 0 : index
    %142 = vector.load %arg24[%c1152, %c0_130] : memref<1376x70xbf16, #tpu.memory_space<vmem>>, vector<32x70xbf16>
    tpu.vector_store %arg24[%c1152, %c0_130], %141 {strides = array<i32>} : memref<1376x70xbf16, #tpu.memory_space<vmem>>, vector<32x70xbf16>,
    %c0_131 = arith.constant 0 : index
    %c146 = arith.constant 146 : index
    %143 = vector.load %arg23[%c0_131, %c146] : memref<32x217xbf16, #tpu.memory_space<vmem>>, vector<32x70xbf16>
    %c1184 = arith.constant 1184 : index
    %c0_132 = arith.constant 0 : index
    %144 = vector.load %arg24[%c1184, %c0_132] : memref<1376x70xbf16, #tpu.memory_space<vmem>>, vector<32x70xbf16>
    tpu.vector_store %arg24[%c1184, %c0_132], %143 {strides = array<i32>} : memref<1376x70xbf16, #tpu.memory_space<vmem>>, vector<32x70xbf16>,
    %c0_133 = arith.constant 0 : index
    %c147 = arith.constant 147 : index
    %145 = vector.load %arg23[%c0_133, %c147] : memref<32x217xbf16, #tpu.memory_space<vmem>>, vector<32x70xbf16>
    %c1216 = arith.constant 1216 : index
    %c0_134 = arith.constant 0 : index
    %146 = vector.load %arg24[%c1216, %c0_134] : memref<1376x70xbf16, #tpu.memory_space<vmem>>, vector<32x70xbf16>
    tpu.vector_store %arg24[%c1216, %c0_134], %145 {strides = array<i32>} : memref<1376x70xbf16, #tpu.memory_space<vmem>>, vector<32x70xbf16>,
    %c0_135 = arith.constant 0 : index
    %c1024_136 = arith.constant 1024 : index
    %147 = vector.load %arg5[%c0_135, %c1024_136] : memref<128x1256xbf16, #tpu.memory_space<vmem>>, vector<128x224xbf16>
    %c1024_137 = arith.constant 1024 : index
    %c0_138 = arith.constant 0 : index
    %148 = vector.load %arg24[%c1024_137, %c0_138] : memref<1376x70xbf16, #tpu.memory_space<vmem>>, vector<224x70xbf16>
    %cst_139 = arith.constant dense<0.000000e+00> : vector<128x70xf32>
    %149 = tpu.matmul %147, %148, %cst_139 {dimension_numbers = #tpu.dot_dimension_numbers<[1], [0], [0], [1], [0, 0, 1, 1], [], []>} : vector<128x224xbf16>, vector<224x70xbf16>, vector<128x70xf32> -> vector<128x70xf32>
    %150 = arith.addf %132, %149 : vector<128x70xf32>
    %c0_140 = arith.constant 0 : index
    %c127_141 = arith.constant 127 : index
    %151 = vector.load %arg25[%c0_140, %c127_141] : memref<128x199xbf16, #tpu.memory_space<vmem>>, vector<8x70xbf16>
    %c0_142 = arith.constant 0 : index
    %c128_143 = arith.constant 128 : index
    %152 = vector.load %arg25[%c0_142, %c128_143] : memref<128x199xbf16, #tpu.memory_space<vmem>>, vector<8x70xbf16>
    %153 = arith.maximumf %151, %152 : vector<8x70xbf16>
    %c0_144 = arith.constant 0 : index
    %c129_145 = arith.constant 129 : index
    %154 = vector.load %arg25[%c0_144, %c129_145] : memref<128x199xbf16, #tpu.memory_space<vmem>>, vector<8x70xbf16>
    %155 = arith.maximumf %153, %154 : vector<8x70xbf16>
    %cst_146 = arith.constant 0.000000e+00 : f32
    %156 = arith.truncf %cst_146 : f32 to bf16
    %157 = vector.shape_cast %2 : vector<1x70xi1> to vector<1x70xi1>
    %158 = vector.broadcast %157 : vector<1x70xi1> to vector<8x70xi1>
    %159 = vector.broadcast %156 : bf16 to vector<8x70xbf16>
    %160 = arith.select %158, %155, %159 : vector<8x70xi1>, vector<8x70xbf16>
    %c1248 = arith.constant 1248 : index
    %c0_147 = arith.constant 0 : index
    %161 = vector.load %arg24[%c1248, %c0_147] : memref<1376x70xbf16, #tpu.memory_space<vmem>>, vector<8x70xbf16>
    tpu.vector_store %arg24[%c1248, %c0_147], %160 {strides = array<i32>} : memref<1376x70xbf16, #tpu.memory_space<vmem>>, vector<8x70xbf16>,
    %c0_148 = arith.constant 0 : index
    %c1248_149 = arith.constant 1248 : index
    %162 = vector.load %arg5[%c0_148, %c1248_149] : memref<128x1256xbf16, #tpu.memory_space<vmem>>, vector<128x8xbf16>
    %c1248_150 = arith.constant 1248 : index
    %c0_151 = arith.constant 0 : index
    %163 = vector.load %arg24[%c1248_150, %c0_151] : memref<1376x70xbf16, #tpu.memory_space<vmem>>, vector<8x70xbf16>
    %cst_152 = arith.constant dense<0.000000e+00> : vector<128x70xf32>
    %164 = tpu.matmul %162, %163, %cst_152 {dimension_numbers = #tpu.dot_dimension_numbers<[1], [0], [0], [1], [0, 0, 1, 1], [], []>} : vector<128x8xbf16>, vector<8x70xbf16>, vector<128x70xf32> -> vector<128x70xf32>
    %165 = arith.addf %150, %164 : vector<128x70xf32>
    %c0_153 = arith.constant 0 : index
    %c0_154 = arith.constant 0 : index
    %166 = vector.load %arg6[%c0_153, %c0_154] : memref<128x1xf32, #tpu.memory_space<vmem>>, vector<128x1xf32>
    %167 = vector.broadcast %166 : vector<128x1xf32> to vector<128x70xf32>
    %168 = arith.mulf %165, %167 : vector<128x70xf32>
    %c0_155 = arith.constant 0 : index
    %c0_156 = arith.constant 0 : index
    %169 = vector.load %arg7[%c0_155, %c0_156] : memref<128x1xf32, #tpu.memory_space<vmem>>, vector<128x1xf32>
    %170 = vector.broadcast %169 : vector<128x1xf32> to vector<128x70xf32>
    %171 = arith.addf %168, %170 : vector<128x70xf32>
    %cst_157 = arith.constant 0.000000e+00 : f32
    %172 = vector.broadcast %cst_157 : f32 to vector<128x70xf32>
    %173 = arith.maximumf %171, %172 : vector<128x70xf32>
    %174 = arith.truncf %173 : vector<128x70xf32> to vector<128x70xbf16>
    %c0_158 = arith.constant 0 : index
    %c0_159 = arith.constant 0 : index
    %175 = vector.load %arg8[%c0_158, %c0_159] : memref<32x128xbf16, #tpu.memory_space<vmem>>, vector<32x128xbf16>
    %cst_160 = arith.constant dense<0.000000e+00> : vector<32x70xf32>
    %176 = tpu.matmul %175, %174, %cst_160 {dimension_numbers = #tpu.dot_dimension_numbers<[1], [0], [0], [1], [0, 0, 1, 1], [], []>} : vector<32x128xbf16>, vector<128x70xbf16>, vector<32x70xf32> -> vector<32x70xf32>
    %cst_161 = arith.constant 0.000000e+00 : f32
    %177 = vector.shape_cast %2 : vector<1x70xi1> to vector<1x70xi1>
    %178 = vector.broadcast %177 : vector<1x70xi1> to vector<32x70xi1>
    %179 = vector.broadcast %cst_161 : f32 to vector<32x70xf32>
    %180 = arith.select %178, %176, %179 : vector<32x70xi1>, vector<32x70xf32>
    %181 = arith.truncf %180 : vector<32x70xf32> to vector<32x70xbf16>
    %c0_162 = arith.constant 0 : index
    %c128_163 = arith.constant 128 : index
    %182 = vector.load %arg23[%c0_162, %c128_163] : memref<32x217xbf16, #tpu.memory_space<vmem>>, vector<32x70xbf16>
    tpu.vector_store %arg23[%c0_162, %c128_163], %181 {strides = array<i32>} : memref<32x217xbf16, #tpu.memory_space<vmem>>, vector<32x70xbf16>,
    %cst_164 = arith.constant 0xFF800000 : f32
    %183 = arith.truncf %cst_164 : f32 to bf16
    %184 = vector.shape_cast %2 : vector<1x70xi1> to vector<1x70xi1>
    %185 = vector.broadcast %184 : vector<1x70xi1> to vector<128x70xi1>
    %186 = vector.broadcast %183 : bf16 to vector<128x70xbf16>
    %187 = arith.select %185, %174, %186 : vector<128x70xi1>, vector<128x70xbf16>
    %c0_165 = arith.constant 0 : index
    %c128_166 = arith.constant 128 : index
    %188 = vector.load %arg25[%c0_165, %c128_166] : memref<128x199xbf16, #tpu.memory_space<vmem>>, vector<128x70xbf16>
    tpu.vector_store %arg25[%c0_165, %c128_166], %187 {strides = array<i32>} : memref<128x199xbf16, #tpu.memory_space<vmem>>, vector<128x70xbf16>,
    %cst_167 = arith.constant 0.000000e+00 : f32
    %189 = vector.broadcast %cst_167 : f32 to vector<128x70xf32>
    %c0_168 = arith.constant 0 : index
    %c109_169 = arith.constant 109 : index
    %190 = vector.load %arg23[%c0_168, %c109_169] : memref<32x217xbf16, #tpu.memory_space<vmem>>, vector<32x70xbf16>
    %c0_170 = arith.constant 0 : index
    %c0_171 = arith.constant 0 : index
    %191 = vector.load %arg24[%c0_170, %c0_171] : memref<1376x70xbf16, #tpu.memory_space<vmem>>, vector<32x70xbf16>
    tpu.vector_store %arg24[%c0_170, %c0_171], %190 {strides = array<i32>} : memref<1376x70xbf16, #tpu.memory_space<vmem>>, vector<32x70xbf16>,
    %c0_172 = arith.constant 0 : index
    %c110_173 = arith.constant 110 : index
    %192 = vector.load %arg23[%c0_172, %c110_173] : memref<32x217xbf16, #tpu.memory_space<vmem>>, vector<32x70xbf16>
    %c32_174 = arith.constant 32 : index
    %c0_175 = arith.constant 0 : index
    %193 = vector.load %arg24[%c32_174, %c0_175] : memref<1376x70xbf16, #tpu.memory_space<vmem>>, vector<32x70xbf16>
    tpu.vector_store %arg24[%c32_174, %c0_175], %192 {strides = array<i32>} : memref<1376x70xbf16, #tpu.memory_space<vmem>>, vector<32x70xbf16>,
    %c0_176 = arith.constant 0 : index
    %c111_177 = arith.constant 111 : index
    %194 = vector.load %arg23[%c0_176, %c111_177] : memref<32x217xbf16, #tpu.memory_space<vmem>>, vector<32x70xbf16>
    %c64_178 = arith.constant 64 : index
    %c0_179 = arith.constant 0 : index
    %195 = vector.load %arg24[%c64_178, %c0_179] : memref<1376x70xbf16, #tpu.memory_space<vmem>>, vector<32x70xbf16>
    tpu.vector_store %arg24[%c64_178, %c0_179], %194 {strides = array<i32>} : memref<1376x70xbf16, #tpu.memory_space<vmem>>, vector<32x70xbf16>,
    %c0_180 = arith.constant 0 : index
    %c112_181 = arith.constant 112 : index
    %196 = vector.load %arg23[%c0_180, %c112_181] : memref<32x217xbf16, #tpu.memory_space<vmem>>, vector<32x70xbf16>
    %c96_182 = arith.constant 96 : index
    %c0_183 = arith.constant 0 : index
    %197 = vector.load %arg24[%c96_182, %c0_183] : memref<1376x70xbf16, #tpu.memory_space<vmem>>, vector<32x70xbf16>
    tpu.vector_store %arg24[%c96_182, %c0_183], %196 {strides = array<i32>} : memref<1376x70xbf16, #tpu.memory_space<vmem>>, vector<32x70xbf16>,
    %c0_184 = arith.constant 0 : index
    %c113_185 = arith.constant 113 : index
    %198 = vector.load %arg23[%c0_184, %c113_185] : memref<32x217xbf16, #tpu.memory_space<vmem>>, vector<32x70xbf16>
    %c128_186 = arith.constant 128 : index
    %c0_187 = arith.constant 0 : index
    %199 = vector.load %arg24[%c128_186, %c0_187] : memref<1376x70xbf16, #tpu.memory_space<vmem>>, vector<32x70xbf16>
    tpu.vector_store %arg24[%c128_186, %c0_187], %198 {strides = array<i32>} : memref<1376x70xbf16, #tpu.memory_space<vmem>>, vector<32x70xbf16>,
    %c0_188 = arith.constant 0 : index
    %c114_189 = arith.constant 114 : index
    %200 = vector.load %arg23[%c0_188, %c114_189] : memref<32x217xbf16, #tpu.memory_space<vmem>>, vector<32x70xbf16>
    %c160_190 = arith.constant 160 : index
    %c0_191 = arith.constant 0 : index
    %201 = vector.load %arg24[%c160_190, %c0_191] : memref<1376x70xbf16, #tpu.memory_space<vmem>>, vector<32x70xbf16>
    tpu.vector_store %arg24[%c160_190, %c0_191], %200 {strides = array<i32>} : memref<1376x70xbf16, #tpu.memory_space<vmem>>, vector<32x70xbf16>,
    %c0_192 = arith.constant 0 : index
    %c115_193 = arith.constant 115 : index
    %202 = vector.load %arg23[%c0_192, %c115_193] : memref<32x217xbf16, #tpu.memory_space<vmem>>, vector<32x70xbf16>
    %c192_194 = arith.constant 192 : index
    %c0_195 = arith.constant 0 : index
    %203 = vector.load %arg24[%c192_194, %c0_195] : memref<1376x70xbf16, #tpu.memory_space<vmem>>, vector<32x70xbf16>
    tpu.vector_store %arg24[%c192_194, %c0_195], %202 {strides = array<i32>} : memref<1376x70xbf16, #tpu.memory_space<vmem>>, vector<32x70xbf16>,
    %c0_196 = arith.constant 0 : index
    %c116_197 = arith.constant 116 : index
    %204 = vector.load %arg23[%c0_196, %c116_197] : memref<32x217xbf16, #tpu.memory_space<vmem>>, vector<32x70xbf16>
    %c224_198 = arith.constant 224 : index
    %c0_199 = arith.constant 0 : index
    %205 = vector.load %arg24[%c224_198, %c0_199] : memref<1376x70xbf16, #tpu.memory_space<vmem>>, vector<32x70xbf16>
    tpu.vector_store %arg24[%c224_198, %c0_199], %204 {strides = array<i32>} : memref<1376x70xbf16, #tpu.memory_space<vmem>>, vector<32x70xbf16>,
    %c0_200 = arith.constant 0 : index
    %c117_201 = arith.constant 117 : index
    %206 = vector.load %arg23[%c0_200, %c117_201] : memref<32x217xbf16, #tpu.memory_space<vmem>>, vector<32x70xbf16>
    %c256_202 = arith.constant 256 : index
    %c0_203 = arith.constant 0 : index
    %207 = vector.load %arg24[%c256_202, %c0_203] : memref<1376x70xbf16, #tpu.memory_space<vmem>>, vector<32x70xbf16>
    tpu.vector_store %arg24[%c256_202, %c0_203], %206 {strides = array<i32>} : memref<1376x70xbf16, #tpu.memory_space<vmem>>, vector<32x70xbf16>,
    %c0_204 = arith.constant 0 : index
    %c118_205 = arith.constant 118 : index
    %208 = vector.load %arg23[%c0_204, %c118_205] : memref<32x217xbf16, #tpu.memory_space<vmem>>, vector<32x70xbf16>
    %c288_206 = arith.constant 288 : index
    %c0_207 = arith.constant 0 : index
    %209 = vector.load %arg24[%c288_206, %c0_207] : memref<1376x70xbf16, #tpu.memory_space<vmem>>, vector<32x70xbf16>
    tpu.vector_store %arg24[%c288_206, %c0_207], %208 {strides = array<i32>} : memref<1376x70xbf16, #tpu.memory_space<vmem>>, vector<32x70xbf16>,
    %c0_208 = arith.constant 0 : index
    %c119_209 = arith.constant 119 : index
    %210 = vector.load %arg23[%c0_208, %c119_209] : memref<32x217xbf16, #tpu.memory_space<vmem>>, vector<32x70xbf16>
    %c320_210 = arith.constant 320 : index
    %c0_211 = arith.constant 0 : index
    %211 = vector.load %arg24[%c320_210, %c0_211] : memref<1376x70xbf16, #tpu.memory_space<vmem>>, vector<32x70xbf16>
    tpu.vector_store %arg24[%c320_210, %c0_211], %210 {strides = array<i32>} : memref<1376x70xbf16, #tpu.memory_space<vmem>>, vector<32x70xbf16>,
    %c0_212 = arith.constant 0 : index
    %c120_213 = arith.constant 120 : index
    %212 = vector.load %arg23[%c0_212, %c120_213] : memref<32x217xbf16, #tpu.memory_space<vmem>>, vector<32x70xbf16>
    %c352_214 = arith.constant 352 : index
    %c0_215 = arith.constant 0 : index
    %213 = vector.load %arg24[%c352_214, %c0_215] : memref<1376x70xbf16, #tpu.memory_space<vmem>>, vector<32x70xbf16>
    tpu.vector_store %arg24[%c352_214, %c0_215], %212 {strides = array<i32>} : memref<1376x70xbf16, #tpu.memory_space<vmem>>, vector<32x70xbf16>,
    %c0_216 = arith.constant 0 : index
    %c121_217 = arith.constant 121 : index
    %214 = vector.load %arg23[%c0_216, %c121_217] : memref<32x217xbf16, #tpu.memory_space<vmem>>, vector<32x70xbf16>
    %c384_218 = arith.constant 384 : index
    %c0_219 = arith.constant 0 : index
    %215 = vector.load %arg24[%c384_218, %c0_219] : memref<1376x70xbf16, #tpu.memory_space<vmem>>, vector<32x70xbf16>
    tpu.vector_store %arg24[%c384_218, %c0_219], %214 {strides = array<i32>} : memref<1376x70xbf16, #tpu.memory_space<vmem>>, vector<32x70xbf16>,
    %c0_220 = arith.constant 0 : index
    %c122_221 = arith.constant 122 : index
    %216 = vector.load %arg23[%c0_220, %c122_221] : memref<32x217xbf16, #tpu.memory_space<vmem>>, vector<32x70xbf16>
    %c416_222 = arith.constant 416 : index
    %c0_223 = arith.constant 0 : index
    %217 = vector.load %arg24[%c416_222, %c0_223] : memref<1376x70xbf16, #tpu.memory_space<vmem>>, vector<32x70xbf16>
    tpu.vector_store %arg24[%c416_222, %c0_223], %216 {strides = array<i32>} : memref<1376x70xbf16, #tpu.memory_space<vmem>>, vector<32x70xbf16>,
    %c0_224 = arith.constant 0 : index
    %c123_225 = arith.constant 123 : index
    %218 = vector.load %arg23[%c0_224, %c123_225] : memref<32x217xbf16, #tpu.memory_space<vmem>>, vector<32x70xbf16>
    %c448_226 = arith.constant 448 : index
    %c0_227 = arith.constant 0 : index
    %219 = vector.load %arg24[%c448_226, %c0_227] : memref<1376x70xbf16, #tpu.memory_space<vmem>>, vector<32x70xbf16>
    tpu.vector_store %arg24[%c448_226, %c0_227], %218 {strides = array<i32>} : memref<1376x70xbf16, #tpu.memory_space<vmem>>, vector<32x70xbf16>,
    %c0_228 = arith.constant 0 : index
    %c124_229 = arith.constant 124 : index
    %220 = vector.load %arg23[%c0_228, %c124_229] : memref<32x217xbf16, #tpu.memory_space<vmem>>, vector<32x70xbf16>
    %c480_230 = arith.constant 480 : index
    %c0_231 = arith.constant 0 : index
    %221 = vector.load %arg24[%c480_230, %c0_231] : memref<1376x70xbf16, #tpu.memory_space<vmem>>, vector<32x70xbf16>
    tpu.vector_store %arg24[%c480_230, %c0_231], %220 {strides = array<i32>} : memref<1376x70xbf16, #tpu.memory_space<vmem>>, vector<32x70xbf16>,
    %c0_232 = arith.constant 0 : index
    %c0_233 = arith.constant 0 : index
    %222 = vector.load %arg9[%c0_232, %c0_233] : memref<128x1376xbf16, #tpu.memory_space<vmem>>, vector<128x512xbf16>
    %c0_234 = arith.constant 0 : index
    %c0_235 = arith.constant 0 : index
    %223 = vector.load %arg24[%c0_234, %c0_235] : memref<1376x70xbf16, #tpu.memory_space<vmem>>, vector<512x70xbf16>
    %cst_236 = arith.constant dense<0.000000e+00> : vector<128x70xf32>
    %224 = tpu.matmul %222, %223, %cst_236 {dimension_numbers = #tpu.dot_dimension_numbers<[1], [0], [0], [1], [0, 0, 1, 1], [], []>} : vector<128x512xbf16>, vector<512x70xbf16>, vector<128x70xf32> -> vector<128x70xf32>
    %225 = arith.addf %189, %224 : vector<128x70xf32>
    %c0_237 = arith.constant 0 : index
    %c125_238 = arith.constant 125 : index
    %226 = vector.load %arg23[%c0_237, %c125_238] : memref<32x217xbf16, #tpu.memory_space<vmem>>, vector<32x70xbf16>
    %c512_239 = arith.constant 512 : index
    %c0_240 = arith.constant 0 : index
    %227 = vector.load %arg24[%c512_239, %c0_240] : memref<1376x70xbf16, #tpu.memory_space<vmem>>, vector<32x70xbf16>
    tpu.vector_store %arg24[%c512_239, %c0_240], %226 {strides = array<i32>} : memref<1376x70xbf16, #tpu.memory_space<vmem>>, vector<32x70xbf16>,
    %c0_241 = arith.constant 0 : index
    %c126_242 = arith.constant 126 : index
    %228 = vector.load %arg23[%c0_241, %c126_242] : memref<32x217xbf16, #tpu.memory_space<vmem>>, vector<32x70xbf16>
    %c544_243 = arith.constant 544 : index
    %c0_244 = arith.constant 0 : index
    %229 = vector.load %arg24[%c544_243, %c0_244] : memref<1376x70xbf16, #tpu.memory_space<vmem>>, vector<32x70xbf16>
    tpu.vector_store %arg24[%c544_243, %c0_244], %228 {strides = array<i32>} : memref<1376x70xbf16, #tpu.memory_space<vmem>>, vector<32x70xbf16>,
    %c0_245 = arith.constant 0 : index
    %c127_246 = arith.constant 127 : index
    %230 = vector.load %arg23[%c0_245, %c127_246] : memref<32x217xbf16, #tpu.memory_space<vmem>>, vector<32x70xbf16>
    %c576_247 = arith.constant 576 : index
    %c0_248 = arith.constant 0 : index
    %231 = vector.load %arg24[%c576_247, %c0_248] : memref<1376x70xbf16, #tpu.memory_space<vmem>>, vector<32x70xbf16>
    tpu.vector_store %arg24[%c576_247, %c0_248], %230 {strides = array<i32>} : memref<1376x70xbf16, #tpu.memory_space<vmem>>, vector<32x70xbf16>,
    %c0_249 = arith.constant 0 : index
    %c128_250 = arith.constant 128 : index
    %232 = vector.load %arg23[%c0_249, %c128_250] : memref<32x217xbf16, #tpu.memory_space<vmem>>, vector<32x70xbf16>
    %c608_251 = arith.constant 608 : index
    %c0_252 = arith.constant 0 : index
    %233 = vector.load %arg24[%c608_251, %c0_252] : memref<1376x70xbf16, #tpu.memory_space<vmem>>, vector<32x70xbf16>
    tpu.vector_store %arg24[%c608_251, %c0_252], %232 {strides = array<i32>} : memref<1376x70xbf16, #tpu.memory_space<vmem>>, vector<32x70xbf16>,
    %c0_253 = arith.constant 0 : index
    %c129_254 = arith.constant 129 : index
    %234 = vector.load %arg23[%c0_253, %c129_254] : memref<32x217xbf16, #tpu.memory_space<vmem>>, vector<32x70xbf16>
    %c640_255 = arith.constant 640 : index
    %c0_256 = arith.constant 0 : index
    %235 = vector.load %arg24[%c640_255, %c0_256] : memref<1376x70xbf16, #tpu.memory_space<vmem>>, vector<32x70xbf16>
    tpu.vector_store %arg24[%c640_255, %c0_256], %234 {strides = array<i32>} : memref<1376x70xbf16, #tpu.memory_space<vmem>>, vector<32x70xbf16>,
    %c0_257 = arith.constant 0 : index
    %c130_258 = arith.constant 130 : index
    %236 = vector.load %arg23[%c0_257, %c130_258] : memref<32x217xbf16, #tpu.memory_space<vmem>>, vector<32x70xbf16>
    %c672_259 = arith.constant 672 : index
    %c0_260 = arith.constant 0 : index
    %237 = vector.load %arg24[%c672_259, %c0_260] : memref<1376x70xbf16, #tpu.memory_space<vmem>>, vector<32x70xbf16>
    tpu.vector_store %arg24[%c672_259, %c0_260], %236 {strides = array<i32>} : memref<1376x70xbf16, #tpu.memory_space<vmem>>, vector<32x70xbf16>,
    %c0_261 = arith.constant 0 : index
    %c131_262 = arith.constant 131 : index
    %238 = vector.load %arg23[%c0_261, %c131_262] : memref<32x217xbf16, #tpu.memory_space<vmem>>, vector<32x70xbf16>
    %c704_263 = arith.constant 704 : index
    %c0_264 = arith.constant 0 : index
    %239 = vector.load %arg24[%c704_263, %c0_264] : memref<1376x70xbf16, #tpu.memory_space<vmem>>, vector<32x70xbf16>
    tpu.vector_store %arg24[%c704_263, %c0_264], %238 {strides = array<i32>} : memref<1376x70xbf16, #tpu.memory_space<vmem>>, vector<32x70xbf16>,
    %c0_265 = arith.constant 0 : index
    %c132_266 = arith.constant 132 : index
    %240 = vector.load %arg23[%c0_265, %c132_266] : memref<32x217xbf16, #tpu.memory_space<vmem>>, vector<32x70xbf16>
    %c736_267 = arith.constant 736 : index
    %c0_268 = arith.constant 0 : index
    %241 = vector.load %arg24[%c736_267, %c0_268] : memref<1376x70xbf16, #tpu.memory_space<vmem>>, vector<32x70xbf16>
    tpu.vector_store %arg24[%c736_267, %c0_268], %240 {strides = array<i32>} : memref<1376x70xbf16, #tpu.memory_space<vmem>>, vector<32x70xbf16>,
    %c0_269 = arith.constant 0 : index
    %c133_270 = arith.constant 133 : index
    %242 = vector.load %arg23[%c0_269, %c133_270] : memref<32x217xbf16, #tpu.memory_space<vmem>>, vector<32x70xbf16>
    %c768_271 = arith.constant 768 : index
    %c0_272 = arith.constant 0 : index
    %243 = vector.load %arg24[%c768_271, %c0_272] : memref<1376x70xbf16, #tpu.memory_space<vmem>>, vector<32x70xbf16>
    tpu.vector_store %arg24[%c768_271, %c0_272], %242 {strides = array<i32>} : memref<1376x70xbf16, #tpu.memory_space<vmem>>, vector<32x70xbf16>,
    %c0_273 = arith.constant 0 : index
    %c134_274 = arith.constant 134 : index
    %244 = vector.load %arg23[%c0_273, %c134_274] : memref<32x217xbf16, #tpu.memory_space<vmem>>, vector<32x70xbf16>
    %c800_275 = arith.constant 800 : index
    %c0_276 = arith.constant 0 : index
    %245 = vector.load %arg24[%c800_275, %c0_276] : memref<1376x70xbf16, #tpu.memory_space<vmem>>, vector<32x70xbf16>
    tpu.vector_store %arg24[%c800_275, %c0_276], %244 {strides = array<i32>} : memref<1376x70xbf16, #tpu.memory_space<vmem>>, vector<32x70xbf16>,
    %c0_277 = arith.constant 0 : index
    %c135_278 = arith.constant 135 : index
    %246 = vector.load %arg23[%c0_277, %c135_278] : memref<32x217xbf16, #tpu.memory_space<vmem>>, vector<32x70xbf16>
    %c832_279 = arith.constant 832 : index
    %c0_280 = arith.constant 0 : index
    %247 = vector.load %arg24[%c832_279, %c0_280] : memref<1376x70xbf16, #tpu.memory_space<vmem>>, vector<32x70xbf16>
    tpu.vector_store %arg24[%c832_279, %c0_280], %246 {strides = array<i32>} : memref<1376x70xbf16, #tpu.memory_space<vmem>>, vector<32x70xbf16>,
    %c0_281 = arith.constant 0 : index
    %c136_282 = arith.constant 136 : index
    %248 = vector.load %arg23[%c0_281, %c136_282] : memref<32x217xbf16, #tpu.memory_space<vmem>>, vector<32x70xbf16>
    %c864_283 = arith.constant 864 : index
    %c0_284 = arith.constant 0 : index
    %249 = vector.load %arg24[%c864_283, %c0_284] : memref<1376x70xbf16, #tpu.memory_space<vmem>>, vector<32x70xbf16>
    tpu.vector_store %arg24[%c864_283, %c0_284], %248 {strides = array<i32>} : memref<1376x70xbf16, #tpu.memory_space<vmem>>, vector<32x70xbf16>,
    %c0_285 = arith.constant 0 : index
    %c137_286 = arith.constant 137 : index
    %250 = vector.load %arg23[%c0_285, %c137_286] : memref<32x217xbf16, #tpu.memory_space<vmem>>, vector<32x70xbf16>
    %c896_287 = arith.constant 896 : index
    %c0_288 = arith.constant 0 : index
    %251 = vector.load %arg24[%c896_287, %c0_288] : memref<1376x70xbf16, #tpu.memory_space<vmem>>, vector<32x70xbf16>
    tpu.vector_store %arg24[%c896_287, %c0_288], %250 {strides = array<i32>} : memref<1376x70xbf16, #tpu.memory_space<vmem>>, vector<32x70xbf16>,
    %c0_289 = arith.constant 0 : index
    %c138_290 = arith.constant 138 : index
    %252 = vector.load %arg23[%c0_289, %c138_290] : memref<32x217xbf16, #tpu.memory_space<vmem>>, vector<32x70xbf16>
    %c928_291 = arith.constant 928 : index
    %c0_292 = arith.constant 0 : index
    %253 = vector.load %arg24[%c928_291, %c0_292] : memref<1376x70xbf16, #tpu.memory_space<vmem>>, vector<32x70xbf16>
    tpu.vector_store %arg24[%c928_291, %c0_292], %252 {strides = array<i32>} : memref<1376x70xbf16, #tpu.memory_space<vmem>>, vector<32x70xbf16>,
    %c0_293 = arith.constant 0 : index
    %c139_294 = arith.constant 139 : index
    %254 = vector.load %arg23[%c0_293, %c139_294] : memref<32x217xbf16, #tpu.memory_space<vmem>>, vector<32x70xbf16>
    %c960_295 = arith.constant 960 : index
    %c0_296 = arith.constant 0 : index
    %255 = vector.load %arg24[%c960_295, %c0_296] : memref<1376x70xbf16, #tpu.memory_space<vmem>>, vector<32x70xbf16>
    tpu.vector_store %arg24[%c960_295, %c0_296], %254 {strides = array<i32>} : memref<1376x70xbf16, #tpu.memory_space<vmem>>, vector<32x70xbf16>,
    %c0_297 = arith.constant 0 : index
    %c140_298 = arith.constant 140 : index
    %256 = vector.load %arg23[%c0_297, %c140_298] : memref<32x217xbf16, #tpu.memory_space<vmem>>, vector<32x70xbf16>
    %c992_299 = arith.constant 992 : index
    %c0_300 = arith.constant 0 : index
    %257 = vector.load %arg24[%c992_299, %c0_300] : memref<1376x70xbf16, #tpu.memory_space<vmem>>, vector<32x70xbf16>
    tpu.vector_store %arg24[%c992_299, %c0_300], %256 {strides = array<i32>} : memref<1376x70xbf16, #tpu.memory_space<vmem>>, vector<32x70xbf16>,
    %c0_301 = arith.constant 0 : index
    %c512_302 = arith.constant 512 : index
    %258 = vector.load %arg9[%c0_301, %c512_302] : memref<128x1376xbf16, #tpu.memory_space<vmem>>, vector<128x512xbf16>
    %c512_303 = arith.constant 512 : index
    %c0_304 = arith.constant 0 : index
    %259 = vector.load %arg24[%c512_303, %c0_304] : memref<1376x70xbf16, #tpu.memory_space<vmem>>, vector<512x70xbf16>
    %cst_305 = arith.constant dense<0.000000e+00> : vector<128x70xf32>
    %260 = tpu.matmul %258, %259, %cst_305 {dimension_numbers = #tpu.dot_dimension_numbers<[1], [0], [0], [1], [0, 0, 1, 1], [], []>} : vector<128x512xbf16>, vector<512x70xbf16>, vector<128x70xf32> -> vector<128x70xf32>
    %261 = arith.addf %225, %260 : vector<128x70xf32>
    %c0_306 = arith.constant 0 : index
    %c141_307 = arith.constant 141 : index
    %262 = vector.load %arg23[%c0_306, %c141_307] : memref<32x217xbf16, #tpu.memory_space<vmem>>, vector<32x70xbf16>
    %c1024_308 = arith.constant 1024 : index
    %c0_309 = arith.constant 0 : index
    %263 = vector.load %arg24[%c1024_308, %c0_309] : memref<1376x70xbf16, #tpu.memory_space<vmem>>, vector<32x70xbf16>
    tpu.vector_store %arg24[%c1024_308, %c0_309], %262 {strides = array<i32>} : memref<1376x70xbf16, #tpu.memory_space<vmem>>, vector<32x70xbf16>,
    %c0_310 = arith.constant 0 : index
    %c142_311 = arith.constant 142 : index
    %264 = vector.load %arg23[%c0_310, %c142_311] : memref<32x217xbf16, #tpu.memory_space<vmem>>, vector<32x70xbf16>
    %c1056_312 = arith.constant 1056 : index
    %c0_313 = arith.constant 0 : index
    %265 = vector.load %arg24[%c1056_312, %c0_313] : memref<1376x70xbf16, #tpu.memory_space<vmem>>, vector<32x70xbf16>
    tpu.vector_store %arg24[%c1056_312, %c0_313], %264 {strides = array<i32>} : memref<1376x70xbf16, #tpu.memory_space<vmem>>, vector<32x70xbf16>,
    %c0_314 = arith.constant 0 : index
    %c143_315 = arith.constant 143 : index
    %266 = vector.load %arg23[%c0_314, %c143_315] : memref<32x217xbf16, #tpu.memory_space<vmem>>, vector<32x70xbf16>
    %c1088_316 = arith.constant 1088 : index
    %c0_317 = arith.constant 0 : index
    %267 = vector.load %arg24[%c1088_316, %c0_317] : memref<1376x70xbf16, #tpu.memory_space<vmem>>, vector<32x70xbf16>
    tpu.vector_store %arg24[%c1088_316, %c0_317], %266 {strides = array<i32>} : memref<1376x70xbf16, #tpu.memory_space<vmem>>, vector<32x70xbf16>,
    %c0_318 = arith.constant 0 : index
    %c144_319 = arith.constant 144 : index
    %268 = vector.load %arg23[%c0_318, %c144_319] : memref<32x217xbf16, #tpu.memory_space<vmem>>, vector<32x70xbf16>
    %c1120_320 = arith.constant 1120 : index
    %c0_321 = arith.constant 0 : index
    %269 = vector.load %arg24[%c1120_320, %c0_321] : memref<1376x70xbf16, #tpu.memory_space<vmem>>, vector<32x70xbf16>
    tpu.vector_store %arg24[%c1120_320, %c0_321], %268 {strides = array<i32>} : memref<1376x70xbf16, #tpu.memory_space<vmem>>, vector<32x70xbf16>,
    %c0_322 = arith.constant 0 : index
    %c145_323 = arith.constant 145 : index
    %270 = vector.load %arg23[%c0_322, %c145_323] : memref<32x217xbf16, #tpu.memory_space<vmem>>, vector<32x70xbf16>
    %c1152_324 = arith.constant 1152 : index
    %c0_325 = arith.constant 0 : index
    %271 = vector.load %arg24[%c1152_324, %c0_325] : memref<1376x70xbf16, #tpu.memory_space<vmem>>, vector<32x70xbf16>
    tpu.vector_store %arg24[%c1152_324, %c0_325], %270 {strides = array<i32>} : memref<1376x70xbf16, #tpu.memory_space<vmem>>, vector<32x70xbf16>,
    %c0_326 = arith.constant 0 : index
    %c146_327 = arith.constant 146 : index
    %272 = vector.load %arg23[%c0_326, %c146_327] : memref<32x217xbf16, #tpu.memory_space<vmem>>, vector<32x70xbf16>
    %c1184_328 = arith.constant 1184 : index
    %c0_329 = arith.constant 0 : index
    %273 = vector.load %arg24[%c1184_328, %c0_329] : memref<1376x70xbf16, #tpu.memory_space<vmem>>, vector<32x70xbf16>
    tpu.vector_store %arg24[%c1184_328, %c0_329], %272 {strides = array<i32>} : memref<1376x70xbf16, #tpu.memory_space<vmem>>, vector<32x70xbf16>,
    %c0_330 = arith.constant 0 : index
    %c147_331 = arith.constant 147 : index
    %274 = vector.load %arg23[%c0_330, %c147_331] : memref<32x217xbf16, #tpu.memory_space<vmem>>, vector<32x70xbf16>
    %c1216_332 = arith.constant 1216 : index
    %c0_333 = arith.constant 0 : index
    %275 = vector.load %arg24[%c1216_332, %c0_333] : memref<1376x70xbf16, #tpu.memory_space<vmem>>, vector<32x70xbf16>
    tpu.vector_store %arg24[%c1216_332, %c0_333], %274 {strides = array<i32>} : memref<1376x70xbf16, #tpu.memory_space<vmem>>, vector<32x70xbf16>,
    %c0_334 = arith.constant 0 : index
    %c1024_335 = arith.constant 1024 : index
    %276 = vector.load %arg9[%c0_334, %c1024_335] : memref<128x1376xbf16, #tpu.memory_space<vmem>>, vector<128x224xbf16>
    %c1024_336 = arith.constant 1024 : index
    %c0_337 = arith.constant 0 : index
    %277 = vector.load %arg24[%c1024_336, %c0_337] : memref<1376x70xbf16, #tpu.memory_space<vmem>>, vector<224x70xbf16>
    %cst_338 = arith.constant dense<0.000000e+00> : vector<128x70xf32>
    %278 = tpu.matmul %276, %277, %cst_338 {dimension_numbers = #tpu.dot_dimension_numbers<[1], [0], [0], [1], [0, 0, 1, 1], [], []>} : vector<128x224xbf16>, vector<224x70xbf16>, vector<128x70xf32> -> vector<128x70xf32>
    %279 = arith.addf %261, %278 : vector<128x70xf32>
    %c0_339 = arith.constant 0 : index
    %c127_340 = arith.constant 127 : index
    %280 = vector.load %arg25[%c0_339, %c127_340] : memref<128x199xbf16, #tpu.memory_space<vmem>>, vector<128x70xbf16>
    %c0_341 = arith.constant 0 : index
    %c128_342 = arith.constant 128 : index
    %281 = vector.load %arg25[%c0_341, %c128_342] : memref<128x199xbf16, #tpu.memory_space<vmem>>, vector<128x70xbf16>
    %282 = arith.maximumf %280, %281 : vector<128x70xbf16>
    %c0_343 = arith.constant 0 : index
    %c129_344 = arith.constant 129 : index
    %283 = vector.load %arg25[%c0_343, %c129_344] : memref<128x199xbf16, #tpu.memory_space<vmem>>, vector<128x70xbf16>
    %284 = arith.maximumf %282, %283 : vector<128x70xbf16>
    %cst_345 = arith.constant 0.000000e+00 : f32
    %285 = arith.truncf %cst_345 : f32 to bf16
    %286 = vector.shape_cast %2 : vector<1x70xi1> to vector<1x70xi1>
    %287 = vector.broadcast %286 : vector<1x70xi1> to vector<128x70xi1>
    %288 = vector.broadcast %285 : bf16 to vector<128x70xbf16>
    %289 = arith.select %287, %284, %288 : vector<128x70xi1>, vector<128x70xbf16>
    %c1248_346 = arith.constant 1248 : index
    %c0_347 = arith.constant 0 : index
    %290 = vector.load %arg24[%c1248_346, %c0_347] : memref<1376x70xbf16, #tpu.memory_space<vmem>>, vector<128x70xbf16>
    tpu.vector_store %arg24[%c1248_346, %c0_347], %289 {strides = array<i32>} : memref<1376x70xbf16, #tpu.memory_space<vmem>>, vector<128x70xbf16>,
    %c0_348 = arith.constant 0 : index
    %c1248_349 = arith.constant 1248 : index
    %291 = vector.load %arg9[%c0_348, %c1248_349] : memref<128x1376xbf16, #tpu.memory_space<vmem>>, vector<128x128xbf16>
    %c1248_350 = arith.constant 1248 : index
    %c0_351 = arith.constant 0 : index
    %292 = vector.load %arg24[%c1248_350, %c0_351] : memref<1376x70xbf16, #tpu.memory_space<vmem>>, vector<128x70xbf16>
    %cst_352 = arith.constant dense<0.000000e+00> : vector<128x70xf32>
    %293 = tpu.matmul %291, %292, %cst_352 {dimension_numbers = #tpu.dot_dimension_numbers<[1], [0], [0], [1], [0, 0, 1, 1], [], []>} : vector<128x128xbf16>, vector<128x70xbf16>, vector<128x70xf32> -> vector<128x70xf32>
    %294 = arith.addf %279, %293 : vector<128x70xf32>
    %c0_353 = arith.constant 0 : index
    %c0_354 = arith.constant 0 : index
    %295 = vector.load %arg10[%c0_353, %c0_354] : memref<128x1xf32, #tpu.memory_space<vmem>>, vector<128x1xf32>
    %296 = vector.broadcast %295 : vector<128x1xf32> to vector<128x70xf32>
    %297 = arith.mulf %294, %296 : vector<128x70xf32>
    %c0_355 = arith.constant 0 : index
    %c0_356 = arith.constant 0 : index
    %298 = vector.load %arg11[%c0_355, %c0_356] : memref<128x1xf32, #tpu.memory_space<vmem>>, vector<128x1xf32>
    %299 = vector.broadcast %298 : vector<128x1xf32> to vector<128x70xf32>
    %300 = arith.addf %297, %299 : vector<128x70xf32>
    %cst_357 = arith.constant 0.000000e+00 : f32
    %301 = vector.broadcast %cst_357 : f32 to vector<128x70xf32>
    %302 = arith.maximumf %300, %301 : vector<128x70xf32>
    %303 = arith.truncf %302 : vector<128x70xf32> to vector<128x70xbf16>
    %c0_358 = arith.constant 0 : index
    %c0_359 = arith.constant 0 : index
    %304 = vector.load %arg12[%c0_358, %c0_359] : memref<32x128xbf16, #tpu.memory_space<vmem>>, vector<32x128xbf16>
    %cst_360 = arith.constant dense<0.000000e+00> : vector<32x70xf32>
    %305 = tpu.matmul %304, %303, %cst_360 {dimension_numbers = #tpu.dot_dimension_numbers<[1], [0], [0], [1], [0, 0, 1, 1], [], []>} : vector<32x128xbf16>, vector<128x70xbf16>, vector<32x70xf32> -> vector<32x70xf32>
    %cst_361 = arith.constant 0.000000e+00 : f32
    %306 = vector.shape_cast %2 : vector<1x70xi1> to vector<1x70xi1>
    %307 = vector.broadcast %306 : vector<1x70xi1> to vector<32x70xi1>
    %308 = vector.broadcast %cst_361 : f32 to vector<32x70xf32>
    %309 = arith.select %307, %305, %308 : vector<32x70xi1>, vector<32x70xf32>
    %310 = arith.truncf %309 : vector<32x70xf32> to vector<32x70xbf16>
    %c0_362 = arith.constant 0 : index
    %c128_363 = arith.constant 128 : index
    %311 = vector.load %arg23[%c0_362, %c128_363] : memref<32x217xbf16, #tpu.memory_space<vmem>>, vector<32x70xbf16>
    tpu.vector_store %arg23[%c0_362, %c128_363], %310 {strides = array<i32>} : memref<32x217xbf16, #tpu.memory_space<vmem>>, vector<32x70xbf16>,
    %cst_364 = arith.constant 0xFF800000 : f32
    %312 = arith.truncf %cst_364 : f32 to bf16
    %313 = vector.shape_cast %2 : vector<1x70xi1> to vector<1x70xi1>
    %314 = vector.broadcast %313 : vector<1x70xi1> to vector<128x70xi1>
    %315 = vector.broadcast %312 : bf16 to vector<128x70xbf16>
    %316 = arith.select %314, %303, %315 : vector<128x70xi1>, vector<128x70xbf16>
    %c0_365 = arith.constant 0 : index
    %c128_366 = arith.constant 128 : index
    %317 = vector.load %arg25[%c0_365, %c128_366] : memref<128x199xbf16, #tpu.memory_space<vmem>>, vector<128x70xbf16>
    tpu.vector_store %arg25[%c0_365, %c128_366], %316 {strides = array<i32>} : memref<128x199xbf16, #tpu.memory_space<vmem>>, vector<128x70xbf16>,
    %cst_367 = arith.constant 0.000000e+00 : f32
    %318 = vector.broadcast %cst_367 : f32 to vector<128x70xf32>
    %c0_368 = arith.constant 0 : index
    %c109_369 = arith.constant 109 : index
    %319 = vector.load %arg23[%c0_368, %c109_369] : memref<32x217xbf16, #tpu.memory_space<vmem>>, vector<32x70xbf16>
    %c0_370 = arith.constant 0 : index
    %c0_371 = arith.constant 0 : index
    %320 = vector.load %arg24[%c0_370, %c0_371] : memref<1376x70xbf16, #tpu.memory_space<vmem>>, vector<32x70xbf16>
    tpu.vector_store %arg24[%c0_370, %c0_371], %319 {strides = array<i32>} : memref<1376x70xbf16, #tpu.memory_space<vmem>>, vector<32x70xbf16>,
    %c0_372 = arith.constant 0 : index
    %c110_373 = arith.constant 110 : index
    %321 = vector.load %arg23[%c0_372, %c110_373] : memref<32x217xbf16, #tpu.memory_space<vmem>>, vector<32x70xbf16>
    %c32_374 = arith.constant 32 : index
    %c0_375 = arith.constant 0 : index
    %322 = vector.load %arg24[%c32_374, %c0_375] : memref<1376x70xbf16, #tpu.memory_space<vmem>>, vector<32x70xbf16>
    tpu.vector_store %arg24[%c32_374, %c0_375], %321 {strides = array<i32>} : memref<1376x70xbf16, #tpu.memory_space<vmem>>, vector<32x70xbf16>,
    %c0_376 = arith.constant 0 : index
    %c111_377 = arith.constant 111 : index
    %323 = vector.load %arg23[%c0_376, %c111_377] : memref<32x217xbf16, #tpu.memory_space<vmem>>, vector<32x70xbf16>
    %c64_378 = arith.constant 64 : index
    %c0_379 = arith.constant 0 : index
    %324 = vector.load %arg24[%c64_378, %c0_379] : memref<1376x70xbf16, #tpu.memory_space<vmem>>, vector<32x70xbf16>
    tpu.vector_store %arg24[%c64_378, %c0_379], %323 {strides = array<i32>} : memref<1376x70xbf16, #tpu.memory_space<vmem>>, vector<32x70xbf16>,
    %c0_380 = arith.constant 0 : index
    %c112_381 = arith.constant 112 : index
    %325 = vector.load %arg23[%c0_380, %c112_381] : memref<32x217xbf16, #tpu.memory_space<vmem>>, vector<32x70xbf16>
    %c96_382 = arith.constant 96 : index
    %c0_383 = arith.constant 0 : index
    %326 = vector.load %arg24[%c96_382, %c0_383] : memref<1376x70xbf16, #tpu.memory_space<vmem>>, vector<32x70xbf16>
    tpu.vector_store %arg24[%c96_382, %c0_383], %325 {strides = array<i32>} : memref<1376x70xbf16, #tpu.memory_space<vmem>>, vector<32x70xbf16>,
    %c0_384 = arith.constant 0 : index
    %c113_385 = arith.constant 113 : index
    %327 = vector.load %arg23[%c0_384, %c113_385] : memref<32x217xbf16, #tpu.memory_space<vmem>>, vector<32x70xbf16>
    %c128_386 = arith.constant 128 : index
    %c0_387 = arith.constant 0 : index
    %328 = vector.load %arg24[%c128_386, %c0_387] : memref<1376x70xbf16, #tpu.memory_space<vmem>>, vector<32x70xbf16>
    tpu.vector_store %arg24[%c128_386, %c0_387], %327 {strides = array<i32>} : memref<1376x70xbf16, #tpu.memory_space<vmem>>, vector<32x70xbf16>,
    %c0_388 = arith.constant 0 : index
    %c114_389 = arith.constant 114 : index
    %329 = vector.load %arg23[%c0_388, %c114_389] : memref<32x217xbf16, #tpu.memory_space<vmem>>, vector<32x70xbf16>
    %c160_390 = arith.constant 160 : index
    %c0_391 = arith.constant 0 : index
    %330 = vector.load %arg24[%c160_390, %c0_391] : memref<1376x70xbf16, #tpu.memory_space<vmem>>, vector<32x70xbf16>
    tpu.vector_store %arg24[%c160_390, %c0_391], %329 {strides = array<i32>} : memref<1376x70xbf16, #tpu.memory_space<vmem>>, vector<32x70xbf16>,
    %c0_392 = arith.constant 0 : index
    %c115_393 = arith.constant 115 : index
    %331 = vector.load %arg23[%c0_392, %c115_393] : memref<32x217xbf16, #tpu.memory_space<vmem>>, vector<32x70xbf16>
    %c192_394 = arith.constant 192 : index
    %c0_395 = arith.constant 0 : index
    %332 = vector.load %arg24[%c192_394, %c0_395] : memref<1376x70xbf16, #tpu.memory_space<vmem>>, vector<32x70xbf16>
    tpu.vector_store %arg24[%c192_394, %c0_395], %331 {strides = array<i32>} : memref<1376x70xbf16, #tpu.memory_space<vmem>>, vector<32x70xbf16>,
    %c0_396 = arith.constant 0 : index
    %c116_397 = arith.constant 116 : index
    %333 = vector.load %arg23[%c0_396, %c116_397] : memref<32x217xbf16, #tpu.memory_space<vmem>>, vector<32x70xbf16>
    %c224_398 = arith.constant 224 : index
    %c0_399 = arith.constant 0 : index
    %334 = vector.load %arg24[%c224_398, %c0_399] : memref<1376x70xbf16, #tpu.memory_space<vmem>>, vector<32x70xbf16>
    tpu.vector_store %arg24[%c224_398, %c0_399], %333 {strides = array<i32>} : memref<1376x70xbf16, #tpu.memory_space<vmem>>, vector<32x70xbf16>,
    %c0_400 = arith.constant 0 : index
    %c117_401 = arith.constant 117 : index
    %335 = vector.load %arg23[%c0_400, %c117_401] : memref<32x217xbf16, #tpu.memory_space<vmem>>, vector<32x70xbf16>
    %c256_402 = arith.constant 256 : index
    %c0_403 = arith.constant 0 : index
    %336 = vector.load %arg24[%c256_402, %c0_403] : memref<1376x70xbf16, #tpu.memory_space<vmem>>, vector<32x70xbf16>
    tpu.vector_store %arg24[%c256_402, %c0_403], %335 {strides = array<i32>} : memref<1376x70xbf16, #tpu.memory_space<vmem>>, vector<32x70xbf16>,
    %c0_404 = arith.constant 0 : index
    %c118_405 = arith.constant 118 : index
    %337 = vector.load %arg23[%c0_404, %c118_405] : memref<32x217xbf16, #tpu.memory_space<vmem>>, vector<32x70xbf16>
    %c288_406 = arith.constant 288 : index
    %c0_407 = arith.constant 0 : index
    %338 = vector.load %arg24[%c288_406, %c0_407] : memref<1376x70xbf16, #tpu.memory_space<vmem>>, vector<32x70xbf16>
    tpu.vector_store %arg24[%c288_406, %c0_407], %337 {strides = array<i32>} : memref<1376x70xbf16, #tpu.memory_space<vmem>>, vector<32x70xbf16>,
    %c0_408 = arith.constant 0 : index
    %c119_409 = arith.constant 119 : index
    %339 = vector.load %arg23[%c0_408, %c119_409] : memref<32x217xbf16, #tpu.memory_space<vmem>>, vector<32x70xbf16>
    %c320_410 = arith.constant 320 : index
    %c0_411 = arith.constant 0 : index
    %340 = vector.load %arg24[%c320_410, %c0_411] : memref<1376x70xbf16, #tpu.memory_space<vmem>>, vector<32x70xbf16>
    tpu.vector_store %arg24[%c320_410, %c0_411], %339 {strides = array<i32>} : memref<1376x70xbf16, #tpu.memory_space<vmem>>, vector<32x70xbf16>,
    %c0_412 = arith.constant 0 : index
    %c120_413 = arith.constant 120 : index
    %341 = vector.load %arg23[%c0_412, %c120_413] : memref<32x217xbf16, #tpu.memory_space<vmem>>, vector<32x70xbf16>
    %c352_414 = arith.constant 352 : index
    %c0_415 = arith.constant 0 : index
    %342 = vector.load %arg24[%c352_414, %c0_415] : memref<1376x70xbf16, #tpu.memory_space<vmem>>, vector<32x70xbf16>
    tpu.vector_store %arg24[%c352_414, %c0_415], %341 {strides = array<i32>} : memref<1376x70xbf16, #tpu.memory_space<vmem>>, vector<32x70xbf16>,
    %c0_416 = arith.constant 0 : index
    %c121_417 = arith.constant 121 : index
    %343 = vector.load %arg23[%c0_416, %c121_417] : memref<32x217xbf16, #tpu.memory_space<vmem>>, vector<32x70xbf16>
    %c384_418 = arith.constant 384 : index
    %c0_419 = arith.constant 0 : index
    %344 = vector.load %arg24[%c384_418, %c0_419] : memref<1376x70xbf16, #tpu.memory_space<vmem>>, vector<32x70xbf16>
    tpu.vector_store %arg24[%c384_418, %c0_419], %343 {strides = array<i32>} : memref<1376x70xbf16, #tpu.memory_space<vmem>>, vector<32x70xbf16>,
    %c0_420 = arith.constant 0 : index
    %c122_421 = arith.constant 122 : index
    %345 = vector.load %arg23[%c0_420, %c122_421] : memref<32x217xbf16, #tpu.memory_space<vmem>>, vector<32x70xbf16>
    %c416_422 = arith.constant 416 : index
    %c0_423 = arith.constant 0 : index
    %346 = vector.load %arg24[%c416_422, %c0_423] : memref<1376x70xbf16, #tpu.memory_space<vmem>>, vector<32x70xbf16>
    tpu.vector_store %arg24[%c416_422, %c0_423], %345 {strides = array<i32>} : memref<1376x70xbf16, #tpu.memory_space<vmem>>, vector<32x70xbf16>,
    %c0_424 = arith.constant 0 : index
    %c123_425 = arith.constant 123 : index
    %347 = vector.load %arg23[%c0_424, %c123_425] : memref<32x217xbf16, #tpu.memory_space<vmem>>, vector<32x70xbf16>
    %c448_426 = arith.constant 448 : index
    %c0_427 = arith.constant 0 : index
    %348 = vector.load %arg24[%c448_426, %c0_427] : memref<1376x70xbf16, #tpu.memory_space<vmem>>, vector<32x70xbf16>
    tpu.vector_store %arg24[%c448_426, %c0_427], %347 {strides = array<i32>} : memref<1376x70xbf16, #tpu.memory_space<vmem>>, vector<32x70xbf16>,
    %c0_428 = arith.constant 0 : index
    %c124_429 = arith.constant 124 : index
    %349 = vector.load %arg23[%c0_428, %c124_429] : memref<32x217xbf16, #tpu.memory_space<vmem>>, vector<32x70xbf16>
    %c480_430 = arith.constant 480 : index
    %c0_431 = arith.constant 0 : index
    %350 = vector.load %arg24[%c480_430, %c0_431] : memref<1376x70xbf16, #tpu.memory_space<vmem>>, vector<32x70xbf16>
    tpu.vector_store %arg24[%c480_430, %c0_431], %349 {strides = array<i32>} : memref<1376x70xbf16, #tpu.memory_space<vmem>>, vector<32x70xbf16>,
    %c0_432 = arith.constant 0 : index
    %c0_433 = arith.constant 0 : index
    %351 = vector.load %arg13[%c0_432, %c0_433] : memref<128x1376xbf16, #tpu.memory_space<vmem>>, vector<128x512xbf16>
    %c0_434 = arith.constant 0 : index
    %c0_435 = arith.constant 0 : index
    %352 = vector.load %arg24[%c0_434, %c0_435] : memref<1376x70xbf16, #tpu.memory_space<vmem>>, vector<512x70xbf16>
    %cst_436 = arith.constant dense<0.000000e+00> : vector<128x70xf32>
    %353 = tpu.matmul %351, %352, %cst_436 {dimension_numbers = #tpu.dot_dimension_numbers<[1], [0], [0], [1], [0, 0, 1, 1], [], []>} : vector<128x512xbf16>, vector<512x70xbf16>, vector<128x70xf32> -> vector<128x70xf32>
    %354 = arith.addf %318, %353 : vector<128x70xf32>
    %c0_437 = arith.constant 0 : index
    %c125_438 = arith.constant 125 : index
    %355 = vector.load %arg23[%c0_437, %c125_438] : memref<32x217xbf16, #tpu.memory_space<vmem>>, vector<32x70xbf16>
    %c512_439 = arith.constant 512 : index
    %c0_440 = arith.constant 0 : index
    %356 = vector.load %arg24[%c512_439, %c0_440] : memref<1376x70xbf16, #tpu.memory_space<vmem>>, vector<32x70xbf16>
    tpu.vector_store %arg24[%c512_439, %c0_440], %355 {strides = array<i32>} : memref<1376x70xbf16, #tpu.memory_space<vmem>>, vector<32x70xbf16>,
    %c0_441 = arith.constant 0 : index
    %c126_442 = arith.constant 126 : index
    %357 = vector.load %arg23[%c0_441, %c126_442] : memref<32x217xbf16, #tpu.memory_space<vmem>>, vector<32x70xbf16>
    %c544_443 = arith.constant 544 : index
    %c0_444 = arith.constant 0 : index
    %358 = vector.load %arg24[%c544_443, %c0_444] : memref<1376x70xbf16, #tpu.memory_space<vmem>>, vector<32x70xbf16>
    tpu.vector_store %arg24[%c544_443, %c0_444], %357 {strides = array<i32>} : memref<1376x70xbf16, #tpu.memory_space<vmem>>, vector<32x70xbf16>,
    %c0_445 = arith.constant 0 : index
    %c127_446 = arith.constant 127 : index
    %359 = vector.load %arg23[%c0_445, %c127_446] : memref<32x217xbf16, #tpu.memory_space<vmem>>, vector<32x70xbf16>
    %c576_447 = arith.constant 576 : index
    %c0_448 = arith.constant 0 : index
    %360 = vector.load %arg24[%c576_447, %c0_448] : memref<1376x70xbf16, #tpu.memory_space<vmem>>, vector<32x70xbf16>
    tpu.vector_store %arg24[%c576_447, %c0_448], %359 {strides = array<i32>} : memref<1376x70xbf16, #tpu.memory_space<vmem>>, vector<32x70xbf16>,
    %c0_449 = arith.constant 0 : index
    %c128_450 = arith.constant 128 : index
    %361 = vector.load %arg23[%c0_449, %c128_450] : memref<32x217xbf16, #tpu.memory_space<vmem>>, vector<32x70xbf16>
    %c608_451 = arith.constant 608 : index
    %c0_452 = arith.constant 0 : index
    %362 = vector.load %arg24[%c608_451, %c0_452] : memref<1376x70xbf16, #tpu.memory_space<vmem>>, vector<32x70xbf16>
    tpu.vector_store %arg24[%c608_451, %c0_452], %361 {strides = array<i32>} : memref<1376x70xbf16, #tpu.memory_space<vmem>>, vector<32x70xbf16>,
    %c0_453 = arith.constant 0 : index
    %c129_454 = arith.constant 129 : index
    %363 = vector.load %arg23[%c0_453, %c129_454] : memref<32x217xbf16, #tpu.memory_space<vmem>>, vector<32x70xbf16>
    %c640_455 = arith.constant 640 : index
    %c0_456 = arith.constant 0 : index
    %364 = vector.load %arg24[%c640_455, %c0_456] : memref<1376x70xbf16, #tpu.memory_space<vmem>>, vector<32x70xbf16>
    tpu.vector_store %arg24[%c640_455, %c0_456], %363 {strides = array<i32>} : memref<1376x70xbf16, #tpu.memory_space<vmem>>, vector<32x70xbf16>,
    %c0_457 = arith.constant 0 : index
    %c130_458 = arith.constant 130 : index
    %365 = vector.load %arg23[%c0_457, %c130_458] : memref<32x217xbf16, #tpu.memory_space<vmem>>, vector<32x70xbf16>
    %c672_459 = arith.constant 672 : index
    %c0_460 = arith.constant 0 : index
    %366 = vector.load %arg24[%c672_459, %c0_460] : memref<1376x70xbf16, #tpu.memory_space<vmem>>, vector<32x70xbf16>
    tpu.vector_store %arg24[%c672_459, %c0_460], %365 {strides = array<i32>} : memref<1376x70xbf16, #tpu.memory_space<vmem>>, vector<32x70xbf16>,
    %c0_461 = arith.constant 0 : index
    %c131_462 = arith.constant 131 : index
    %367 = vector.load %arg23[%c0_461, %c131_462] : memref<32x217xbf16, #tpu.memory_space<vmem>>, vector<32x70xbf16>
    %c704_463 = arith.constant 704 : index
    %c0_464 = arith.constant 0 : index
    %368 = vector.load %arg24[%c704_463, %c0_464] : memref<1376x70xbf16, #tpu.memory_space<vmem>>, vector<32x70xbf16>
    tpu.vector_store %arg24[%c704_463, %c0_464], %367 {strides = array<i32>} : memref<1376x70xbf16, #tpu.memory_space<vmem>>, vector<32x70xbf16>,
    %c0_465 = arith.constant 0 : index
    %c132_466 = arith.constant 132 : index
    %369 = vector.load %arg23[%c0_465, %c132_466] : memref<32x217xbf16, #tpu.memory_space<vmem>>, vector<32x70xbf16>
    %c736_467 = arith.constant 736 : index
    %c0_468 = arith.constant 0 : index
    %370 = vector.load %arg24[%c736_467, %c0_468] : memref<1376x70xbf16, #tpu.memory_space<vmem>>, vector<32x70xbf16>
    tpu.vector_store %arg24[%c736_467, %c0_468], %369 {strides = array<i32>} : memref<1376x70xbf16, #tpu.memory_space<vmem>>, vector<32x70xbf16>,
    %c0_469 = arith.constant 0 : index
    %c133_470 = arith.constant 133 : index
    %371 = vector.load %arg23[%c0_469, %c133_470] : memref<32x217xbf16, #tpu.memory_space<vmem>>, vector<32x70xbf16>
    %c768_471 = arith.constant 768 : index
    %c0_472 = arith.constant 0 : index
    %372 = vector.load %arg24[%c768_471, %c0_472] : memref<1376x70xbf16, #tpu.memory_space<vmem>>, vector<32x70xbf16>
    tpu.vector_store %arg24[%c768_471, %c0_472], %371 {strides = array<i32>} : memref<1376x70xbf16, #tpu.memory_space<vmem>>, vector<32x70xbf16>,
    %c0_473 = arith.constant 0 : index
    %c134_474 = arith.constant 134 : index
    %373 = vector.load %arg23[%c0_473, %c134_474] : memref<32x217xbf16, #tpu.memory_space<vmem>>, vector<32x70xbf16>
    %c800_475 = arith.constant 800 : index
    %c0_476 = arith.constant 0 : index
    %374 = vector.load %arg24[%c800_475, %c0_476] : memref<1376x70xbf16, #tpu.memory_space<vmem>>, vector<32x70xbf16>
    tpu.vector_store %arg24[%c800_475, %c0_476], %373 {strides = array<i32>} : memref<1376x70xbf16, #tpu.memory_space<vmem>>, vector<32x70xbf16>,
    %c0_477 = arith.constant 0 : index
    %c135_478 = arith.constant 135 : index
    %375 = vector.load %arg23[%c0_477, %c135_478] : memref<32x217xbf16, #tpu.memory_space<vmem>>, vector<32x70xbf16>
    %c832_479 = arith.constant 832 : index
    %c0_480 = arith.constant 0 : index
    %376 = vector.load %arg24[%c832_479, %c0_480] : memref<1376x70xbf16, #tpu.memory_space<vmem>>, vector<32x70xbf16>
    tpu.vector_store %arg24[%c832_479, %c0_480], %375 {strides = array<i32>} : memref<1376x70xbf16, #tpu.memory_space<vmem>>, vector<32x70xbf16>,
    %c0_481 = arith.constant 0 : index
    %c136_482 = arith.constant 136 : index
    %377 = vector.load %arg23[%c0_481, %c136_482] : memref<32x217xbf16, #tpu.memory_space<vmem>>, vector<32x70xbf16>
    %c864_483 = arith.constant 864 : index
    %c0_484 = arith.constant 0 : index
    %378 = vector.load %arg24[%c864_483, %c0_484] : memref<1376x70xbf16, #tpu.memory_space<vmem>>, vector<32x70xbf16>
    tpu.vector_store %arg24[%c864_483, %c0_484], %377 {strides = array<i32>} : memref<1376x70xbf16, #tpu.memory_space<vmem>>, vector<32x70xbf16>,
    %c0_485 = arith.constant 0 : index
    %c137_486 = arith.constant 137 : index
    %379 = vector.load %arg23[%c0_485, %c137_486] : memref<32x217xbf16, #tpu.memory_space<vmem>>, vector<32x70xbf16>
    %c896_487 = arith.constant 896 : index
    %c0_488 = arith.constant 0 : index
    %380 = vector.load %arg24[%c896_487, %c0_488] : memref<1376x70xbf16, #tpu.memory_space<vmem>>, vector<32x70xbf16>
    tpu.vector_store %arg24[%c896_487, %c0_488], %379 {strides = array<i32>} : memref<1376x70xbf16, #tpu.memory_space<vmem>>, vector<32x70xbf16>,
    %c0_489 = arith.constant 0 : index
    %c138_490 = arith.constant 138 : index
    %381 = vector.load %arg23[%c0_489, %c138_490] : memref<32x217xbf16, #tpu.memory_space<vmem>>, vector<32x70xbf16>
    %c928_491 = arith.constant 928 : index
    %c0_492 = arith.constant 0 : index
    %382 = vector.load %arg24[%c928_491, %c0_492] : memref<1376x70xbf16, #tpu.memory_space<vmem>>, vector<32x70xbf16>
    tpu.vector_store %arg24[%c928_491, %c0_492], %381 {strides = array<i32>} : memref<1376x70xbf16, #tpu.memory_space<vmem>>, vector<32x70xbf16>,
    %c0_493 = arith.constant 0 : index
    %c139_494 = arith.constant 139 : index
    %383 = vector.load %arg23[%c0_493, %c139_494] : memref<32x217xbf16, #tpu.memory_space<vmem>>, vector<32x70xbf16>
    %c960_495 = arith.constant 960 : index
    %c0_496 = arith.constant 0 : index
    %384 = vector.load %arg24[%c960_495, %c0_496] : memref<1376x70xbf16, #tpu.memory_space<vmem>>, vector<32x70xbf16>
    tpu.vector_store %arg24[%c960_495, %c0_496], %383 {strides = array<i32>} : memref<1376x70xbf16, #tpu.memory_space<vmem>>, vector<32x70xbf16>,
    %c0_497 = arith.constant 0 : index
    %c140_498 = arith.constant 140 : index
    %385 = vector.load %arg23[%c0_497, %c140_498] : memref<32x217xbf16, #tpu.memory_space<vmem>>, vector<32x70xbf16>
    %c992_499 = arith.constant 992 : index
    %c0_500 = arith.constant 0 : index
    %386 = vector.load %arg24[%c992_499, %c0_500] : memref<1376x70xbf16, #tpu.memory_space<vmem>>, vector<32x70xbf16>
    tpu.vector_store %arg24[%c992_499, %c0_500], %385 {strides = array<i32>} : memref<1376x70xbf16, #tpu.memory_space<vmem>>, vector<32x70xbf16>,
    %c0_501 = arith.constant 0 : index
    %c512_502 = arith.constant 512 : index
    %387 = vector.load %arg13[%c0_501, %c512_502] : memref<128x1376xbf16, #tpu.memory_space<vmem>>, vector<128x512xbf16>
    %c512_503 = arith.constant 512 : index
    %c0_504 = arith.constant 0 : index
    %388 = vector.load %arg24[%c512_503, %c0_504] : memref<1376x70xbf16, #tpu.memory_space<vmem>>, vector<512x70xbf16>
    %cst_505 = arith.constant dense<0.000000e+00> : vector<128x70xf32>
    %389 = tpu.matmul %387, %388, %cst_505 {dimension_numbers = #tpu.dot_dimension_numbers<[1], [0], [0], [1], [0, 0, 1, 1], [], []>} : vector<128x512xbf16>, vector<512x70xbf16>, vector<128x70xf32> -> vector<128x70xf32>
    %390 = arith.addf %354, %389 : vector<128x70xf32>
    %c0_506 = arith.constant 0 : index
    %c141_507 = arith.constant 141 : index
    %391 = vector.load %arg23[%c0_506, %c141_507] : memref<32x217xbf16, #tpu.memory_space<vmem>>, vector<32x70xbf16>
    %c1024_508 = arith.constant 1024 : index
    %c0_509 = arith.constant 0 : index
    %392 = vector.load %arg24[%c1024_508, %c0_509] : memref<1376x70xbf16, #tpu.memory_space<vmem>>, vector<32x70xbf16>
    tpu.vector_store %arg24[%c1024_508, %c0_509], %391 {strides = array<i32>} : memref<1376x70xbf16, #tpu.memory_space<vmem>>, vector<32x70xbf16>,
    %c0_510 = arith.constant 0 : index
    %c142_511 = arith.constant 142 : index
    %393 = vector.load %arg23[%c0_510, %c142_511] : memref<32x217xbf16, #tpu.memory_space<vmem>>, vector<32x70xbf16>
    %c1056_512 = arith.constant 1056 : index
    %c0_513 = arith.constant 0 : index
    %394 = vector.load %arg24[%c1056_512, %c0_513] : memref<1376x70xbf16, #tpu.memory_space<vmem>>, vector<32x70xbf16>
    tpu.vector_store %arg24[%c1056_512, %c0_513], %393 {strides = array<i32>} : memref<1376x70xbf16, #tpu.memory_space<vmem>>, vector<32x70xbf16>,
    %c0_514 = arith.constant 0 : index
    %c143_515 = arith.constant 143 : index
    %395 = vector.load %arg23[%c0_514, %c143_515] : memref<32x217xbf16, #tpu.memory_space<vmem>>, vector<32x70xbf16>
    %c1088_516 = arith.constant 1088 : index
    %c0_517 = arith.constant 0 : index
    %396 = vector.load %arg24[%c1088_516, %c0_517] : memref<1376x70xbf16, #tpu.memory_space<vmem>>, vector<32x70xbf16>
    tpu.vector_store %arg24[%c1088_516, %c0_517], %395 {strides = array<i32>} : memref<1376x70xbf16, #tpu.memory_space<vmem>>, vector<32x70xbf16>,
    %c0_518 = arith.constant 0 : index
    %c144_519 = arith.constant 144 : index
    %397 = vector.load %arg23[%c0_518, %c144_519] : memref<32x217xbf16, #tpu.memory_space<vmem>>, vector<32x70xbf16>
    %c1120_520 = arith.constant 1120 : index
    %c0_521 = arith.constant 0 : index
    %398 = vector.load %arg24[%c1120_520, %c0_521] : memref<1376x70xbf16, #tpu.memory_space<vmem>>, vector<32x70xbf16>
    tpu.vector_store %arg24[%c1120_520, %c0_521], %397 {strides = array<i32>} : memref<1376x70xbf16, #tpu.memory_space<vmem>>, vector<32x70xbf16>,
    %c0_522 = arith.constant 0 : index
    %c145_523 = arith.constant 145 : index
    %399 = vector.load %arg23[%c0_522, %c145_523] : memref<32x217xbf16, #tpu.memory_space<vmem>>, vector<32x70xbf16>
    %c1152_524 = arith.constant 1152 : index
    %c0_525 = arith.constant 0 : index
    %400 = vector.load %arg24[%c1152_524, %c0_525] : memref<1376x70xbf16, #tpu.memory_space<vmem>>, vector<32x70xbf16>
    tpu.vector_store %arg24[%c1152_524, %c0_525], %399 {strides = array<i32>} : memref<1376x70xbf16, #tpu.memory_space<vmem>>, vector<32x70xbf16>,
    %c0_526 = arith.constant 0 : index
    %c146_527 = arith.constant 146 : index
    %401 = vector.load %arg23[%c0_526, %c146_527] : memref<32x217xbf16, #tpu.memory_space<vmem>>, vector<32x70xbf16>
    %c1184_528 = arith.constant 1184 : index
    %c0_529 = arith.constant 0 : index
    %402 = vector.load %arg24[%c1184_528, %c0_529] : memref<1376x70xbf16, #tpu.memory_space<vmem>>, vector<32x70xbf16>
    tpu.vector_store %arg24[%c1184_528, %c0_529], %401 {strides = array<i32>} : memref<1376x70xbf16, #tpu.memory_space<vmem>>, vector<32x70xbf16>,
    %c0_530 = arith.constant 0 : index
    %c147_531 = arith.constant 147 : index
    %403 = vector.load %arg23[%c0_530, %c147_531] : memref<32x217xbf16, #tpu.memory_space<vmem>>, vector<32x70xbf16>
    %c1216_532 = arith.constant 1216 : index
    %c0_533 = arith.constant 0 : index
    %404 = vector.load %arg24[%c1216_532, %c0_533] : memref<1376x70xbf16, #tpu.memory_space<vmem>>, vector<32x70xbf16>
    tpu.vector_store %arg24[%c1216_532, %c0_533], %403 {strides = array<i32>} : memref<1376x70xbf16, #tpu.memory_space<vmem>>, vector<32x70xbf16>,
    %c0_534 = arith.constant 0 : index
    %c1024_535 = arith.constant 1024 : index
    %405 = vector.load %arg13[%c0_534, %c1024_535] : memref<128x1376xbf16, #tpu.memory_space<vmem>>, vector<128x224xbf16>
    %c1024_536 = arith.constant 1024 : index
    %c0_537 = arith.constant 0 : index
    %406 = vector.load %arg24[%c1024_536, %c0_537] : memref<1376x70xbf16, #tpu.memory_space<vmem>>, vector<224x70xbf16>
    %cst_538 = arith.constant dense<0.000000e+00> : vector<128x70xf32>
    %407 = tpu.matmul %405, %406, %cst_538 {dimension_numbers = #tpu.dot_dimension_numbers<[1], [0], [0], [1], [0, 0, 1, 1], [], []>} : vector<128x224xbf16>, vector<224x70xbf16>, vector<128x70xf32> -> vector<128x70xf32>
    %408 = arith.addf %390, %407 : vector<128x70xf32>
    %c0_539 = arith.constant 0 : index
    %c127_540 = arith.constant 127 : index
    %409 = vector.load %arg25[%c0_539, %c127_540] : memref<128x199xbf16, #tpu.memory_space<vmem>>, vector<128x70xbf16>
    %c0_541 = arith.constant 0 : index
    %c128_542 = arith.constant 128 : index
    %410 = vector.load %arg25[%c0_541, %c128_542] : memref<128x199xbf16, #tpu.memory_space<vmem>>, vector<128x70xbf16>
    %411 = arith.maximumf %409, %410 : vector<128x70xbf16>
    %c0_543 = arith.constant 0 : index
    %c129_544 = arith.constant 129 : index
    %412 = vector.load %arg25[%c0_543, %c129_544] : memref<128x199xbf16, #tpu.memory_space<vmem>>, vector<128x70xbf16>
    %413 = arith.maximumf %411, %412 : vector<128x70xbf16>
    %cst_545 = arith.constant 0.000000e+00 : f32
    %414 = arith.truncf %cst_545 : f32 to bf16
    %415 = vector.shape_cast %2 : vector<1x70xi1> to vector<1x70xi1>
    %416 = vector.broadcast %415 : vector<1x70xi1> to vector<128x70xi1>
    %417 = vector.broadcast %414 : bf16 to vector<128x70xbf16>
    %418 = arith.select %416, %413, %417 : vector<128x70xi1>, vector<128x70xbf16>
    %c1248_546 = arith.constant 1248 : index
    %c0_547 = arith.constant 0 : index
    %419 = vector.load %arg24[%c1248_546, %c0_547] : memref<1376x70xbf16, #tpu.memory_space<vmem>>, vector<128x70xbf16>
    tpu.vector_store %arg24[%c1248_546, %c0_547], %418 {strides = array<i32>} : memref<1376x70xbf16, #tpu.memory_space<vmem>>, vector<128x70xbf16>,
    %c0_548 = arith.constant 0 : index
    %c1248_549 = arith.constant 1248 : index
    %420 = vector.load %arg13[%c0_548, %c1248_549] : memref<128x1376xbf16, #tpu.memory_space<vmem>>, vector<128x128xbf16>
    %c1248_550 = arith.constant 1248 : index
    %c0_551 = arith.constant 0 : index
    %421 = vector.load %arg24[%c1248_550, %c0_551] : memref<1376x70xbf16, #tpu.memory_space<vmem>>, vector<128x70xbf16>
    %cst_552 = arith.constant dense<0.000000e+00> : vector<128x70xf32>
    %422 = tpu.matmul %420, %421, %cst_552 {dimension_numbers = #tpu.dot_dimension_numbers<[1], [0], [0], [1], [0, 0, 1, 1], [], []>} : vector<128x128xbf16>, vector<128x70xbf16>, vector<128x70xf32> -> vector<128x70xf32>
    %423 = arith.addf %408, %422 : vector<128x70xf32>
    %c0_553 = arith.constant 0 : index
    %c0_554 = arith.constant 0 : index
    %424 = vector.load %arg14[%c0_553, %c0_554] : memref<128x1xf32, #tpu.memory_space<vmem>>, vector<128x1xf32>
    %425 = vector.broadcast %424 : vector<128x1xf32> to vector<128x70xf32>
    %426 = arith.mulf %423, %425 : vector<128x70xf32>
    %c0_555 = arith.constant 0 : index
    %c0_556 = arith.constant 0 : index
    %427 = vector.load %arg15[%c0_555, %c0_556] : memref<128x1xf32, #tpu.memory_space<vmem>>, vector<128x1xf32>
    %428 = vector.broadcast %427 : vector<128x1xf32> to vector<128x70xf32>
    %429 = arith.addf %426, %428 : vector<128x70xf32>
    %cst_557 = arith.constant 0.000000e+00 : f32
    %430 = vector.broadcast %cst_557 : f32 to vector<128x70xf32>
    %431 = arith.maximumf %429, %430 : vector<128x70xf32>
    %c0_558 = arith.constant 0 : index
    %c0_559 = arith.constant 0 : index
    %432 = vector.load %arg16[%c0_558, %c0_559] : memref<128x8xbf16, #tpu.memory_space<vmem>>, vector<128x8xbf16>
    %cst_560 = arith.constant dense<0.000000e+00> : vector<128x70xf32>
    %433 = tpu.matmul %432, %45, %cst_560 {dimension_numbers = #tpu.dot_dimension_numbers<[1], [0], [0], [1], [0, 0, 1, 1], [], []>} : vector<128x8xbf16>, vector<8x70xbf16>, vector<128x70xf32> -> vector<128x70xf32>
    %c0_561 = arith.constant 0 : index
    %c0_562 = arith.constant 0 : index
    %434 = vector.load %arg17[%c0_561, %c0_562] : memref<128x1xf32, #tpu.memory_space<vmem>>, vector<128x1xf32>
    %435 = vector.broadcast %434 : vector<128x1xf32> to vector<128x70xf32>
    %436 = arith.mulf %433, %435 : vector<128x70xf32>
    %437 = arith.addf %431, %436 : vector<128x70xf32>
    %c0_563 = arith.constant 0 : index
    %c0_564 = arith.constant 0 : index
    %438 = vector.load %arg18[%c0_563, %c0_564] : memref<128x1xf32, #tpu.memory_space<vmem>>, vector<128x1xf32>
    %439 = vector.broadcast %438 : vector<128x1xf32> to vector<128x70xf32>
    %440 = arith.addf %437, %439 : vector<128x70xf32>
    %cst_565 = arith.constant 0.000000e+00 : f32
    %441 = vector.broadcast %cst_565 : f32 to vector<128x70xf32>
    %442 = arith.maximumf %440, %441 : vector<128x70xf32>
    %c0_566 = arith.constant 0 : index
    %c0_567 = arith.constant 0 : index
    %443 = vector.load %arg3[%c0_566, %c0_567] : memref<70x2xf32, #tpu.memory_space<vmem>>, vector<70x2xf32>
    %cst_568 = arith.constant dense<0.000000e+00> : vector<128x2xf32>
    %444 = tpu.matmul %442, %443, %cst_568 {dimension_numbers = #tpu.dot_dimension_numbers<[1], [0], [0], [1], [0, 0, 1, 1], [], []>} : vector<128x70xf32>, vector<70x2xf32>, vector<128x2xf32> -> vector<128x2xf32>
    %c0_569 = arith.constant 0 : index
    %c0_570 = arith.constant 0 : index
    %c0_571 = arith.constant 0 : index
    %445 = vector.load %arg22[%c0_569, %c0_570, %c0_571] : memref<1x128x2xf32, #tpu.memory_space<vmem>>, vector<1x128x2xf32>
    %446 = vector.shape_cast %445 : vector<1x128x2xf32> to vector<128x2xf32>
    %447 = vector.shape_cast %444 : vector<128x2xf32> to vector<1x128x2xf32>
    tpu.vector_store %arg22[%c0_569, %c0_570, %c0_571], %447 {strides = array<i32>} : memref<1x128x2xf32, #tpu.memory_space<vmem>>, vector<1x128x2xf32>,
    %c0_572 = arith.constant 0 : index
    %c0_573 = arith.constant 0 : index
    %448 = vector.load %arg19[%c0_572, %c0_573] : memref<6x128xf32, #tpu.memory_space<vmem>>, vector<6x128xf32>
    %cst_574 = arith.constant dense<0.000000e+00> : vector<6x2xf32>
    %449 = tpu.matmul %448, %444, %cst_574 {dimension_numbers = #tpu.dot_dimension_numbers<[1], [0], [0], [1], [0, 0, 1, 1], [], []>} : vector<6x128xf32>, vector<128x2xf32>, vector<6x2xf32> -> vector<6x2xf32>
    %c0_575 = arith.constant 0 : index
    %c0_576 = arith.constant 0 : index
    %450 = vector.load %arg20[%c0_575, %c0_576] : memref<6x1xf32, #tpu.memory_space<vmem>>, vector<6x1xf32>
    %451 = vector.broadcast %450 : vector<6x1xf32> to vector<6x2xf32>
    %452 = arith.addf %449, %451 : vector<6x2xf32>
    %c0_577 = arith.constant 0 : index
    %c0_578 = arith.constant 0 : index
    %c0_579 = arith.constant 0 : index
    %453 = vector.load %arg21[%c0_577, %c0_578, %c0_579] : memref<1x6x2xf32, #tpu.memory_space<vmem>>, vector<1x6x2xf32>
    %454 = vector.shape_cast %453 : vector<1x6x2xf32> to vector<6x2xf32>
    %455 = vector.shape_cast %452 : vector<6x2xf32> to vector<1x6x2xf32>
    tpu.vector_store %arg21[%c0_577, %c0_578, %c0_579], %455 {strides = array<i32>} : memref<1x6x2xf32, #tpu.memory_space<vmem>>, vector<1x6x2xf32>,
    return
  }
  func.func @transform_0(%arg0: i32) -> (i32, i32, i32) {
    %c0_i32 = arith.constant 0 : i32
    %c0_i32_0 = arith.constant 0 : i32
    %c0_i32_1 = arith.constant 0 : i32
    return %arg0, %c0_i32, %c0_i32_0 : i32, i32, i32
  }
  func.func @transform_1(%arg0: i32) -> (i32, i32) {
    %c0_i32 = arith.constant 0 : i32
    %c0_i32_0 = arith.constant 0 : i32
    %c0_i32_1 = arith.constant 0 : i32
    return %c0_i32, %c0_i32_0 : i32, i32
  }
  func.func @transform_2(%arg0: i32) -> (i32, i32) {
    %c0_i32 = arith.constant 0 : i32
    %c0_i32_0 = arith.constant 0 : i32
    %c0_i32_1 = arith.constant 0 : i32
    return %c0_i32, %c0_i32_0 : i32, i32
  }
  func.func @transform_3(%arg0: i32) -> (i32, i32) {
    %c0_i32 = arith.constant 0 : i32
    %c0_i32_0 = arith.constant 0 : i32
    %c0_i32_1 = arith.constant 0 : i32
    return %c0_i32, %c0_i32_0 : i32, i32
  }
  func.func @transform_4(%arg0: i32) -> (i32, i32) {
    %c0_i32 = arith.constant 0 : i32
    %c0_i32_0 = arith.constant 0 : i32
    %c0_i32_1 = arith.constant 0 : i32
    return %c0_i32, %c0_i32_0 : i32, i32
  }
  func.func @transform_5(%arg0: i32) -> (i32, i32) {
    %c0_i32 = arith.constant 0 : i32
    %c0_i32_0 = arith.constant 0 : i32
    %c0_i32_1 = arith.constant 0 : i32
    return %c0_i32, %c0_i32_0 : i32, i32
  }
  func.func @transform_6(%arg0: i32) -> (i32, i32) {
    %c0_i32 = arith.constant 0 : i32
    %c0_i32_0 = arith.constant 0 : i32
    %c0_i32_1 = arith.constant 0 : i32
    return %c0_i32, %c0_i32_0 : i32, i32
  }
  func.func @transform_7(%arg0: i32) -> (i32, i32) {
    %c0_i32 = arith.constant 0 : i32
    %c0_i32_0 = arith.constant 0 : i32
    %c0_i32_1 = arith.constant 0 : i32
    return %c0_i32, %c0_i32_0 : i32, i32
  }
  func.func @transform_8(%arg0: i32) -> (i32, i32) {
    %c0_i32 = arith.constant 0 : i32
    %c0_i32_0 = arith.constant 0 : i32
    %c0_i32_1 = arith.constant 0 : i32
    return %c0_i32, %c0_i32_0 : i32, i32
  }
  func.func @transform_9(%arg0: i32) -> (i32, i32) {
    %c0_i32 = arith.constant 0 : i32
    %c0_i32_0 = arith.constant 0 : i32
    %c0_i32_1 = arith.constant 0 : i32
    return %c0_i32, %c0_i32_0 : i32, i32
  }
  func.func @transform_10(%arg0: i32) -> (i32, i32) {
    %c0_i32 = arith.constant 0 : i32
    %c0_i32_0 = arith.constant 0 : i32
    %c0_i32_1 = arith.constant 0 : i32
    return %c0_i32, %c0_i32_0 : i32, i32
  }
  func.func @transform_11(%arg0: i32) -> (i32, i32) {
    %c0_i32 = arith.constant 0 : i32
    %c0_i32_0 = arith.constant 0 : i32
    %c0_i32_1 = arith.constant 0 : i32
    return %c0_i32, %c0_i32_0 : i32, i32
  }
  func.func @transform_12(%arg0: i32) -> (i32, i32) {
    %c0_i32 = arith.constant 0 : i32
    %c0_i32_0 = arith.constant 0 : i32
    %c0_i32_1 = arith.constant 0 : i32
    return %c0_i32, %c0_i32_0 : i32, i32
  }
  func.func @transform_13(%arg0: i32) -> (i32, i32) {
    %c0_i32 = arith.constant 0 : i32
    %c0_i32_0 = arith.constant 0 : i32
    %c0_i32_1 = arith.constant 0 : i32
    return %c0_i32, %c0_i32_0 : i32, i32
  }
  func.func @transform_14(%arg0: i32) -> (i32, i32) {
    %c0_i32 = arith.constant 0 : i32
    %c0_i32_0 = arith.constant 0 : i32
    %c0_i32_1 = arith.constant 0 : i32
    return %c0_i32, %c0_i32_0 : i32, i32
  }
  func.func @transform_15(%arg0: i32) -> (i32, i32) {
    %c0_i32 = arith.constant 0 : i32
    %c0_i32_0 = arith.constant 0 : i32
    %c0_i32_1 = arith.constant 0 : i32
    return %c0_i32, %c0_i32_0 : i32, i32
  }
  func.func @transform_16(%arg0: i32) -> (i32, i32) {
    %c0_i32 = arith.constant 0 : i32
    %c0_i32_0 = arith.constant 0 : i32
    %c0_i32_1 = arith.constant 0 : i32
    return %c0_i32, %c0_i32_0 : i32, i32
  }
  func.func @transform_17(%arg0: i32) -> (i32, i32) {
    %c0_i32 = arith.constant 0 : i32
    %c0_i32_0 = arith.constant 0 : i32
    %c0_i32_1 = arith.constant 0 : i32
    return %c0_i32, %c0_i32_0 : i32, i32
  }
  func.func @transform_18(%arg0: i32) -> (i32, i32) {
    %c0_i32 = arith.constant 0 : i32
    %c0_i32_0 = arith.constant 0 : i32
    %c0_i32_1 = arith.constant 0 : i32
    return %c0_i32, %c0_i32_0 : i32, i32
  }
  func.func @transform_19(%arg0: i32) -> (i32, i32) {
    %c0_i32 = arith.constant 0 : i32
    %c0_i32_0 = arith.constant 0 : i32
    %c0_i32_1 = arith.constant 0 : i32
    return %c0_i32, %c0_i32_0 : i32, i32
  }
  func.func @transform_20(%arg0: i32) -> (i32, i32, i32) {
    %c0_i32 = arith.constant 0 : i32
    %c0_i32_0 = arith.constant 0 : i32
    %c0_i32_1 = arith.constant 0 : i32
    return %arg0, %c0_i32, %c0_i32_0 : i32, i32, i32
  }
  func.func @transform_21(%arg0: i32) -> (i32, i32, i32) {
    %c0_i32 = arith.constant 0 : i32
    %c0_i32_0 = arith.constant 0 : i32
    %c0_i32_1 = arith.constant 0 : i32
    return %arg0, %c0_i32, %c0_i32_0 : i32, i32, i32
  }
}

</mosaic_0001>

<bundles_post_ra>
// kernel: tpu_custom_call.1
= control target key start
LH: loop header
LB: loop body
LE: loop exit
PB: predicated region body
PF: predicated region fallthrough
CT: control target
= control target key end

     0   :  { %s16167_s0 = inlined_call_operand.hbm [shape: f32[6,8,16], index: 0, kind: input, shape index: {}]   ;;  %s16168_s1 = inlined_call_operand.hbm [shape: f32[1,70], index: 1, kind: input, shape index: {}]   ;;  %s16169_s2 = inlined_call_operand.hbm [shape: f32[70,2], index: 2, kind: input, shape index: {}]   ;;  %s16170_s3 = inlined_call_operand.hbm [shape: bf16[32,8], index: 3, kind: input, shape index: {}]   ;;  %s16171_s4 = inlined_call_operand.hbm [shape: bf16[128,1256], index: 4, kind: input, shape index: {}]   ;;  %s16172_s5 = inlined_call_operand.hbm [shape: f32[128,1], index: 5, kind: input, shape index: {}]   ;;  %s16173_s6 = inlined_call_operand.hbm [shape: f32[128,1], index: 6, kind: input, shape index: {}]   ;;  %s16174_s7 = inlined_call_operand.hbm [shape: bf16[32,128], index: 7, kind: input, shape index: {}]   ;;  %s16175_s8 = inlined_call_operand.hbm [shape: bf16[128,1376], index: 8, kind: input, shape index: {}]   ;;  %s16176_s9 = inlined_call_operand.hbm [shape: f32[128,1], index: 9, kind: input, shape index: {}]   ;;  %s16177_s10 = inlined_call_operand.hbm [shape: f32[128,1], index: 10, kind: input, shape index: {}]   ;;  %s16178_s11 = inlined_call_operand.hbm [shape: bf16[32,128], index: 11, kind: input, shape index: {}]   ;;  %s16179_s12 = inlined_call_operand.hbm [shape: bf16[128,1376], index: 12, kind: input, shape index: {}]   ;;  %s16180_s13 = inlined_call_operand.hbm [shape: f32[128,1], index: 13, kind: input, shape index: {}]   ;;  %s16181_s14 = inlined_call_operand.hbm [shape: f32[128,1], index: 14, kind: input, shape index: {}]   ;;  %s16182_s15 = inlined_call_operand.hbm [shape: bf16[128,8], index: 15, kind: input, shape index: {}]   ;;  %s16183_s16 = inlined_call_operand.hbm [shape: f32[128,1], index: 16, kind: input, shape index: {}]   ;;  %s16184_s17 = inlined_call_operand.hbm [shape: f32[128,1], index: 17, kind: input, shape index: {}]   ;;  %s16185_s18 = inlined_call_operand.hbm [shape: f32[6,128], index: 18, kind: input, shape index: {}]   ;;  %s16186_s19 = inlined_call_operand.hbm [shape: f32[6,1], index: 19, kind: input, shape index: {}]   ;;  %s16187_s20 = inlined_call_operand.hbm [shape: f32[3,6,2], index: 20, kind: output, shape index: {0}]   ;;  %s16188_s21 = inlined_call_operand.hbm [shape: f32[3,128,2], index: 21, kind: output, shape index: {1}]  }
   0x1   :  { %16340 = sst [smem:[#allocation78_spill]] %s16167_s0 }
   0x2   :  { %16341 = sst [smem:[#allocation79_spill]] %s16168_s1 }
   0x3   :  { %16342 = sst [smem:[#allocation80_spill]] %s16169_s2 }
   0x4   :  { %16343 = sst [smem:[#allocation81_spill]] %s16170_s3 }
   0x5   :  { %16344 = sst [smem:[#allocation82_spill]] %s16171_s4 }
   0x6   :  { %16345 = sst [smem:[#allocation83_spill]] %s16172_s5 }
   0x7   :  { %16346 = sst [smem:[#allocation84_spill]] %s16173_s6 }
   0x8   :  { %16347 = sst [smem:[#allocation85_spill]] %s16174_s7 }
   0x9   :  { %16348 = sst [smem:[#allocation86_spill]] %s16175_s8 }
   0xa   :  { %16349 = sst [smem:[#allocation87_spill]] %s16176_s9 }
   0xb   :  { %16350 = sst [smem:[#allocation88_spill]] %s16177_s10 }
   0xc   :  { %16351 = sst [smem:[#allocation89_spill]] %s16178_s11 }
   0xd   :  { %16352 = sst [smem:[#allocation90_spill]] %s16179_s12 }
   0xe   :  { %16353 = sst [smem:[#allocation91_spill]] %s16180_s13 }
   0xf   :  { %16354 = sst [smem:[#allocation92_spill]] %s16181_s14 }
  0x10   :  { %16355 = sst [smem:[#allocation93_spill]] %s16182_s15 }
  0x11   :  { %16356 = sst [smem:[#allocation94_spill]] %s16183_s16 }
  0x12   :  { %16357 = sst [smem:[#allocation95_spill]] %s16184_s17 }
  0x13   :  { %16358 = sst [smem:[#allocation96_spill]] %s16185_s18 }
  0x14   :  { %16359 = sst [smem:[#allocation97_spill]] %s16186_s19 }
  0x15   :  { %16360 = sst [smem:[#allocation98_spill]] %s16187_s20 }
  0x16   :  { %16361 = sst [smem:[#allocation99_spill]] %s16188_s21 }
  0x17   :  { %27 = vsyncpa [#allocation7], 0 }
  0x18   :  { %29 = vsyncpa [#allocation7 + $0x1], 0 }
  0x19   :  { %30 = vsyncpa [#allocation10], 0 }
  0x1a   :  { %31 = vsyncpa [#allocation13], 0 }
  0x1b   :  { %32 = vsyncpa [#allocation16], 0 }
  0x1c   :  { %33 = vsyncpa [#allocation19], 0 }
  0x1d   :  { %34 = vsyncpa [#allocation22], 0 }
  0x1e   :  { %35 = vsyncpa [#allocation25], 0 }
  0x1f   :  { %36 = vsyncpa [#allocation28], 0 }
  0x20   :  { %37 = vsyncpa [#allocation31], 0 }
  0x21   :  { %38 = vsyncpa [#allocation34], 0 }
  0x22   :  { %39 = vsyncpa [#allocation37], 0 }
  0x23   :  { %40 = vsyncpa [#allocation8], 0 }
  0x24   :  { %42 = vsyncpa [#allocation8 + $0x1], 0 }
  0x25   :  { %43 = vsyncpa [#allocation40], 0 }
  0x26   :  { %45 = vsyncpa [#allocation40 + $0x1], 0  ;;  %s12761_s2 = smov 0   ;;  %s12763_s25 = smov 0  }
  0x27   :  { %s12765_s26 = smov 0   ;;  %s12767_s27 = smov 0  }
  0x28 LB: > { %16362 = sst [smem:[#allocation54_spill]] %s12561_s2  ;;  %s12575_s3 = smov [#allocation9]   ;;  %s12573_s27 = sphi %s12767_s27, %s16636_s27   ;;  %s12569_s26 = sphi %s12765_s26, %s16639_s26   ;;  %s12565_s25 = sphi %s12763_s25, %s16638_s25   ;;  %s12561_s2 = sphi %s12761_s2, %s16637_s2  }
  0x29   : > { %16363 = sst [smem:[#allocation55_spill]] %s12565_s25  ;;  %s546_s28 = sshll.u32 %s12575_s3, 4  ;;  %s547_s28 = int_to_ptr.vmem [resolvable:$true] %s546_s28 }
  0x2a   : > { %16364 = sst [smem:[#allocation56_spill]] %s12569_s26  ;;  %s12782_s29 = sadd.s32 4294967295, %s12573_s27  }
  0x2b   : > { %16365 = sst [smem:[#allocation57_spill]] %s12573_s27  ;;  %p9575_p0 = scmp.ge.s32.totalorder %s12573_s27, 1 }
  0x2c   : > { %16366 = sst [smem:[#allocation58_spill]] %s12782_s29  ;;  %p16201_p1 = scmp.eq.s32.totalorder %s12782_s29, 0 }
  0x2d   : > { %p533_p2 = scmp.lt.s32.totalorder %s12573_s27, 4  ;;  %s12576_s4 = smov [#allocation12]  }
  0x2e   : > { %s569_s30 = sshll.u32 %s12576_s4, 4  ;;  %s12577_s22 = smov [#allocation15]   ;;  %s12793_s30 = int_to_ptr.vmem [resolvable:$true] %s569_s30 }
  0x2f   : > { %p12787_p3 = pnand %p9575_p0, %p533_p2  ;;  %s12801_s23 = sshll.u32 %s12577_s22, 4  ;;  %s596_s23 = int_to_ptr.vmem [resolvable:$true] %s12801_s23 }
  0x30   : > { %s16370_s3 = sld [smem:[#allocation79_spill]] }
  0x31   : > { %s16367_s0 = scalar_select %p12787_p3, 1, 0 }
  0x32   : > { %p11276_p4 = pneg %p12787_p3 }
  0x33   : > { %16368 = sst [smem:[#allocation59_spill]] %s16367_s0 }
  0x34   : > { %p12797_p5 = pnand %p11276_p4, %p16201_p1 }
  0x36   : > { %s11873_s20 = scalar_lea.hbm %s16370_s3, 16  ;;  %p12811_p7 = pneg %p12797_p5 }
  0x37   : > { %p11874_p6 = scmp.ne.s32.totalorder %s16370_s3, %s11873_s20  ;;  %p11880_p10 = scmp.lt.u32.totalorder %s11873_s20, %s16370_s3 }
  0x39   : > { %p11876_p8 = pnand %p12811_p7, %p11874_p6 }
  0x3b   : > { %p11877_p9 = pneg %p11876_p8 }
  0x3d   : > { %p11882_p11 = pnand %p11880_p10, %p11877_p9 }
  0x3f   : > { %11885 = shalt.err (!%p11882_p11)
}
  0x40   : > { %s11886_s1 = scalar_lea.vmem %s547_s28, 16  ;;  %s11893_s21 = scalar_lea.vmem %s547_s28, 32 }
  0x41   : > { %p11887_p12 = scmp.ne.s32.totalorder %s547_s28, %s11886_s1  ;;  %p11894_p2 = scmp.lt.s32.totalorder %s547_s28, %s547_s28 }
  0x42   : > { %p11895_p4 = scmp.lt.s32.totalorder %s11893_s21, %s11886_s1 }
  0x43   : > { %p11889_p13 = pnand %p11887_p12, %p12811_p7 }
  0x44   : > { %p11896_p1 = por %p11895_p4, %p11894_p2 }
  0x45   : > { %p11890_p0 = pneg %p11889_p13 }
  0x47   : > { %p11897_p3 = pnand %p11896_p1, %p11890_p0 }
  0x49   : > { %11900 = shalt.err (!%p11897_p3)
}
  0x4a   : > { %11279 = dma.hbm_to_vmem [thread:$0]  (!%p12797_p5), %s16370_s3, 16, %s547_s28, [#allocation10]  }
  0x4b   : > { %s16372_s22 = sld [smem:[#allocation81_spill]] }
  0x51   : > { %s11901_s2 = scalar_lea.hbm %s16372_s22, 256 }
  0x52   : > { %p11902_p6 = scmp.ne.s32.totalorder %s16372_s22, %s11901_s2  ;;  %p11908_p1 = scmp.lt.u32.totalorder %s11901_s2, %s16372_s22 }
  0x54   : > { %p11904_p8 = pnand %p11902_p6, %p12811_p7 }
  0x56   : > { %p11905_p9 = pneg %p11904_p8 }
  0x58   : > { %p11910_p3 = pnand %p11908_p1, %p11905_p9 }
  0x5a   : > { %11913 = shalt.err (!%p11910_p3)
}
  0x5b   : > { %s11914_s28 = scalar_lea.vmem %s12793_s30, 256  ;;  %p11922_p13 = scmp.lt.s32.totalorder %s12793_s30, %s12793_s30 }
  0x5c   : > { %p11915_p10 = scmp.ne.s32.totalorder %s12793_s30, %s11914_s28  ;;  %p11923_p0 = scmp.lt.s32.totalorder %s11914_s28, %s11914_s28 }
  0x5e   : > { %p11917_p11 = pnand %p11915_p10, %p12811_p7  ;;  %p11924_p2 = por %p11923_p0, %p11922_p13 }
  0x60   : > { %p11918_p12 = pneg %p11917_p11 }
  0x62   : > { %p11925_p4 = pnand %p11924_p2, %p11918_p12 }
  0x64   : > { %11928 = shalt.err (!%p11925_p4)
}
  0x65   : > { %s16208_s25 = smov 64   ;;  %s16210_s2 = smov 4  }
  0x66   : > { %11285 = dma.hbm_to_vmem [thread:$0]  (!%p12797_p5), %s16372_s22, 256, %s12793_s30, [#allocation13], %s16208_s25, %s16208_s25, %s16210_s2  }
  0x67   : > { %s16373_s29 = sld [smem:[#allocation83_spill]] }
  0x6d   : > { %s11929_s1 = scalar_lea.hbm %s16373_s29, 2048 }
  0x6e   : > { %p11930_p6 = scmp.ne.s32.totalorder %s16373_s29, %s11929_s1  ;;  %p11936_p1 = scmp.lt.u32.totalorder %s11929_s1, %s16373_s29 }
  0x70   : > { %p11932_p8 = pnand %p11930_p6, %p12811_p7 }
  0x72   : > { %p11933_p9 = pneg %p11932_p8 }
  0x74   : > { %p11938_p3 = pnand %p11936_p1, %p11933_p9 }
  0x76   : > { %11941 = shalt.err (!%p11938_p3)
}
  0x77   : > { %s11942_s26 = scalar_lea.vmem %s596_s23, 2048  ;;  %p11950_p13 = scmp.lt.s32.totalorder %s596_s23, %s596_s23 }
  0x78   : > { %p11943_p10 = scmp.ne.s32.totalorder %s596_s23, %s11942_s26  ;;  %p11951_p0 = scmp.lt.s32.totalorder %s11942_s26, %s11942_s26 }
  0x7a   : > { %p11945_p11 = pnand %p11943_p10, %p12811_p7  ;;  %p11952_p2 = por %p11951_p0, %p11950_p13 }
  0x7c   : > { %p11946_p12 = pneg %p11945_p11 }
  0x7e   : > { %p11953_p4 = pnand %p11952_p2, %p11946_p12 }
  0x80   : > { %11956 = shalt.err (!%p11953_p4)
}
  0x81   : > { %s16215_s30 = smov 128   ;;  %s16217_s0 = smov 8  }
  0x82   : > { %11291 = dma.hbm_to_vmem [thread:$0]  (!%p12797_p5), %s16373_s29, 2048, %s596_s23, [#allocation16], %s16215_s30, %s16215_s30, %s16217_s0  }
  0x83   : > { %s12582_s24 = smov [#allocation18]   ;;  %s12583_s1 = smov [#allocation21]  }
  0x84   : > { %s621_s20 = sshll.u32 %s12582_s24, 4  ;;  %s647_s21 = sshll.u32 %s12583_s1, 4  ;;  %s622_s20 = int_to_ptr.vmem [resolvable:$true] %s621_s20  ;;  %s648_s21 = int_to_ptr.vmem [resolvable:$true] %s647_s21 }
  0x85   : > { %s16374_s7 = sld [smem:[#allocation85_spill]] }
  0x8b   : > { %s11957_s25 = scalar_lea.hbm %s16374_s7, 256 }
  0x8c   : > { %p11958_p6 = scmp.ne.s32.totalorder %s16374_s7, %s11957_s25  ;;  %p11964_p1 = scmp.lt.u32.totalorder %s11957_s25, %s16374_s7 }
  0x8e   : > { %p11960_p8 = pnand %p11958_p6, %p12811_p7 }
  0x90   : > { %p11961_p9 = pneg %p11960_p8 }
  0x92   : > { %p11966_p3 = pnand %p11964_p1, %p11961_p9 }
  0x94   : > { %11969 = shalt.err (!%p11966_p3)
}
  0x95   : > { %s11970_s23 = scalar_lea.vmem %s622_s20, 256  ;;  %p11978_p13 = scmp.lt.s32.totalorder %s622_s20, %s622_s20 }
  0x96   : > { %p11971_p10 = scmp.ne.s32.totalorder %s622_s20, %s11970_s23  ;;  %p11979_p0 = scmp.lt.s32.totalorder %s11970_s23, %s11970_s23 }
  0x98   : > { %p11973_p11 = pnand %p11971_p10, %p12811_p7  ;;  %p11980_p2 = por %p11979_p0, %p11978_p13 }
  0x9a   : > { %p11974_p12 = pneg %p11973_p11 }
  0x9c   : > { %p11981_p4 = pnand %p11980_p2, %p11974_p12 }
  0x9e   : > { %11984 = shalt.err (!%p11981_p4)
}
  0x9f   : > { %s16375_s22 = smov 4   ;;  %s16376_s2 = smov 64  }
  0xa0   : > { %11297 = dma.hbm_to_vmem [thread:$0]  (!%p12797_p5), %s16374_s7, 256, %s622_s20, [#allocation19], %s16376_s2, %s16376_s2, %s16375_s22  }
  0xa1   : > { %s16377_s9 = sld [smem:[#allocation87_spill]] }
  0xa7   : > { %s11985_s3 = scalar_lea.hbm %s16377_s9, 2048 }
  0xa8   : > { %p11986_p6 = scmp.ne.s32.totalorder %s16377_s9, %s11985_s3  ;;  %p11992_p1 = scmp.lt.u32.totalorder %s11985_s3, %s16377_s9 }
  0xaa   : > { %p11988_p8 = pnand %p11986_p6, %p12811_p7 }
  0xac   : > { %p11989_p9 = pneg %p11988_p8 }
  0xae   : > { %p11994_p3 = pnand %p11992_p1, %p11989_p9 }
  0xb0   : > { %11997 = shalt.err (!%p11994_p3)
}
  0xb1   : > { %s11998_s23 = scalar_lea.vmem %s648_s21, 2048  ;;  %p12006_p13 = scmp.lt.s32.totalorder %s648_s21, %s648_s21 }
  0xb2   : > { %p11999_p10 = scmp.ne.s32.totalorder %s648_s21, %s11998_s23  ;;  %p12007_p0 = scmp.lt.s32.totalorder %s11998_s23, %s11998_s23 }
  0xb4   : > { %p12001_p11 = pnand %p11999_p10, %p12811_p7  ;;  %p12008_p2 = por %p12007_p0, %p12006_p13 }
  0xb6   : > { %p12002_p12 = pneg %p12001_p11 }
  0xb8   : > { %p12009_p4 = pnand %p12008_p2, %p12002_p12 }
  0xba   : > { %12012 = shalt.err (!%p12009_p4)
}
  0xbb   : > { %11303 = dma.hbm_to_vmem [thread:$0]  (!%p12797_p5), %s16377_s9, 2048, %s648_s21, [#allocation22], %s16215_s30, %s16215_s30, %s16217_s0  }
  0xbc   : > { %s12584_s19 = smov [#allocation24]   ;;  %s12585_s27 = smov [#allocation27]  }
  0xbd   : > { %s673_s25 = sshll.u32 %s12584_s19, 4  ;;  %s699_s3 = sshll.u32 %s12585_s27, 4  ;;  %s674_s25 = int_to_ptr.vmem [resolvable:$true] %s673_s25  ;;  %s700_s3 = int_to_ptr.vmem [resolvable:$true] %s699_s3 }
  0xbe   : > { %s16378_s11 = sld [smem:[#allocation89_spill]] }
  0xc4   : > { %s12013_s28 = scalar_lea.hbm %s16378_s11, 256 }
  0xc5   : > { %p12014_p6 = scmp.ne.s32.totalorder %s16378_s11, %s12013_s28  ;;  %p12020_p1 = scmp.lt.u32.totalorder %s12013_s28, %s16378_s11 }
  0xc7   : > { %p12016_p8 = pnand %p12014_p6, %p12811_p7 }
  0xc9   : > { %p12017_p9 = pneg %p12016_p8 }
  0xcb   : > { %p12022_p3 = pnand %p12020_p1, %p12017_p9 }
  0xcd   : > { %12025 = shalt.err (!%p12022_p3)
}
  0xce   : > { %s12026_s21 = scalar_lea.vmem %s674_s25, 256  ;;  %p12034_p13 = scmp.lt.s32.totalorder %s674_s25, %s674_s25 }
  0xcf   : > { %p12027_p10 = scmp.ne.s32.totalorder %s674_s25, %s12026_s21  ;;  %p12035_p0 = scmp.lt.s32.totalorder %s12026_s21, %s12026_s21 }
  0xd1   : > { %p12029_p11 = pnand %p12027_p10, %p12811_p7  ;;  %p12036_p2 = por %p12035_p0, %p12034_p13 }
  0xd3   : > { %p12030_p12 = pneg %p12029_p11 }
  0xd5   : > { %p12037_p4 = pnand %p12036_p2, %p12030_p12 }
  0xd7   : > { %12040 = shalt.err (!%p12037_p4)
}
  0xd8   : > { %11309 = dma.hbm_to_vmem [thread:$0]  (!%p12797_p5), %s16378_s11, 256, %s674_s25, [#allocation25], %s16376_s2, %s16376_s2, %s16375_s22  }
  0xd9   : > { %s16379_s13 = sld [smem:[#allocation91_spill]] }
  0xdf   : > { %s12041_s24 = scalar_lea.hbm %s16379_s13, 2048 }
  0xe0   : > { %p12042_p6 = scmp.ne.s32.totalorder %s16379_s13, %s12041_s24  ;;  %p12048_p1 = scmp.lt.u32.totalorder %s12041_s24, %s16379_s13 }
  0xe2   : > { %p12044_p8 = pnand %p12042_p6, %p12811_p7 }
  0xe4   : > { %p12045_p9 = pneg %p12044_p8 }
  0xe6   : > { %p12050_p3 = pnand %p12048_p1, %p12045_p9 }
  0xe8   : > { %12053 = shalt.err (!%p12050_p3)
}
  0xe9   : > { %s12054_s20 = scalar_lea.vmem %s700_s3, 2048  ;;  %p12062_p13 = scmp.lt.s32.totalorder %s700_s3, %s700_s3 }
  0xea   : > { %p12055_p10 = scmp.ne.s32.totalorder %s700_s3, %s12054_s20  ;;  %p12063_p0 = scmp.lt.s32.totalorder %s12054_s20, %s12054_s20 }
  0xec   : > { %p12057_p11 = pnand %p12055_p10, %p12811_p7  ;;  %p12064_p2 = por %p12063_p0, %p12062_p13 }
  0xee   : > { %p12058_p12 = pneg %p12057_p11 }
  0xf0   : > { %p12065_p4 = pnand %p12064_p2, %p12058_p12 }
  0xf2   : > { %12068 = shalt.err (!%p12065_p4)
}
  0xf3   : > { %11315 = dma.hbm_to_vmem [thread:$0]  (!%p12797_p5), %s16379_s13, 2048, %s700_s3, [#allocation28], %s16215_s30, %s16215_s30, %s16217_s0  }
  0xf4   : > { %s12586_s7 = smov [#allocation30]   ;;  %s12587_s19 = smov [#allocation33]  }
  0xf5   : > { %s725_s18 = sshll.u32 %s12586_s7, 4  ;;  %s751_s27 = sshll.u32 %s12587_s19, 4  ;;  %s726_s18 = int_to_ptr.vmem [resolvable:$true] %s725_s18  ;;  %s752_s27 = int_to_ptr.vmem [resolvable:$true] %s751_s27 }
  0xf6   : > { %s16380_s15 = sld [smem:[#allocation93_spill]] }
  0xfc   : > { %s12069_s28 = scalar_lea.hbm %s16380_s15, 1024 }
  0xfd   : > { %p12070_p6 = scmp.ne.s32.totalorder %s16380_s15, %s12069_s28  ;;  %p12076_p1 = scmp.lt.u32.totalorder %s12069_s28, %s16380_s15 }
  0xff   : > { %p12072_p8 = pnand %p12070_p6, %p12811_p7 }
 0x101   : > { %p12073_p9 = pneg %p12072_p8 }
 0x103   : > { %p12078_p3 = pnand %p12076_p1, %p12073_p9 }
 0x105   : > { %12081 = shalt.err (!%p12078_p3)
}
 0x106   : > { %s12082_s3 = scalar_lea.vmem %s726_s18, 1024  ;;  %p12090_p13 = scmp.lt.s32.totalorder %s726_s18, %s726_s18 }
 0x107   : > { %p12083_p10 = scmp.ne.s32.totalorder %s726_s18, %s12082_s3  ;;  %p12091_p0 = scmp.lt.s32.totalorder %s12082_s3, %s12082_s3 }
 0x109   : > { %p12085_p11 = pnand %p12083_p10, %p12811_p7  ;;  %p12092_p2 = por %p12091_p0, %p12090_p13 }
 0x10b   : > { %p12086_p12 = pneg %p12085_p11 }
 0x10d   : > { %p12093_p4 = pnand %p12092_p2, %p12086_p12 }
 0x10f   : > { %12096 = shalt.err (!%p12093_p4)
}
 0x110   : > { %11321 = dma.hbm_to_vmem [thread:$0]  (!%p12797_p5), %s16380_s15, 1024, %s726_s18, [#allocation31], %s16376_s2, %s16376_s2, %s16375_s22  }
 0x111   : > { %s16381_s17 = sld [smem:[#allocation95_spill]] }
 0x117   : > { %s12097_s1 = scalar_lea.hbm %s16381_s17, 2048 }
 0x118   : > { %p12098_p6 = scmp.ne.s32.totalorder %s16381_s17, %s12097_s1  ;;  %p12104_p1 = scmp.lt.u32.totalorder %s12097_s1, %s16381_s17 }
 0x11a   : > { %p12100_p8 = pnand %p12098_p6, %p12811_p7 }
 0x11c   : > { %p12101_p9 = pneg %p12100_p8 }
 0x11e   : > { %p12106_p3 = pnand %p12104_p1, %p12101_p9 }
 0x120   : > { %12109 = shalt.err (!%p12106_p3)
}
 0x121   : > { %s12110_s25 = scalar_lea.vmem %s752_s27, 2048  ;;  %p12118_p13 = scmp.lt.s32.totalorder %s752_s27, %s752_s27 }
 0x122   : > { %p12111_p10 = scmp.ne.s32.totalorder %s752_s27, %s12110_s25  ;;  %p12119_p0 = scmp.lt.s32.totalorder %s12110_s25, %s12110_s25 }
 0x124   : > { %p12113_p11 = pnand %p12111_p10, %p12811_p7  ;;  %p12120_p2 = por %p12119_p0, %p12118_p13 }
 0x126   : > { %p12114_p12 = pneg %p12113_p11 }
 0x128   : > { %p12121_p4 = pnand %p12120_p2, %p12114_p12 }
 0x12a   : > { %12124 = shalt.err (!%p12121_p4)
}
 0x12b   : > { %11327 = dma.hbm_to_vmem [thread:$0]  (!%p12797_p5), %s16381_s17, 2048, %s752_s27, [#allocation34], %s16215_s30, %s16215_s30, %s16217_s0  }
 0x12c   : > { %s12588_s18 = smov [#allocation11]   ;;  %s12589_s21 = smov [#allocation14]  }
 0x12d   : > { %s556_s3 = sshll.u32 %s12588_s18, 4  ;;  %s582_s7 = sshll.u32 %s12589_s21, 4  ;;  %s557_s3 = int_to_ptr.vmem [resolvable:$true] %s556_s3  ;;  %s583_s7 = int_to_ptr.vmem [resolvable:$true] %s582_s7 }
 0x12e   : > { %s16382_s1 = sld [smem:[#allocation80_spill]] }
 0x134   : > { %s12125_s28 = scalar_lea.hbm %s16382_s1, 1152 }
 0x135   : > { %p12126_p6 = scmp.ne.s32.totalorder %s16382_s1, %s12125_s28  ;;  %p12132_p1 = scmp.lt.u32.totalorder %s12125_s28, %s16382_s1 }
 0x137   : > { %p12128_p8 = pnand %p12126_p6, %p12811_p7 }
 0x139   : > { %p12129_p9 = pneg %p12128_p8 }
 0x13b   : > { %p12134_p3 = pnand %p12132_p1, %p12129_p9 }
 0x13d   : > { %12137 = shalt.err (!%p12134_p3)
}
 0x13e   : > { %s12138_s27 = scalar_lea.vmem %s557_s3, 1152  ;;  %p12146_p13 = scmp.lt.s32.totalorder %s557_s3, %s557_s3 }
 0x13f   : > { %p12139_p10 = scmp.ne.s32.totalorder %s557_s3, %s12138_s27  ;;  %p12147_p0 = scmp.lt.s32.totalorder %s12138_s27, %s12138_s27 }
 0x141   : > { %p12141_p11 = pnand %p12139_p10, %p12811_p7  ;;  %p12148_p2 = por %p12147_p0, %p12146_p13 }
 0x143   : > { %p12142_p12 = pneg %p12141_p11 }
 0x145   : > { %p12149_p4 = pnand %p12148_p2, %p12142_p12 }
 0x147   : > { %12152 = shalt.err (!%p12149_p4)
}
 0x148   : > { %11282 = dma.hbm_to_vmem [thread:$0]  (!%p12797_p5), %s16382_s1, 1152, %s557_s3, [#allocation10], %s16215_s30, %s16215_s30, %s16217_s0  }
 0x149   : > { %s16383_s19 = sld [smem:[#allocation82_spill]] }
 0x14f   : > { %s12153_s24 = scalar_lea.hbm %s16383_s19, 10240 }
 0x150   : > { %p12154_p6 = scmp.ne.s32.totalorder %s16383_s19, %s12153_s24  ;;  %p12160_p1 = scmp.lt.u32.totalorder %s12153_s24, %s16383_s19 }
 0x152   : > { %p12156_p8 = pnand %p12154_p6, %p12811_p7 }
 0x154   : > { %p12157_p9 = pneg %p12156_p8 }
 0x156   : > { %p12162_p3 = pnand %p12160_p1, %p12157_p9 }
 0x158   : > { %12165 = shalt.err (!%p12162_p3)
}
 0x159   : > { %s12166_s25 = scalar_lea.vmem %s583_s7, 10240  ;;  %p12174_p13 = scmp.lt.s32.totalorder %s583_s7, %s583_s7 }
 0x15a   : > { %p12167_p10 = scmp.ne.s32.totalorder %s583_s7, %s12166_s25  ;;  %p12175_p0 = scmp.lt.s32.totalorder %s12166_s25, %s12166_s25 }
 0x15c   : > { %p12169_p11 = pnand %p12167_p10, %p12811_p7  ;;  %p12176_p2 = por %p12175_p0, %p12174_p13 }
 0x15e   : > { %p12170_p12 = pneg %p12169_p11 }
 0x160   : > { %p12177_p4 = pnand %p12176_p2, %p12170_p12 }
 0x162   : > { %12180 = shalt.err (!%p12177_p4)
}
 0x163   : > { %s12590_s3 = smov 640   ;;  %s12591_s27 = smov 40  }
 0x164   : > { %11288 = dma.hbm_to_vmem [thread:$0]  (!%p12797_p5), %s16383_s19, 10240, %s583_s7, [#allocation13], %s12590_s3, %s12590_s3, %s12591_s27  }
 0x165   : > { %s12592_s18 = smov [#allocation17]   ;;  %s12593_s24 = smov [#allocation20]  }
 0x166   : > { %s608_s21 = sshll.u32 %s12592_s18, 4  ;;  %s634_s28 = sshll.u32 %s12593_s24, 4  ;;  %s609_s21 = int_to_ptr.vmem [resolvable:$true] %s608_s21  ;;  %s635_s28 = int_to_ptr.vmem [resolvable:$true] %s634_s28 }
 0x167   : > { %s16384_s6 = sld [smem:[#allocation84_spill]] }
 0x16d   : > { %s12181_s20 = scalar_lea.hbm %s16384_s6, 2048 }
 0x16e   : > { %p12182_p6 = scmp.ne.s32.totalorder %s16384_s6, %s12181_s20  ;;  %p12188_p1 = scmp.lt.u32.totalorder %s12181_s20, %s16384_s6 }
 0x170   : > { %p12184_p8 = pnand %p12182_p6, %p12811_p7 }
 0x172   : > { %p12185_p9 = pneg %p12184_p8 }
 0x174   : > { %p12190_p3 = pnand %p12188_p1, %p12185_p9 }
 0x176   : > { %12193 = shalt.err (!%p12190_p3)
}
 0x177   : > { %s12194_s7 = scalar_lea.vmem %s609_s21, 2048  ;;  %p12202_p13 = scmp.lt.s32.totalorder %s609_s21, %s609_s21 }
 0x178   : > { %p12195_p10 = scmp.ne.s32.totalorder %s609_s21, %s12194_s7  ;;  %p12203_p0 = scmp.lt.s32.totalorder %s12194_s7, %s12194_s7 }
 0x17a   : > { %p12197_p11 = pnand %p12195_p10, %p12811_p7  ;;  %p12204_p2 = por %p12203_p0, %p12202_p13 }
 0x17c   : > { %p12198_p12 = pneg %p12197_p11 }
 0x17e   : > { %p12205_p4 = pnand %p12204_p2, %p12198_p12 }
 0x180   : > { %12208 = shalt.err (!%p12205_p4)
}
 0x181   : > { %s16385_s30 = smov 8   ;;  %s16386_s3 = smov 128  }
 0x182   : > { %11294 = dma.hbm_to_vmem [thread:$0]  (!%p12797_p5), %s16384_s6, 2048, %s609_s21, [#allocation16], %s16386_s3, %s16386_s3, %s16385_s30  }
 0x183   : > { %s16387_s8 = sld [smem:[#allocation86_spill]] }
 0x189   : > { %s12209_s2 = scalar_lea.hbm %s16387_s8, 11264 }
 0x18a   : > { %p12210_p6 = scmp.ne.s32.totalorder %s16387_s8, %s12209_s2  ;;  %p12216_p1 = scmp.lt.u32.totalorder %s12209_s2, %s16387_s8 }
 0x18c   : > { %p12212_p8 = pnand %p12210_p6, %p12811_p7 }
 0x18e   : > { %p12213_p9 = pneg %p12212_p8 }
 0x190   : > { %p12218_p3 = pnand %p12216_p1, %p12213_p9 }
 0x192   : > { %12221 = shalt.err (!%p12218_p3)
}
 0x193   : > { %s12222_s20 = scalar_lea.vmem %s635_s28, 11264  ;;  %p12230_p13 = scmp.lt.s32.totalorder %s635_s28, %s635_s28 }
 0x194   : > { %p12223_p10 = scmp.ne.s32.totalorder %s635_s28, %s12222_s20  ;;  %p12231_p0 = scmp.lt.s32.totalorder %s12222_s20, %s12222_s20 }
 0x196   : > { %p12225_p11 = pnand %p12223_p10, %p12811_p7  ;;  %p12232_p2 = por %p12231_p0, %p12230_p13 }
 0x198   : > { %p12226_p12 = pneg %p12225_p11 }
 0x19a   : > { %p12233_p4 = pnand %p12232_p2, %p12226_p12 }
 0x19c   : > { %12236 = shalt.err (!%p12233_p4)
}
 0x19d   : > { %s12594_s21 = smov 704   ;;  %s12595_s25 = smov 44  }
 0x19e   : > { %11300 = dma.hbm_to_vmem [thread:$0]  (!%p12797_p5), %s16387_s8, 11264, %s635_s28, [#allocation19], %s12594_s21, %s12594_s21, %s12595_s25  }
 0x19f   : > { %s12596_s1 = smov [#allocation23]   ;;  %s12597_s22 = smov [#allocation26]  }
 0x1a0   : > { %s660_s27 = sshll.u32 %s12596_s1, 4  ;;  %s686_s2 = sshll.u32 %s12597_s22, 4  ;;  %s661_s27 = int_to_ptr.vmem [resolvable:$true] %s660_s27  ;;  %s687_s2 = int_to_ptr.vmem [resolvable:$true] %s686_s2 }
 0x1a1   : > { %s16388_s10 = sld [smem:[#allocation88_spill]] }
 0x1a7   : > { %s12237_s26 = scalar_lea.hbm %s16388_s10, 2048 }
 0x1a8   : > { %p12238_p6 = scmp.ne.s32.totalorder %s16388_s10, %s12237_s26  ;;  %p12244_p1 = scmp.lt.u32.totalorder %s12237_s26, %s16388_s10 }
 0x1aa   : > { %p12240_p8 = pnand %p12238_p6, %p12811_p7 }
 0x1ac   : > { %p12241_p9 = pneg %p12240_p8 }
 0x1ae   : > { %p12246_p3 = pnand %p12244_p1, %p12241_p9 }
 0x1b0   : > { %12249 = shalt.err (!%p12246_p3)
}
 0x1b1   : > { %s12250_s28 = scalar_lea.vmem %s661_s27, 2048  ;;  %p12258_p13 = scmp.lt.s32.totalorder %s661_s27, %s661_s27 }
 0x1b2   : > { %p12251_p10 = scmp.ne.s32.totalorder %s661_s27, %s12250_s28  ;;  %p12259_p0 = scmp.lt.s32.totalorder %s12250_s28, %s12250_s28 }
 0x1b4   : > { %p12253_p11 = pnand %p12251_p10, %p12811_p7  ;;  %p12260_p2 = por %p12259_p0, %p12258_p13 }
 0x1b6   : > { %p12254_p12 = pneg %p12253_p11 }
 0x1b8   : > { %p12261_p4 = pnand %p12260_p2, %p12254_p12 }
 0x1ba   : > { %12264 = shalt.err (!%p12261_p4)
}
 0x1bb   : > { %11306 = dma.hbm_to_vmem [thread:$0]  (!%p12797_p5), %s16388_s10, 2048, %s661_s27, [#allocation22], %s16386_s3, %s16386_s3, %s16385_s30  }
 0x1bc   : > { %s16389_s12 = sld [smem:[#allocation90_spill]] }
 0x1c2   : > { %s12265_s1 = scalar_lea.hbm %s16389_s12, 11264 }
 0x1c3   : > { %p12266_p6 = scmp.ne.s32.totalorder %s16389_s12, %s12265_s1  ;;  %p12272_p1 = scmp.lt.u32.totalorder %s12265_s1, %s16389_s12 }
 0x1c5   : > { %p12268_p8 = pnand %p12266_p6, %p12811_p7 }
 0x1c7   : > { %p12269_p9 = pneg %p12268_p8 }
 0x1c9   : > { %p12274_p3 = pnand %p12272_p1, %p12269_p9 }
 0x1cb   : > { %12277 = shalt.err (!%p12274_p3)
}
 0x1cc   : > { %s12278_s23 = scalar_lea.vmem %s687_s2, 11264  ;;  %p12286_p13 = scmp.lt.s32.totalorder %s687_s2, %s687_s2 }
 0x1cd   : > { %p12279_p10 = scmp.ne.s32.totalorder %s687_s2, %s12278_s23  ;;  %p12287_p0 = scmp.lt.s32.totalorder %s12278_s23, %s12278_s23 }
 0x1cf   : > { %p12281_p11 = pnand %p12279_p10, %p12811_p7  ;;  %p12288_p2 = por %p12287_p0, %p12286_p13 }
 0x1d1   : > { %p12282_p12 = pneg %p12281_p11 }
 0x1d3   : > { %p12289_p4 = pnand %p12288_p2, %p12282_p12 }
 0x1d5   : > { %12292 = shalt.err (!%p12289_p4)
}
 0x1d6   : > { %11312 = dma.hbm_to_vmem [thread:$0]  (!%p12797_p5), %s16389_s12, 11264, %s687_s2, [#allocation25], %s12594_s21, %s12594_s21, %s12595_s25  }
 0x1d7   : > { %s12598_s28 = smov [#allocation29]   ;;  %s12599_s9 = smov [#allocation32]  }
 0x1d8   : > { %s712_s6 = sshll.u32 %s12598_s28, 4  ;;  %s738_s7 = sshll.u32 %s12599_s9, 4  ;;  %s713_s6 = int_to_ptr.vmem [resolvable:$true] %s712_s6  ;;  %s739_s7 = int_to_ptr.vmem [resolvable:$true] %s738_s7 }
 0x1d9   : > { %s16390_s14 = sld [smem:[#allocation92_spill]] }
 0x1df   : > { %s12293_s22 = scalar_lea.hbm %s16390_s14, 2048 }
 0x1e0   : > { %p12294_p6 = scmp.ne.s32.totalorder %s16390_s14, %s12293_s22  ;;  %p12300_p1 = scmp.lt.u32.totalorder %s12293_s22, %s16390_s14 }
 0x1e2   : > { %p12296_p8 = pnand %p12294_p6, %p12811_p7 }
 0x1e4   : > { %p12297_p9 = pneg %p12296_p8 }
 0x1e6   : > { %p12302_p3 = pnand %p12300_p1, %p12297_p9 }
 0x1e8   : > { %12305 = shalt.err (!%p12302_p3)
}
 0x1e9   : > { %s12306_s21 = scalar_lea.vmem %s713_s6, 2048  ;;  %p12314_p13 = scmp.lt.s32.totalorder %s713_s6, %s713_s6 }
 0x1ea   : > { %p12307_p10 = scmp.ne.s32.totalorder %s713_s6, %s12306_s21  ;;  %p12315_p0 = scmp.lt.s32.totalorder %s12306_s21, %s12306_s21 }
 0x1ec   : > { %p12309_p11 = pnand %p12307_p10, %p12811_p7  ;;  %p12316_p2 = por %p12315_p0, %p12314_p13 }
 0x1ee   : > { %p12310_p12 = pneg %p12309_p11 }
 0x1f0   : > { %p12317_p4 = pnand %p12316_p2, %p12310_p12 }
 0x1f2   : > { %12320 = shalt.err (!%p12317_p4)
}
 0x1f3   : > { %11318 = dma.hbm_to_vmem [thread:$0]  (!%p12797_p5), %s16390_s14, 2048, %s713_s6, [#allocation28], %s16386_s3, %s16386_s3, %s16385_s30  }
 0x1f4   : > { %s16391_s16 = sld [smem:[#allocation94_spill]] }
 0x1fa   : > { %s12321_s28 = scalar_lea.hbm %s16391_s16, 2048 }
 0x1fb   : > { %p12322_p6 = scmp.ne.s32.totalorder %s16391_s16, %s12321_s28  ;;  %p12328_p1 = scmp.lt.u32.totalorder %s12321_s28, %s16391_s16 }
 0x1fd   : > { %p12324_p8 = pnand %p12322_p6, %p12811_p7 }
 0x1ff   : > { %p12325_p9 = pneg %p12324_p8 }
 0x201   : > { %p12330_p3 = pnand %p12328_p1, %p12325_p9 }
 0x203   : > { %12333 = shalt.err (!%p12330_p3)
}
 0x204   : > { %s12334_s18 = scalar_lea.vmem %s739_s7, 2048  ;;  %p12342_p13 = scmp.lt.s32.totalorder %s739_s7, %s739_s7 }
 0x205   : > { %p12335_p10 = scmp.ne.s32.totalorder %s739_s7, %s12334_s18  ;;  %p12343_p0 = scmp.lt.s32.totalorder %s12334_s18, %s12334_s18 }
 0x207   : > { %p12337_p11 = pnand %p12335_p10, %p12811_p7  ;;  %p12344_p2 = por %p12343_p0, %p12342_p13 }
 0x209   : > { %p12338_p12 = pneg %p12337_p11 }
 0x20b   : > { %p12345_p4 = pnand %p12344_p2, %p12338_p12 }
 0x20d   : > { %12348 = shalt.err (!%p12345_p4)
}
 0x20e   : > { %11324 = dma.hbm_to_vmem [thread:$0]  (!%p12797_p5), %s16391_s16, 2048, %s739_s7, [#allocation31], %s16386_s3, %s16386_s3, %s16385_s30  }
 0x20f   : > { %s12600_s26 = smov [#allocation35]   ;;  %s12601_s21 = smov [#allocation36]  }
 0x210   : > { %s765_s23 = sshll.u32 %s12600_s26, 4  ;;  %s776_s25 = sshll.u32 %s12601_s21, 4  ;;  %s766_s23 = int_to_ptr.vmem [resolvable:$true] %s765_s23  ;;  %s777_s25 = int_to_ptr.vmem [resolvable:$true] %s776_s25 }
 0x211   : > { %s16392_s20 = sld [smem:[#allocation96_spill]] }
 0x217   : > { %s12349_s28 = scalar_lea.hbm %s16392_s20, 128 }
 0x218   : > { %p12350_p6 = scmp.ne.s32.totalorder %s16392_s20, %s12349_s28  ;;  %p12356_p1 = scmp.lt.u32.totalorder %s12349_s28, %s16392_s20 }
 0x21a   : > { %p12352_p8 = pnand %p12350_p6, %p12811_p7 }
 0x21c   : > { %p12353_p9 = pneg %p12352_p8 }
 0x21e   : > { %p12358_p3 = pnand %p12356_p1, %p12353_p9 }
 0x220   : > { %12361 = shalt.err (!%p12358_p3)
}
 0x221   : > { %s12362_s7 = scalar_lea.vmem %s766_s23, 128  ;;  %p12370_p13 = scmp.lt.s32.totalorder %s766_s23, %s766_s23 }
 0x222   : > { %p12363_p10 = scmp.ne.s32.totalorder %s766_s23, %s12362_s7  ;;  %p12371_p0 = scmp.lt.s32.totalorder %s12362_s7, %s12362_s7 }
 0x224   : > { %p12365_p11 = pnand %p12363_p10, %p12811_p7  ;;  %p12372_p2 = por %p12371_p0, %p12370_p13 }
 0x226   : > { %p12366_p12 = pneg %p12365_p11 }
 0x228   : > { %p12373_p4 = pnand %p12372_p2, %p12366_p12 }
 0x22a   : > { %12376 = shalt.err (!%p12373_p4)
}
 0x22b   : > { %11330 = dma.hbm_to_vmem [thread:$0]  (!%p12797_p5), %s16392_s20, 128, %s766_s23, [#allocation34]  }
 0x22c   : > { %s16393_s21 = sld [smem:[#allocation97_spill]] }
 0x232   : > { %s12377_s2 = scalar_lea.hbm %s16393_s21, 128 }
 0x233   : > { %p12378_p6 = scmp.ne.s32.totalorder %s16393_s21, %s12377_s2  ;;  %p12384_p1 = scmp.lt.u32.totalorder %s12377_s2, %s16393_s21 }
 0x235   : > { %p12380_p8 = pnand %p12378_p6, %p12811_p7 }
 0x237   : > { %p12381_p9 = pneg %p12380_p8 }
 0x239   : > { %p12386_p3 = pnand %p12384_p1, %p12381_p9 }
 0x23b   : > { %12389 = shalt.err (!%p12386_p3)
}
 0x23c   : > { %s12390_s1 = scalar_lea.vmem %s777_s25, 128  ;;  %p12398_p13 = scmp.lt.s32.totalorder %s777_s25, %s777_s25 }
 0x23d   : > { %p12391_p10 = scmp.ne.s32.totalorder %s777_s25, %s12390_s1  ;;  %p12399_p0 = scmp.lt.s32.totalorder %s12390_s1, %s12390_s1 }
 0x23f   : > { %p12393_p11 = pnand %p12391_p10, %p12811_p7  ;;  %p12400_p2 = por %p12399_p0, %p12398_p13 }
 0x241   : > { %p12394_p12 = pneg %p12393_p11 }
 0x243   : > { %p12401_p4 = pnand %p12400_p2, %p12394_p12 }
 0x245   : > { %12404 = shalt.err (!%p12401_p4)
}
 0x246   : > { %s16394_s7 = sld [smem:[#allocation57_spill]]  ;;  %s16395_s18 = sld [smem:[#allocation56_spill]] }
 0x247   : > { %s16396_s6 = sld [smem:[#allocation55_spill]]  ;;  %s16397_s4 = sld [smem:[#allocation54_spill]] }
 0x248   : > { %s16398_s24 = sld [smem:[#allocation58_spill]] }
 0x249   : > { %11333 = dma.hbm_to_vmem [thread:$0]  (!%p12797_p5), %s16393_s21, 128, %s777_s25, [#allocation37]  }
 0x24c   : > { %s9574_s26 = sadd.s32 4294967294, %s16394_s7   ;;  %s13204_s27 = sadd.s32 1, %s16394_s7  }
 0x24d   : > { %16399 = sst [smem:[#allocation60_spill]] %s13204_s27  ;;  %s58_s5 = sadd.s32 1, %s16395_s18 }
 0x24e   : > { %s55_s2 = ssub.s32 %s16394_s7, %s13204_s27  ;;  %p65_p7 = scmp.ne.s32.totalorder %s16395_s18, %s16396_s6 }
 0x24f   : > { %p56_p6 = scmp.eq.s32.totalorder %s55_s2, 0  ;;  %p66_p8 = scmp.eq.s32.totalorder %s16394_s7, 0 }
 0x250   : > { %p71_p9 = scmp.ne.s32.totalorder %s16396_s6, %s16397_s4  ;;  %p494_p1 = scmp.eq.s32.totalorder %s16398_s24, 2 }
 0x251   : > { %s13216_s28 = scalar_select %p56_p6, %s16395_s18, %s58_s5  }
 0x252   : > { %p67_p3 = por %p66_p8, %p65_p7  ;;  %p16401_p10 = scmp.eq.s32.totalorder %s16398_s24, 0 }
 0x253   : > { %16400 = sst [smem:[#allocation61_spill]] %s13216_s28  ;;  %p13224_p5 = por %p494_p1, %p65_p7 }
 0x254   : > { %p13220_p11 = por %p16401_p10, %p71_p9  ;;  %p500_p12 = scmp.eq.s32.totalorder %s9574_s26, 2 }
 0x255   : > { %s16403_s25 = scalar_select %p13224_p5, 1, 0 }
 0x256   : > { %p11364_p13 = scmp.lt.s32.totalorder %s16394_s7, 3  ;;  %s787_s0 = sand.u32 1, %s16395_s18  }
 0x257   : > { %16404 = sst [smem:[#allocation62_spill]] %s16403_s25  ;;  %p13230_p0 = por %p500_p12, %p71_p9 }
 0x258   : > { %s9596_s23 = sshll.u32 %s787_s0, 4  ;;  %s9999_s22 = sshll.u32 %s16394_s7, 8 }
 0x259   : > { %s16405_s1 = scalar_select %p13230_p0, 1, 0 }
 0x25a   : > { %s16407_s24 = sld [smem:[#allocation78_spill]]  ;;  %s791_s2 = scalar_lea.vmem [#allocation6], %s9596_s23 }
 0x25b   : > { %16406 = sst [smem:[#allocation63_spill]] %s16405_s1  ;;  %s798_s8 = sshll.u32 %s791_s2, 4  ;;  %s13244_s8 = int_to_ptr.vmem [resolvable:$true] %s798_s8 }
 0x25c   : > { %p13240_p2 = pnand %p11364_p13, %p67_p3  ;;  %s13246_s7 = scalar_lea.sflag [#allocation7], %s787_s0 }
 0x25e   : > { %p12407_p7 = pneg %p13240_p2 }
 0x260   : > { %s13238_s5 = scalar_lea.hbm %s16407_s24, %s9999_s22  ;;  %s12410_s6 = scalar_lea.hbm %s16407_s24, 768 }
 0x261   : > { %s12405_s18 = scalar_lea.hbm %s13238_s5, 256  ;;  %p12411_p9 = scmp.lt.u32.totalorder %s13238_s5, %s16407_s24 }
 0x262   : > { %p12406_p4 = scmp.ne.s32.totalorder %s13238_s5, %s12405_s18  ;;  %p12412_p1 = scmp.lt.u32.totalorder %s12410_s6, %s12405_s18 }
 0x263   : > { %p12414_p10 = scmp.lt.u32.totalorder %s12405_s18, %s13238_s5 }
 0x264   : > { %p12408_p6 = pnand %p12407_p7, %p12406_p4  ;;  %p12413_p3 = por %p12412_p1, %p12411_p9 }
 0x266   : > { %p12409_p8 = pneg %p12408_p6  ;;  %p12415_p12 = por %p12414_p10, %p12413_p3 }
 0x268   : > { %p12416_p13 = pnand %p12415_p12, %p12409_p8 }
 0x26a   : > { %12419 = shalt.err (!%p12416_p13)
}
 0x26b   : > { %s12420_s0 = scalar_lea.vmem %s13244_s8, 256  ;;  %s12602_s23 = smov [#allocation6]  }
 0x26c   : > { %p12421_p4 = scmp.ne.s32.totalorder %s13244_s8, %s12420_s0  ;;  %s12425_s22 = sshll.u32 %s12602_s23, 4  ;;  %s12426_s22 = int_to_ptr.vmem [resolvable:$false] %s12425_s22 }
 0x26d   : > { %s12427_s4 = scalar_lea.vmem %s12426_s22, 512  ;;  %p12428_p5 = scmp.lt.s32.totalorder %s13244_s8, %s12426_s22 }
 0x26e   : > { %p12423_p6 = pnand %p12421_p4, %p12407_p7  ;;  %p12429_p9 = scmp.lt.s32.totalorder %s12427_s4, %s12420_s0 }
 0x270   : > { %p12424_p0 = pneg %p12423_p6  ;;  %p12430_p1 = por %p12429_p9, %p12428_p5 }
 0x272   : > { %p12431_p3 = pnand %p12430_p1, %p12424_p0 }
 0x274   : > { %12434 = shalt.err (!%p12431_p3)
}
 0x275   : > { %11337 = dma.hbm_to_vmem [thread:$0]  (!%p13240_p2), %s13238_s5, 256, %s13244_s8, %s13246_s7, %s16386_s3, %s16386_s3, %s16385_s30  }
 0x276   : > { %s16409_s18 = sld [smem:[#allocation59_spill]] }
 0x27c   : > { %p16410_p7 = scmp.ne.s32.totalorder %s16409_s18, 0 }
 0x27e   : > { %810 = sbr.rel (%p16410_p7) target bundleno = 4123 (0x101b), region = 100 }
 0x285   : > { %s16411_s6 = sld [smem:[#allocation55_spill]] }
 0x28b   : > { %s13280_s2 = sand.u32 1, %s16411_s6  }
 0x28c   : > { %16412 = sst [smem:[#allocation64_spill]] %s13280_s2  ;;  %s9600_s0 = sshll.u32 %s13280_s2, 4 }
 0x28d   : > { %s813_s23 = scalar_lea.sflag [#allocation7], %s13280_s2  ;;  %s816_s22 = scalar_lea.vmem [#allocation6], %s9600_s0 }
 0x28e   : > { %12508 = dma.done.wait (%p13220_p11), %s813_s23, 256  }
 0x28f   : > { %12510 = vsyncadd (%p13220_p11), %s813_s23, 4294967040  ;;  %s16413_s26 = sld [smem:[#allocation58_spill]] }
 0x295   : > { %p16414_p5 = scmp.eq.s32.totalorder %s16413_s26, 0 }
 0x297   : > { %12512 = dma.done.wait (%p16414_p5), [#allocation10], 1168   ;;  %p16415_p0 = pmov %p16414_p5 }
 0x299   : > { %12514 = vsyncadd (%p16415_p0), [#allocation10], 4294966128  ;;  %p16416_p2 = pmov %p16415_p0 }
 0x29a   : > { %p16417_p8 = pmov %p16415_p0 }
 0x29b   : > { %12516 = dma.done.wait (%p16416_p2), [#allocation13], 10496  }
 0x29c   : > { %12518 = vsyncadd (%p16417_p8), [#allocation13], 4294956800  ;;  %p16418_p10 = pmov %p16415_p0 }
 0x29d   : > { %p16419_p12 = pmov %p16415_p0 }
 0x29e   : > { %12520 = dma.done.wait (%p16418_p10), [#allocation16], 4096  }
 0x29f   : > { %12522 = vsyncadd (%p16419_p12), [#allocation16], 4294963200  ;;  %p16420_p11 = pmov %p16415_p0 }
 0x2a0   : > { %p16421_p13 = pmov %p16415_p0 }
 0x2a1   : > { %12524 = dma.done.wait (%p16420_p11), [#allocation19], 11520  }
 0x2a2   : > { %12526 = vsyncadd (%p16421_p13), [#allocation19], 4294955776  ;;  %p16422_p4 = pmov %p16415_p0 }
 0x2a3   : > { %p16423_p6 = pmov %p16415_p0 }
 0x2a4   : > { %12528 = dma.done.wait (%p16422_p4), [#allocation22], 4096  }
 0x2a5   : > { %12530 = vsyncadd (%p16423_p6), [#allocation22], 4294963200  ;;  %p16424_p9 = pmov %p16415_p0 }
 0x2a6   : > { %p16425_p1 = pmov %p16415_p0 }
 0x2a7   : > { %12532 = dma.done.wait (%p16424_p9), [#allocation25], 11520  }
 0x2a8   : > { %12534 = vsyncadd (%p16425_p1), [#allocation25], 4294955776  ;;  %p16426_p3 = pmov %p16415_p0 }
 0x2a9   : > { %p16427_p7 = pmov %p16415_p0 }
 0x2aa   : > { %12536 = dma.done.wait (%p16426_p3), [#allocation28], 4096  }
 0x2ab   : > { %12538 = vsyncadd (%p16427_p7), [#allocation28], 4294963200  ;;  %p16428_p5 = pmov %p16415_p0 }
 0x2ad   : > { %12540 = dma.done.wait (%p16428_p5), [#allocation31], 3072  }
 0x2ae   : > { %12542 = vsyncadd (%p16415_p0), [#allocation31], 4294964224  ;;  %p16429_p2 = pmov %p16415_p0 }
 0x2af   : > { %p16430_p8 = pmov %p16415_p0 }
 0x2b0   : > { %12544 = dma.done.wait (%p16429_p2), [#allocation34], 2176  }
 0x2b1   : > { %12546 = vsyncadd (%p16430_p8), [#allocation34], 4294965120  ;;  %p16431_p10 = pmov %p16415_p0 }
 0x2b2   : > { %p16432_p12 = pmov %p16415_p0 }
 0x2b3   : > { %12548 = dma.done.wait (%p16431_p10), [#allocation37], 128  }
 0x2b4   : > { %12550 = vsyncadd (%p16432_p12), [#allocation37], 4294967168  ;;  %vm16314_vm0 = vcmask 568320   ;;  %v12603_v0 = vmov 0   ;;  %vm992_vm1 = vcmask 130048   ;;  %v9630_v1 = vld [vmem:[%s816_s22 + $0x8] sm:$0xff] }
 0x2b5   : > { %988 = vst.msk [vmem:[#allocation5] sm:$0xf] %vm16314_vm0, %v12603_v0  ;;  %11491 = vset.pattern.permute.xlu1 %v12603_v0  ;;  %11490 = vset.pattern.permute.xlu0 %v12603_v0  ;;  %v13332_v2 = vld [vmem:[%s816_s22] sm:$0xff]  ;;  %vm1094_vm2 = vcmp.ne.f32.partialorder %v9630_v1, %v9630_v1  ;;  %v16339_v3 = vmov 0.0   ;;  %v1107_v8 = vrot.slane %v9630_v1, 1  ;;  %v1108_v9 = vrot.slane %v9630_v1, 2 }
 0x2b6   : > { %v1095_v4 = vsel %vm1094_vm2, 1.0, %v16339_v3  ;;  %vm990_vm3 = vcmp.ne.f32.partialorder %v13332_v2, %v13332_v2  ;;  %v1109_v10 = vrot.slane %v9630_v1, 3  ;;  %v1110_v13 = vrot.slane %v9630_v1, 4  ;;  %s12605_s8 = smov 54   ;;  %s16231_s30 = smov 2  }
 0x2b7   : > { %v1096_v5 = vsel %vm992_vm1, %v1095_v4, -inf  ;;  %v991_v7 = vsel %vm990_vm3, 1.0, %v16339_v3  ;;  %v1111_v14 = vrot.slane %v9630_v1, 5  ;;  %v1112_v16 = vrot.slane %v9630_v1, 6  ;;  %s16245_s3 = smov 3   ;;  %s16239_s9 = smov 1  }
 0x2b8   : > { %v1097_v6 = vrot.slane %v1096_v5, 4  ;;  %v993_v11 = vsel %vm992_vm1, %v991_v7, -inf  ;;  %v1113_v19 = vrot.slane %v9630_v1, 7  ;;  %v1004_v22 = vrot.slane %v13332_v2, 1  ;;  %s16251_s5 = smov 15   ;;  %s16249_s7 = smov 19  }
 0x2b9   : > { %v994_v15 = vrot.slane %v993_v11, 4  ;;  %v1005_v25 = vrot.slane %v13332_v2, 2  ;;  %v1006_v26 = vrot.slane %v13332_v2, 3  ;;  %v1007_v27 = vrot.slane %v13332_v2, 4  ;;  %s16229_s4 = smov 14   ;;  %s16227_s18 = smov 18  }
 0x2ba   : > { %v1098_v12 = vmax.f32 %v1096_v5, %v1097_v6  ;;  %vm1068_vm4 = vcmask 1041409   ;;  %vm1071_vm5 = vcmask 1042434   ;;  %v1008_v30 = vrot.slane %v13332_v2, 5  ;;  %s16225_s6 = smov 7   ;;  %s16261_s0 = smov 11  }
 0x2bb   : > { %v995_v18 = vmax.f32 %v993_v11, %v994_v15  ;;  %v1009_v31 = vrot.slane %v13332_v2, 6  ;;  %v1010_v32 = vrot.slane %v13332_v2, 7  ;;  %vm1074_vm6 = vcmask 1043459   ;;  %s16223_s23 = smov 13   ;;  %s16221_s22 = smov 17  }
 0x2bc   : > { %v1099_v17 = vrot.slane %v1098_v12, 2  ;;  %vm1077_vm8 = vcmask 1044484   ;;  %vm1080_vm9 = vcmask 1045509   ;;  %vm1083_vm10 = vcmask 1046534   ;;  %s16445_s10 = smov 122   ;;  %s16447_s11 = smov 116  }
 0x2bd   : > { %v996_v21 = vrot.slane %v995_v18, 2  ;;  %vm1086_vm11 = vcmask 1047559   ;;  %vm978_vm13 = vcmask 581168   ;;  %vm1205_vm14 = vcmask 64512   ;;  %s16448_s12 = smov 121   ;;  %s16269_s13 = smov 10  }
 0x2be   : > { %v1100_v20 = vmax.f32 %v1098_v12, %v1099_v17  ;;  %vm963_vm15 = vcmask 1048424   ;;  %vm1090_vm2 = vcmask 125952   ;;  %s16271_s14 = smov 12   ;;  %s16273_s15 = smov 16  }
 0x2bf   : > { %v997_v24 = vmax.f32 %v995_v18, %v996_v21  ;;  %964 = vst.msk [vmem:[#allocation2] sm:$0xff] %vm963_vm15, %v12603_v0  ;;  %965 = vst.msk [vmem:[#allocation2 + $0x10] sm:$0xff] %vm963_vm15, %v12603_v0  ;;  %s16277_s16 = smov 5   ;;  %s16453_s17 = smov 11   ;;  %vm1299_vm15 = vcmask 154624  }
 0x2c0   : > { %v1101_v23 = vrot.slane %v1100_v20, 1  ;;  %s16284_s19 = smov 115   ;;  %s16455_s20 = smov 6  }
 0x2c1   : > { %v998_v29 = vrot.slane %v997_v24, 1  ;;  %s16456_s21 = smov 10   ;;  %s16292_s24 = smov 113  }
 0x2c2   : > { %v1102_v28 = vmax.f32 %v1100_v20, %v1101_v23  ;;  %s16294_s29 = smov 112   ;;  %s16299_s28 = smov 111  }
 0x2c3   : > { %v999_v33 = vmax.f32 %v997_v24, %v998_v29  ;;  %s16301_s27 = smov 110   ;;  %s16461_s1 = smov 8  }
 0x2c4   : > { %vm1103_vm7 = vcmp.gt.f32.partialorder %v1102_v28, 0.0  ;;  %s16463_s25 = smov 127   ;;  %s16464_s26 = smov 113  }
 0x2c5   : > { %v1122_v34 = vsel %vm1103_vm7, 0.0, %v9630_v1  ;;  %v1123_v35 = vsel %vm1103_vm7, 0.0, %v1107_v8  ;;  %v1124_v36 = vsel %vm1103_vm7, 0.0, %v1108_v9  ;;  %v1125_v37 = vsel %vm1103_vm7, 0.0, %v1109_v10  ;;  %s16465_s2 = smov 112  }
 0x2c6   : > { %v1126_v38 = vsel %vm1103_vm7, 0.0, %v1110_v13  ;;  %v1127_v39 = vsel %vm1103_vm7, 0.0, %v1111_v14  ;;  %v1128_v40 = vsel %vm1103_vm7, 0.0, %v1112_v16  ;;  %v1129_v41 = vsel %vm1103_vm7, 0.0, %v1113_v19 }
 0x2c7   : > { %v10008_v42 = vpack.c.bf16 %v1122_v34, %v1122_v34  ;;  %v10009_v43 = vpack.c.bf16 %v1123_v35, %v1123_v35  ;;  %v10010_v44 = vpack.c.bf16 %v1124_v36, %v1124_v36  ;;  %v10011_v45 = vpack.c.bf16 %v1125_v37, %v1125_v37 }
 0x2c8   : > { %v10012_v46 = vpack.c.bf16 %v1126_v38, %v1126_v38  ;;  %v10013_v47 = vpack.c.bf16 %v1127_v39, %v1127_v39  ;;  %v10014_v48 = vpack.c.bf16 %v1128_v40, %v1128_v40  ;;  %v10015_v49 = vpack.c.bf16 %v1129_v41, %v1129_v41  ;;  %v11492_v38 = vld [vmem:[#allocation12] sm:$0xff]  }
 0x2c9   : > { %v1162_v50 = vunpack.c.l.b16 %v10008_v42  ;;  %v1163_v51 = vunpack.c.l.b16 %v10009_v43  ;;  %v1164_v52 = vunpack.c.l.b16 %v10010_v44  ;;  %v1165_v53 = vunpack.c.l.b16 %v10011_v45  ;;  %10902 = vmatprep.mubr.msk.bf16.mxu0 %vm1205_vm14, %v11492_v38 }
 0x2ca   : > { %v1166_v54 = vunpack.c.l.b16 %v10012_v46  ;;  %v1167_v55 = vunpack.c.l.b16 %v10013_v47  ;;  %v1168_v56 = vunpack.c.l.b16 %v10014_v48  ;;  %v1169_v57 = vunpack.c.l.b16 %v10015_v49 }
 0x2cb   : > { %v1170_v58 = vrot.slane %v1163_v51, 7  ;;  %v1172_v59 = vrot.slane %v1164_v52, 6  ;;  %v1174_v60 = vrot.slane %v1165_v53, 5  ;;  %vm1000_vm12 = vcmp.gt.f32.partialorder %v999_v33, 0.0  ;;  %v13373_v52 = vld [vmem:[#allocation2] sm:$0xff]  ;;  %v13379_v53 = vld [vmem:[#allocation2 + $0x10] sm:$0xff] }
 0x2cc   : > { %v1176_v61 = vrot.slane %v1166_v54, 4  ;;  %v1178_v62 = vrot.slane %v1167_v55, 3  ;;  %v1180_v63 = vrot.slane %v1168_v56, 2  ;;  %v1182_v1 = vrot.slane %v1169_v57, 1  ;;  %1746 = vrot.lane.b32.xlu1 %v13373_v52, %s16231_s30  ;;  %v961_v55 = vld [vmem:[#allocation9] sm:$0x1] }
 0x2cd   : > { %v1171_v4 = vsel %vm1068_vm4, %v1170_v58, %v1162_v50  ;;  %v1019_v5 = vsel %vm1000_vm12, 0.0, %v13332_v2  ;;  %v1020_v6 = vsel %vm1000_vm12, 0.0, %v1004_v22  ;;  %v1021_v7 = vsel %vm1000_vm12, 0.0, %v1005_v25 }
 0x2ce   : > { %v1173_v8 = vsel %vm1071_vm5, %v1172_v59, %v1171_v4  ;;  %v1022_v9 = vsel %vm1000_vm12, 0.0, %v1006_v26  ;;  %v1023_v10 = vsel %vm1000_vm12, 0.0, %v1007_v27  ;;  %v1024_v11 = vsel %vm1000_vm12, 0.0, %v1008_v30  ;;  %v11493_v4 = vld [vmem:[#allocation12 + $0x8] sm:$0xff]  }
 0x2cf   : > { %v1175_v12 = vsel %vm1074_vm6, %v1174_v60, %v1173_v8  ;;  %v1025_v13 = vsel %vm1000_vm12, 0.0, %v1009_v31  ;;  %v1026_v14 = vsel %vm1000_vm12, 0.0, %v1010_v32  ;;  %v10000_v15 = vpack.c.bf16 %v1019_v5, %v1019_v5 }
 0x2d0   : > { %v1177_v16 = vsel %vm1077_vm8, %v1176_v61, %v1175_v12  ;;  %v10001_v17 = vpack.c.bf16 %v1020_v6, %v1020_v6  ;;  %v10002_v18 = vpack.c.bf16 %v1021_v7, %v1021_v7  ;;  %v10003_v19 = vpack.c.bf16 %v1022_v9, %v1022_v9  ;;  %1769 = vrot.lane.b32.xlu1 %v13373_v52, %s16239_s9 }
 0x2d1   : > { %v1179_v20 = vsel %vm1080_vm9, %v1178_v62, %v1177_v16  ;;  %v10004_v2 = vpack.c.bf16 %v1023_v10, %v1023_v10  ;;  %v10005_v21 = vpack.c.bf16 %v1024_v11, %v1024_v11  ;;  %v10006_v22 = vpack.c.bf16 %v1025_v13, %v1025_v13 }
 0x2d2   : > { %v1181_v23 = vsel %vm1083_vm10, %v1180_v63, %v1179_v20  ;;  %v10007_v24 = vpack.c.bf16 %v1026_v14, %v1026_v14  ;;  %v1059_v25 = vunpack.c.l.b16 %v10000_v15  ;;  %v1060_v26 = vunpack.c.l.b16 %v10001_v17 }
 0x2d3   : > { %v1183_v27 = vsel %vm1086_vm11, %v1182_v1, %v1181_v23  ;;  %v1061_v28 = vunpack.c.l.b16 %v10002_v18  ;;  %v1062_v29 = vunpack.c.l.b16 %v10003_v19  ;;  %v1063_v30 = vunpack.c.l.b16 %v10004_v2 }
 0x2d4   : > { %v1184_v31 = vpack.c.b16 %v1183_v27, %v1183_v27  ;;  %v1064_v32 = vunpack.c.l.b16 %v10005_v21  ;;  %v1065_v33 = vunpack.c.l.b16 %v10006_v22  ;;  %v1066_v34 = vunpack.c.l.b16 %v10007_v24  ;;  %1383 = vrot.lane.b32.xlu1 %v13373_v52, %s16251_s5 }
 0x2d5   : > { %v1067_v35 = vrot.slane %v1060_v26, 7  ;;  %v1070_v36 = vrot.slane %v1061_v28, 6  ;;  %v1073_v37 = vrot.slane %v1062_v29, 5  ;;  %v1076_v39 = vrot.slane %v1063_v30, 4  ;;  %v11496_v29 = vld [vmem:[#allocation14 + $0x14] ss:$40 sps:$4 sm:$0xff]  }
 0x2d6   : > { %1185 = vrot.lane.b32.xlu0 %v1184_v31, %s12605_s8  ;;  %v1079_v41 = vrot.slane %v1064_v32, 3  ;;  %v1082_v43 = vrot.slane %v1065_v33, 2  ;;  %v12606_v44 = vmov 4286644096   ;;  %v1085_v46 = vrot.slane %v1066_v34, 1  ;;  %s16247_s8 = smov 127   ;;  %2188 = vmatprep.mubr.bf16.mxu1 %v11496_v29 }
 0x2d7   : > { %v1069_v40 = vsel %vm1068_vm4, %v1067_v35, %v1059_v25  ;;  %979 = vst.msk [vmem:[#allocation4 + $0x8] sm:$0xff] %vm978_vm13, %v12606_v44  ;;  %980 = vst.msk [vmem:[#allocation4 + $0x18] sm:$0xff] %vm978_vm13, %v12606_v44  ;;  %v1266_v54 = vlaneseq  ;;  %vm962_vm3 = vcmp.gt.f32.partialorder %v961_v55, 0.5  ;;  %vm1188_vm4 = vcmask 568752  }
 0x2d8   : > { %v1072_v42 = vsel %vm1071_vm5, %v1070_v36, %v1069_v40  ;;  %981 = vst.msk [vmem:[#allocation4 + $0x28] sm:$0xff] %vm978_vm13, %v12606_v44  ;;  %982 = vst.msk [vmem:[#allocation4 + $0x38] sm:$0xff] %vm978_vm13, %v12606_v44  ;;  %1291 = vrot.lane.b32.xlu1 %v13373_v52, %s16249_s7  ;;  %v1265_v58 = vsel %vm962_vm3, 1, %v12603_v0  ;;  %v11503_v36 = vld [vmem:[#allocation14 + $0x1c] ss:$40 sps:$4 sm:$0xff]   ;;  %vm16315_vm12 = vcmask 7168  }
 0x2d9   : > { %983 = vst.msk [vmem:[#allocation4 + $0x48] sm:$0xff] %vm978_vm13, %v12606_v44  ;;  %984 = vst.msk [vmem:[#allocation4 + $0x58] sm:$0xff] %vm978_vm13, %v12606_v44  ;;  %v1075_v45 = vsel %vm1074_vm6, %v1073_v37, %v1072_v42  ;;  %v13409_v56 = vshrl.u32 %v1266_v54, 7  ;;  %vm16313_vm6 = vcmask 1043456   ;;  %vm1322_vm3 = vcmask 146432  }
 0x2da   : > { %985 = vst.msk [vmem:[#allocation4 + $0x68] sm:$0xff] %vm978_vm13, %v12606_v44  ;;  %986 = vst.msk [vmem:[#allocation4 + $0x78] sm:$0xff] %vm978_vm13, %v12606_v44  ;;  %v1078_v47 = vsel %vm1077_vm8, %v1076_v39, %v1075_v45  ;;  %1723 = vrot.lane.b32.xlu0 %v13373_v52, %s16245_s3  ;;  %vm966_vm8 = vcmask 728624   ;;  %vm1391_vm13 = vcmask 121856  }
 0x2db   : > { %v1081_v48 = vsel %vm1080_vm9, %v1079_v41, %v1078_v47  ;;  %v1268_v57 = vsub.s32 0, %v13409_v56  ;;  %968 = vst.msk [vmem:[#allocation2 + $0x18] sm:$0xff] %vm966_vm8, %v12603_v0  ;;  %967 = vst.msk [vmem:[#allocation2 + $0x8] sm:$0xff] %vm966_vm8, %v12603_v0  ;;  %vm1277_vm9 = vcmask 572416   ;;  %vm1483_vm8 = vcmask 89088  }
 0x2dc   : > { %v1084_v49 = vsel %vm1083_vm10, %v1082_v43, %v1081_v48  ;;  %1387 = vrot.lane.b32.xlu1 %v13379_v53, %s16251_s5  ;;  %vm16296_vm10 = vcmask 23552  }
 0x2dd   : > { %v1087_v50 = vsel %vm1086_vm11, %v1085_v46, %v1084_v49  ;;  %v13415_v59 = vrot.slane %v1265_v58, %v1268_v57  ;;  %vm16306_vm11 = vcmask 15360  }
 0x2de   : > { %v1088_v51 = vpack.c.b16 %v1087_v50, %v1087_v50  ;;  %1727 = vrot.lane.b32.xlu0 %v13379_v53, %s16245_s3 }
 0x2df   : > { %vm16312_vm5 = vcmp.eq.s32.totalorder %v13415_v59, 1 }
 0x2e0   : > { %1091 = vst.msk [vmem:[#allocation5] sm:$0xf] %vm1090_vm2, %v1088_v51  ;;  %1295 = vrot.lane.b32.xlu1 %v13379_v53, %s16249_s7  ;;  %vm13421_vm7 = vmpackc.low %vm16312_vm5, %vm16312_vm5  ;;  %vm16316_vm2 = vcmask 113664  }
 0x2e2   : > { %1750 = vrot.lane.b32.xlu0 %v13379_v53, %s16231_s30 }
 0x2e4   : > { %1406 = vrot.lane.b32.xlu1 %v13373_v52, %s16229_s4 }
 0x2e6   : > { %1773 = vrot.lane.b32.xlu0 %v13379_v53, %s16239_s9 }
 0x2e8   : > { %1314 = vrot.lane.b32.xlu1 %v13373_v52, %s16227_s18 }
 0x2ec   : > { %1410 = vrot.lane.b32.xlu1 %v13379_v53, %s16229_s4  ;;  %s16241_s4 = smov 118  }
 0x2f0   : > { %1318 = vrot.lane.b32.xlu1 %v13379_v53, %s16227_s18  ;;  %s16237_s18 = smov 125  }
 0x2f4   : > { %1567 = vrot.lane.b32.xlu1 %v13373_v52, %s16225_s6 }
 0x2f8   : > { %1475 = vrot.lane.b32.xlu1 %v13373_v52, %s16261_s0 }
 0x2fc   : > { %1429 = vrot.lane.b32.xlu1 %v13373_v52, %s16223_s23  ;;  %s16233_s23 = smov 119  }
 0x300   : > { %1337 = vrot.lane.b32.xlu1 %v13373_v52, %s16221_s22  ;;  %s16253_s22 = smov 126  }
 0x304   : > { %1571 = vrot.lane.b32.xlu1 %v13379_v53, %s16225_s6  ;;  %s16235_s6 = smov 123  }
 0x33e   : > { %v13488_v17 = vpop.permute.xlu1 %1746 }
 0x342   : > { %v13494_v18 = vpop.permute.xlu1 %1769 }
 0x346   : > { %v13504_v19 = vpop.permute.xlu1 %1383 }
 0x348   : > { %v1186_v60 = vpop.permute.xlu0 %1185 }
 0x349   : > { %1189 = vst.msk [vmem:[#allocation5] sm:$0xf] %vm1188_vm4, %v1186_v60  ;;  %vm1575_vm4 = vcmask 56320  }
 0x34a   : > { %v13510_v20 = vpop.permute.xlu1 %1291 }
 0x34c   : > { %v13574_v27 = vpop.permute.xlu0 %1723 }
 0x34e   : > { %v13520_v2 = vpop.permute.xlu1 %1387 }
 0x350   : > { %v1190_v62 = vld [vmem:[#allocation5] sm:$0xf]  ;;  %v1728_v30 = vpop.permute.xlu0 %1727 }
 0x351   : > { %11191 = vmatprep.subr.msk.bf16.mxu0 %vm16313_vm6, %v1190_v62  ;;  %v1281_v63 = vsel %vm13421_vm7, %v1190_v62, 4286644096  ;;  %v13429_v1 = vsel %vm16313_vm6, %v1190_v62, 0  ;;  %vm1460_vm6 = vcmask 97280  }
 0x352   : > { %1282 = vst.msk [vmem:[#allocation4 + $0x8] sm:$0xf] %vm16314_vm0, %v1281_v63  ;;  %10901 = vmatpush3.bf16.msra.mxu0 %v13429_v1  ;;  %v13526_v21 = vpop.permute.xlu1 %1295  ;;  %vm16320_vm0 = vcmask 39936  }
 0x354   : > { %v1751_v32 = vpop.permute.xlu0 %1750 }
 0x355   : > { %10903 = vmatmul.mubr.msk.bf16.vlgmr.msra.gmra.mrb[0].mxu0 %vm1205_vm14, %v11493_v4 }
 0x356   : > { %v13536_v22 = vpop.permute.xlu1 %1406  ;;  %2285 = vmatprep.mubr.bf16.mxu0 %v11503_v36 }
 0x358   : > { %v1774_v34 = vpop.permute.xlu0 %1773 }
 0x359   : > { %v13656_v62 = vld [vmem:[#allocation4 + $0x8] sm:$0xf] }
 0x35a   : > { %v13542_v23 = vpop.permute.xlu1 %1314 }
 0x35e   : > { %v13552_v24 = vpop.permute.xlu1 %1410 }
 0x362   : > { %v13558_v25 = vpop.permute.xlu1 %1318 }
 0x366   : > { %v13568_v26 = vpop.permute.xlu1 %1567 }
 0x36a   : > { %v13576_v28 = vpop.permute.xlu1 %1475 }
 0x36e   : > { %v13586_v31 = vpop.permute.xlu1 %1429 }
 0x372   : > { %v13592_v33 = vpop.permute.xlu1 %1337 }
 0x376   : > { %v13602_v35 = vpop.permute.xlu1 %1571 }
 0x428   : > { %v10904_v5 = vpop.f32.mrb[0].mxu0 }
 0x429   : > { %v1250_v6 = vpop.f32.mrb[1].mxu0  ;;  %v1273_v8 = vsel %vm16312_vm5, %v10904_v5, 0.0 }
 0x42a   : > { %v10905_v7 = vpop.f32.mrb[2].mxu0  ;;  %v1271_v11 = vsel %vm16312_vm5, %v1250_v6, 0.0 }
 0x42b   : > { %v1274_v9 = vsel %vm16312_vm5, %v10905_v7, 0.0  ;;  %v1253_v10 = vpop.f32.mrb[3].mxu0 }
 0x42c   : > { %v1276_v12 = vpack.c.bf16 %v1274_v9, %v1273_v8  ;;  %v1272_v13 = vsel %vm16312_vm5, %v1253_v10, 0.0  ;;  %vm16321_vm5 = vcmask 80896  }
 0x42d   : > { %v1275_v14 = vpack.c.bf16 %v1272_v13, %v1271_v11 }
 0x42e   : > { %1279 = vst.msk [vmem:[#allocation2 + $0x18] sm:$0xff] %vm1277_vm9, %v1276_v12 }
 0x42f   : > { %1278 = vst.msk [vmem:[#allocation2 + $0x8] sm:$0xff] %vm1277_vm9, %v1275_v14 }
 0x435   : > { %v13452_v15 = vld [vmem:[#allocation2 + $0x18] sm:$0xff] }
 0x436   : > { %1794 = vrot.lane.b32.xlu0 %v13452_v15, %s16247_s8  ;;  %1729 = vrot.lane.b32.xlu1 %v13452_v15, %s16245_s3  ;;  %v13458_v16 = vld [vmem:[#allocation2 + $0x8] sm:$0xff]  ;;  %1787 = vst.msk [vmem:[#allocation3 + $0x138] sm:$0xff] %vm1277_vm9, %v13452_v15 }
 0x437   : > { %1786 = vst.msk [vmem:[#allocation3 + $0x130] sm:$0xff] %vm1277_vm9, %v13458_v16 }
 0x43a   : > { %1806 = vrot.lane.b32.xlu0 %v13452_v15, %s16253_s22  ;;  %1752 = vrot.lane.b32.xlu1 %v13452_v15, %s16231_s30  ;;  %s16259_s30 = smov 122  }
 0x43e   : > { %1890 = vrot.lane.b32.xlu0 %v13452_v15, %s16233_s23  ;;  %1842 = vrot.lane.b32.xlu1 %v13452_v15, %s16235_s6  ;;  %s16263_s23 = smov 124   ;;  %s16265_s6 = smov 117  }
 0x442   : > { %1818 = vrot.lane.b32.xlu0 %v13452_v15, %s16237_s18  ;;  %1775 = vrot.lane.b32.xlu1 %v13452_v15, %s16239_s9  ;;  %s16255_s18 = smov 121   ;;  %s16257_s9 = smov 116  }
 0x446   : > { %1902 = vrot.lane.b32.xlu0 %v13452_v15, %s16241_s4  ;;  %1854 = vrot.lane.b32.xlu1 %v13452_v15, %s16259_s30  ;;  %s16243_s4 = smov 120   ;;  %s16443_s30 = smov 13  }
 0x44a   : > { %1830 = vrot.lane.b32.xlu0 %v13452_v15, %s16263_s23  ;;  %1914 = vrot.lane.b32.xlu1 %v13452_v15, %s16265_s6 }
 0x44e   : > { %1866 = vrot.lane.b32.xlu0 %v13452_v15, %s16255_s18  ;;  %1926 = vrot.lane.b32.xlu1 %v13452_v15, %s16257_s9  ;;  %s16441_s18 = smov 2   ;;  %s16442_s9 = smov 123  }
 0x452   : > { %1878 = vrot.lane.b32.xlu0 %v13452_v15, %s16243_s4  ;;  %1725 = vrot.lane.b32.xlu1 %v13458_v16, %s16245_s3  ;;  %s16435_s4 = smov 14   ;;  %s16436_s3 = smov 18  }
 0x456   : > { %1389 = vrot.lane.b32.xlu0 %v13452_v15, %s16251_s5  ;;  %1792 = vrot.lane.b32.xlu1 %v13458_v16, %s16247_s8  ;;  %s16437_s8 = smov 119   ;;  %s16439_s5 = smov 125  }
 0x45a   : > { %1297 = vrot.lane.b32.xlu0 %v13452_v15, %s16249_s7  ;;  %1479 = vrot.lane.b32.xlu1 %v13379_v53, %s16261_s0  ;;  %s16438_s7 = smov 7  }
 0x45e   : > { %1412 = vrot.lane.b32.xlu0 %v13452_v15, %s16435_s4  ;;  %1804 = vrot.lane.b32.xlu1 %v13458_v16, %s16253_s22  ;;  %s16440_s22 = smov 118  }
 0x462   : > { %1320 = vrot.lane.b32.xlu0 %v13452_v15, %s16436_s3  ;;  %1888 = vrot.lane.b32.xlu1 %v13458_v16, %s16437_s8 }
 0x466   : > { %1573 = vrot.lane.b32.xlu0 %v13452_v15, %s16438_s7  ;;  %1816 = vrot.lane.b32.xlu1 %v13458_v16, %s16439_s5 }
 0x46a   : > { %1481 = vrot.lane.b32.xlu0 %v13452_v15, %s16261_s0  ;;  %1900 = vrot.lane.b32.xlu1 %v13458_v16, %s16440_s22  ;;  %s16444_s0 = smov 1  }
 0x46e   : > { %1748 = vrot.lane.b32.xlu0 %v13458_v16, %s16441_s18  ;;  %1828 = vrot.lane.b32.xlu1 %v13458_v16, %s16263_s23  ;;  %s16446_s23 = smov 17  }
 0x472   : > { %1840 = vrot.lane.b32.xlu0 %v13458_v16, %s16442_s9  ;;  %1433 = vrot.lane.b32.xlu1 %v13379_v53, %s16443_s30 }
 0x476   : > { %1771 = vrot.lane.b32.xlu0 %v13458_v16, %s16444_s0  ;;  %1912 = vrot.lane.b32.xlu1 %v13458_v16, %s16265_s6  ;;  %s16267_s6 = smov 6  }
 0x47a   : > { %1852 = vrot.lane.b32.xlu0 %v13458_v16, %s16445_s10  ;;  %1341 = vrot.lane.b32.xlu1 %v13379_v53, %s16446_s23 }
 0x47e   : > { %1435 = vrot.lane.b32.xlu0 %v13452_v15, %s16443_s30  ;;  %1924 = vrot.lane.b32.xlu1 %v13458_v16, %s16447_s11 }
 0x482   : > { %1343 = vrot.lane.b32.xlu0 %v13452_v15, %s16446_s23  ;;  %1590 = vrot.lane.b32.xlu1 %v13373_v52, %s16267_s6 }
 0x486   : > { %1864 = vrot.lane.b32.xlu0 %v13458_v16, %s16448_s12  ;;  %1498 = vrot.lane.b32.xlu1 %v13373_v52, %s16269_s13 }
 0x48a   : > { %1596 = vrot.lane.b32.xlu0 %v13452_v15, %s16267_s6  ;;  %1452 = vrot.lane.b32.xlu1 %v13373_v52, %s16271_s14 }
 0x48e   : > { %1504 = vrot.lane.b32.xlu0 %v13452_v15, %s16269_s13  ;;  %1360 = vrot.lane.b32.xlu1 %v13373_v52, %s16273_s15 }
 0x492   : > { %1458 = vrot.lane.b32.xlu0 %v13452_v15, %s16271_s14  ;;  %1594 = vrot.lane.b32.xlu1 %v13379_v53, %s16267_s6  ;;  %s16279_s6 = smov 9  }
 0x496   : > { %1366 = vrot.lane.b32.xlu0 %v13452_v15, %s16273_s15  ;;  %1502 = vrot.lane.b32.xlu1 %v13379_v53, %s16269_s13  ;;  %s16275_s13 = smov 4  }
 0x49a   : > { %1619 = vrot.lane.b32.xlu0 %v13452_v15, %s16277_s16  ;;  %1456 = vrot.lane.b32.xlu1 %v13379_v53, %s16271_s14  ;;  %s16449_s14 = smov 120  }
 0x49e   : > { %1527 = vrot.lane.b32.xlu0 %v13452_v15, %s16279_s6  ;;  %1364 = vrot.lane.b32.xlu1 %v13379_v53, %s16273_s15  ;;  %s16450_s15 = smov 15  }
 0x4a2   : > { %1642 = vrot.lane.b32.xlu0 %v13452_v15, %s16275_s13  ;;  %1613 = vrot.lane.b32.xlu1 %v13373_v52, %s16277_s16  ;;  %s16451_s13 = smov 19  }
 0x4a6   : > { %1876 = vrot.lane.b32.xlu0 %v13458_v16, %s16449_s14  ;;  %1521 = vrot.lane.b32.xlu1 %v13373_v52, %s16279_s6 }
 0x4a8   : > { %v1795_v37 = vpop.permute.xlu0 %1794  ;;  %v1730_v38 = vpop.permute.xlu1 %1729 }
 0x4a9   : > { %1799 = vst.msk [vmem:[#allocation3 + $0x148] sm:$0xff] %vm1277_vm9, %v1795_v37  ;;  %v1733_v39 = vsel %vm16296_vm10, %v1728_v30, %v1730_v38 }
 0x4aa   : > { %1737 = vst.msk [vmem:[#allocation3 + $0x108] sm:$0xff] %vm1277_vm9, %v1733_v39  ;;  %1617 = vrot.lane.b32.xlu1 %v13379_v53, %s16277_s16  ;;  %1385 = vrot.lane.b32.xlu0 %v13458_v16, %s16450_s15  ;;  %s16452_s16 = smov 4  }
 0x4ac   : > { %v1807_v40 = vpop.permute.xlu0 %1806  ;;  %v1753_v41 = vpop.permute.xlu1 %1752 }
 0x4ad   : > { %1811 = vst.msk [vmem:[#allocation3 + $0x158] sm:$0xff] %vm1277_vm9, %v1807_v40  ;;  %v1756_v42 = vsel %vm16306_vm11, %v1751_v32, %v1753_v41 }
 0x4ae   : > { %1760 = vst.msk [vmem:[#allocation3 + $0x118] sm:$0xff] %vm1277_vm9, %v1756_v42  ;;  %1525 = vrot.lane.b32.xlu1 %v13379_v53, %s16279_s6  ;;  %1293 = vrot.lane.b32.xlu0 %v13458_v16, %s16451_s13  ;;  %s16282_s6 = smov 8  }
 0x4b0   : > { %v1891_v43 = vpop.permute.xlu0 %1890  ;;  %v1843_v45 = vpop.permute.xlu1 %1842  ;;  %v1973_v14 = vld [vmem:[#allocation3 + $0x148] sm:$0xff] }
 0x4b1   : > { %1895 = vst.msk [vmem:[#allocation3 + $0x1c8] sm:$0xff] %vm1277_vm9, %v1891_v43  ;;  %1847 = vst.msk [vmem:[#allocation3 + $0x188] sm:$0xff] %vm1277_vm9, %v1843_v45 }
 0x4b2   : > { %1636 = vrot.lane.b32.xlu1 %v13373_v52, %s16452_s16  ;;  %1408 = vrot.lane.b32.xlu0 %v13458_v16, %s16435_s4 }
 0x4b4   : > { %v1819_v46 = vpop.permute.xlu0 %1818  ;;  %v1776_v47 = vpop.permute.xlu1 %1775 }
 0x4b5   : > { %1823 = vst.msk [vmem:[#allocation3 + $0x168] sm:$0xff] %vm1277_vm9, %v1819_v46  ;;  %v1779_v48 = vsel %vm16315_vm12, %v1774_v34, %v1776_v47  ;;  %v1975_v46 = vld [vmem:[#allocation3 + $0x158] sm:$0xff] }
 0x4b6   : > { %1783 = vst.msk [vmem:[#allocation3 + $0x128] sm:$0xff] %vm1277_vm9, %v1779_v48  ;;  %1544 = vrot.lane.b32.xlu1 %v13373_v52, %s16282_s6  ;;  %1316 = vrot.lane.b32.xlu0 %v13458_v16, %s16436_s3 }
 0x4b8   : > { %v1903_v49 = vpop.permute.xlu0 %1902  ;;  %v1855_v50 = vpop.permute.xlu1 %1854 }
 0x4b9   : > { %1907 = vst.msk [vmem:[#allocation3 + $0x1d8] sm:$0xff] %vm1277_vm9, %v1903_v49  ;;  %1859 = vst.msk [vmem:[#allocation3 + $0x198] sm:$0xff] %vm1277_vm9, %v1855_v50  ;;  %v1967_v50 = vld [vmem:[#allocation3 + $0x118] sm:$0xff] }
 0x4ba   : > { %1640 = vrot.lane.b32.xlu1 %v13379_v53, %s16452_s16  ;;  %1569 = vrot.lane.b32.xlu0 %v13458_v16, %s16438_s7 }
 0x4bc   : > { %v1831_v51 = vpop.permute.xlu0 %1830  ;;  %v1915_v54 = vpop.permute.xlu1 %1914 }
 0x4bd   : > { %1835 = vst.msk [vmem:[#allocation3 + $0x178] sm:$0xff] %vm1277_vm9, %v1831_v51  ;;  %1919 = vst.msk [vmem:[#allocation3 + $0x1e8] sm:$0xff] %vm1277_vm9, %v1915_v54  ;;  %v1989_v51 = vld [vmem:[#allocation3 + $0x1c8] sm:$0xff] }
 0x4be   : > { %1548 = vrot.lane.b32.xlu1 %v13379_v53, %s16282_s6  ;;  %1477 = vrot.lane.b32.xlu0 %v13458_v16, %s16453_s17  ;;  %s16454_s6 = smov 126  }
 0x4c0   : > { %v1867_v52 = vpop.permute.xlu0 %1866  ;;  %v1927_v55 = vpop.permute.xlu1 %1926 }
 0x4c1   : > { %1871 = vst.msk [vmem:[#allocation3 + $0x1a8] sm:$0xff] %vm1277_vm9, %v1867_v52  ;;  %1931 = vst.msk [vmem:[#allocation3 + $0x1f8] sm:$0xff] %vm1277_vm9, %v1927_v55  ;;  %v1981_v55 = vld [vmem:[#allocation3 + $0x188] sm:$0xff] }
 0x4c2   : > { %2708 = vrot.lane.b32.xlu1 %v13458_v16, %s16284_s19  ;;  %1431 = vrot.lane.b32.xlu0 %v13458_v16, %s16443_s30  ;;  %s16289_s19 = smov 114  }
 0x4c4   : > { %v1879_v58 = vpop.permute.xlu0 %1878  ;;  %v1726_v60 = vpop.permute.xlu1 %1725 }
 0x4c5   : > { %1883 = vst.msk [vmem:[#allocation3 + $0x1b8] sm:$0xff] %vm1277_vm9, %v1879_v58  ;;  %v1732_v53 = vsel %vm16296_vm10, %v13574_v27, %v1726_v60  ;;  %v1965_v27 = vld [vmem:[#allocation3 + $0x108] sm:$0xff]  ;;  %vm969_vm10 = vcmask 1048568   ;;  %v3041_v58 = vsel %vm13421_vm7, 65537, %v12603_v0  ;;  %vm16322_vm7 = vcmask 48128  }
 0x4c6   : > { %1736 = vst.msk [vmem:[#allocation3 + $0x100] sm:$0xff] %vm1277_vm9, %v1732_v53  ;;  %3036 = vrot.lane.b32.xlu1 %v13656_v62, %s16454_s6  ;;  %1339 = vrot.lane.b32.xlu0 %v13458_v16, %s16446_s23  ;;  %v13747_v61 = vrot.slane %v3041_v58, %v1268_v57  ;;  %v1944_v58 = vld [vmem:[#allocation14 + $0x100] sm:$0xff] }
 0x4c7   : > { %970 = vst.msk [vmem:[#allocation4] sm:$0xff] %vm969_vm10, %v12606_v44  ;;  %971 = vst.msk [vmem:[#allocation4 + $0x10] sm:$0xff] %vm969_vm10, %v12606_v44 }
 0x4c8   : > { %v1390_v63 = vpop.permute.xlu0 %1389  ;;  %v1793_v4 = vpop.permute.xlu1 %1792  ;;  %972 = vst.msk [vmem:[#allocation4 + $0x20] sm:$0xff] %vm969_vm10, %v12606_v44  ;;  %973 = vst.msk [vmem:[#allocation4 + $0x30] sm:$0xff] %vm969_vm10, %v12606_v44 }
 0x4c9   : > { %v1393_v5 = vsel %vm1391_vm13, %v13520_v2, %v1390_v63  ;;  %1798 = vst.msk [vmem:[#allocation3 + $0x140] sm:$0xff] %vm1277_vm9, %v1793_v4 }
 0x4ca   : > { %1397 = vst.msk [vmem:[#allocation3 + $0x48] sm:$0xff] %vm1277_vm9, %v1393_v5  ;;  %2720 = vrot.lane.b32.xlu1 %v13458_v16, %s16289_s19  ;;  %1592 = vrot.lane.b32.xlu0 %v13458_v16, %s16455_s20 }
 0x4cb   : > { %974 = vst.msk [vmem:[#allocation4 + $0x40] sm:$0xff] %vm969_vm10, %v12606_v44  ;;  %975 = vst.msk [vmem:[#allocation4 + $0x50] sm:$0xff] %vm969_vm10, %v12606_v44 }
 0x4cc   : > { %v1298_v6 = vpop.permute.xlu0 %1297  ;;  %v1480_v7 = vpop.permute.xlu1 %1479  ;;  %976 = vst.msk [vmem:[#allocation4 + $0x60] sm:$0xff] %vm969_vm10, %v12606_v44  ;;  %977 = vst.msk [vmem:[#allocation4 + $0x70] sm:$0xff] %vm969_vm10, %v12606_v44  ;;  %vm1437_vm10 = vcmask 105472  }
 0x4cd   : > { %v1301_v8 = vsel %vm1299_vm15, %v13526_v21, %v1298_v6  ;;  %v1964_v13 = vld [vmem:[#allocation3 + $0x100] sm:$0xff] }
 0x4ce   : > { %1305 = vst.msk [vmem:[#allocation3 + $0x8] sm:$0xff] %vm1277_vm9, %v1301_v8  ;;  %2722 = vrot.lane.b32.xlu1 %v13452_v15, %s16289_s19  ;;  %1500 = vrot.lane.b32.xlu0 %v13458_v16, %s16456_s21  ;;  %s16457_s19 = smov 12   ;;  %v1969_v8 = vld [vmem:[#allocation3 + $0x128] sm:$0xff] }
 0x4d0   : > { %v1413_v9 = vpop.permute.xlu0 %1412  ;;  %v1805_v10 = vpop.permute.xlu1 %1804  ;;  %v1972_v11 = vld [vmem:[#allocation3 + $0x140] sm:$0xff] }
 0x4d1   : > { %v1416_v12 = vsel %vm16316_vm2, %v13552_v24, %v1413_v9  ;;  %1810 = vst.msk [vmem:[#allocation3 + $0x150] sm:$0xff] %vm1277_vm9, %v1805_v10  ;;  %10020 = vmatprep.subr.bf16.mxu1 %v1972_v11  ;;  %v1991_v9 = vld [vmem:[#allocation3 + $0x1d8] sm:$0xff] }
 0x4d2   : > { %1420 = vst.msk [vmem:[#allocation3 + $0x58] sm:$0xff] %vm1277_vm9, %v1416_v12  ;;  %2734 = vrot.lane.b32.xlu1 %v13452_v15, %s16292_s24  ;;  %10021 = vmatpush3.bf16.msra.mxu1 %v1964_v13  ;;  %s16458_s24 = smov 16   ;;  %v1983_v11 = vld [vmem:[#allocation3 + $0x198] sm:$0xff]  ;;  %v1970_v12 = vld [vmem:[#allocation3 + $0x130] sm:$0xff] }
 0x4d3   : > { %1454 = vrot.lane.b32.xlu0 %v13458_v16, %s16457_s19  ;;  %10022 = vmatprep.subr.bf16.mxu1 %v1973_v14  ;;  %v1979_v14 = vld [vmem:[#allocation3 + $0x178] sm:$0xff] }
 0x4d4   : > { %v1321_v2 = vpop.permute.xlu0 %1320  ;;  %v1889_v21 = vpop.permute.xlu1 %1888 }
 0x4d5   : > { %v1324_v24 = vsel %vm1322_vm3, %v13558_v25, %v1321_v2  ;;  %1894 = vst.msk [vmem:[#allocation3 + $0x1c0] sm:$0xff] %vm1277_vm9, %v1889_v21 }
 0x4d6   : > { %1328 = vst.msk [vmem:[#allocation3 + $0x18] sm:$0xff] %vm1277_vm9, %v1324_v24  ;;  %2746 = vrot.lane.b32.xlu1 %v13452_v15, %s16294_s29  ;;  %10023 = vmatpush3.bf16.msra.mxu1 %v1965_v27  ;;  %s16459_s29 = smov 5   ;;  %v1971_v24 = vld [vmem:[#allocation3 + $0x138] sm:$0xff] }
 0x4d7   : > { %1362 = vrot.lane.b32.xlu0 %v13458_v16, %s16458_s24  ;;  %v11494_v27 = vld [vmem:[#allocation14 + $0x10] ss:$40 sps:$4 sm:$0xff]  }
 0x4d8   : > { %v1574_v29 = vpop.permute.xlu0 %1573  ;;  %v1817_v30 = vpop.permute.xlu1 %1816  ;;  %v1974_v32 = vld [vmem:[#allocation3 + $0x150] sm:$0xff] }
 0x4d9   : > { %v1577_v25 = vsel %vm1575_vm4, %v13602_v35, %v1574_v29  ;;  %1822 = vst.msk [vmem:[#allocation3 + $0x160] sm:$0xff] %vm1277_vm9, %v1817_v30  ;;  %10024 = vmatprep.subr.bf16.mxu1 %v1974_v32  ;;  %v11497_v29 = vld [vmem:[#allocation14 + $0x64] ss:$40 sps:$4 sm:$0xff]  }
 0x4da   : > { %1581 = vst.msk [vmem:[#allocation3 + $0xc8] sm:$0xff] %vm1277_vm9, %v1577_v25  ;;  %2758 = vrot.lane.b32.xlu1 %v13452_v15, %s16299_s28  ;;  %s16460_s28 = smov 9  }
 0x4db   : > { %1615 = vrot.lane.b32.xlu0 %v13458_v16, %s16459_s29 }
 0x4dc   : > { %v1482_v34 = vpop.permute.xlu0 %1481  ;;  %v1901_v36 = vpop.permute.xlu1 %1900  ;;  %v1988_v37 = vld [vmem:[#allocation3 + $0x1c0] sm:$0xff] }
 0x4dd   : > { %v1485_v38 = vsel %vm1483_vm8, %v1480_v7, %v1482_v34  ;;  %1906 = vst.msk [vmem:[#allocation3 + $0x1d0] sm:$0xff] %vm1277_vm9, %v1901_v36  ;;  %10084 = vmatprep.subr.bf16.mxu0 %v1988_v37  ;;  %v1993_v34 = vld [vmem:[#allocation3 + $0x1e8] sm:$0xff]  ;;  %v1938_v37 = vld [vmem:[#allocation14 + $0x88] sm:$0xff] }
 0x4de   : > { %1489 = vst.msk [vmem:[#allocation3 + $0x88] sm:$0xff] %vm1277_vm9, %v1485_v38  ;;  %2770 = vrot.lane.b32.xlu1 %v13452_v15, %s16301_s27  ;;  %s16304_s27 = smov 109   ;;  %v1936_v36 = vld [vmem:[#allocation14 + $0x60] sm:$0xff] }
 0x4df   : > { %1523 = vrot.lane.b32.xlu0 %v13458_v16, %s16460_s28 }
 0x4e0   : > { %v1749_v35 = vpop.permute.xlu0 %1748  ;;  %v1829_v39 = vpop.permute.xlu1 %1828 }
 0x4e1   : > { %v1755_v40 = vsel %vm16306_vm11, %v13488_v17, %v1749_v35  ;;  %1834 = vst.msk [vmem:[#allocation3 + $0x170] sm:$0xff] %vm1277_vm9, %v1829_v39  ;;  %vm1345_vm11 = vcmask 138240   ;;  %v1985_v39 = vld [vmem:[#allocation3 + $0x1a8] sm:$0xff] }
 0x4e2   : > { %1759 = vst.msk [vmem:[#allocation3 + $0x110] sm:$0xff] %vm1277_vm9, %v1755_v40  ;;  %2782 = vrot.lane.b32.xlu1 %v13452_v15, %s16304_s27  ;;  %s16462_s27 = smov 115  }
 0x4e3   : > { %1638 = vrot.lane.b32.xlu0 %v13458_v16, %s16452_s16 }
 0x4e4   : > { %v1841_v44 = vpop.permute.xlu0 %1840  ;;  %v1434_v41 = vpop.permute.xlu1 %1433  ;;  %v1990_v63 = vld [vmem:[#allocation3 + $0x1d0] sm:$0xff] }
 0x4e5   : > { %1846 = vst.msk [vmem:[#allocation3 + $0x180] sm:$0xff] %vm1277_vm9, %v1841_v44 }
 0x4e7   : > { %1546 = vrot.lane.b32.xlu0 %v13458_v16, %s16461_s1 }
 0x4e8   : > { %v1772_v42 = vpop.permute.xlu0 %1771  ;;  %v1913_v17 = vpop.permute.xlu1 %1912  ;;  %v1978_v10 = vld [vmem:[#allocation3 + $0x170] sm:$0xff] }
 0x4e9   : > { %v1778_v43 = vsel %vm16315_vm12, %v13494_v18, %v1772_v42  ;;  %1918 = vst.msk [vmem:[#allocation3 + $0x1e0] sm:$0xff] %vm1277_vm9, %v1913_v17  ;;  %v1966_v45 = vld [vmem:[#allocation3 + $0x110] sm:$0xff]  ;;  %v1976_v18 = vld [vmem:[#allocation3 + $0x160] sm:$0xff]  ;;  %vm16318_vm12 = vcmask 72704  }
 0x4ea   : > { %1782 = vst.msk [vmem:[#allocation3 + $0x120] sm:$0xff] %vm1277_vm9, %v1778_v43  ;;  %10025 = vmatpush3.bf16.msra.mxu1 %v1966_v45  ;;  %v11499_v42 = vld [vmem:[#allocation14 + $0xb4] ss:$40 sps:$4 sm:$0xff]  }
 0x4eb   : > { %1550 = vrot.lane.b32.xlu0 %v13452_v15, %s16461_s1  ;;  %10026 = vmatprep.subr.bf16.mxu1 %v1975_v46  ;;  %v1940_v46 = vld [vmem:[#allocation14 + $0xb0] sm:$0xff] }
 0x4ec   : > { %v1853_v47 = vpop.permute.xlu0 %1852  ;;  %v1342_v48 = vpop.permute.xlu1 %1341  ;;  %v1980_v49 = vld [vmem:[#allocation3 + $0x180] sm:$0xff] }
 0x4ed   : > { %1858 = vst.msk [vmem:[#allocation3 + $0x190] sm:$0xff] %vm1277_vm9, %v1853_v47  ;;  %10085 = vmatpush3.bf16.msra.mxu0 %v1980_v49  ;;  %v1942_v47 = vld [vmem:[#allocation14 + $0xd8] sm:$0xff] }
 0x4ee   : > { %10027 = vmatpush3.bf16.msra.mxu1 %v1967_v50  ;;  %10086 = vmatprep.subr.bf16.mxu0 %v1989_v51  ;;  %v9651_v51 = vcombine.low %v1940_v46, %v1942_v47  ;;  %v1939_v46 = vld [vmem:[#allocation14 + $0x90] sm:$0xff] }
 0x4ef   : > { %2710 = vrot.lane.b32.xlu0 %v13452_v15, %s16462_s27  ;;  %10028 = vmatprep.subr.bf16.mxu1 %v1976_v18  ;;  %v1977_v15 = vld [vmem:[#allocation3 + $0x168] sm:$0xff]  ;;  %v11504_v18 = vld [vmem:[#allocation14 + $0x104] ss:$40 sps:$4 sm:$0xff]   ;;  %v1956_v47 = vld [vmem:[#allocation14 + $0x1f0] sm:$0xff]  ;;  %s16479_s27 = smov 117  }
 0x4f0   : > { %v1436_v54 = vpop.permute.xlu0 %1435  ;;  %v1925_v52 = vpop.permute.xlu1 %1924  ;;  %v1992_v13 = vld [vmem:[#allocation3 + $0x1e0] sm:$0xff] }
 0x4f1   : > { %v1439_v60 = vsel %vm1437_vm10, %v1434_v41, %v1436_v54  ;;  %1930 = vst.msk [vmem:[#allocation3 + $0x1f0] sm:$0xff] %vm1277_vm9, %v1925_v52  ;;  %10087 = vmatpush3.bf16.msra.mxu0 %v1981_v55  ;;  %v1968_v53 = vld [vmem:[#allocation3 + $0x120] sm:$0xff]  ;;  %v9647_v41 = vcombine.low %v1936_v36, %v1938_v37  ;;  %v1987_v37 = vld [vmem:[#allocation3 + $0x1b8] sm:$0xff] }
 0x4f2   : > { %1443 = vst.msk [vmem:[#allocation3 + $0x68] sm:$0xff] %vm1277_vm9, %v1439_v60  ;;  %10029 = vmatpush3.bf16.msra.mxu1 %v1968_v53  ;;  %10088 = vmatprep.subr.bf16.mxu0 %v1990_v63  ;;  %v1946_v60 = vld [vmem:[#allocation14 + $0x128] sm:$0xff] }
 0x4f3   : > { %3031 = vrot.lane.b32.xlu0 %v13656_v62, %s16463_s25  ;;  %10030 = vmatprep.subr.bf16.mxu1 %v1977_v15  ;;  %v9655_v63 = vcombine.low %v1944_v58, %v1946_v60  ;;  %v11508_v15 = vld [vmem:[#allocation14 + $0x154] ss:$40 sps:$4 sm:$0xff]   ;;  %v11520_v60 = vld [vmem:[#allocation14 + $0x244] ss:$40 sps:$4 sm:$0xff]  }
 0x4f4   : > { %v1344_v4 = vpop.permute.xlu0 %1343  ;;  %v13749_v5 = vpop.permute.xlu1 %1590  ;;  %v1982_v6 = vld [vmem:[#allocation3 + $0x190] sm:$0xff] }
 0x4f5   : > { %v1347_v7 = vsel %vm1345_vm11, %v1342_v48, %v1344_v4  ;;  %10089 = vmatpush3.bf16.msra.mxu0 %v1982_v6 }
 0x4f6   : > { %1351 = vst.msk [vmem:[#allocation3 + $0x28] sm:$0xff] %vm1277_vm9, %v1347_v7  ;;  %10031 = vmatpush3.bf16.msra.mxu1 %v1969_v8  ;;  %10090 = vmatprep.subr.bf16.mxu0 %v1991_v9  ;;  %v1948_v7 = vld [vmem:[#allocation14 + $0x150] sm:$0xff]  ;;  %v1950_v8 = vld [vmem:[#allocation14 + $0x178] sm:$0xff] }
 0x4f7   : > { %3046 = vrot.lane.b32.xlu0 %v13747_v61, %s16463_s25  ;;  %10032 = vmatprep.subr.bf16.mxu1 %v1978_v10 }
 0x4f8   : > { %v1865_v56 = vpop.permute.xlu0 %1864  ;;  %v13755_v57 = vpop.permute.xlu1 %1498  ;;  %v1994_v44 = vld [vmem:[#allocation3 + $0x1f0] sm:$0xff] }
 0x4f9   : > { %1870 = vst.msk [vmem:[#allocation3 + $0x1a0] sm:$0xff] %vm1277_vm9, %v1865_v56  ;;  %10091 = vmatpush3.bf16.msra.mxu0 %v1983_v11 }
 0x4fa   : > { %10033 = vmatpush3.bf16.msra.mxu1 %v1970_v12  ;;  %10092 = vmatprep.subr.bf16.mxu0 %v1992_v13  ;;  %v9659_v12 = vcombine.low %v1948_v7, %v1950_v8  ;;  %v11512_v13 = vld [vmem:[#allocation14 + $0x1a4] ss:$40 sps:$4 sm:$0xff]  }
 0x4fb   : > { %2732 = vrot.lane.b32.xlu0 %v13458_v16, %s16464_s26  ;;  %10034 = vmatprep.subr.bf16.mxu1 %v1979_v14  ;;  %s16466_s26 = smov 111   ;;  %v1943_v7 = vld [vmem:[#allocation14 + $0xe0] sm:$0xff]  ;;  %v1694_v8 = vld [vmem:[#allocation3 + $0x58] sm:$0xff] }
 0x4fc   : > { %v1597_v2 = vpop.permute.xlu0 %1596  ;;  %v13760_v21 = vpop.permute.xlu1 %1452 }
 0x4fe   : > { %10035 = vmatpush3.bf16.msra.mxu1 %v1971_v24 }
 0x4ff   : > { %2744 = vrot.lane.b32.xlu0 %v13458_v16, %s16465_s2  ;;  %s16467_s2 = smov 110  }
 0x500   : > { %v1505_v30 = vpop.permute.xlu0 %1504  ;;  %v13764_v32 = vpop.permute.xlu1 %1360  ;;  %v1984_v25 = vld [vmem:[#allocation3 + $0x1a0] sm:$0xff] }
 0x501   : > { %10093 = vmatpush3.bf16.msra.mxu0 %v1984_v25  ;;  %2189 = vmatmul.mubr.bf16.vlgmr.msra.gmra.mrb[0].mxu1 %v11494_v27  ;;  %v1954_v25 = vld [vmem:[#allocation14 + $0x1c8] sm:$0xff] }
 0x502   : > { %10094 = vmatprep.subr.bf16.mxu0 %v1993_v34  ;;  %2196 = vmatprep.mubr.bf16.mxu1 %v11497_v29 }
 0x503   : > { %2756 = vrot.lane.b32.xlu0 %v13458_v16, %s16466_s26  ;;  %s16468_s26 = smov 109  }
 0x504   : > { %v1459_v38 = vpop.permute.xlu0 %1458  ;;  %v1595_v35 = vpop.permute.xlu1 %1594 }
 0x505   : > { %v1600_v40 = vsel %vm16322_vm7, %v1595_v35, %v1597_v2  ;;  %10095 = vmatpush3.bf16.msra.mxu0 %v1985_v39  ;;  %v11506_v39 = vld [vmem:[#allocation14 + $0x6c] ss:$40 sps:$4 sm:$0xff]  }
 0x506   : > { %1604 = vst.msk [vmem:[#allocation3 + $0xd8] sm:$0xff] %vm1277_vm9, %v1600_v40  ;;  %10096 = vmatprep.subr.bf16.mxu0 %v1994_v44  ;;  %v11516_v44 = vld [vmem:[#allocation14 + $0x1f4] ss:$40 sps:$4 sm:$0xff]  }
 0x507   : > { %2768 = vrot.lane.b32.xlu0 %v13458_v16, %s16467_s2  ;;  %s16478_s2 = smov 124  }
 0x508   : > { %v1367_v17 = vpop.permute.xlu0 %1366  ;;  %v1503_v43 = vpop.permute.xlu1 %1502 }
 0x509   : > { %v1508_v45 = vsel %vm16321_vm5, %v1503_v43, %v1505_v30  ;;  %2197 = vmatmul.mubr.bf16.gmra.mrb[4].mxu1 %v9647_v41  ;;  %v1995_v30 = vld [vmem:[#allocation3 + $0x1f8] sm:$0xff] }
 0x50a   : > { %1512 = vst.msk [vmem:[#allocation3 + $0x98] sm:$0xff] %vm1277_vm9, %v1508_v45  ;;  %2204 = vmatprep.mubr.bf16.mxu1 %v11499_v42  ;;  %v1937_v45 = vld [vmem:[#allocation14 + $0x68] sm:$0xff] }
 0x50b   : > { %2780 = vrot.lane.b32.xlu0 %v13458_v16, %s16468_s26  ;;  %s16323_s26 = smov 32  }
 0x50c   : > { %v1620_v48 = vpop.permute.xlu0 %1619  ;;  %v1457_v49 = vpop.permute.xlu1 %1456 }
 0x50d   : > { %v1462_v50 = vsel %vm1460_vm6, %v1457_v49, %v1459_v38  ;;  %v11501_v38 = vld [vmem:[#allocation14 + $0x18] ss:$40 sps:$4 sm:$0xff]  }
 0x50e   : > { %1466 = vst.msk [vmem:[#allocation3 + $0x78] sm:$0xff] %vm1277_vm9, %v1462_v50 }
 0x510   : > { %v1528_v54 = vpop.permute.xlu0 %1527  ;;  %v1365_v52 = vpop.permute.xlu1 %1364 }
 0x511   : > { %v1370_v55 = vsel %vm992_vm1, %v1365_v52, %v1367_v17  ;;  %2205 = vmatmul.mubr.bf16.gmra.mrb[8].mxu1 %v9651_v51  ;;  %v9649_v51 = vcombine.low %v1937_v45, %v1939_v46  ;;  %v1949_v46 = vld [vmem:[#allocation14 + $0x158] sm:$0xff] }
 0x512   : > { %1374 = vst.msk [vmem:[#allocation3 + $0x38] sm:$0xff] %vm1277_vm9, %v1370_v55  ;;  %2212 = vmatprep.mubr.bf16.mxu1 %v11504_v18  ;;  %v11510_v55 = vld [vmem:[#allocation14 + $0xbc] ss:$40 sps:$4 sm:$0xff]  }
 0x514   : > { %v13780_v53 = vpop.permute.xlu0 %1642  ;;  %v13782_v16 = vpop.permute.xlu1 %1613 }
 0x518   : > { %v1877_v4 = vpop.permute.xlu0 %1876  ;;  %v13784_v6 = vpop.permute.xlu1 %1521 }
 0x519   : > { %1882 = vst.msk [vmem:[#allocation3 + $0x1b0] sm:$0xff] %vm1277_vm9, %v1877_v4  ;;  %2213 = vmatmul.mubr.bf16.gmra.mrb[12].mxu1 %v9655_v63 }
 0x51a   : > { %2220 = vmatprep.mubr.bf16.mxu1 %v11508_v15 }
 0x51c   : > { %v1618_v9 = vpop.permute.xlu1 %1617  ;;  %v1386_v10 = vpop.permute.xlu0 %1385 }
 0x51d   : > { %v1623_v56 = vsel %vm16320_vm0, %v1618_v9, %v1620_v48  ;;  %v1392_v11 = vsel %vm1391_vm13, %v13504_v19, %v1386_v10  ;;  %v1952_v19 = vld [vmem:[#allocation14 + $0x1a0] sm:$0xff]  ;;  %v1958_v48 = vld [vmem:[#allocation14 + $0x218] sm:$0xff]  ;;  %v1962_v10 = vld [vmem:[#allocation14 + $0x268] sm:$0xff] }
 0x51e   : > { %1627 = vst.msk [vmem:[#allocation3 + $0xe8] sm:$0xff] %vm1277_vm9, %v1623_v56  ;;  %1396 = vst.msk [vmem:[#allocation3 + $0x40] sm:$0xff] %vm1277_vm9, %v1392_v11  ;;  %v9663_v40 = vcombine.low %v1952_v19, %v1954_v25  ;;  %v9667_v58 = vcombine.low %v1956_v47, %v1958_v48  ;;  %v1960_v9 = vld [vmem:[#allocation14 + $0x240] sm:$0xff] }
 0x520   : > { %v1526_v14 = vpop.permute.xlu1 %1525  ;;  %v1294_v2 = vpop.permute.xlu0 %1293  ;;  %v1986_v24 = vld [vmem:[#allocation3 + $0x1b0] sm:$0xff] }
 0x521   : > { %v1531_v27 = vsel %vm16318_vm12, %v1526_v14, %v1528_v54  ;;  %v1300_v29 = vsel %vm1299_vm15, %v13510_v20, %v1294_v2  ;;  %10097 = vmatpush3.bf16.msra.mxu0 %v1986_v24  ;;  %2221 = vmatmul.mubr.bf16.gmra.mrb[16].mxu1 %v9659_v12  ;;  %v1684_v54 = vld [vmem:[#allocation3 + $0x8] sm:$0xff]  ;;  %v11514_v2 = vld [vmem:[#allocation14 + $0x10c] ss:$40 sps:$4 sm:$0xff]   ;;  %v9671_v24 = vcombine.low %v1960_v9, %v1962_v10 }
 0x522   : > { %1535 = vst.msk [vmem:[#allocation3 + $0xa8] sm:$0xff] %vm1277_vm9, %v1531_v27  ;;  %1304 = vst.msk [vmem:[#allocation3] sm:$0xff] %vm1277_vm9, %v1300_v29  ;;  %10098 = vmatprep.subr.bf16.mxu0 %v1995_v30  ;;  %2228 = vmatprep.mubr.bf16.mxu1 %v11512_v13  ;;  %v1686_v13 = vld [vmem:[#allocation3 + $0x18] sm:$0xff] }
 0x523   : > { %v11528_v27 = vld [vmem:[#allocation14 + $0x4] ss:$40 sps:$4 sm:$0xff]  }
 0x524   : > { %v13797_v34 = vpop.permute.xlu1 %1636  ;;  %v1409_v36 = vpop.permute.xlu0 %1408 }
 0x525   : > { %v1415_v35 = vsel %vm16316_vm2, %v13536_v22, %v1409_v36  ;;  %10099 = vmatpush3.bf16.msra.mxu0 %v1987_v37  ;;  %v1691_v20 = vld [vmem:[#allocation3 + $0x40] sm:$0xff]  ;;  %v1692_v22 = vld [vmem:[#allocation3 + $0x48] sm:$0xff]  ;;  %vm16317_vm2 = vcmask 31744   ;;  %v1945_v36 = vld [vmem:[#allocation14 + $0x108] sm:$0xff] }
 0x526   : > { %1419 = vst.msk [vmem:[#allocation3 + $0x50] sm:$0xff] %vm1277_vm9, %v1415_v35  ;;  %10148 = vmatprep.subr.bf16.mxu1 %v1691_v20  ;;  %v1947_v37 = vld [vmem:[#allocation14 + $0x130] sm:$0xff] }
 0x527   : > { %v9657_v20 = vcombine.low %v1945_v36, %v1947_v37  ;;  %v1961_v37 = vld [vmem:[#allocation14 + $0x248] sm:$0xff] }
 0x528   : > { %v13802_v41 = vpop.permute.xlu1 %1544  ;;  %v1317_v42 = vpop.permute.xlu0 %1316  ;;  %2286 = vmatmul.mubr.bf16.vlgmr.msra.gmra.mrb[4].mxu0 %v11501_v38 }
 0x529   : > { %v1323_v17 = vsel %vm1322_vm3, %v13542_v23, %v1317_v42  ;;  %v1683_v43 = vld [vmem:[#allocation3] sm:$0xff]  ;;  %2293 = vmatprep.mubr.bf16.mxu0 %v11506_v39  ;;  %2229 = vmatmul.mubr.bf16.gmra.mrb[20].mxu1 %v9663_v40  ;;  %v1700_v40 = vld [vmem:[#allocation3 + $0x88] sm:$0xff] }
 0x52a   : > { %1327 = vst.msk [vmem:[#allocation3 + $0x10] sm:$0xff] %vm1277_vm9, %v1323_v17  ;;  %10149 = vmatpush3.bf16.msra.mxu1 %v1683_v43  ;;  %2236 = vmatprep.mubr.bf16.mxu1 %v11516_v44  ;;  %v11518_v44 = vld [vmem:[#allocation14 + $0x15c] ss:$40 sps:$4 sm:$0xff]  }
 0x52b   : > { %10150 = vmatprep.subr.bf16.mxu1 %v1692_v22  ;;  %v1951_v22 = vld [vmem:[#allocation14 + $0x180] sm:$0xff] }
 0x52c   : > { %v1641_v49 = vpop.permute.xlu1 %1640  ;;  %v1570_v50 = vpop.permute.xlu0 %1569  ;;  %v9661_v48 = vcombine.low %v1949_v46, %v1951_v22  ;;  %v11533_v46 = vld [vmem:[#allocation14 + $0xa4] ss:$40 sps:$4 sm:$0xff]  }
 0x52d   : > { %v1646_v23 = vsel %vm16317_vm2, %v1641_v49, %v13780_v53  ;;  %v1576_v18 = vsel %vm1575_vm4, %v13568_v26, %v1570_v50  ;;  %v1693_v52 = vld [vmem:[#allocation3 + $0x50] sm:$0xff]  ;;  %v1941_v26 = vld [vmem:[#allocation14 + $0xb8] sm:$0xff] }
 0x52e   : > { %1650 = vst.msk [vmem:[#allocation3 + $0xf8] sm:$0xff] %vm1277_vm9, %v1646_v23  ;;  %1580 = vst.msk [vmem:[#allocation3 + $0xc0] sm:$0xff] %vm1277_vm9, %v1576_v18  ;;  %10151 = vmatpush3.bf16.msra.mxu1 %v1684_v54  ;;  %v9653_v12 = vcombine.low %v1941_v26, %v1943_v7  ;;  %v1688_v50 = vld [vmem:[#allocation3 + $0x28] sm:$0xff]  ;;  %v11522_v23 = vld [vmem:[#allocation14 + $0x1ac] ss:$40 sps:$4 sm:$0xff]  }
 0x52f   : > { %10152 = vmatprep.subr.bf16.mxu1 %v1693_v52  ;;  %v1702_v26 = vld [vmem:[#allocation3 + $0x98] sm:$0xff]  ;;  %v11524_v7 = vld [vmem:[#allocation14 + $0x1fc] ss:$40 sps:$4 sm:$0xff]  }
 0x530   : > { %v13813_v63 = vpop.permute.xlu1 %1548  ;;  %v1478_v15 = vpop.permute.xlu0 %1477  ;;  %2294 = vmatmul.mubr.bf16.gmra.mrb[8].mxu0 %v9649_v51 }
 0x531   : > { %v1484_v53 = vsel %vm1483_vm8, %v13576_v28, %v1478_v15  ;;  %v1685_v4 = vld [vmem:[#allocation3 + $0x10] sm:$0xff]  ;;  %2301 = vmatprep.mubr.bf16.mxu0 %v11510_v55  ;;  %2237 = vmatmul.mubr.bf16.gmra.mrb[24].mxu1 %v9667_v58  ;;  %v1955_v58 = vld [vmem:[#allocation14 + $0x1d0] sm:$0xff] }
 0x532   : > { %1488 = vst.msk [vmem:[#allocation3 + $0x80] sm:$0xff] %vm1277_vm9, %v1484_v53  ;;  %10153 = vmatpush3.bf16.msra.mxu1 %v1685_v4  ;;  %2244 = vmatprep.mubr.bf16.mxu1 %v11520_v60  ;;  %v1953_v55 = vld [vmem:[#allocation14 + $0x1a8] sm:$0xff] }
 0x533   : > { %10154 = vmatprep.subr.bf16.mxu1 %v1694_v8  ;;  %v1710_v15 = vld [vmem:[#allocation3 + $0xd8] sm:$0xff]  ;;  %v9665_v53 = vcombine.low %v1953_v55, %v1955_v58 }
 0x534   : > { %v2709_v56 = vpop.permute.xlu1 %2708  ;;  %v1432_v11 = vpop.permute.xlu0 %1431  ;;  %v1663_v58 = vld [vmem:[#allocation14 + $0xf0] sm:$0xff] }
 0x535   : > { %2714 = vst.msk [vmem:[#allocation3 + $0x200] sm:$0xff] %vm1277_vm9, %v2709_v56  ;;  %v1438_v28 = vsel %vm1437_vm10, %v13586_v31, %v1432_v11  ;;  %v1707_v14 = vld [vmem:[#allocation3 + $0xc0] sm:$0xff]  ;;  %v1708_v31 = vld [vmem:[#allocation3 + $0xc8] sm:$0xff] }
 0x536   : > { %1442 = vst.msk [vmem:[#allocation3 + $0x60] sm:$0xff] %vm1277_vm9, %v1438_v28  ;;  %10155 = vmatpush3.bf16.msra.mxu1 %v1686_v13  ;;  %10212 = vmatprep.subr.bf16.mxu0 %v1707_v14  ;;  %v1957_v56 = vld [vmem:[#allocation14 + $0x1f8] sm:$0xff]  ;;  %v1959_v11 = vld [vmem:[#allocation14 + $0x220] sm:$0xff] }
 0x537   : > { %v9669_v14 = vcombine.low %v1957_v56, %v1959_v11  ;;  %v1667_v11 = vld [vmem:[#allocation14 + $0x140] sm:$0xff] }
 0x538   : > { %v13822_v29 = vpop.permute.xlu1 %3036  ;;  %v1340_v30 = vpop.permute.xlu0 %1339  ;;  %2302 = vmatmul.mubr.bf16.gmra.mrb[12].mxu0 %v9653_v12 }
 0x539   : > { %v1346_v19 = vsel %vm1345_vm11, %v13592_v33, %v1340_v30  ;;  %v1699_v25 = vld [vmem:[#allocation3 + $0x80] sm:$0xff]  ;;  %2309 = vmatprep.mubr.bf16.mxu0 %v11514_v2  ;;  %2245 = vmatmul.mubr.bf16.gmra.mrb[28].mxu1 %v9671_v24  ;;  %v1690_v30 = vld [vmem:[#allocation3 + $0x38] sm:$0xff] }
 0x53a   : > { %1350 = vst.msk [vmem:[#allocation3 + $0x20] sm:$0xff] %vm1277_vm9, %v1346_v19  ;;  %10213 = vmatpush3.bf16.msra.mxu0 %v1699_v25  ;;  %2542 = vmatprep.mubr.bf16.mxu1 %v11528_v27  ;;  %v11529_v24 = vld [vmem:[#allocation14 + $0x24c] ss:$40 sps:$4 sm:$0xff]   ;;  %v11526_v25 = vld [vmem:[#allocation14] ss:$40 sps:$4 sm:$0xff]  }
 0x53b   : > { %10214 = vmatprep.subr.bf16.mxu0 %v1708_v31  ;;  %v1963_v31 = vld [vmem:[#allocation14 + $0x270] sm:$0xff] }
 0x53c   : > { %v2721_v38 = vpop.permute.xlu1 %2720  ;;  %v1593_v35 = vpop.permute.xlu0 %1592 }
 0x53d   : > { %2726 = vst.msk [vmem:[#allocation3 + $0x210] sm:$0xff] %vm1277_vm9, %v2721_v38  ;;  %v1599_v39 = vsel %vm16322_vm7, %v13749_v5, %v1593_v35  ;;  %v1695_v33 = vld [vmem:[#allocation3 + $0x60] sm:$0xff]  ;;  %v1696_v5 = vld [vmem:[#allocation3 + $0x68] sm:$0xff] }
 0x53e   : > { %1603 = vst.msk [vmem:[#allocation3 + $0xd0] sm:$0xff] %vm1277_vm9, %v1599_v39  ;;  %10156 = vmatprep.subr.bf16.mxu1 %v1695_v33  ;;  %10215 = vmatpush3.bf16.msra.mxu0 %v1700_v40  ;;  %v2804_v35 = vld [vmem:[#allocation3 + $0x200] sm:$0xff]  ;;  %v9673_v40 = vcombine.low %v1961_v37, %v1963_v31  ;;  %v11552_v31 = vld [vmem:[#allocation14 + $0xfc] ss:$40 sps:$4 sm:$0xff]  }
 0x53f   : > { %v1655_v39 = vld [vmem:[#allocation14 + $0x50] sm:$0xff]  ;;  %v1657_v33 = vld [vmem:[#allocation14 + $0x78] sm:$0xff] }
 0x540   : > { %v2723_v42 = vpop.permute.xlu1 %2722  ;;  %v1501_v17 = vpop.permute.xlu0 %1500  ;;  %2310 = vmatmul.mubr.bf16.gmra.mrb[16].mxu0 %v9657_v20  ;;  %v1712_v20 = vld [vmem:[#allocation3 + $0xe8] sm:$0xff] }
 0x541   : > { %2727 = vst.msk [vmem:[#allocation3 + $0x218] sm:$0xff] %vm1277_vm9, %v2723_v42  ;;  %v1507_v43 = vsel %vm16321_vm5, %v13755_v57, %v1501_v17  ;;  %v1687_v45 = vld [vmem:[#allocation3 + $0x20] sm:$0xff]  ;;  %2317 = vmatprep.mubr.bf16.mxu0 %v11518_v44  ;;  %v1704_v17 = vld [vmem:[#allocation3 + $0xa8] sm:$0xff]  ;;  %vm16471_vm5 = vcmask 1043456  }
 0x542   : > { %1511 = vst.msk [vmem:[#allocation3 + $0x90] sm:$0xff] %vm1277_vm9, %v1507_v43  ;;  %10157 = vmatpush3.bf16.msra.mxu1 %v1687_v45  ;;  %v11537_v42 = vld [vmem:[#allocation14 + $0xc] ss:$40 sps:$4 sm:$0xff]   ;;  %v9679_v45 = vcombine.low %v1655_v39, %v1657_v33  ;;  %v11555_v33 = vld [vmem:[#allocation14 + $0x190] ss:$40 sps:$4 sm:$0xff]   ;;  %vm16472_vm7 = vmmov %vm16471_vm5 }
 0x543   : > { %10158 = vmatprep.subr.bf16.mxu1 %v1696_v5  ;;  %v11550_v37 = vld [vmem:[#allocation14 + $0x194] ss:$40 sps:$4 sm:$0xff]  }
 0x544   : > { %v2735_v47 = vpop.permute.xlu1 %2734 }
 0x545   : > { %2739 = vst.msk [vmem:[#allocation3 + $0x228] sm:$0xff] %vm1277_vm9, %v2735_v47  ;;  %v1455_v49 = vpop.permute.xlu0 %1454  ;;  %v1709_v51 = vld [vmem:[#allocation3 + $0xd0] sm:$0xff]  ;;  %v1714_v47 = vld [vmem:[#allocation3 + $0xf8] sm:$0xff] }
 0x546   : > { %v1461_v57 = vsel %vm1460_vm6, %v13760_v21, %v1455_v49  ;;  %10159 = vmatpush3.bf16.msra.mxu1 %v1688_v50  ;;  %10216 = vmatprep.subr.bf16.mxu0 %v1709_v51 }
 0x547   : > { %1465 = vst.msk [vmem:[#allocation3 + $0x70] sm:$0xff] %vm1277_vm9, %v1461_v57  ;;  %v11538_v57 = vld [vmem:[#allocation14 + $0xa0] ss:$40 sps:$4 sm:$0xff]  }
 0x548   : > { %v2747_v18 = vpop.permute.xlu1 %2746  ;;  %2318 = vmatmul.mubr.bf16.gmra.mrb[20].mxu0 %v9661_v48  ;;  %v3028_v48 = vld [vmem:[#allocation4] sm:$0xf] }
 0x549   : > { %2751 = vst.msk [vmem:[#allocation3 + $0x238] sm:$0xff] %vm1277_vm9, %v2747_v18  ;;  %v1363_v54 = vpop.permute.xlu0 %1362  ;;  %v1701_v52 = vld [vmem:[#allocation3 + $0x90] sm:$0xff]  ;;  %2325 = vmatprep.mubr.bf16.mxu0 %v11522_v23 }
 0x54a   : > { %v1369_v60 = vsel %vm992_vm1, %v13764_v32, %v1363_v54  ;;  %10217 = vmatpush3.bf16.msra.mxu0 %v1701_v52  ;;  %v11535_v23 = vld [vmem:[#allocation14 + $0x8] ss:$40 sps:$4 sm:$0xff]  }
 0x54b   : > { %1373 = vst.msk [vmem:[#allocation3 + $0x30] sm:$0xff] %vm1277_vm9, %v1369_v60  ;;  %10218 = vmatprep.subr.bf16.mxu0 %v1710_v15  ;;  %v11539_v60 = vld [vmem:[#allocation14 + $0xf4] ss:$40 sps:$4 sm:$0xff]  }
 0x54c   : > { %v2759_v21 = vpop.permute.xlu1 %2758 }
 0x54d   : > { %2763 = vst.msk [vmem:[#allocation3 + $0x248] sm:$0xff] %vm1277_vm9, %v2759_v21  ;;  %v1616_v4 = vpop.permute.xlu0 %1615 }
 0x54e   : > { %v1622_v8 = vsel %vm16320_vm0, %v13782_v16, %v1616_v4  ;;  %v1697_v9 = vld [vmem:[#allocation3 + $0x70] sm:$0xff]  ;;  %10219 = vmatpush3.bf16.msra.mxu0 %v1702_v26  ;;  %v1698_v16 = vld [vmem:[#allocation3 + $0x78] sm:$0xff]  ;;  %vm16470_vm0 = vcmask 568320  }
 0x54f   : > { %1626 = vst.msk [vmem:[#allocation3 + $0xe0] sm:$0xff] %vm1277_vm9, %v1622_v8  ;;  %10160 = vmatprep.subr.bf16.mxu1 %v1697_v9  ;;  %v1658_v4 = vld [vmem:[#allocation14 + $0x80] sm:$0xff]  ;;  %v11548_v8 = vld [vmem:[#allocation14 + $0x74] ss:$40 sps:$4 sm:$0xff]  }
 0x550   : > { %v2771_v32 = vpop.permute.xlu1 %2770  ;;  %2326 = vmatmul.mubr.bf16.gmra.mrb[24].mxu0 %v9665_v53  ;;  %v1665_v53 = vld [vmem:[#allocation14 + $0x118] sm:$0xff]  ;;  %v2806_v9 = vld [vmem:[#allocation3 + $0x210] sm:$0xff] }
 0x551   : > { %2775 = vst.msk [vmem:[#allocation3 + $0x258] sm:$0xff] %vm1277_vm9, %v2771_v32  ;;  %v1524_v10 = vpop.permute.xlu0 %1523  ;;  %2333 = vmatprep.mubr.bf16.mxu0 %v11524_v7  ;;  %v11543_v7 = vld [vmem:[#allocation14 + $0x24] ss:$40 sps:$4 sm:$0xff]   ;;  %v9687_v32 = vcombine.low %v1663_v58, %v1665_v53 }
 0x552   : > { %v1530_v12 = vsel %vm16318_vm12, %v13784_v6, %v1524_v10  ;;  %v1689_v28 = vld [vmem:[#allocation3 + $0x30] sm:$0xff]  ;;  %v11531_v6 = vld [vmem:[#allocation14 + $0x54] ss:$40 sps:$4 sm:$0xff]   ;;  %vm16319_vm12 = vcmask 785408  }
 0x553   : > { %1534 = vst.msk [vmem:[#allocation3 + $0xa0] sm:$0xff] %vm1277_vm9, %v1530_v12  ;;  %10161 = vmatpush3.bf16.msra.mxu1 %v1689_v28  ;;  %v11544_v12 = vld [vmem:[#allocation14 + $0x144] ss:$40 sps:$4 sm:$0xff]  }
 0x554   : > { %10162 = vmatprep.subr.bf16.mxu1 %v1698_v16  ;;  %v2783_v13 = vpop.permute.xlu1 %2782  ;;  %v11546_v28 = vld [vmem:[#allocation14 + $0xac] ss:$40 sps:$4 sm:$0xff]  }
 0x555   : > { %2787 = vst.msk [vmem:[#allocation3 + $0x268] sm:$0xff] %vm1277_vm9, %v2783_v13  ;;  %v1639_v2 = vpop.permute.xlu0 %1638  ;;  %v2807_v16 = vld [vmem:[#allocation3 + $0x218] sm:$0xff] }
 0x556   : > { %v1645_v27 = vsel %vm16317_vm2, %v13797_v34, %v1639_v2  ;;  %v1711_v19 = vld [vmem:[#allocation3 + $0xe0] sm:$0xff]  ;;  %v11549_v13 = vld [vmem:[#allocation14 + $0xc4] ss:$40 sps:$4 sm:$0xff]  }
 0x557   : > { %1649 = vst.msk [vmem:[#allocation3 + $0xf0] sm:$0xff] %vm1277_vm9, %v1645_v27  ;;  %10163 = vmatpush3.bf16.msra.mxu1 %v1690_v30  ;;  %10220 = vmatprep.subr.bf16.mxu0 %v1711_v19  ;;  %v1669_v2 = vld [vmem:[#allocation14 + $0x168] sm:$0xff]  ;;  %v1662_v27 = vld [vmem:[#allocation14 + $0xd0] sm:$0xff] }
 0x558   : > { %2334 = vmatmul.mubr.bf16.gmra.mrb[28].mxu0 %v9669_v14  ;;  %11163 = vmatprep.subr.bf16.mxu1 %v12603_v0  ;;  %v11554_v14 = vld [vmem:[#allocation14 + $0x114] ss:$40 sps:$4 sm:$0xff]   ;;  %v3386_v58 = vld [vmem:[#allocation17 + $0x8] sm:$0xff] }
 0x559   : > { %v1547_v36 = vpop.permute.xlu0 %1546  ;;  %2341 = vmatprep.mubr.bf16.mxu0 %v11529_v24  ;;  %v1660_v24 = vld [vmem:[#allocation14 + $0xa8] sm:$0xff] }
 0x55a   : > { %v1553_v38 = vsel %vm1205_vm14, %v13802_v41, %v1547_v36  ;;  %2543 = vmatmul.mubr.bf16.vlgmr.msra.gmra.mrb[32].mxu1 %v11526_v25  ;;  %v1703_v34 = vld [vmem:[#allocation3 + $0xa0] sm:$0xff]  ;;  %v9691_v25 = vcombine.low %v1667_v11, %v1669_v2  ;;  %v3278_v11 = vld [vmem:[#allocation15 + $0x28] sm:$0xff] }
 0x55b   : > { %1557 = vst.msk [vmem:[#allocation3 + $0xb0] sm:$0xff] %vm1277_vm9, %v1553_v38  ;;  %10221 = vmatpush3.bf16.msra.mxu0 %v1703_v34  ;;  %11177 = vmatpush1.bf16.msra.mxu1 %v2804_v35  ;;  %v2809_v38 = vld [vmem:[#allocation3 + $0x228] sm:$0xff]  ;;  %v11557_v34 = vld [vmem:[#allocation14 + $0x164] ss:$40 sps:$4 sm:$0xff]  }
 0x55c   : > { %10222 = vmatprep.subr.bf16.mxu0 %v1712_v20  ;;  %2550 = vmatprep.mubr.bf16.mxu1 %v11531_v6  ;;  %v9685_v6 = vcombine.low %v1660_v24, %v1662_v27  ;;  %v2817_v53 = vld [vmem:[#allocation3 + $0x268] sm:$0xff]  ;;  %v11591_v27 = vld [vmem:[#allocation14 + $0x164] ss:$40 sps:$4 sm:$0xff]  }
 0x55d   : > { %v1551_v44 = vpop.permute.xlu0 %1550  ;;  %11164 = vmatprep.subr.bf16.mxu1 %v12603_v0  ;;  %v11590_v2 = vld [vmem:[#allocation14 + $0x110] ss:$40 sps:$4 sm:$0xff]  }
 0x55e   : > { %v1554_v41 = vsel %vm1205_vm14, %v13813_v63, %v1551_v44  ;;  %v1713_v43 = vld [vmem:[#allocation3 + $0xf0] sm:$0xff]  ;;  %v3280_v24 = vld [vmem:[#allocation15 + $0x38] sm:$0xff] }
 0x55f   : > { %1558 = vst.msk [vmem:[#allocation3 + $0xb8] sm:$0xff] %vm1277_vm9, %v1554_v41  ;;  %10223 = vmatpush3.bf16.msra.mxu0 %v1704_v17  ;;  %v11558_v44 = vld [vmem:[#allocation14 + $0x1e4] ss:$40 sps:$4 sm:$0xff]  }
 0x560   : > { %10224 = vmatprep.subr.bf16.mxu0 %v1713_v43  ;;  %2342 = vmatmul.mubr.bf16.gmra.mrb[32].mxu0 %v9673_v40  ;;  %v11556_v40 = vld [vmem:[#allocation14 + $0xf8] ss:$40 sps:$4 sm:$0xff]   ;;  %v2811_v41 = vld [vmem:[#allocation3 + $0x238] sm:$0xff]  ;;  %v11570_v43 = vld [vmem:[#allocation14 + $0x254] ss:$40 sps:$4 sm:$0xff]  }
 0x561   : > { %v2711_v22 = vpop.permute.xlu0 %2710  ;;  %2639 = vmatprep.mubr.bf16.mxu0 %v11537_v42  ;;  %v11560_v42 = vld [vmem:[#allocation14 + $0x14c] ss:$40 sps:$4 sm:$0xff]  }
 0x562   : > { %2715 = vst.msk [vmem:[#allocation3 + $0x208] sm:$0xff] %vm1277_vm9, %v2711_v22  ;;  %2551 = vmatmul.mubr.bf16.gmra.mrb[36].mxu1 %v9679_v45  ;;  %v1705_v5 = vld [vmem:[#allocation3 + $0xb0] sm:$0xff] }
 0x563   : > { %10225 = vmatpush3.bf16.msra.mxu0 %v1705_v5  ;;  %2558 = vmatprep.mubr.bf16.mxu1 %v11533_v46  ;;  %v11565_v17 = vld [vmem:[#allocation14 + $0x204] ss:$40 sps:$4 sm:$0xff]   ;;  %v11563_v46 = vld [vmem:[#allocation14 + $0x1e0] ss:$40 sps:$4 sm:$0xff]   ;;  %v11566_v5 = vld [vmem:[#allocation14 + $0x234] ss:$40 sps:$4 sm:$0xff]  }
 0x564   : > { %10226 = vmatprep.subr.bf16.mxu0 %v1714_v47  ;;  %v11564_v22 = vld [vmem:[#allocation14 + $0x148] ss:$40 sps:$4 sm:$0xff]   ;;  %v11568_v47 = vld [vmem:[#allocation14 + $0x19c] ss:$40 sps:$4 sm:$0xff]  }
 0x565   : > { %v3032_v63 = vpop.permute.xlu0 %3031 }
 0x566   : > { %v3034_v49 = vmax.bf16 %v3032_v63, %v3028_v48  ;;  %v3035_v50 = vmax.bf16 %v3032_v63, %v13656_v62  ;;  %v1706_v51 = vld [vmem:[#allocation3 + $0xb8] sm:$0xff]  ;;  %v11541_v62 = vld [vmem:[#allocation14 + $0x5c] ss:$40 sps:$4 sm:$0xff]  }
 0x567   : > { %10227 = vmatpush3.bf16.msra.mxu0 %v1706_v51  ;;  %v2813_v48 = vld [vmem:[#allocation3 + $0x248] sm:$0xff]  ;;  %v3274_v63 = vld [vmem:[#allocation15 + $0x8] sm:$0xff] }
 0x568   : > { %2915 = vmatprep.subr.bf16.mxu0 %v12603_v0  ;;  %v3040_v18 = vmax.bf16 %v13822_v29, %v3035_v50  ;;  %v3039_v54 = vmax.bf16 %v13822_v29, %v3034_v49  ;;  %v1656_v29 = vld [vmem:[#allocation14 + $0x58] sm:$0xff]  ;;  %v3273_v49 = vld [vmem:[#allocation15] sm:$0xff] }
 0x569   : > { %v13868_v52 = vpop.permute.xlu0 %3046  ;;  %v2805_v55 = vld [vmem:[#allocation3 + $0x208] sm:$0xff]  ;;  %v9681_v10 = vcombine.low %v1656_v29, %v1658_v4 }
 0x56a   : > { %vm3048_vm2 = vcmp.ne.s16.totalorder %v13868_v52, 0  ;;  %2559 = vmatmul.mubr.bf16.gmra.mrb[40].mxu1 %v11538_v57  ;;  %2640 = vmatmul.mubr.bf16.vlgmr.msra.gmra.mrb[36].mxu0 %v11535_v23  ;;  %v11571_v51 = vld [vmem:[#allocation14 + $0x230] ss:$40 sps:$4 sm:$0xff]   ;;  %v11573_v57 = vld [vmem:[#allocation14 + $0x1ec] ss:$40 sps:$4 sm:$0xff]  }
 0x56b   : > { %11178 = vmatpush1.bf16.msra.mxu1 %v2805_v55  ;;  %2916 = vmatpush1.bf16.msra.mxu0 %v2804_v35  ;;  %v3050_v15 = vsel %vm3048_vm2, %v3040_v18, 0  ;;  %v3049_v21 = vsel %vm3048_vm2, %v3039_v54, 0  ;;  %v11562_v35 = vld [vmem:[#allocation14 + $0x1b4] ss:$40 sps:$4 sm:$0xff]   ;;  %v11572_v23 = vld [vmem:[#allocation14 + $0x198] ss:$40 sps:$4 sm:$0xff]  }
 0x56c   : > { %3055 = vrot.lane.b32.xlu1 %v3050_v15, %s16444_s0  ;;  %3053 = vrot.lane.b32.xlu0 %v3049_v21, %s16444_s0  ;;  %v11578_v18 = vld [vmem:[#allocation14 + $0x74] ss:$40 sps:$4 sm:$0xff]   ;;  %v2815_v54 = vld [vmem:[#allocation3 + $0x258] sm:$0xff] }
 0x56d   : > { %11165 = vmatprep.subr.bf16.mxu1 %v12603_v0  ;;  %v2733_v26 = vpop.permute.xlu0 %2732  ;;  %2917 = vmatprep.subr.bf16.mxu0 %v12603_v0  ;;  %v3275_v15 = vld [vmem:[#allocation15 + $0x10] sm:$0xff]  ;;  %v11579_v21 = vld [vmem:[#allocation14 + $0x23c] ss:$40 sps:$4 sm:$0xff]  }
 0x56e   : > { %2738 = vst.msk [vmem:[#allocation3 + $0x220] sm:$0xff] %vm1277_vm9, %v2733_v26  ;;  %2566 = vmatprep.mubr.bf16.mxu1 %v11539_v60  ;;  %2647 = vmatprep.mubr.bf16.mxu0 %v11541_v62  ;;  %v11575_v62 = vld [vmem:[#allocation14 + $0x1e8] ss:$40 sps:$4 sm:$0xff]   ;;  %v3276_v4 = vld [vmem:[#allocation15 + $0x18] sm:$0xff]  ;;  %v11582_v26 = vld [vmem:[#allocation14 + $0xc4] ss:$40 sps:$4 sm:$0xff]  }
 0x56f   : > { %11179 = vmatpush1.bf16.msra.mxu1 %v2806_v9  ;;  %2918 = vmatpush1.bf16.msra.mxu0 %v2805_v55  ;;  %v3385_v55 = vld [vmem:[#allocation17] sm:$0xff]  ;;  %v11576_v29 = vld [vmem:[#allocation14 + $0x70] ss:$40 sps:$4 sm:$0xff]  }
 0x570   : > { %11166 = vmatprep.subr.bf16.mxu1 %v12603_v0  ;;  %2919 = vmatprep.subr.bf16.mxu0 %v12603_v0  ;;  %v11784_v52 = vld [vmem:[#allocation26 + $0x64] ss:$44 sps:$4 sm:$0xff]  }
 0x571   : > { %v2745_v56 = vpop.permute.xlu0 %2744  ;;  %3117 = vrot.lane.b32.xlu0 %v11543_v7, %s16323_s26  ;;  %3119 = vrot.lane.b32.xlu1 %v11548_v8, %s16323_s26  ;;  %v3387_v7 = vld [vmem:[#allocation17 + $0x10] sm:$0xff]  ;;  %v11581_v8 = vld [vmem:[#allocation14 + $0x238] ss:$40 sps:$4 sm:$0xff]  }
 0x572   : > { %2750 = vst.msk [vmem:[#allocation3 + $0x230] sm:$0xff] %vm1277_vm9, %v2745_v56  ;;  %2567 = vmatmul.mubr.bf16.gmra.mrb[44].mxu1 %v9687_v32  ;;  %2648 = vmatmul.mubr.bf16.gmra.mrb[40].mxu0 %v9681_v10  ;;  %v11587_v32 = vld [vmem:[#allocation14 + $0x24] ss:$40 sps:$4 sm:$0xff]   ;;  %v11584_v56 = vld [vmem:[#allocation14 + $0xc0] ss:$40 sps:$4 sm:$0xff]  }
 0x573   : > { %11180 = vmatpush1.bf16.msra.mxu1 %v2807_v16  ;;  %2920 = vmatpush1.bf16.msra.mxu0 %v2806_v9  ;;  %v3388_v9 = vld [vmem:[#allocation17 + $0x18] sm:$0xff]  ;;  %v3277_v10 = vld [vmem:[#allocation15 + $0x20] sm:$0xff] }
 0x574   : > { %11167 = vmatprep.subr.bf16.mxu1 %v12603_v0  ;;  %2921 = vmatprep.subr.bf16.mxu0 %v12603_v0 }
 0x575   : > { %v2757_v30 = vpop.permute.xlu0 %2756  ;;  %v2808_v19 = vld [vmem:[#allocation3 + $0x220] sm:$0xff]  ;;  %2574 = vmatprep.mubr.bf16.mxu1 %v11544_v12  ;;  %2655 = vmatprep.mubr.bf16.mxu0 %v11546_v28  ;;  %v3389_v28 = vld [vmem:[#allocation17 + $0x20] sm:$0xff] }
 0x576   : > { %2762 = vst.msk [vmem:[#allocation3 + $0x240] sm:$0xff] %vm1277_vm9, %v2757_v30  ;;  %3121 = vrot.lane.b32.xlu0 %v11549_v13, %s16323_s26  ;;  %3123 = vrot.lane.b32.xlu1 %v11554_v14, %s16323_s26  ;;  %v11588_v12 = vld [vmem:[#allocation14 + $0x114] ss:$40 sps:$4 sm:$0xff]   ;;  %v3390_v13 = vld [vmem:[#allocation17 + $0x28] sm:$0xff] }
 0x577   : > { %11181 = vmatpush1.bf16.msra.mxu1 %v2808_v19  ;;  %2922 = vmatpush1.bf16.msra.mxu0 %v2807_v16  ;;  %v11585_v16 = vld [vmem:[#allocation14 + $0x20] ss:$40 sps:$4 sm:$0xff]   ;;  %v3279_v14 = vld [vmem:[#allocation15 + $0x30] sm:$0xff] }
 0x578   : > { %11168 = vmatprep.subr.bf16.mxu1 %v12603_v0  ;;  %2923 = vmatprep.subr.bf16.mxu0 %v12603_v0  ;;  %v3391_v30 = vld [vmem:[#allocation17 + $0x30] sm:$0xff] }
 0x579   : > { %v2769_v36 = vpop.permute.xlu0 %2768  ;;  %v2810_v39 = vld [vmem:[#allocation3 + $0x230] sm:$0xff] }
 0x57a   : > { %2774 = vst.msk [vmem:[#allocation3 + $0x250] sm:$0xff] %vm1277_vm9, %v2769_v36  ;;  %2575 = vmatmul.mubr.bf16.gmra.mrb[48].mxu1 %v9691_v25  ;;  %2656 = vmatmul.mubr.bf16.gmra.mrb[44].mxu0 %v9685_v6  ;;  %v3281_v25 = vld [vmem:[#allocation15 + $0x40] sm:$0xff]  ;;  %v3282_v36 = vld [vmem:[#allocation15 + $0x48] sm:$0xff] }
 0x57b   : > { %11182 = vmatpush1.bf16.msra.mxu1 %v2809_v38  ;;  %2924 = vmatpush1.bf16.msra.mxu0 %v2808_v19  ;;  %v3392_v19 = vld [vmem:[#allocation17 + $0x38] sm:$0xff]  ;;  %v11593_v6 = vld [vmem:[#allocation14 + $0x160] ss:$40 sps:$4 sm:$0xff]  }
 0x57c   : > { %11169 = vmatprep.subr.bf16.mxu1 %v12603_v0  ;;  %2925 = vmatprep.subr.bf16.mxu0 %v12603_v0 }
 0x57d   : > { %v2781_v20 = vpop.permute.xlu0 %2780  ;;  %2582 = vmatprep.mubr.bf16.mxu1 %v11550_v37  ;;  %2663 = vmatprep.mubr.bf16.mxu0 %v11552_v31  ;;  %v2812_v45 = vld [vmem:[#allocation3 + $0x240] sm:$0xff]  ;;  %v3393_v31 = vld [vmem:[#allocation17 + $0x40] sm:$0xff] }
 0x57e   : > { %2786 = vst.msk [vmem:[#allocation3 + $0x260] sm:$0xff] %vm1277_vm9, %v2781_v20  ;;  %3125 = vrot.lane.b32.xlu0 %v11557_v34, %s16323_s26  ;;  %3127 = vrot.lane.b32.xlu1 %v11562_v35, %s16323_s26  ;;  %v11594_v37 = vld [vmem:[#allocation14 + $0x1b4] ss:$40 sps:$4 sm:$0xff]   ;;  %v11596_v35 = vld [vmem:[#allocation14 + $0x1b0] ss:$40 sps:$4 sm:$0xff]  }
 0x57f   : > { %11183 = vmatpush1.bf16.msra.mxu1 %v2810_v39  ;;  %2926 = vmatpush1.bf16.msra.mxu0 %v2809_v38  ;;  %v3394_v38 = vld [vmem:[#allocation17 + $0x48] sm:$0xff]  ;;  %v3283_v34 = vld [vmem:[#allocation15 + $0x50] sm:$0xff]  ;;  %v3284_v20 = vld [vmem:[#allocation15 + $0x58] sm:$0xff] }
 0x580   : > { %11170 = vmatprep.subr.bf16.mxu1 %v12603_v0  ;;  %2927 = vmatprep.subr.bf16.mxu0 %v12603_v0 }
 0x581   : > { %v2814_v50 = vld [vmem:[#allocation3 + $0x250] sm:$0xff] }
 0x582   : > { %2583 = vmatmul.mubr.bf16.gmra.mrb[52].mxu1 %v11555_v33  ;;  %2664 = vmatmul.mubr.bf16.gmra.mrb[48].mxu0 %v11556_v40  ;;  %v3395_v33 = vld [vmem:[#allocation17 + $0x50] sm:$0xff]  ;;  %v3396_v40 = vld [vmem:[#allocation17 + $0x58] sm:$0xff] }
 0x583   : > { %11184 = vmatpush1.bf16.msra.mxu1 %v2811_v41  ;;  %2928 = vmatpush1.bf16.msra.mxu0 %v2810_v39  ;;  %v11597_v39 = vld [vmem:[#allocation14 + $0x204] ss:$40 sps:$4 sm:$0xff]  }
 0x584   : > { %11171 = vmatprep.subr.bf16.mxu1 %v12603_v0  ;;  %2929 = vmatprep.subr.bf16.mxu0 %v12603_v0 }
 0x585   : > { %2590 = vmatprep.mubr.bf16.mxu1 %v11558_v44  ;;  %2671 = vmatprep.mubr.bf16.mxu0 %v11560_v42  ;;  %v2816_v60 = vld [vmem:[#allocation3 + $0x260] sm:$0xff]  ;;  %v3285_v44 = vld [vmem:[#allocation15 + $0x60] sm:$0xff] }
 0x586   : > { %3129 = vrot.lane.b32.xlu0 %v11565_v17, %s16323_s26  ;;  %3131 = vrot.lane.b32.xlu1 %v11570_v43, %s16323_s26  ;;  %v11599_v42 = vld [vmem:[#allocation14 + $0x200] ss:$40 sps:$4 sm:$0xff]   ;;  %v11600_v17 = vld [vmem:[#allocation14 + $0x254] ss:$40 sps:$4 sm:$0xff]   ;;  %s16473_s26 = smov 3  }
 0x587   : > { %11185 = vmatpush1.bf16.msra.mxu1 %v2812_v45  ;;  %2930 = vmatpush1.bf16.msra.mxu0 %v2811_v41  ;;  %v3286_v41 = vld [vmem:[#allocation15 + $0x68] sm:$0xff]  ;;  %v3397_v43 = vld [vmem:[#allocation17 + $0x60] sm:$0xff] }
 0x588   : > { %11172 = vmatprep.subr.bf16.mxu1 %v12603_v0  ;;  %2931 = vmatprep.subr.bf16.mxu0 %v12603_v0 }
 0x58a   : > { %2591 = vmatmul.mubr.bf16.gmra.mrb[56].mxu1 %v11563_v46  ;;  %2672 = vmatmul.mubr.bf16.gmra.mrb[52].mxu0 %v11564_v22  ;;  %v3287_v46 = vld [vmem:[#allocation15 + $0x70] sm:$0xff] }
 0x58b   : > { %11186 = vmatpush1.bf16.msra.mxu1 %v2813_v48  ;;  %2932 = vmatpush1.bf16.msra.mxu0 %v2812_v45  ;;  %v3398_v45 = vld [vmem:[#allocation17 + $0x68] sm:$0xff]  ;;  %v11602_v22 = vld [vmem:[#allocation14 + $0x250] ss:$40 sps:$4 sm:$0xff]  }
 0x58c   : > { %11173 = vmatprep.subr.bf16.mxu1 %v12603_v0  ;;  %2933 = vmatprep.subr.bf16.mxu0 %v12603_v0 }
 0x58d   : > { %2598 = vmatprep.mubr.bf16.mxu1 %v11566_v5  ;;  %2679 = vmatprep.mubr.bf16.mxu0 %v11568_v47  ;;  %v3288_v5 = vld [vmem:[#allocation15 + $0x78] sm:$0xff]  ;;  %v3399_v47 = vld [vmem:[#allocation17 + $0x70] sm:$0xff] }
 0x58e   : > { %3296 = vperm.xlu1 %11491, %v3274_v63   ;;  %3291 = vperm.xlu0 %11490, %v3273_v49  }
 0x58f   : > { %11187 = vmatpush1.bf16.msra.mxu1 %v2814_v50  ;;  %2934 = vmatpush1.bf16.msra.mxu0 %v2813_v48  ;;  %v3400_v48 = vld [vmem:[#allocation17 + $0x78] sm:$0xff] }
 0x590   : > { %11174 = vmatprep.subr.bf16.mxu1 %v12603_v0  ;;  %2935 = vmatprep.subr.bf16.mxu0 %v12603_v0 }
 0x592   : > { %2599 = vmatmul.mubr.bf16.gmra.mrb[60].mxu1 %v11571_v51  ;;  %2680 = vmatmul.mubr.bf16.gmra.mrb[56].mxu0 %v11572_v23 }
 0x593   : > { %11188 = vmatpush1.bf16.msra.mxu1 %v2815_v54  ;;  %2936 = vmatpush1.bf16.msra.mxu0 %v2814_v50 }
 0x594   : > { %11175 = vmatprep.subr.bf16.mxu1 %v12603_v0  ;;  %2937 = vmatprep.subr.bf16.mxu0 %v12603_v0 }
 0x595   : > { %2687 = vmatprep.mubr.bf16.mxu0 %v11573_v57  ;;  %9724 = vmatprep.mubr.msk.bf16.mxu1 %vm16319_vm12, %v11578_v18 }
 0x596   : > { %3403 = vperm.xlu1 %11491, %v3385_v55   ;;  %3408 = vperm.xlu0 %11490, %v3386_v58  }
 0x597   : > { %11189 = vmatpush1.bf16.msra.mxu1 %v2816_v60  ;;  %2938 = vmatpush1.bf16.msra.mxu0 %v2815_v54 }
 0x598   : > { %11176 = vmatprep.subr.bf16.mxu1 %v12603_v0  ;;  %2939 = vmatprep.subr.bf16.mxu0 %v12603_v0 }
 0x59a   : > { %2688 = vmatmul.mubr.bf16.gmra.mrb[60].mxu0 %v11575_v62  ;;  %3301 = vperm.xlu1 %11491, %v3275_v15  }
 0x59b   : > { %11190 = vmatpush1.bf16.msra.mxu1 %v2817_v53  ;;  %2940 = vmatpush1.bf16.msra.mxu0 %v2816_v60 }
 0x59c   : > { %2941 = vmatprep.subr.bf16.mxu0 %v12603_v0  ;;  %2695 = vmatprep.mubr.bf16.mxu0 %v11579_v21 }
 0x59d   : > { %3306 = vperm.xlu0 %11490, %v3276_v4  }
 0x59e   : > { %2956 = vmatmul.mubr.bf16.vlgmr.msra.gmra.mrb[64].mxu1 %v11576_v29  ;;  %3413 = vperm.xlu1 %11491, %v3387_v7  }
 0x59f   : > { %2942 = vmatpush1.bf16.msra.mxu0 %v2817_v53  ;;  %9725 = vmatprep.mubr.msk.bf16.mxu1 %vm16319_vm12, %v11582_v26 }
 0x5a1   : > { %3418 = vperm.xlu0 %11490, %v3388_v9  }
 0x5a2   : > { %2696 = vmatmul.mubr.bf16.gmra.mrb[64].mxu0 %v11581_v8  ;;  %3311 = vperm.xlu1 %11491, %v3277_v10  }
 0x5a3   : > { %9723 = vmatprep.mubr.msk.bf16.mxu0 %vm16319_vm12, %v11587_v32 }
 0x5a5   : > { %3316 = vperm.xlu0 %11490, %v3278_v11  }
 0x5a6   : > { %2964 = vmatmul.mubr.bf16.gmra.mrb[68].mxu1 %v11584_v56  ;;  %3423 = vperm.xlu1 %11491, %v3389_v28  }
 0x5a7   : > { %9726 = vmatprep.mubr.msk.bf16.mxu1 %vm16319_vm12, %v11588_v12 }
 0x5a9   : > { %3428 = vperm.xlu0 %11490, %v3390_v13  }
 0x5aa   : > { %2948 = vmatmul.mubr.bf16.vlgmr.msra.gmra.mrb[68].mxu0 %v11585_v16  ;;  %3321 = vperm.xlu1 %11491, %v3279_v14  }
 0x5ad   : > { %3326 = vperm.xlu0 %11490, %v3280_v24  }
 0x5ae   : > { %2972 = vmatmul.mubr.bf16.gmra.mrb[72].mxu1 %v11590_v2  ;;  %3433 = vperm.xlu1 %11491, %v3391_v30  }
 0x5af   : > { %9727 = vmatprep.mubr.msk.bf16.mxu1 %vm16319_vm12, %v11591_v27 }
 0x5b1   : > { %3438 = vperm.xlu0 %11490, %v3392_v19  }
 0x5b2   : > { %3331 = vperm.xlu1 %11491, %v3281_v25  }
 0x5b5   : > { %3336 = vperm.xlu0 %11490, %v3282_v36  }
 0x5b6   : > { %2980 = vmatmul.mubr.bf16.gmra.mrb[76].mxu1 %v11593_v6  ;;  %3443 = vperm.xlu1 %11491, %v3393_v31  }
 0x5b7   : > { %9728 = vmatprep.mubr.msk.bf16.mxu1 %vm16319_vm12, %v11594_v37 }
 0x5b9   : > { %3448 = vperm.xlu0 %11490, %v3394_v38  }
 0x5ba   : > { %3341 = vperm.xlu1 %11491, %v3283_v34  }
 0x5bd   : > { %3346 = vperm.xlu0 %11490, %v3284_v20  }
 0x5be   : > { %2988 = vmatmul.mubr.bf16.gmra.mrb[80].mxu1 %v11596_v35  ;;  %3453 = vperm.xlu1 %11491, %v3395_v33  }
 0x5bf   : > { %9729 = vmatprep.mubr.msk.bf16.mxu1 %vm16319_vm12, %v11597_v39 }
 0x5c1   : > { %3458 = vperm.xlu0 %11490, %v3396_v40  }
 0x5c2   : > { %3351 = vperm.xlu1 %11491, %v3285_v44  }
 0x5c5   : > { %3356 = vperm.xlu0 %11490, %v3286_v41  }
 0x5c6   : > { %2996 = vmatmul.mubr.bf16.gmra.mrb[84].mxu1 %v11599_v42  ;;  %3463 = vperm.xlu1 %11491, %v3397_v43  }
 0x5c7   : > { %9730 = vmatprep.mubr.msk.bf16.mxu1 %vm16319_vm12, %v11600_v17  ;;  %vm16469_vm12 = vcmask 7168  }
 0x5c9   : > { %3468 = vperm.xlu0 %11490, %v3398_v45  }
 0x5ca   : > { %3361 = vperm.xlu1 %11491, %v3287_v46  }
 0x5cd   : > { %3366 = vperm.xlu0 %11490, %v3288_v5  }
 0x5ce   : > { %3004 = vmatmul.mubr.bf16.gmra.mrb[88].mxu1 %v11602_v22  ;;  %3473 = vperm.xlu1 %11491, %v3399_v47  }
 0x5d1   : > { %3478 = vperm.xlu0 %11490, %v3400_v48   ;;  %v13958_v48 = vld [vmem:[#allocation2] sm:$0xff] }
 0x5d2   : > { %4035 = vrot.lane.b32.xlu1 %v13958_v48, %s16473_s26 }
 0x5d4   : > { %v10036_v63 = vpop.f32.mrb[0].mxu1 }
 0x5d5   : > { %v10037_v49 = vpop.f32.mrb[1].mxu1 }
 0x5d6   : > { %v10038_v50 = vadd.f32 %v10037_v49, %v10036_v63  ;;  %v10039_v51 = vpop.f32.mrb[2].mxu1  ;;  %4057 = vrot.lane.b32.xlu1 %v13958_v48, %s16441_s18 }
 0x5d7   : > { %v10040_v23 = vpop.f32.mrb[3].mxu1 }
 0x5d8   : > { %v10041_v57 = vadd.f32 %v10040_v23, %v10039_v51 }
 0x5da   : > { %4079 = vrot.lane.b32.xlu1 %v13958_v48, %s16444_s0 }
 0x5dc   : > { %v10042_v18 = vpop.f32.mrb[4].mxu1 }
 0x5dd   : > { %v10043_v54 = vpop.f32.mrb[5].mxu1 }
 0x5de   : > { %v3056_v55 = vpop.permute.xlu1 %3055  ;;  %v3054_v58 = vpop.permute.xlu0 %3053  ;;  %v13923_v60 = vadd.f32 %v10043_v54, %v10042_v18  ;;  %3707 = vrot.lane.b32.xlu1 %v13958_v48, %s16450_s15 }
 0x5df   : > { %v3057_v62 = vsel %vm16469_vm12, %v3054_v58, %v3056_v55  ;;  %v10045_v15 = vpop.f32.mrb[6].mxu1 }
 0x5e0   : > { %3059 = vst.msk [vmem:[#allocation3 + $0x270] sm:$0xf] %vm16470_vm0, %v3057_v62  ;;  %v10046_v21 = vpop.f32.mrb[7].mxu1  ;;  %vm16325_vm0 = vcmp.ne.s16.totalorder %v13747_v61, 0 }
 0x5e1   : > { %v13927_v53 = vadd.f32 %v10046_v21, %v10045_v15 }
 0x5e2   : > { %3619 = vrot.lane.b32.xlu1 %v13958_v48, %s16451_s13 }
 0x5e3   : > { %v3118_v29 = vpop.permute.xlu0 %3117  ;;  %v3120_v11 = vpop.permute.xlu1 %3119 }
 0x5e4   : > { %10908 = vmatprep.mubr.msk.bf16.mxu0 %vm1205_vm14, %v3118_v29  ;;  %v10048_v4 = vpop.f32.mrb[8].mxu1 }
 0x5e5   : > { %v10049_v26 = vpop.f32.mrb[9].mxu1 }
 0x5e6   : > { %v13930_v7 = vadd.f32 %v10049_v26, %v10048_v4  ;;  %v10051_v8 = vpop.f32.mrb[10].mxu1 }
 0x5e7   : > { %v3076_v9 = vld [vmem:[#allocation3 + $0x270] sm:$0xf]  ;;  %v10052_v32 = vpop.f32.mrb[11].mxu1 }
 0x5e8   : > { %11192 = vmatprep.subr.msk.bf16.mxu0 %vm16471_vm5, %v3076_v9  ;;  %v3158_v10 = vsel %vm16472_vm7, %v3076_v9, 0  ;;  %v13934_v56 = vadd.f32 %v10052_v32, %v10051_v8  ;;  %v3122_v12 = vpop.permute.xlu0 %3121  ;;  %v3124_v27 = vpop.permute.xlu1 %3123  ;;  %vm16474_vm5 = vcmp.eq.s32.totalorder %v13415_v59, 1 }
 0x5e9   : > { %10907 = vmatpush3.bf16.msra.mxu0 %v3158_v10  ;;  %vm16475_vm12 = vmmov %vm16474_vm5 }
 0x5ea   : > { %vm16476_vm7 = vmmov %vm16474_vm5 }
 0x5ec   : > { %10909 = vmatmul.mubr.msk.bf16.vlgmr.msra.gmra.mrb[72].mxu0 %vm1205_vm14, %v3120_v11  ;;  %v10054_v28 = vpop.f32.mrb[12].mxu1 }
 0x5ed   : > { %10912 = vmatprep.mubr.msk.bf16.mxu0 %vm1205_vm14, %v3122_v12  ;;  %v10055_v16 = vpop.f32.mrb[13].mxu1 }
 0x5ee   : > { %v13938_v13 = vadd.f32 %v10055_v16, %v10054_v28  ;;  %v10057_v14 = vpop.f32.mrb[14].mxu1 }
 0x5ef   : > { %v10058_v2 = vpop.f32.mrb[15].mxu1 }
 0x5f0   : > { %v13940_v24 = vadd.f32 %v10058_v2, %v10057_v14  ;;  %v3126_v30 = vpop.permute.xlu0 %3125  ;;  %v3128_v38 = vpop.permute.xlu1 %3127 }
 0x5f4   : > { %10913 = vmatmul.mubr.msk.bf16.gmra.mrb[76].mxu0 %vm1205_vm14, %v3124_v27  ;;  %v10060_v19 = vpop.f32.mrb[16].mxu1 }
 0x5f5   : > { %10916 = vmatprep.mubr.msk.bf16.mxu0 %vm1205_vm14, %v3126_v30  ;;  %v10061_v25 = vpop.f32.mrb[17].mxu1 }
 0x5f6   : > { %v13944_v6 = vadd.f32 %v10061_v25, %v10060_v19  ;;  %v10063_v36 = vpop.f32.mrb[18].mxu1  ;;  %v13991_v19 = vld [vmem:[#allocation2 + $0x10] sm:$0xff] }
 0x5f7   : > { %v10064_v37 = vpop.f32.mrb[19].mxu1  ;;  %4039 = vrot.lane.b32.xlu0 %v13991_v19, %s16473_s26  ;;  %3711 = vrot.lane.b32.xlu1 %v13991_v19, %s16450_s15 }
 0x5f8   : > { %v13946_v31 = vadd.f32 %v10064_v37, %v10063_v36  ;;  %v3130_v34 = vpop.permute.xlu0 %3129  ;;  %v3132_v5 = vpop.permute.xlu1 %3131 }
 0x5fb   : > { %v10100_v35 = vpop.f32.mrb[4].mxu0  ;;  %4061 = vrot.lane.b32.xlu0 %v13991_v19, %s16441_s18  ;;  %3623 = vrot.lane.b32.xlu1 %v13991_v19, %s16451_s13 }
 0x5fc   : > { %10917 = vmatmul.mubr.msk.bf16.gmra.mrb[80].mxu0 %vm1205_vm14, %v3128_v38  ;;  %v10101_v20 = vpop.f32.mrb[5].mxu0  ;;  %v10066_v39 = vpop.f32.mrb[20].mxu1 }
 0x5fd   : > { %10920 = vmatprep.mubr.msk.bf16.mxu0 %vm1205_vm14, %v3130_v34  ;;  %v10102_v33 = vadd.f32 %v10101_v20, %v10100_v35  ;;  %v10103_v40 = vpop.f32.mrb[6].mxu0  ;;  %v10067_v44 = vpop.f32.mrb[21].mxu1 }
 0x5fe   : > { %v10104_v42 = vpop.f32.mrb[7].mxu0  ;;  %v13950_v41 = vadd.f32 %v10067_v44, %v10066_v39  ;;  %v10069_v17 = vpop.f32.mrb[22].mxu1 }
 0x5ff   : > { %v13952_v43 = vadd.f32 %v10102_v33, %v10038_v50  ;;  %v10105_v45 = vadd.f32 %v10104_v42, %v10103_v40  ;;  %v10070_v46 = vpop.f32.mrb[23].mxu1  ;;  %4083 = vrot.lane.b32.xlu0 %v13991_v19, %s16444_s0  ;;  %3729 = vrot.lane.b32.xlu1 %v13958_v48, %s16435_s4 }
 0x600   : > { %v13954_v22 = vadd.f32 %v10070_v46, %v10069_v17 }
 0x601   : > { %v13956_v47 = vadd.f32 %v10105_v45, %v10041_v57 }
 0x603   : > { %v10106_v63 = vpop.f32.mrb[8].mxu0  ;;  %3641 = vrot.lane.b32.xlu1 %v13958_v48, %s16436_s3 }
 0x604   : > { %10921 = vmatmul.mubr.msk.bf16.gmra.mrb[84].mxu0 %vm1205_vm14, %v3132_v5  ;;  %v10107_v49 = vpop.f32.mrb[9].mxu0  ;;  %v10072_v51 = vpop.f32.mrb[24].mxu1 }
 0x605   : > { %v10108_v23 = vadd.f32 %v10107_v49, %v10106_v63  ;;  %v10109_v50 = vpop.f32.mrb[10].mxu0  ;;  %v10073_v18 = vpop.f32.mrb[25].mxu1 }
 0x606   : > { %v10110_v54 = vpop.f32.mrb[11].mxu0  ;;  %v13963_v55 = vadd.f32 %v10073_v18, %v10072_v51  ;;  %v10075_v58 = vpop.f32.mrb[26].mxu1 }
 0x607   : > { %v13966_v57 = vadd.f32 %v10108_v23, %v13923_v60  ;;  %v10111_v62 = vadd.f32 %v10110_v54, %v10109_v50  ;;  %v10076_v15 = vpop.f32.mrb[27].mxu1  ;;  %3733 = vrot.lane.b32.xlu1 %v13991_v19, %s16435_s4 }
 0x608   : > { %v13970_v21 = vadd.f32 %v10076_v15, %v10075_v58 }
 0x609   : > { %v13973_v29 = vadd.f32 %v10111_v62, %v13927_v53 }
 0x60b   : > { %v10112_v4 = vpop.f32.mrb[12].mxu0  ;;  %3645 = vrot.lane.b32.xlu1 %v13991_v19, %s16436_s3 }
 0x60c   : > { %v10113_v26 = vpop.f32.mrb[13].mxu0  ;;  %v10078_v8 = vpop.f32.mrb[28].mxu1 }
 0x60d   : > { %v10114_v9 = vadd.f32 %v10113_v26, %v10112_v4  ;;  %v10115_v32 = vpop.f32.mrb[14].mxu0  ;;  %v10079_v60 = vpop.f32.mrb[29].mxu1 }
 0x60e   : > { %v10116_v10 = vpop.f32.mrb[15].mxu0  ;;  %v13977_v11 = vadd.f32 %v10079_v60, %v10078_v8  ;;  %v10081_v12 = vpop.f32.mrb[30].mxu1 }
 0x60f   : > { %v13980_v28 = vadd.f32 %v10114_v9, %v13930_v7  ;;  %v10117_v16 = vadd.f32 %v10116_v10, %v10115_v32  ;;  %v10082_v14 = vpop.f32.mrb[31].mxu1  ;;  %3751 = vrot.lane.b32.xlu1 %v13958_v48, %s16443_s30 }
 0x610   : > { %v13984_v53 = vadd.f32 %v10082_v14, %v10081_v12 }
 0x611   : > { %v13987_v2 = vadd.f32 %v10117_v16, %v13934_v56 }
 0x613   : > { %v10118_v27 = vpop.f32.mrb[16].mxu0  ;;  %3663 = vrot.lane.b32.xlu1 %v13958_v48, %s16446_s23 }
 0x614   : > { %v10119_v30 = vpop.f32.mrb[17].mxu0 }
 0x615   : > { %v10120_v25 = vadd.f32 %v10119_v30, %v10118_v27  ;;  %v10121_v7 = vpop.f32.mrb[18].mxu0 }
 0x616   : > { %v10122_v36 = vpop.f32.mrb[19].mxu0 }
 0x617   : > { %v10123_v37 = vadd.f32 %v10122_v36, %v10121_v7  ;;  %v13996_v38 = vadd.f32 %v10120_v25, %v13938_v13  ;;  %3755 = vrot.lane.b32.xlu1 %v13991_v19, %s16443_s30 }
 0x619   : > { %v14001_v56 = vadd.f32 %v10123_v37, %v13940_v24 }
 0x61b   : > { %v10124_v34 = vpop.f32.mrb[20].mxu0  ;;  %3667 = vrot.lane.b32.xlu1 %v13991_v19, %s16446_s23 }
 0x61c   : > { %v10125_v35 = vpop.f32.mrb[21].mxu0 }
 0x61d   : > { %v10126_v20 = vadd.f32 %v10125_v35, %v10124_v34  ;;  %v10127_v39 = vpop.f32.mrb[22].mxu0 }
 0x61e   : > { %v10128_v13 = vpop.f32.mrb[23].mxu0 }
 0x61f   : > { %v14010_v33 = vadd.f32 %v10126_v20, %v13944_v6  ;;  %v10129_v40 = vadd.f32 %v10128_v13, %v10127_v39  ;;  %3773 = vrot.lane.b32.xlu1 %v13958_v48, %s16457_s19 }
 0x621   : > { %v14015_v24 = vadd.f32 %v10129_v40, %v13946_v31 }
 0x623   : > { %v10130_v44 = vpop.f32.mrb[24].mxu0  ;;  %3685 = vrot.lane.b32.xlu1 %v13958_v48, %s16458_s24 }
 0x624   : > { %v10131_v42 = vpop.f32.mrb[25].mxu0 }
 0x625   : > { %v10132_v17 = vadd.f32 %v10131_v42, %v10130_v44  ;;  %v10133_v45 = vpop.f32.mrb[26].mxu0 }
 0x626   : > { %v10134_v46 = vpop.f32.mrb[27].mxu0 }
 0x627   : > { %v14020_v5 = vadd.f32 %v10132_v17, %v13950_v41  ;;  %v10135_v6 = vadd.f32 %v10134_v46, %v10133_v45  ;;  %3777 = vrot.lane.b32.xlu1 %v13991_v19, %s16457_s19 }
 0x629   : > { %v14025_v63 = vadd.f32 %v10135_v6, %v13954_v22 }
 0x62b   : > { %v10136_v31 = vpop.f32.mrb[28].mxu0  ;;  %3689 = vrot.lane.b32.xlu1 %v13991_v19, %s16458_s24 }
 0x62c   : > { %v10137_v49 = vpop.f32.mrb[29].mxu0 }
 0x62d   : > { %v10164_v51 = vpop.f32.mrb[32].mxu1  ;;  %v10138_v23 = vadd.f32 %v10137_v49, %v10136_v31  ;;  %v10139_v50 = vpop.f32.mrb[30].mxu0 }
 0x62e   : > { %v10165_v18 = vpop.f32.mrb[33].mxu1  ;;  %v10140_v54 = vpop.f32.mrb[31].mxu0 }
 0x62f   : > { %v10166_v58 = vadd.f32 %v10165_v18, %v10164_v51  ;;  %v10167_v41 = vpop.f32.mrb[34].mxu1  ;;  %v14030_v62 = vadd.f32 %v10138_v23, %v13963_v55  ;;  %v10141_v15 = vadd.f32 %v10140_v54, %v10139_v50  ;;  %3883 = vrot.lane.b32.xlu1 %v13958_v48, %s16438_s7 }
 0x630   : > { %v10168_v22 = vpop.f32.mrb[35].mxu1 }
 0x631   : > { %v10169_v4 = vadd.f32 %v10168_v22, %v10167_v41  ;;  %v14035_v26 = vadd.f32 %v10141_v15, %v13970_v21  ;;  %v2545_v8 = vadd.f32 %v10166_v58, %v13952_v43 }
 0x633   : > { %v10142_v9 = vpop.f32.mrb[32].mxu0  ;;  %v2548_v32 = vadd.f32 %v10169_v4, %v13956_v47  ;;  %3795 = vrot.lane.b32.xlu1 %v13958_v48, %s16453_s17 }
 0x634   : > { %v10143_v60 = vpop.f32.mrb[33].mxu0 }
 0x635   : > { %v10170_v55 = vpop.f32.mrb[36].mxu1  ;;  %v10144_v10 = vadd.f32 %v10143_v60, %v10142_v9  ;;  %v10145_v12 = vpop.f32.mrb[34].mxu0 }
 0x636   : > { %v10171_v16 = vpop.f32.mrb[37].mxu1  ;;  %v10146_v14 = vpop.f32.mrb[35].mxu0 }
 0x637   : > { %v10172_v27 = vadd.f32 %v10171_v16, %v10170_v55  ;;  %v10173_v30 = vpop.f32.mrb[38].mxu1  ;;  %v14042_v25 = vadd.f32 %v10144_v10, %v13977_v11  ;;  %v10147_v21 = vadd.f32 %v10146_v14, %v10145_v12 }
 0x638   : > { %v10174_v43 = vpop.f32.mrb[39].mxu1 }
 0x639   : > { %v10175_v47 = vadd.f32 %v10174_v43, %v10173_v30  ;;  %v14047_v7 = vadd.f32 %v10147_v21, %v13984_v53  ;;  %v2553_v36 = vadd.f32 %v10172_v27, %v13966_v57 }
 0x63b   : > { %v2556_v37 = vadd.f32 %v10175_v47, %v13973_v29 }
 0x63d   : > { %v10176_v34 = vpop.f32.mrb[40].mxu1  ;;  %v10228_v35 = vpop.f32.mrb[36].mxu0 }
 0x63e   : > { %v10177_v11 = vpop.f32.mrb[41].mxu1  ;;  %v10229_v20 = vpop.f32.mrb[37].mxu0 }
 0x63f   : > { %v10178_v39 = vadd.f32 %v10177_v11, %v10176_v34  ;;  %v10230_v13 = vadd.f32 %v10229_v20, %v10228_v35  ;;  %v10179_v40 = vpop.f32.mrb[42].mxu1  ;;  %v10231_v44 = vpop.f32.mrb[38].mxu0 }
 0x640   : > { %v10180_v53 = vpop.f32.mrb[43].mxu1  ;;  %v10232_v42 = vpop.f32.mrb[39].mxu0 }
 0x641   : > { %v10181_v17 = vadd.f32 %v10180_v53, %v10179_v40  ;;  %v10233_v57 = vadd.f32 %v10232_v42, %v10231_v44  ;;  %v2561_v29 = vadd.f32 %v10178_v39, %v13980_v28  ;;  %v14056_v45 = vadd.f32 %v10230_v13, %v2545_v8 }
 0x643   : > { %v2564_v46 = vadd.f32 %v10181_v17, %v13987_v2  ;;  %v14059_v6 = vadd.f32 %v10233_v57, %v2548_v32 }
 0x645   : > { %v10182_v31 = vpop.f32.mrb[44].mxu1  ;;  %v10234_v49 = vpop.f32.mrb[40].mxu0 }
 0x646   : > { %v10183_v51 = vpop.f32.mrb[45].mxu1  ;;  %v10235_v23 = vpop.f32.mrb[41].mxu0 }
 0x647   : > { %v10184_v50 = vadd.f32 %v10183_v51, %v10182_v31  ;;  %v10236_v18 = vadd.f32 %v10235_v23, %v10234_v49  ;;  %v10185_v54 = vpop.f32.mrb[46].mxu1  ;;  %v10237_v58 = vpop.f32.mrb[42].mxu0 }
 0x648   : > { %v10186_v28 = vpop.f32.mrb[47].mxu1  ;;  %v10238_v41 = vpop.f32.mrb[43].mxu0 }
 0x649   : > { %v2569_v2 = vadd.f32 %v10184_v50, %v13996_v38  ;;  %v10187_v15 = vadd.f32 %v10186_v28, %v10185_v54  ;;  %v10239_v22 = vadd.f32 %v10238_v41, %v10237_v58  ;;  %v14066_v4 = vadd.f32 %v10236_v18, %v2553_v36 }
 0x64b   : > { %v2572_v8 = vadd.f32 %v10187_v15, %v14001_v56  ;;  %v14069_v9 = vadd.f32 %v10239_v22, %v2556_v37 }
 0x64d   : > { %v10188_v32 = vpop.f32.mrb[48].mxu1  ;;  %v10240_v60 = vpop.f32.mrb[44].mxu0 }
 0x64e   : > { %v10189_v55 = vpop.f32.mrb[49].mxu1  ;;  %v10241_v10 = vpop.f32.mrb[45].mxu0 }
 0x64f   : > { %v10190_v12 = vadd.f32 %v10189_v55, %v10188_v32  ;;  %v10242_v16 = vadd.f32 %v10241_v10, %v10240_v60  ;;  %v10191_v14 = vpop.f32.mrb[50].mxu1  ;;  %v10243_v27 = vpop.f32.mrb[46].mxu0 }
 0x650   : > { %v10192_v38 = vpop.f32.mrb[51].mxu1  ;;  %v10244_v30 = vpop.f32.mrb[47].mxu0 }
 0x651   : > { %v2577_v56 = vadd.f32 %v10190_v12, %v14010_v33  ;;  %v10193_v21 = vadd.f32 %v10192_v38, %v10191_v14  ;;  %v10245_v43 = vadd.f32 %v10244_v30, %v10243_v27  ;;  %v14076_v47 = vadd.f32 %v10242_v16, %v2561_v29 }
 0x653   : > { %v2580_v36 = vadd.f32 %v10193_v21, %v14015_v24  ;;  %v14079_v37 = vadd.f32 %v10245_v43, %v2564_v46 }
 0x655   : > { %v10194_v34 = vpop.f32.mrb[52].mxu1  ;;  %v10246_v35 = vpop.f32.mrb[48].mxu0 }
 0x656   : > { %v10195_v11 = vpop.f32.mrb[53].mxu1  ;;  %v10247_v20 = vpop.f32.mrb[49].mxu0 }
 0x657   : > { %v10196_v39 = vadd.f32 %v10195_v11, %v10194_v34  ;;  %v10248_v13 = vadd.f32 %v10247_v20, %v10246_v35  ;;  %v10197_v40 = vpop.f32.mrb[54].mxu1  ;;  %v10249_v44 = vpop.f32.mrb[50].mxu0 }
 0x658   : > { %v10198_v33 = vpop.f32.mrb[55].mxu1  ;;  %v10250_v53 = vpop.f32.mrb[51].mxu0 }
 0x659   : > { %v2585_v42 = vadd.f32 %v10196_v39, %v14020_v5  ;;  %v10199_v17 = vadd.f32 %v10198_v33, %v10197_v40  ;;  %v10251_v57 = vadd.f32 %v10250_v53, %v10249_v44  ;;  %v14084_v24 = vadd.f32 %v10248_v13, %v2569_v2 }
 0x65b   : > { %v2588_v29 = vadd.f32 %v10199_v17, %v14025_v63  ;;  %v14087_v46 = vadd.f32 %v10251_v57, %v2572_v8 }
 0x65d   : > { %v10200_v31 = vpop.f32.mrb[56].mxu1  ;;  %v10252_v49 = vpop.f32.mrb[52].mxu0 }
 0x65e   : > { %v10201_v51 = vpop.f32.mrb[57].mxu1  ;;  %v10253_v23 = vpop.f32.mrb[53].mxu0 }
 0x65f   : > { %v10202_v50 = vadd.f32 %v10201_v51, %v10200_v31  ;;  %v10254_v18 = vadd.f32 %v10253_v23, %v10252_v49  ;;  %v10203_v54 = vpop.f32.mrb[58].mxu1  ;;  %v10255_v58 = vpop.f32.mrb[54].mxu0 }
 0x660   : > { %v10204_v28 = vpop.f32.mrb[59].mxu1  ;;  %v10256_v41 = vpop.f32.mrb[55].mxu0 }
 0x661   : > { %v2593_v5 = vadd.f32 %v10202_v50, %v14030_v62  ;;  %v10205_v15 = vadd.f32 %v10204_v28, %v10203_v54  ;;  %v10257_v22 = vadd.f32 %v10256_v41, %v10255_v58  ;;  %v14090_v2 = vadd.f32 %v10254_v18, %v2577_v56 }
 0x663   : > { %v2596_v63 = vadd.f32 %v10205_v15, %v14035_v26  ;;  %v14093_v8 = vadd.f32 %v10257_v22, %v2580_v36  ;;  %v11603_v36 = vld [vmem:[#allocation18] sm:$0xff]  }
 0x664   : > { %10940 = vmatprep.mubr.bf16.mxu0 %v11603_v36 }
 0x665   : > { %v10206_v32 = vpop.f32.mrb[60].mxu1  ;;  %v10258_v60 = vpop.f32.mrb[56].mxu0 }
 0x666   : > { %v10207_v55 = vpop.f32.mrb[61].mxu1  ;;  %v10259_v10 = vpop.f32.mrb[57].mxu0 }
 0x667   : > { %v10208_v12 = vadd.f32 %v10207_v55, %v10206_v32  ;;  %v10260_v16 = vadd.f32 %v10259_v10, %v10258_v60  ;;  %v10209_v14 = vpop.f32.mrb[62].mxu1  ;;  %v10261_v27 = vpop.f32.mrb[58].mxu0 }
 0x668   : > { %v10210_v38 = vpop.f32.mrb[63].mxu1  ;;  %v10262_v30 = vpop.f32.mrb[59].mxu0 }
 0x669   : > { %v2601_v62 = vadd.f32 %v10208_v12, %v14042_v25  ;;  %v10211_v21 = vadd.f32 %v10210_v38, %v10209_v14  ;;  %v10263_v43 = vadd.f32 %v10262_v30, %v10261_v27  ;;  %v2682_v56 = vadd.f32 %v10260_v16, %v2585_v42  ;;  %v14113_v10 = vpop.permute.xlu1 %3296  ;;  %v3292_v14 = vpop.permute.xlu0 %3291 }
 0x66b   : > { %v2604_v34 = vadd.f32 %v10211_v21, %v14047_v7  ;;  %v2685_v26 = vadd.f32 %v10263_v43, %v2588_v29 }
 0x66d   : > { %v10264_v35 = vpop.f32.mrb[60].mxu0  ;;  %v3409_v30 = vpop.permute.xlu0 %3408 }
 0x66e   : > { %v10265_v11 = vpop.f32.mrb[61].mxu0 }
 0x66f   : > { %v10266_v20 = vadd.f32 %v10265_v11, %v10264_v35  ;;  %v10267_v39 = vpop.f32.mrb[62].mxu0 }
 0x670   : > { %v10268_v13 = vpop.f32.mrb[63].mxu0 }
 0x671   : > { %v10269_v40 = vadd.f32 %v10268_v13, %v10267_v39  ;;  %v2957_v44 = vpop.f32.mrb[64].mxu1  ;;  %v2690_v33 = vadd.f32 %v10266_v20, %v2593_v5  ;;  %v3307_v35 = vpop.permute.xlu0 %3306 }
 0x672   : > { %v14098_v53 = vadd.f32 %v2957_v44, %v14066_v4  ;;  %v2959_v25 = vpop.f32.mrb[65].mxu1 }
 0x673   : > { %v2960_v17 = vpop.f32.mrb[66].mxu1  ;;  %v2693_v57 = vadd.f32 %v10269_v40, %v2596_v63 }
 0x674   : > { %v14101_v42 = vadd.f32 %v2960_v17, %v14069_v9  ;;  %v2962_v7 = vpop.f32.mrb[67].mxu1 }
 0x675   : > { %v10270_v29 = vpop.f32.mrb[64].mxu0  ;;  %v3419_v25 = vpop.permute.xlu0 %3418 }
 0x676   : > { %v10271_v31 = vpop.f32.mrb[65].mxu0 }
 0x677   : > { %v10272_v49 = vadd.f32 %v10271_v31, %v10270_v29  ;;  %v10273_v51 = vpop.f32.mrb[66].mxu0 }
 0x678   : > { %v10274_v23 = vpop.f32.mrb[67].mxu0 }
 0x679   : > { %v10275_v50 = vadd.f32 %v10274_v23, %v10273_v51  ;;  %v2965_v18 = vpop.f32.mrb[68].mxu1  ;;  %v2698_v54 = vadd.f32 %v10272_v49, %v2601_v62 }
 0x67a   : > { %v14104_v58 = vadd.f32 %v2965_v18, %v14076_v47  ;;  %v2967_v4 = vpop.f32.mrb[69].mxu1 }
 0x67b   : > { %v2968_v28 = vpop.f32.mrb[70].mxu1  ;;  %v2701_v41 = vadd.f32 %v10275_v50, %v2604_v34 }
 0x67c   : > { %v14107_v5 = vadd.f32 %v2968_v28, %v14079_v37  ;;  %v2970_v9 = vpop.f32.mrb[71].mxu1 }
 0x67d   : > { %v2949_v15 = vpop.f32.mrb[68].mxu0 }
 0x67e   : > { %v3012_v22 = vadd.f32 %v2949_v15, %v14056_v45  ;;  %v2951_v63 = vpop.f32.mrb[69].mxu0  ;;  %v3404_v45 = vpop.permute.xlu1 %3403 }
 0x67f   : > { %v2952_v32 = vpop.f32.mrb[70].mxu0 }
 0x680   : > { %v14111_v60 = vadd.f32 %v2952_v32, %v14059_v6  ;;  %v2954_v55 = vpop.f32.mrb[71].mxu0 }
 0x681   : > { %v2973_v47 = vpop.f32.mrb[72].mxu1 }
 0x682   : > { %v14116_v12 = vadd.f32 %v2973_v47, %v14084_v24  ;;  %v2975_v16 = vpop.f32.mrb[73].mxu1  ;;  %v3302_v36 = vpop.permute.xlu1 %3301 }
 0x683   : > { %v2976_v37 = vpop.f32.mrb[74].mxu1 }
 0x684   : > { %v14119_v27 = vadd.f32 %v2976_v37, %v14087_v46  ;;  %v2978_v38 = vpop.f32.mrb[75].mxu1 }
 0x686   : > { %v3414_v39 = vpop.permute.xlu1 %3413 }
 0x689   : > { %v2981_v62 = vpop.f32.mrb[76].mxu1 }
 0x68a   : > { %v14122_v6 = vadd.f32 %v2981_v62, %v14090_v2  ;;  %v2983_v21 = vpop.f32.mrb[77].mxu1  ;;  %v3312_v2 = vpop.permute.xlu1 %3311 }
 0x68b   : > { %v2984_v43 = vpop.f32.mrb[78].mxu1 }
 0x68c   : > { %v14125_v34 = vadd.f32 %v2984_v43, %v14093_v8  ;;  %v2986_v24 = vpop.f32.mrb[79].mxu1  ;;  %v14133_v8 = vpop.permute.xlu0 %3316 }
 0x690   : > { %v14137_v23 = vpop.permute.xlu0 %3428 }
 0x691   : > { %v2989_v11 = vpop.f32.mrb[80].mxu1 }
 0x692   : > { %v14127_v20 = vadd.f32 %v2989_v11, %v2682_v56  ;;  %v2991_v46 = vpop.f32.mrb[81].mxu1  ;;  %v3424_v56 = vpop.permute.xlu1 %3423 }
 0x693   : > { %v2992_v13 = vpop.f32.mrb[82].mxu1 }
 0x694   : > { %v14129_v40 = vadd.f32 %v2992_v13, %v2685_v26  ;;  %v2994_v44 = vpop.f32.mrb[83].mxu1  ;;  %v3327_v15 = vpop.permute.xlu0 %3326 }
 0x698   : > { %v3439_v32 = vpop.permute.xlu0 %3438 }
 0x699   : > { %v2997_v17 = vpop.f32.mrb[84].mxu1 }
 0x69a   : > { %v14131_v7 = vadd.f32 %v2997_v17, %v2690_v33  ;;  %v2999_v29 = vpop.f32.mrb[85].mxu1  ;;  %v3322_v33 = vpop.permute.xlu1 %3321 }
 0x69b   : > { %v3000_v31 = vpop.f32.mrb[86].mxu1 }
 0x69c   : > { %v14135_v49 = vadd.f32 %v3000_v31, %v2693_v57  ;;  %v3002_v51 = vpop.f32.mrb[87].mxu1  ;;  %v14145_v57 = vpop.permute.xlu0 %3336 }
 0x69e   : > { %v3434_v63 = vpop.permute.xlu1 %3433 }
 0x6a0   : > { %v14149_v16 = vpop.permute.xlu0 %3448 }
 0x6a1   : > { %v3005_v50 = vpop.f32.mrb[88].mxu1 }
 0x6a2   : > { %v14139_v18 = vadd.f32 %v3005_v50, %v2698_v54  ;;  %v3007_v26 = vpop.f32.mrb[89].mxu1  ;;  %v14143_v55 = vpop.permute.xlu1 %3331 }
 0x6a3   : > { %v3008_v4 = vpop.f32.mrb[90].mxu1 }
 0x6a4   : > { %v14141_v28 = vadd.f32 %v3008_v4, %v2701_v41  ;;  %v3010_v9 = vpop.f32.mrb[91].mxu1  ;;  %v14153_v54 = vpop.permute.xlu0 %3346 }
 0x6a6   : > { %v14147_v47 = vpop.permute.xlu1 %3443 }
 0x6a8   : > { %v14158_v51 = vpop.permute.xlu0 %3458 }
 0x6aa   : > { %v14151_v37 = vpop.permute.xlu1 %3341 }
 0x6ae   : > { %v3454_v13 = vpop.permute.xlu1 %3453 }
 0x6bf   : > { %v10910_v38 = vpop.f32.mrb[72].mxu0 }
 0x6c0   : > { %v3259_v41 = vadd.f32 %v10910_v38, %v14098_v53  ;;  %v3194_v62 = vpop.f32.mrb[73].mxu0 }
 0x6c1   : > { %v3257_v21 = vadd.f32 %v3194_v62, %v3012_v22  ;;  %v10911_v43 = vpop.f32.mrb[74].mxu0  ;;  %v14167_v62 = vpop.permute.xlu0 %3356 }
 0x6c2   : > { %v3371_v24 = vmul.f32 %v3302_v36, %v3259_v41  ;;  %v3260_v11 = vadd.f32 %v10911_v43, %v14101_v42  ;;  %v3197_v46 = vpop.f32.mrb[75].mxu0 }
 0x6c3   : > { %v3369_v44 = vmul.f32 %v3292_v14, %v3257_v21  ;;  %v3258_v17 = vadd.f32 %v3197_v46, %v14111_v60  ;;  %v14163_v14 = vpop.permute.xlu1 %3351 }
 0x6c4   : > { %v3483_v29 = vadd.f32 %v3414_v39, %v3371_v24  ;;  %v3372_v31 = vmul.f32 %v3307_v35, %v3260_v11 }
 0x6c5   : > { %v3481_v50 = vadd.f32 %v3404_v45, %v3369_v44  ;;  %v3370_v26 = vmul.f32 %v14113_v10, %v3258_v17 }
 0x6c6   : > { %v3484_v4 = vadd.f32 %v3419_v25, %v3372_v31  ;;  %v3499_v22 = vmax.f32 %v3483_v29, 0.0  ;;  %v3469_v29 = vpop.permute.xlu0 %3468 }
 0x6c7   : > { %v3482_v53 = vadd.f32 %v3409_v30, %v3370_v26  ;;  %v10914_v9 = vpop.f32.mrb[76].mxu0  ;;  %v3497_v60 = vmax.f32 %v3481_v50, 0.0 }
 0x6c8   : > { %v3500_v38 = vmax.f32 %v3484_v4, 0.0  ;;  %v3263_v36 = vadd.f32 %v10914_v9, %v14116_v12  ;;  %v3210_v42 = vpop.f32.mrb[77].mxu0 }
 0x6c9   : > { %v3498_v39 = vmax.f32 %v3482_v53, 0.0  ;;  %v3261_v35 = vadd.f32 %v3210_v42, %v14104_v58  ;;  %v10915_v41 = vpop.f32.mrb[78].mxu0 }
 0x6ca   : > { %v3375_v45 = vmul.f32 %v3322_v33, %v3263_v36  ;;  %v3264_v10 = vadd.f32 %v10915_v41, %v14119_v27  ;;  %v3213_v25 = vpop.f32.mrb[79].mxu0  ;;  %v3514_v30 = vpack.c.bf16 %v3500_v38, %v3499_v22 }
 0x6cb   : > { %v3373_v21 = vmul.f32 %v3312_v2, %v3261_v35  ;;  %v3262_v12 = vadd.f32 %v3213_v25, %v14107_v5  ;;  %v3513_v43 = vpack.c.bf16 %v3498_v39, %v3497_v60  ;;  %v3464_v5 = vpop.permute.xlu1 %3463 }
 0x6cc   : > { %v3487_v24 = vadd.f32 %v3434_v63, %v3375_v45  ;;  %v3376_v11 = vmul.f32 %v3327_v15, %v3264_v10  ;;  %v3596_v46 = vsel %vm16325_vm0, %v3514_v30, 4286644096 }
 0x6cd   : > { %v3485_v44 = vadd.f32 %v3424_v56, %v3373_v21  ;;  %v3374_v58 = vmul.f32 %v14133_v8, %v3262_v12  ;;  %10924 = vmatprep.subr.bf16.mxu0 %v3513_v43  ;;  %v3595_v27 = vsel %vm16325_vm0, %v3513_v43, 4286644096  ;;  %3604 = vst.msk [vmem:[#allocation4 + $0x18] sm:$0xff] %vm1277_vm9, %v3596_v46 }
 0x6ce   : > { %v3488_v33 = vadd.f32 %v3439_v32, %v3376_v11  ;;  %3603 = vst.msk [vmem:[#allocation4 + $0x8] sm:$0xff] %vm1277_vm9, %v3595_v27  ;;  %10925 = vmatpush3.bf16.msra.mxu0 %v3513_v43  ;;  %v3503_v63 = vmax.f32 %v3487_v24, 0.0 }
 0x6cf   : > { %v3486_v2 = vadd.f32 %v14137_v23, %v3374_v58  ;;  %v10918_v15 = vpop.f32.mrb[80].mxu0  ;;  %10926 = vmatprep.subr.bf16.mxu0 %v3514_v30  ;;  %v3501_v31 = vmax.f32 %v3485_v44, 0.0 }
 0x6d0   : > { %v3504_v17 = vmax.f32 %v3488_v33, 0.0  ;;  %v3267_v56 = vadd.f32 %v10918_v15, %v14127_v20  ;;  %v3226_v8 = vpop.f32.mrb[81].mxu0 }
 0x6d1   : > { %v3502_v50 = vmax.f32 %v3486_v2, 0.0  ;;  %v3265_v26 = vadd.f32 %v3226_v8, %v14122_v6  ;;  %v10919_v4 = vpop.f32.mrb[82].mxu0  ;;  %v3362_v6 = vpop.permute.xlu1 %3361 }
 0x6d2   : > { %v3379_v32 = vmul.f32 %v14151_v37, %v3267_v56  ;;  %v3268_v53 = vadd.f32 %v10919_v4, %v14129_v40  ;;  %v3229_v9 = vpop.f32.mrb[83].mxu0  ;;  %10927 = vmatpush3.bf16.msra.mxu0 %v3514_v30  ;;  %v3516_v23 = vpack.c.bf16 %v3504_v17, %v3503_v63 }
 0x6d3   : > { %v3377_v22 = vmul.f32 %v14143_v55, %v3265_v26  ;;  %v3266_v38 = vadd.f32 %v3229_v9, %v14125_v34  ;;  %v3515_v36 = vpack.c.bf16 %v3502_v50, %v3501_v31  ;;  %v3367_v55 = vpop.permute.xlu0 %3366 }
 0x6d4   : > { %v3491_v20 = vadd.f32 %v3454_v13, %v3379_v32  ;;  %v3380_v42 = vmul.f32 %v14153_v54, %v3268_v53  ;;  %v3598_v60 = vsel %vm16325_vm0, %v3516_v23, 4286644096 }
 0x6d5   : > { %v3489_v39 = vadd.f32 %v14147_v47, %v3377_v22  ;;  %v3378_v37 = vmul.f32 %v14145_v57, %v3266_v38  ;;  %10928 = vmatprep.subr.bf16.mxu0 %v3515_v36  ;;  %v3597_v40 = vsel %vm16325_vm0, %v3515_v36, 4286644096  ;;  %v14191_v35 = vld [vmem:[#allocation4 + $0x8] sm:$0xff]  ;;  %3606 = vst.msk [vmem:[#allocation4 + $0x38] sm:$0xff] %vm1277_vm9, %v3598_v60  ;;  %v3474_v11 = vpop.permute.xlu1 %3473 }
 0x6d6   : > { %v3492_v34 = vadd.f32 %v14158_v51, %v3380_v42  ;;  %3605 = vst.msk [vmem:[#allocation4 + $0x28] sm:$0xff] %vm1277_vm9, %v3597_v40  ;;  %5400 = vrot.lane.b32.xlu0 %v14191_v35, %s16454_s6  ;;  %5360 = vrot.lane.b32.xlu1 %v14191_v35, %s16463_s25  ;;  %v3507_v54 = vmax.f32 %v3491_v20, 0.0 }
 0x6d7   : > { %v3490_v57 = vadd.f32 %v14149_v16, %v3378_v37  ;;  %10929 = vmatpush3.bf16.msra.mxu0 %v3515_v36  ;;  %v10922_v47 = vpop.f32.mrb[84].mxu0  ;;  %v3505_v51 = vmax.f32 %v3489_v39, 0.0  ;;  %v3479_v33 = vpop.permute.xlu0 %3478 }
 0x6d8   : > { %v3508_v13 = vmax.f32 %v3492_v34, 0.0  ;;  %v3271_v41 = vadd.f32 %v10922_v47, %v14139_v18  ;;  %10930 = vmatprep.subr.bf16.mxu0 %v3516_v23  ;;  %v3242_v45 = vpop.f32.mrb[85].mxu0 }
 0x6d9   : > { %v3506_v10 = vmax.f32 %v3490_v57, 0.0  ;;  %v3269_v25 = vadd.f32 %v3242_v45, %v14131_v7  ;;  %v10923_v30 = vpop.f32.mrb[86].mxu0  ;;  %v14219_v50 = vpop.permute.xlu1 %4035 }
 0x6da   : > { %v3383_v21 = vmul.f32 %v3362_v6, %v3271_v41  ;;  %v3272_v12 = vadd.f32 %v10923_v30, %v14141_v28  ;;  %v3245_v43 = vpop.f32.mrb[87].mxu0  ;;  %v3518_v24 = vpack.c.bf16 %v3508_v13, %v3507_v54  ;;  %v14307_v41 = vld [vmem:[#allocation4 + $0x18] sm:$0xff] }
 0x6db   : > { %v3381_v16 = vmul.f32 %v14163_v14, %v3269_v25  ;;  %v3270_v46 = vadd.f32 %v3245_v43, %v14135_v49  ;;  %10931 = vmatpush3.bf16.msra.mxu0 %v3516_v23  ;;  %v3517_v44 = vpack.c.bf16 %v3506_v10, %v3505_v51 }
 0x6dc   : > { %v3495_v18 = vadd.f32 %v3474_v11, %v3383_v21  ;;  %v3384_v58 = vmul.f32 %v3367_v55, %v3272_v12  ;;  %v3600_v27 = vsel %vm16325_vm0, %v3518_v24, 4286644096  ;;  %v14369_v43 = vld [vmem:[#allocation4 + $0x38] sm:$0xff]  ;;  %v4040_v11 = vpop.permute.xlu0 %4039 }
 0x6dd   : > { %v3493_v7 = vadd.f32 %v3464_v5, %v3381_v16  ;;  %v3382_v2 = vmul.f32 %v14167_v62, %v3270_v46  ;;  %10932 = vmatprep.subr.bf16.mxu0 %v3517_v44  ;;  %v3599_v28 = vsel %vm16325_vm0, %v3517_v44, 4286644096  ;;  %3608 = vst.msk [vmem:[#allocation4 + $0x58] sm:$0xff] %vm1277_vm9, %v3600_v27  ;;  %v14225_v22 = vpop.permute.xlu1 %4057  ;;  %v14347_v21 = vld [vmem:[#allocation4 + $0x28] sm:$0xff] }
 0x6de   : > { %v3496_v14 = vadd.f32 %v3479_v33, %v3384_v58  ;;  %3607 = vst.msk [vmem:[#allocation4 + $0x48] sm:$0xff] %vm1277_vm9, %v3599_v28  ;;  %v3511_v15 = vmax.f32 %v3495_v18, 0.0 }
 0x6df   : > { %v3494_v49 = vadd.f32 %v3469_v29, %v3382_v2  ;;  %10933 = vmatpush3.bf16.msra.mxu0 %v3517_v44  ;;  %v3509_v17 = vmax.f32 %v3493_v7, 0.0  ;;  %v11604_v29 = vld [vmem:[#allocation18 + $0x8] sm:$0xff]  }
 0x6e0   : > { %v3512_v63 = vmax.f32 %v3496_v14, 0.0  ;;  %10934 = vmatprep.subr.bf16.mxu0 %v3518_v24  ;;  %v4062_v44 = vpop.permute.xlu0 %4061 }
 0x6e1   : > { %v3510_v56 = vmax.f32 %v3494_v49, 0.0  ;;  %v14233_v60 = vpop.permute.xlu1 %4079 }
 0x6e2   : > { %v3520_v8 = vpack.c.bf16 %v3512_v63, %v3511_v15  ;;  %v11868_v15 = vld [vmem:[#allocation2] sm:$0xff] }
 0x6e3   : > { %10935 = vmatpush3.bf16.msra.mxu0 %v3518_v24  ;;  %v3519_v5 = vpack.c.bf16 %v3510_v56, %v3509_v17 }
 0x6e4   : > { %v3602_v62 = vsel %vm16325_vm0, %v3520_v8, 4286644096  ;;  %v4084_v58 = vpop.permute.xlu0 %4083  ;;  %v14395_v27 = vld [vmem:[#allocation4 + $0x58] sm:$0xff] }
 0x6e5   : > { %10936 = vmatprep.subr.bf16.mxu0 %v3519_v5  ;;  %v3601_v31 = vsel %vm16325_vm0, %v3519_v5, 4286644096  ;;  %3610 = vst.msk [vmem:[#allocation4 + $0x78] sm:$0xff] %vm1277_vm9, %v3602_v62  ;;  %vm16477_vm0 = vmmov %vm16474_vm5  ;;  %v14247_v37 = vpop.permute.xlu1 %3707  ;;  %v14377_v16 = vld [vmem:[#allocation4 + $0x48] sm:$0xff] }
 0x6e6   : > { %3609 = vst.msk [vmem:[#allocation4 + $0x68] sm:$0xff] %vm1277_vm9, %v3601_v31 }
 0x6e7   : > { %10937 = vmatpush3.bf16.msra.mxu0 %v3519_v5  ;;  %v11607_v5 = vld [vmem:[#allocation20 + $0x14] ss:$44 sps:$4 sm:$0xff]  }
 0x6e8   : > { %10938 = vmatprep.subr.bf16.mxu0 %v3520_v8  ;;  %4497 = vmatprep.mubr.bf16.mxu1 %v11607_v5 }
 0x6e9   : > { %v14253_v40 = vpop.permute.xlu1 %3619 }
 0x6eb   : > { %10939 = vmatpush3.bf16.msra.mxu0 %v3520_v8  ;;  %v11869_v8 = vld [vmem:[#allocation2 + $0x10] sm:$0xff] }
 0x6ed   : > { %v14263_v34 = vpop.permute.xlu1 %3711  ;;  %v14405_v2 = vld [vmem:[#allocation4 + $0x68] sm:$0xff] }
 0x6ee   : > { %10941 = vmatmul.mubr.bf16.vlgmr.msra.gmra.mrb[88].mxu0 %v11604_v29 }
 0x6f1   : > { %v14269_v55 = vpop.permute.xlu1 %3623 }
 0x6f5   : > { %v14279_v57 = vpop.permute.xlu1 %3729 }
 0x6f9   : > { %v14285_v47 = vpop.permute.xlu1 %3641 }
 0x6fd   : > { %v14295_v54 = vpop.permute.xlu1 %3733 }
 0x701   : > { %v14301_v13 = vpop.permute.xlu1 %3645 }
 0x705   : > { %v14313_v45 = vpop.permute.xlu1 %3751 }
 0x709   : > { %v14319_v51 = vpop.permute.xlu1 %3663 }
 0x70d   : > { %v14329_v10 = vpop.permute.xlu1 %3755 }
 0x711   : > { %v14335_v25 = vpop.permute.xlu1 %3667 }
 0x715   : > { %v14345_v30 = vpop.permute.xlu1 %3773 }
 0x748   : > { %v14403_v7 = vpop.permute.xlu0 %5400 }
 0x7c1   : > { %v10942_v26 = vpop.f32.mrb[88].mxu0 }
 0x7c2   : > { %v3571_v4 = vpop.f32.mrb[89].mxu0  ;;  %v3588_v53 = vsel %vm16474_vm5, %v10942_v26, 0.0  ;;  %vm16481_vm5 = vcmask 15360  }
 0x7c3   : > { %v10943_v32 = vpop.f32.mrb[90].mxu0  ;;  %v3586_v38 = vsel %vm16476_vm7, %v3571_v4, 0.0  ;;  %vm16486_vm7 = vcmask 113664  }
 0x7c4   : > { %v3589_v9 = vsel %vm16475_vm12, %v10943_v32, 0.0  ;;  %v3574_v23 = vpop.f32.mrb[91].mxu0  ;;  %vm16482_vm12 = vcmask 7168  }
 0x7c5   : > { %v3591_v36 = vpack.c.bf16 %v3589_v9, %v3588_v53  ;;  %v3587_v20 = vsel %vm16477_vm0, %v3574_v23, 0.0  ;;  %vm16480_vm0 = vcmask 23552  }
 0x7c6   : > { %v3590_v42 = vpack.c.bf16 %v3587_v20, %v3586_v38 }
 0x7c7   : > { %3593 = vst.msk [vmem:[#allocation2 + $0x18] sm:$0xff] %vm1277_vm9, %v3591_v36 }
 0x7c8   : > { %3592 = vst.msk [vmem:[#allocation2 + $0x8] sm:$0xff] %vm1277_vm9, %v3590_v42 }
 0x7ce   : > { %v14235_v6 = vld [vmem:[#allocation2 + $0x18] sm:$0xff] }
 0x7cf   : > { %4103 = vrot.lane.b32.xlu0 %v14235_v6, %s16463_s25  ;;  %v14239_v39 = vld [vmem:[#allocation2 + $0x8] sm:$0xff]  ;;  %4096 = vst.msk [vmem:[#allocation3 + $0x138] sm:$0xff] %vm1277_vm9, %v14235_v6  ;;  %4041 = vrot.lane.b32.xlu1 %v14235_v6, %s16473_s26 }
 0x7d0   : > { %4095 = vst.msk [vmem:[#allocation3 + $0x130] sm:$0xff] %vm1277_vm9, %v14239_v39 }
 0x7d3   : > { %4115 = vrot.lane.b32.xlu0 %v14235_v6, %s16454_s6  ;;  %4063 = vrot.lane.b32.xlu1 %v14235_v6, %s16441_s18 }
 0x7d7   : > { %4127 = vrot.lane.b32.xlu0 %v14235_v6, %s16439_s5  ;;  %4085 = vrot.lane.b32.xlu1 %v14235_v6, %s16444_s0 }
 0x7db   : > { %4139 = vrot.lane.b32.xlu0 %v14235_v6, %s16478_s2  ;;  %4199 = vrot.lane.b32.xlu1 %v14235_v6, %s16437_s8 }
 0x7df   : > { %4151 = vrot.lane.b32.xlu0 %v14235_v6, %s16442_s9  ;;  %4211 = vrot.lane.b32.xlu1 %v14235_v6, %s16440_s22 }
 0x7e3   : > { %4163 = vrot.lane.b32.xlu0 %v14235_v6, %s16445_s10  ;;  %4223 = vrot.lane.b32.xlu1 %v14235_v6, %s16479_s27 }
 0x7e7   : > { %4175 = vrot.lane.b32.xlu0 %v14235_v6, %s16448_s12  ;;  %4235 = vrot.lane.b32.xlu1 %v14235_v6, %s16447_s11 }
 0x7eb   : > { %4187 = vrot.lane.b32.xlu0 %v14235_v6, %s16449_s14  ;;  %4101 = vrot.lane.b32.xlu1 %v14239_v39, %s16463_s25 }
 0x7ef   : > { %3713 = vrot.lane.b32.xlu0 %v14235_v6, %s16450_s15  ;;  %3887 = vrot.lane.b32.xlu1 %v13991_v19, %s16438_s7 }
 0x7f3   : > { %3625 = vrot.lane.b32.xlu0 %v14235_v6, %s16451_s13  ;;  %4113 = vrot.lane.b32.xlu1 %v14239_v39, %s16454_s6 }
 0x7f7   : > { %3735 = vrot.lane.b32.xlu0 %v14235_v6, %s16435_s4  ;;  %3799 = vrot.lane.b32.xlu1 %v13991_v19, %s16453_s17 }
 0x7fb   : > { %3647 = vrot.lane.b32.xlu0 %v14235_v6, %s16436_s3  ;;  %4125 = vrot.lane.b32.xlu1 %v14239_v39, %s16439_s5 }
 0x7ff   : > { %3757 = vrot.lane.b32.xlu0 %v14235_v6, %s16443_s30  ;;  %5362 = vrot.lane.b32.xlu1 %v14307_v41, %s16463_s25 }
 0x803   : > { %3669 = vrot.lane.b32.xlu0 %v14235_v6, %s16446_s23  ;;  %4137 = vrot.lane.b32.xlu1 %v14239_v39, %s16478_s2  ;;  %s16488_s2 = smov 111  }
 0x807   : > { %3779 = vrot.lane.b32.xlu0 %v14235_v6, %s16457_s19  ;;  %4197 = vrot.lane.b32.xlu1 %v14239_v39, %s16437_s8 }
 0x80b   : > { %3691 = vrot.lane.b32.xlu0 %v14235_v6, %s16458_s24  ;;  %3905 = vrot.lane.b32.xlu1 %v13958_v48, %s16455_s20 }
 0x80f   : > { %4209 = vrot.lane.b32.xlu1 %v14239_v39, %s16440_s22  ;;  %4037 = vrot.lane.b32.xlu0 %v14239_v39, %s16473_s26 }
 0x813   : > { %3817 = vrot.lane.b32.xlu1 %v13958_v48, %s16456_s21  ;;  %3889 = vrot.lane.b32.xlu0 %v14235_v6, %s16438_s7  ;;  %v14353_v48 = vpop.permute.xlu1 %3685 }
 0x817   : > { %4221 = vrot.lane.b32.xlu1 %v14239_v39, %s16479_s27  ;;  %4059 = vrot.lane.b32.xlu0 %v14239_v39, %s16441_s18  ;;  %v14363_v12 = vpop.permute.xlu1 %3777  ;;  %s16490_s27 = smov 109  }
 0x81b   : > { %5364 = vrot.lane.b32.xlu1 %v14347_v21, %s16463_s25  ;;  %3801 = vrot.lane.b32.xlu0 %v14235_v6, %s16453_s17  ;;  %v14371_v24 = vpop.permute.xlu1 %3689 }
 0x81f   : > { %4233 = vrot.lane.b32.xlu1 %v14239_v39, %s16447_s11  ;;  %4081 = vrot.lane.b32.xlu0 %v14239_v39, %s16444_s0  ;;  %v14383_v46 = vpop.permute.xlu1 %3883  ;;  %s16483_s11 = smov 115  }
 0x823   : > { %3909 = vrot.lane.b32.xlu1 %v13991_v19, %s16455_s20  ;;  %5402 = vrot.lane.b32.xlu0 %v14307_v41, %s16454_s6  ;;  %v14389_v18 = vpop.permute.xlu1 %3795 }
 0x827   : > { %3821 = vrot.lane.b32.xlu1 %v13991_v19, %s16456_s21  ;;  %4149 = vrot.lane.b32.xlu0 %v14239_v39, %s16442_s9  ;;  %v14401_v33 = vpop.permute.xlu1 %5360 }
 0x82b   : > { %5406 = vrot.lane.b32.xlu1 %v14369_v43, %s16454_s6  ;;  %4161 = vrot.lane.b32.xlu0 %v14239_v39, %s16445_s10 }
 0x82f   : > { %5368 = vrot.lane.b32.xlu1 %v14377_v16, %s16463_s25  ;;  %5404 = vrot.lane.b32.xlu0 %v14347_v21, %s16454_s6 }
 0x833   : > { %3931 = vrot.lane.b32.xlu1 %v13991_v19, %s16459_s29  ;;  %4173 = vrot.lane.b32.xlu0 %v14239_v39, %s16448_s12  ;;  %s16489_s12 = smov 110  }
 0x837   : > { %3843 = vrot.lane.b32.xlu1 %v13991_v19, %s16460_s28  ;;  %3911 = vrot.lane.b32.xlu0 %v14235_v6, %s16455_s20 }
 0x83b   : > { %5410 = vrot.lane.b32.xlu1 %v14395_v27, %s16454_s6  ;;  %3823 = vrot.lane.b32.xlu0 %v14235_v6, %s16456_s21 }
 0x83f   : > { %5372 = vrot.lane.b32.xlu1 %v14405_v2, %s16463_s25  ;;  %5366 = vrot.lane.b32.xlu0 %v14369_v43, %s16463_s25 }
 0x841   : > { %v4042_v28 = vpop.permute.xlu1 %4041  ;;  %v4104_v14 = vpop.permute.xlu0 %4103 }
 0x842   : > { %v4044_v49 = vsel %vm16480_vm0, %v4040_v11, %v4042_v28  ;;  %4108 = vst.msk [vmem:[#allocation3 + $0x148] sm:$0xff] %vm1277_vm9, %v4104_v14 }
 0x843   : > { %4048 = vst.msk [vmem:[#allocation3 + $0x108] sm:$0xff] %vm1277_vm9, %v4044_v49  ;;  %3953 = vrot.lane.b32.xlu1 %v13991_v19, %s16452_s16  ;;  %3927 = vrot.lane.b32.xlu0 %v11868_v15, %s16459_s29 }
 0x845   : > { %v4064_v63 = vpop.permute.xlu1 %4063  ;;  %v4116_v17 = vpop.permute.xlu0 %4115 }
 0x846   : > { %v4066_v56 = vsel %vm16481_vm5, %v4062_v44, %v4064_v63  ;;  %4120 = vst.msk [vmem:[#allocation3 + $0x158] sm:$0xff] %vm1277_vm9, %v4116_v17  ;;  %v14469_v63 = vld [vmem:[#allocation4 + $0x78] sm:$0xff] }
 0x847   : > { %4070 = vst.msk [vmem:[#allocation3 + $0x118] sm:$0xff] %vm1277_vm9, %v4066_v56  ;;  %3865 = vrot.lane.b32.xlu1 %v11869_v8, %s16461_s1  ;;  %3839 = vrot.lane.b32.xlu0 %v11868_v15, %s16460_s28 }
 0x849   : > { %v4086_v62 = vpop.permute.xlu1 %4085  ;;  %v4128_v31 = vpop.permute.xlu0 %4127 }
 0x84a   : > { %v4088_v19 = vsel %vm16482_vm12, %v4084_v58, %v4086_v62  ;;  %4132 = vst.msk [vmem:[#allocation3 + $0x168] sm:$0xff] %vm1277_vm9, %v4128_v31  ;;  %v5385_v31 = vmax.bf16 %v14401_v33, %v14191_v35 }
 0x84b   : > { %4092 = vst.msk [vmem:[#allocation3 + $0x128] sm:$0xff] %vm1277_vm9, %v4088_v19  ;;  %5017 = vrot.lane.b32.xlu1 %v14239_v39, %s16483_s11  ;;  %5019 = vrot.lane.b32.xlu0 %v14235_v6, %s16483_s11  ;;  %s16484_s11 = smov 114  }
 0x84d   : > { %v4200_v29 = vpop.permute.xlu1 %4199  ;;  %v4140_v26 = vpop.permute.xlu0 %4139 }
 0x84e   : > { %4204 = vst.msk [vmem:[#allocation3 + $0x1c8] sm:$0xff] %vm1277_vm9, %v4200_v29  ;;  %4144 = vst.msk [vmem:[#allocation3 + $0x178] sm:$0xff] %vm1277_vm9, %v4140_v26  ;;  %v5425_v26 = vmax.bf16 %v14403_v7, %v5385_v31 }
 0x84f   : > { %5408 = vrot.lane.b32.xlu0 %v14377_v16, %s16454_s6  ;;  %3929 = vrot.lane.b32.xlu1 %v14239_v39, %s16459_s29 }
 0x851   : > { %v4212_v4 = vpop.permute.xlu1 %4211  ;;  %v4152_v32 = vpop.permute.xlu0 %4151 }
 0x852   : > { %4216 = vst.msk [vmem:[#allocation3 + $0x1d8] sm:$0xff] %vm1277_vm9, %v4212_v4  ;;  %4156 = vst.msk [vmem:[#allocation3 + $0x188] sm:$0xff] %vm1277_vm9, %v4152_v32 }
 0x853   : > { %3933 = vrot.lane.b32.xlu0 %v14235_v6, %s16459_s29  ;;  %3841 = vrot.lane.b32.xlu1 %v14239_v39, %s16460_s28  ;;  %s16487_s29 = smov 112  }
 0x855   : > { %v4224_v53 = vpop.permute.xlu1 %4223  ;;  %v4164_v9 = vpop.permute.xlu0 %4163 }
 0x856   : > { %4228 = vst.msk [vmem:[#allocation3 + $0x1e8] sm:$0xff] %vm1277_vm9, %v4224_v53  ;;  %4168 = vst.msk [vmem:[#allocation3 + $0x198] sm:$0xff] %vm1277_vm9, %v4164_v9  ;;  %v5441_v53 = vsel %vm3048_vm2, %v5425_v26, 0 }
 0x857   : > { %3845 = vrot.lane.b32.xlu0 %v14235_v6, %s16460_s28  ;;  %5029 = vrot.lane.b32.xlu1 %v14239_v39, %s16484_s11  ;;  %s16485_s28 = smov 113  }
 0x859   : > { %v4236_v23 = vpop.permute.xlu1 %4235  ;;  %v4176_v38 = vpop.permute.xlu0 %4175 }
 0x85a   : > { %4240 = vst.msk [vmem:[#allocation3 + $0x1f8] sm:$0xff] %vm1277_vm9, %v4236_v23  ;;  %4180 = vst.msk [vmem:[#allocation3 + $0x1a8] sm:$0xff] %vm1277_vm9, %v4176_v38 }
 0x85b   : > { %5370 = vrot.lane.b32.xlu0 %v14395_v27, %s16463_s25  ;;  %3951 = vrot.lane.b32.xlu1 %v14239_v39, %s16452_s16 }
 0x85d   : > { %v4102_v36 = vpop.permute.xlu1 %4101  ;;  %v4188_v20 = vpop.permute.xlu0 %4187 }
 0x85e   : > { %4107 = vst.msk [vmem:[#allocation3 + $0x140] sm:$0xff] %vm1277_vm9, %v4102_v36  ;;  %4192 = vst.msk [vmem:[#allocation3 + $0x1b8] sm:$0xff] %vm1277_vm9, %v4188_v20 }
 0x85f   : > { %3949 = vrot.lane.b32.xlu0 %v11868_v15, %s16452_s16  ;;  %3863 = vrot.lane.b32.xlu1 %v14239_v39, %s16461_s1 }
 0x861   : > { %v14458_v42 = vpop.permute.xlu1 %3887  ;;  %v3714_v11 = vpop.permute.xlu0 %3713 }
 0x862   : > { %v3716_v44 = vsel %vm1391_vm13, %v14263_v34, %v3714_v11  ;;  %v11616_v34 = vld [vmem:[#allocation20 + $0x1c] ss:$44 sps:$4 sm:$0xff]  }
 0x863   : > { %3720 = vst.msk [vmem:[#allocation3 + $0x48] sm:$0xff] %vm1277_vm9, %v3716_v44  ;;  %3861 = vrot.lane.b32.xlu0 %v11868_v15, %s16461_s1  ;;  %5041 = vrot.lane.b32.xlu1 %v14239_v39, %s16485_s28 }
 0x864   : > { %4594 = vmatprep.mubr.bf16.mxu0 %v11616_v34 }
 0x865   : > { %v4114_v58 = vpop.permute.xlu1 %4113  ;;  %v3626_v28 = vpop.permute.xlu0 %3625  ;;  %v4281_v14 = vld [vmem:[#allocation3 + $0x140] sm:$0xff] }
 0x866   : > { %4119 = vst.msk [vmem:[#allocation3 + $0x150] sm:$0xff] %vm1277_vm9, %v4114_v58  ;;  %v3628_v49 = vsel %vm1299_vm15, %v14269_v55, %v3626_v28  ;;  %10295 = vmatprep.subr.bf16.mxu1 %v4281_v14 }
 0x867   : > { %3632 = vst.msk [vmem:[#allocation3 + $0x8] sm:$0xff] %vm1277_vm9, %v3628_v49  ;;  %4185 = vrot.lane.b32.xlu0 %v14239_v39, %s16449_s14  ;;  %5414 = vrot.lane.b32.xlu1 %v14469_v63, %s16454_s6 }
 0x869   : > { %v14476_v15 = vpop.permute.xlu1 %3799  ;;  %v3736_v17 = vpop.permute.xlu0 %3735 }
 0x86a   : > { %v3738_v56 = vsel %vm16486_vm7, %v14295_v54, %v3736_v17  ;;  %vm16491_vm7 = vcmask 48128  }
 0x86b   : > { %3742 = vst.msk [vmem:[#allocation3 + $0x58] sm:$0xff] %vm1277_vm9, %v3738_v56  ;;  %5053 = vrot.lane.b32.xlu1 %v14239_v39, %s16487_s29  ;;  %3709 = vrot.lane.b32.xlu0 %v14239_v39, %s16450_s15  ;;  %v4274_v56 = vld [vmem:[#allocation3 + $0x108] sm:$0xff] }
 0x86d   : > { %v4126_v55 = vpop.permute.xlu1 %4125  ;;  %v3648_v8 = vpop.permute.xlu0 %3647 }
 0x86e   : > { %4131 = vst.msk [vmem:[#allocation3 + $0x160] sm:$0xff] %vm1277_vm9, %v4126_v55  ;;  %v3650_v5 = vsel %vm1322_vm3, %v14301_v13, %v3648_v8  ;;  %v5338_v55 = vld [vmem:[#allocation4 + $0x10] sm:$0xff] }
 0x86f   : > { %3654 = vst.msk [vmem:[#allocation3 + $0x18] sm:$0xff] %vm1277_vm9, %v3650_v5  ;;  %5065 = vrot.lane.b32.xlu1 %v14239_v39, %s16488_s2  ;;  %3621 = vrot.lane.b32.xlu0 %v14239_v39, %s16451_s13 }
 0x871   : > { %v14493_v54 = vpop.permute.xlu1 %5362  ;;  %v3758_v62 = vpop.permute.xlu0 %3757 }
 0x872   : > { %v3760_v19 = vsel %vm1437_vm10, %v14329_v10, %v3758_v62 }
 0x873   : > { %3764 = vst.msk [vmem:[#allocation3 + $0x68] sm:$0xff] %vm1277_vm9, %v3760_v19  ;;  %5077 = vrot.lane.b32.xlu1 %v14239_v39, %s16489_s12  ;;  %3731 = vrot.lane.b32.xlu0 %v14239_v39, %s16435_s4  ;;  %v5386_v19 = vmax.bf16 %v14493_v54, %v5338_v55  ;;  %v4280_v55 = vld [vmem:[#allocation3 + $0x138] sm:$0xff] }
 0x875   : > { %v4138_v13 = vpop.permute.xlu1 %4137  ;;  %v3670_v29 = vpop.permute.xlu0 %3669 }
 0x876   : > { %4143 = vst.msk [vmem:[#allocation3 + $0x170] sm:$0xff] %vm1277_vm9, %v4138_v13  ;;  %v3672_v35 = vsel %vm1345_vm11, %v14335_v25, %v3670_v29 }
 0x877   : > { %3676 = vst.msk [vmem:[#allocation3 + $0x28] sm:$0xff] %vm1277_vm9, %v3672_v35  ;;  %5089 = vrot.lane.b32.xlu1 %v14239_v39, %s16490_s27  ;;  %3643 = vrot.lane.b32.xlu0 %v14239_v39, %s16436_s3  ;;  %v4276_v35 = vld [vmem:[#allocation3 + $0x118] sm:$0xff] }
 0x879   : > { %v4198_v10 = vpop.permute.xlu1 %4197  ;;  %v3780_v4 = vpop.permute.xlu0 %3779 }
 0x87a   : > { %4203 = vst.msk [vmem:[#allocation3 + $0x1c0] sm:$0xff] %vm1277_vm9, %v4198_v10  ;;  %v3782_v32 = vsel %vm1460_vm6, %v14363_v12, %v3780_v4 }
 0x87b   : > { %3786 = vst.msk [vmem:[#allocation3 + $0x78] sm:$0xff] %vm1277_vm9, %v3782_v32  ;;  %3753 = vrot.lane.b32.xlu0 %v14239_v39, %s16443_s30  ;;  %5474 = vrot.lane.b32.xlu1 %v5441_v53, %s16444_s0 }
 0x87d   : > { %v14522_v25 = vpop.permute.xlu1 %3905  ;;  %v3692_v9 = vpop.permute.xlu0 %3691 }
 0x87e   : > { %v3694_v23 = vsel %vm992_vm1, %v14371_v24, %v3692_v9  ;;  %v4286_v9 = vld [vmem:[#allocation3 + $0x168] sm:$0xff] }
 0x87f   : > { %3698 = vst.msk [vmem:[#allocation3 + $0x38] sm:$0xff] %vm1277_vm9, %v3694_v23  ;;  %3665 = vrot.lane.b32.xlu0 %v14239_v39, %s16446_s23 }
 0x881   : > { %v4210_v12 = vpop.permute.xlu1 %4209  ;;  %v4038_v38 = vpop.permute.xlu0 %4037  ;;  %v4297_v36 = vld [vmem:[#allocation3 + $0x1c0] sm:$0xff] }
 0x882   : > { %4215 = vst.msk [vmem:[#allocation3 + $0x1d0] sm:$0xff] %vm1277_vm9, %v4210_v12  ;;  %v4043_v20 = vsel %vm16480_vm0, %v14219_v50, %v4038_v38  ;;  %10359 = vmatprep.subr.bf16.mxu0 %v4297_v36  ;;  %v4278_v38 = vld [vmem:[#allocation3 + $0x128] sm:$0xff]  ;;  %v4287_v36 = vld [vmem:[#allocation3 + $0x170] sm:$0xff]  ;;  %vm16492_vm0 = vcmask 80896  }
 0x883   : > { %4047 = vst.msk [vmem:[#allocation3 + $0x100] sm:$0xff] %vm1277_vm9, %v4043_v20  ;;  %3775 = vrot.lane.b32.xlu0 %v14239_v39, %s16457_s19 }
 0x885   : > { %v14535_v24 = vpop.permute.xlu1 %3817  ;;  %v3890_v11 = vpop.permute.xlu0 %3889 }
 0x886   : > { %v3892_v44 = vsel %vm1575_vm4, %v14458_v42, %v3890_v11  ;;  %v4282_v42 = vld [vmem:[#allocation3 + $0x148] sm:$0xff] }
 0x887   : > { %3896 = vst.msk [vmem:[#allocation3 + $0xc8] sm:$0xff] %vm1277_vm9, %v3892_v44  ;;  %3687 = vrot.lane.b32.xlu0 %v14239_v39, %s16458_s24 }
 0x889   : > { %v4222_v58 = vpop.permute.xlu1 %4221  ;;  %v4060_v28 = vpop.permute.xlu0 %4059 }
 0x88a   : > { %4227 = vst.msk [vmem:[#allocation3 + $0x1e0] sm:$0xff] %vm1277_vm9, %v4222_v58  ;;  %v4065_v50 = vsel %vm16481_vm5, %v14225_v22, %v4060_v28  ;;  %v4273_v14 = vld [vmem:[#allocation3 + $0x100] sm:$0xff]  ;;  %v4283_v22 = vld [vmem:[#allocation3 + $0x150] sm:$0xff]  ;;  %vm16493_vm5 = vcmask 39936  }
 0x88b   : > { %4069 = vst.msk [vmem:[#allocation3 + $0x110] sm:$0xff] %vm1277_vm9, %v4065_v50  ;;  %3885 = vrot.lane.b32.xlu0 %v14239_v39, %s16438_s7  ;;  %10296 = vmatpush3.bf16.msra.mxu1 %v4273_v14  ;;  %v4279_v50 = vld [vmem:[#allocation3 + $0x130] sm:$0xff]  ;;  %v4298_v14 = vld [vmem:[#allocation3 + $0x1c8] sm:$0xff] }
 0x88c   : > { %10297 = vmatprep.subr.bf16.mxu1 %v4282_v42  ;;  %v4288_v42 = vld [vmem:[#allocation3 + $0x178] sm:$0xff] }
 0x88d   : > { %v14548_v49 = vpop.permute.xlu1 %5364  ;;  %v3802_v34 = vpop.permute.xlu0 %3801 }
 0x88e   : > { %v3804_v17 = vsel %vm1483_vm8, %v14476_v15, %v3802_v34  ;;  %v4284_v15 = vld [vmem:[#allocation3 + $0x158] sm:$0xff] }
 0x88f   : > { %3808 = vst.msk [vmem:[#allocation3 + $0x88] sm:$0xff] %vm1277_vm9, %v3804_v17  ;;  %3797 = vrot.lane.b32.xlu0 %v14239_v39, %s16453_s17  ;;  %10298 = vmatpush3.bf16.msra.mxu1 %v4274_v56 }
 0x890   : > { %10299 = vmatprep.subr.bf16.mxu1 %v4283_v22  ;;  %v4290_v22 = vld [vmem:[#allocation3 + $0x188] sm:$0xff] }
 0x891   : > { %v4234_v8 = vpop.permute.xlu1 %4233  ;;  %v4082_v5 = vpop.permute.xlu0 %4081 }
 0x892   : > { %4239 = vst.msk [vmem:[#allocation3 + $0x1f0] sm:$0xff] %vm1277_vm9, %v4234_v8  ;;  %v4087_v62 = vsel %vm16482_vm12, %v14233_v60, %v4082_v5  ;;  %v4275_v31 = vld [vmem:[#allocation3 + $0x110] sm:$0xff]  ;;  %v4285_v60 = vld [vmem:[#allocation3 + $0x160] sm:$0xff]  ;;  %vm16494_vm12 = vcmask 72704  }
 0x893   : > { %4091 = vst.msk [vmem:[#allocation3 + $0x120] sm:$0xff] %vm1277_vm9, %v4087_v62  ;;  %3907 = vrot.lane.b32.xlu0 %v14239_v39, %s16455_s20  ;;  %10300 = vmatpush3.bf16.msra.mxu1 %v4275_v31  ;;  %v11605_v8 = vld [vmem:[#allocation20 + $0x10] ss:$44 sps:$4 sm:$0xff]   ;;  %v11608_v62 = vld [vmem:[#allocation20 + $0x6c] ss:$44 sps:$4 sm:$0xff]  }
 0x894   : > { %10301 = vmatprep.subr.bf16.mxu1 %v4284_v15  ;;  %v4299_v5 = vld [vmem:[#allocation3 + $0x1d0] sm:$0xff] }
 0x895   : > { %v3910_v13 = vpop.permute.xlu1 %3909  ;;  %v14562_v29 = vpop.permute.xlu0 %5402 }
 0x896   : > { %v5426_v26 = vmax.bf16 %v14562_v29, %v5386_v19 }
 0x897   : > { %3819 = vrot.lane.b32.xlu0 %v14239_v39, %s16456_s21  ;;  %10302 = vmatpush3.bf16.msra.mxu1 %v4276_v35  ;;  %v5340_v39 = vld [vmem:[#allocation4 + $0x20] sm:$0xff]  ;;  %v4300_v35 = vld [vmem:[#allocation3 + $0x1d8] sm:$0xff] }
 0x898   : > { %10303 = vmatprep.subr.bf16.mxu1 %v4285_v60  ;;  %v5442_v10 = vsel %vm3048_vm2, %v5426_v26, 0  ;;  %v5388_v20 = vmax.bf16 %v14548_v49, %v5340_v39 }
 0x899   : > { %v3822_v4 = vpop.permute.xlu1 %3821  ;;  %5476 = vrot.lane.b32.xlu1 %v5442_v10, %s16444_s0  ;;  %v4150_v32 = vpop.permute.xlu0 %4149 }
 0x89a   : > { %4155 = vst.msk [vmem:[#allocation3 + $0x180] sm:$0xff] %vm1277_vm9, %v4150_v32  ;;  %v4277_v53 = vld [vmem:[#allocation3 + $0x120] sm:$0xff]  ;;  %v4292_v32 = vld [vmem:[#allocation3 + $0x198] sm:$0xff] }
 0x89b   : > { %5031 = vrot.lane.b32.xlu0 %v14235_v6, %s16484_s11  ;;  %10304 = vmatpush3.bf16.msra.mxu1 %v4277_v53  ;;  %v4245_v53 = vld [vmem:[#allocation20 + $0x68] sm:$0xff] }
 0x89c   : > { %10305 = vmatprep.subr.bf16.mxu1 %v4286_v9  ;;  %v4247_v9 = vld [vmem:[#allocation20 + $0x94] sm:$0xff] }
 0x89d   : > { %v14573_v23 = vpop.permute.xlu1 %5406  ;;  %v4162_v12 = vpop.permute.xlu0 %4161 }
 0x89e   : > { %4167 = vst.msk [vmem:[#allocation3 + $0x190] sm:$0xff] %vm1277_vm9, %v4162_v12  ;;  %v5342_v12 = vld [vmem:[#allocation4 + $0x30] sm:$0xff] }
 0x89f   : > { %5412 = vrot.lane.b32.xlu0 %v14405_v2, %s16454_s6  ;;  %10306 = vmatpush3.bf16.msra.mxu1 %v4278_v38  ;;  %v9753_v38 = vcombine.low %v4245_v53, %v4247_v9 }
 0x8a0   : > { %10307 = vmatprep.subr.bf16.mxu1 %v4287_v36 }
 0x8a1   : > { %v14579_v11 = vpop.permute.xlu1 %5368  ;;  %v14581_v44 = vpop.permute.xlu0 %5404  ;;  %v4289_v58 = vld [vmem:[#allocation3 + $0x180] sm:$0xff] }
 0x8a2   : > { %v5428_v28 = vmax.bf16 %v14581_v44, %v5388_v20  ;;  %10360 = vmatpush3.bf16.msra.mxu0 %v4289_v58 }
 0x8a3   : > { %3955 = vrot.lane.b32.xlu0 %v14235_v6, %s16452_s16  ;;  %10308 = vmatpush3.bf16.msra.mxu1 %v4279_v50 }
 0x8a4   : > { %10361 = vmatprep.subr.bf16.mxu0 %v4298_v14  ;;  %10309 = vmatprep.subr.bf16.mxu1 %v4288_v42  ;;  %v5444_v34 = vsel %vm3048_vm2, %v5428_v28, 0  ;;  %v11610_v28 = vld [vmem:[#allocation20 + $0xc4] ss:$44 sps:$4 sm:$0xff]  }
 0x8a5   : > { %v14588_v17 = vpop.permute.xlu1 %3931  ;;  %5480 = vrot.lane.b32.xlu1 %v5444_v34, %s16444_s0  ;;  %v4174_v56 = vpop.permute.xlu0 %4173  ;;  %v4291_v19 = vld [vmem:[#allocation3 + $0x190] sm:$0xff] }
 0x8a6   : > { %4179 = vst.msk [vmem:[#allocation3 + $0x1a0] sm:$0xff] %vm1277_vm9, %v4174_v56  ;;  %10362 = vmatpush3.bf16.msra.mxu0 %v4290_v22  ;;  %v5336_v14 = vld [vmem:[#allocation4] sm:$0xff]  ;;  %v4294_v22 = vld [vmem:[#allocation3 + $0x1a8] sm:$0xff] }
 0x8a7   : > { %3867 = vrot.lane.b32.xlu0 %v14235_v6, %s16461_s1  ;;  %10310 = vmatpush3.bf16.msra.mxu1 %v4280_v55  ;;  %v4249_v55 = vld [vmem:[#allocation20 + $0xc0] sm:$0xff] }
 0x8a8   : > { %10363 = vmatprep.subr.bf16.mxu0 %v4299_v5  ;;  %v5384_v5 = vmax.bf16 %v14401_v33, %v5336_v14  ;;  %v5344_v33 = vld [vmem:[#allocation4 + $0x40] sm:$0xff] }
 0x8a9   : > { %v14594_v31 = vpop.permute.xlu1 %3843  ;;  %v3912_v15 = vpop.permute.xlu0 %3911  ;;  %v11617_v14 = vld [vmem:[#allocation20 + $0x174] ss:$44 sps:$4 sm:$0xff]  }
 0x8aa   : > { %v3914_v26 = vsel %vm16491_vm7, %v3910_v13, %v3912_v15  ;;  %10364 = vmatpush3.bf16.msra.mxu0 %v4291_v19  ;;  %4498 = vmatmul.mubr.bf16.vlgmr.msra.gmra.mrb[92].mxu1 %v11605_v8  ;;  %v4301_v13 = vld [vmem:[#allocation3 + $0x1e0] sm:$0xff]  ;;  %v4251_v8 = vld [vmem:[#allocation20 + $0xec] sm:$0xff]  ;;  %vm16495_vm7 = vmmov %vm16493_vm5 }
 0x8ab   : > { %3918 = vst.msk [vmem:[#allocation3 + $0xd8] sm:$0xff] %vm1277_vm9, %v3914_v26  ;;  %5374 = vrot.lane.b32.xlu0 %v14469_v63, %s16463_s25  ;;  %10365 = vmatprep.subr.bf16.mxu0 %v4300_v35  ;;  %v9757_v19 = vcombine.low %v4249_v55, %v4251_v8  ;;  %v4257_v8 = vld [vmem:[#allocation20 + $0x170] sm:$0xff] }
 0x8ac   : > { %4505 = vmatprep.mubr.bf16.mxu1 %v11608_v62  ;;  %v4303_v62 = vld [vmem:[#allocation3 + $0x1f0] sm:$0xff] }
 0x8ad   : > { %v14600_v60 = vpop.permute.xlu1 %5410  ;;  %v3824_v10 = vpop.permute.xlu0 %3823  ;;  %v4293_v58 = vld [vmem:[#allocation3 + $0x1a0] sm:$0xff] }
 0x8ae   : > { %v3826_v39 = vsel %vm16492_vm0, %v3822_v4, %v3824_v10  ;;  %10366 = vmatpush3.bf16.msra.mxu0 %v4292_v32  ;;  %v4302_v4 = vld [vmem:[#allocation3 + $0x1e8] sm:$0xff]  ;;  %v5424_v32 = vmax.bf16 %v14403_v7, %v5384_v5  ;;  %v5387_v7 = vmax.bf16 %v14493_v54, %v14307_v41  ;;  %v5389_v41 = vmax.bf16 %v14548_v49, %v14347_v21  ;;  %v4259_v5 = vld [vmem:[#allocation20 + $0x19c] sm:$0xff]  ;;  %vm16496_vm0 = vmmov %vm16494_vm12 }
 0x8af   : > { %3830 = vst.msk [vmem:[#allocation3 + $0x98] sm:$0xff] %vm1277_vm9, %v3826_v39  ;;  %5043 = vrot.lane.b32.xlu0 %v14235_v6, %s16485_s28  ;;  %10367 = vmatprep.subr.bf16.mxu0 %v4301_v13  ;;  %v11612_v10 = vld [vmem:[#allocation20 + $0x11c] ss:$44 sps:$4 sm:$0xff]  }
 0x8b0   : > { %v4253_v39 = vld [vmem:[#allocation20 + $0x118] sm:$0xff]  ;;  %v4255_v13 = vld [vmem:[#allocation20 + $0x144] sm:$0xff] }
 0x8b1   : > { %v14606_v36 = vpop.permute.xlu1 %5372  ;;  %v14608_v20 = vpop.permute.xlu0 %5366 }
 0x8b2   : > { %v5390_v50 = vmax.bf16 %v14608_v20, %v5342_v12  ;;  %10368 = vmatpush3.bf16.msra.mxu0 %v4293_v58  ;;  %4506 = vmatmul.mubr.bf16.gmra.mrb[96].mxu1 %v9753_v38  ;;  %v5440_v12 = vsel %vm3048_vm2, %v5424_v32, 0  ;;  %v5392_v38 = vmax.bf16 %v14579_v11, %v5344_v33  ;;  %v9761_v58 = vcombine.low %v4253_v39, %v4255_v13  ;;  %v11619_v32 = vld [vmem:[#allocation20 + $0x1cc] ss:$44 sps:$4 sm:$0xff]  }
 0x8b3   : > { %5055 = vrot.lane.b32.xlu0 %v14235_v6, %s16487_s29  ;;  %10369 = vmatprep.subr.bf16.mxu0 %v4302_v4  ;;  %v4263_v39 = vld [vmem:[#allocation20 + $0x1f4] sm:$0xff]  ;;  %s16530_s29 = smov 116  }
 0x8b4   : > { %v5430_v42 = vmax.bf16 %v14573_v23, %v5390_v50  ;;  %4513 = vmatprep.mubr.bf16.mxu1 %v11610_v28  ;;  %v5427_v28 = vmax.bf16 %v14562_v29, %v5387_v7 }
 0x8b5   : > { %v14614_v34 = vpop.permute.xlu1 %3953  ;;  %v3928_v56 = vpop.permute.xlu0 %3927 }
 0x8b6   : > { %10370 = vmatpush3.bf16.msra.mxu0 %v4294_v22  ;;  %v5446_v15 = vsel %vm3048_vm2, %v5430_v42, 0 }
 0x8b7   : > { %5067 = vrot.lane.b32.xlu0 %v14235_v6, %s16488_s2  ;;  %10371 = vmatprep.subr.bf16.mxu0 %v4303_v62  ;;  %v5429_v62 = vmax.bf16 %v14581_v44, %v5389_v41  ;;  %v4267_v41 = vld [vmem:[#allocation20 + $0x24c] sm:$0xff]  ;;  %s16529_s2 = smov 124  }
 0x8b8   : > { %5484 = vrot.lane.b32.xlu1 %v5446_v15, %s16444_s0  ;;  %v9765_v15 = vcombine.low %v4257_v8, %v4259_v5  ;;  %v11627_v8 = vld [vmem:[#allocation20 + $0x27c] ss:$44 sps:$4 sm:$0xff]  }
 0x8b9   : > { %v14622_v26 = vpop.permute.xlu1 %3865  ;;  %v3840_v35 = vpop.permute.xlu0 %3839  ;;  %v5445_v44 = vsel %vm3048_vm2, %v5429_v62, 0 }
 0x8ba   : > { %4514 = vmatmul.mubr.bf16.gmra.mrb[100].mxu1 %v9757_v19 }
 0x8bb   : > { %5079 = vrot.lane.b32.xlu0 %v14235_v6, %s16489_s12  ;;  %4521 = vmatprep.mubr.bf16.mxu1 %v11612_v10  ;;  %s16528_s12 = smov 121  }
 0x8bd   : > { %v5018_v53 = vpop.permute.xlu1 %5017  ;;  %v5020_v9 = vpop.permute.xlu0 %5019 }
 0x8be   : > { %5023 = vst.msk [vmem:[#allocation3 + $0x200] sm:$0xff] %vm1277_vm9, %v5018_v53  ;;  %5024 = vst.msk [vmem:[#allocation3 + $0x208] sm:$0xff] %vm1277_vm9, %v5020_v9  ;;  %v4261_v9 = vld [vmem:[#allocation20 + $0x1c8] sm:$0xff] }
 0x8bf   : > { %5472 = vrot.lane.b32.xlu0 %v5440_v12, %s16444_s0 }
 0x8c1   : > { %v3930_v50 = vpop.permute.xlu1 %3929  ;;  %v5409_v4 = vpop.permute.xlu0 %5408 }
 0x8c2   : > { %v3935_v42 = vsel %vm16493_vm5, %v3928_v56, %v3930_v50  ;;  %v5432_v22 = vmax.bf16 %v5409_v4, %v5392_v38  ;;  %4522 = vmatmul.mubr.bf16.gmra.mrb[104].mxu1 %v9761_v58  ;;  %v5443_v56 = vsel %vm3048_vm2, %v5427_v28, 0  ;;  %v9769_v38 = vcombine.low %v4261_v9, %v4263_v39  ;;  %v11621_v39 = vld [vmem:[#allocation20 + $0x74] ss:$44 sps:$4 sm:$0xff]  }
 0x8c3   : > { %3939 = vst.msk [vmem:[#allocation3 + $0xe0] sm:$0xff] %vm1277_vm9, %v3935_v42  ;;  %5091 = vrot.lane.b32.xlu0 %v14235_v6, %s16490_s27  ;;  %4529 = vmatprep.mubr.bf16.mxu1 %v11617_v14  ;;  %v5391_v6 = vmax.bf16 %v14608_v20, %v14369_v43  ;;  %v5346_v20 = vld [vmem:[#allocation4 + $0x50] sm:$0xff]  ;;  %vm16497_vm5 = vcmask 31744   ;;  %s16501_s27 = smov 32  }
 0x8c4   : > { %v5448_v54 = vsel %vm3048_vm2, %v5432_v22, 0  ;;  %v4265_v22 = vld [vmem:[#allocation20 + $0x220] sm:$0xff] }
 0x8c5   : > { %v3842_v55 = vpop.permute.xlu1 %3841  ;;  %5488 = vrot.lane.b32.xlu1 %v5448_v54, %s16444_s0  ;;  %v3934_v29 = vpop.permute.xlu0 %3933 }
 0x8c6   : > { %v3847_v21 = vsel %vm16494_vm12, %v3840_v35, %v3842_v55  ;;  %v3936_v49 = vsel %vm16495_vm7, %v14588_v17, %v3934_v29  ;;  %v5431_v17 = vmax.bf16 %v14573_v23, %v5391_v6  ;;  %v5393_v35 = vmax.bf16 %v14579_v11, %v14377_v16  ;;  %v11623_v11 = vld [vmem:[#allocation20 + $0x224] ss:$44 sps:$4 sm:$0xff]   ;;  %v4269_v6 = vld [vmem:[#allocation20 + $0x278] sm:$0xff] }
 0x8c7   : > { %3851 = vst.msk [vmem:[#allocation3 + $0xa0] sm:$0xff] %vm1277_vm9, %v3847_v21  ;;  %3940 = vst.msk [vmem:[#allocation3 + $0xe8] sm:$0xff] %vm1277_vm9, %v3936_v49  ;;  %5478 = vrot.lane.b32.xlu0 %v5443_v56, %s16444_s0  ;;  %v4271_v21 = vld [vmem:[#allocation20 + $0x2a4] sm:$0xff]  ;;  %vm16498_vm12 = vcmask 113664   ;;  %vm16499_vm7 = vcmask 48128  }
 0x8c8   : > { %v5447_v23 = vsel %vm3048_vm2, %v5431_v17, 0  ;;  %v4304_v17 = vld [vmem:[#allocation3 + $0x1f8] sm:$0xff] }
 0x8c9   : > { %v5030_v19 = vpop.permute.xlu1 %5029  ;;  %v3846_v10 = vpop.permute.xlu0 %3845 }
 0x8ca   : > { %5035 = vst.msk [vmem:[#allocation3 + $0x210] sm:$0xff] %vm1277_vm9, %v5030_v19  ;;  %v3848_v43 = vsel %vm16496_vm0, %v14594_v31, %v3846_v10  ;;  %4530 = vmatmul.mubr.bf16.gmra.mrb[108].mxu1 %v9765_v15  ;;  %v5433_v31 = vmax.bf16 %v5409_v4, %v5393_v35  ;;  %v9777_v15 = vcombine.low %v4269_v6, %v4271_v21  ;;  %v4296_v35 = vld [vmem:[#allocation3 + $0x1b8] sm:$0xff]  ;;  %v4256_v6 = vld [vmem:[#allocation20 + $0x14c] sm:$0xff]  ;;  %vm16500_vm0 = vcmask 80896  }
 0x8cb   : > { %3852 = vst.msk [vmem:[#allocation3 + $0xa8] sm:$0xff] %vm1277_vm9, %v3848_v43  ;;  %5482 = vrot.lane.b32.xlu0 %v5445_v44, %s16444_s0  ;;  %4537 = vmatprep.mubr.bf16.mxu1 %v11619_v32  ;;  %v11635_v43 = vld [vmem:[#allocation20 + $0x4] ss:$44 sps:$4 sm:$0xff]  }
 0x8cc   : > { %v5449_v50 = vsel %vm3048_vm2, %v5433_v31, 0 }
 0x8cd   : > { %v3952_v33 = vpop.permute.xlu1 %3951  ;;  %v5371_v53 = vpop.permute.xlu0 %5370 }
 0x8ce   : > { %v5394_v13 = vmax.bf16 %v5371_v53, %v5346_v20  ;;  %v5395_v12 = vmax.bf16 %v5371_v53, %v14395_v27 }
 0x8cf   : > { %5486 = vrot.lane.b32.xlu0 %v5447_v23, %s16444_s0  ;;  %v4246_v23 = vld [vmem:[#allocation20 + $0x70] sm:$0xff] }
 0x8d0   : > { %v5434_v7 = vmax.bf16 %v14600_v60, %v5394_v13  ;;  %v5435_v27 = vmax.bf16 %v14600_v60, %v5395_v12  ;;  %v9773_v60 = vcombine.low %v4265_v22, %v4267_v41 }
 0x8d1   : > { %v3864_v58 = vpop.permute.xlu1 %3863  ;;  %v3950_v16 = vpop.permute.xlu0 %3949 }
 0x8d2   : > { %v3957_v28 = vsel %vm16497_vm5, %v3950_v16, %v3952_v33  ;;  %v5450_v4 = vsel %vm3048_vm2, %v5434_v7, 0  ;;  %4538 = vmatmul.mubr.bf16.gmra.mrb[112].mxu1 %v9769_v38  ;;  %v5451_v55 = vsel %vm3048_vm2, %v5435_v27, 0  ;;  %v11614_v33 = vld [vmem:[#allocation20 + $0x18] ss:$44 sps:$4 sm:$0xff]   ;;  %v4248_v7 = vld [vmem:[#allocation20 + $0x9c] sm:$0xff] }
 0x8d3   : > { %3961 = vst.msk [vmem:[#allocation3 + $0xf0] sm:$0xff] %vm1277_vm9, %v3957_v28  ;;  %5490 = vrot.lane.b32.xlu0 %v5449_v50, %s16444_s0  ;;  %5492 = vrot.lane.b32.xlu1 %v5450_v4, %s16444_s0  ;;  %v11625_v50 = vld [vmem:[#allocation20 + $0xcc] ss:$44 sps:$4 sm:$0xff]  }
 0x8d4   : > { %4545 = vmatprep.mubr.bf16.mxu1 %v11623_v11  ;;  %v3996_v11 = vld [vmem:[#allocation3 + $0x8] sm:$0xff] }
 0x8d5   : > { %v5042_v14 = vpop.permute.xlu1 %5041  ;;  %v3862_v42 = vpop.permute.xlu0 %3861 }
 0x8d6   : > { %5047 = vst.msk [vmem:[#allocation3 + $0x220] sm:$0xff] %vm1277_vm9, %v5042_v14  ;;  %v3869_v54 = vsel %vm1205_vm14, %v3862_v42, %v3864_v58  ;;  %v9755_v58 = vcombine.low %v4246_v23, %v4248_v7  ;;  %v4250_v14 = vld [vmem:[#allocation20 + $0xc8] sm:$0xff]  ;;  %v4252_v42 = vld [vmem:[#allocation20 + $0xf4] sm:$0xff] }
 0x8d7   : > { %3873 = vst.msk [vmem:[#allocation3 + $0xb0] sm:$0xff] %vm1277_vm9, %v3869_v54  ;;  %5494 = vrot.lane.b32.xlu0 %v5451_v55, %s16444_s0  ;;  %v9759_v41 = vcombine.low %v4250_v14, %v4252_v42  ;;  %v3998_v55 = vld [vmem:[#allocation3 + $0x18] sm:$0xff]  ;;  %v5113_v23 = vld [vmem:[#allocation3 + $0x200] sm:$0xff]  ;;  %v5348_v7 = vld [vmem:[#allocation4 + $0x60] sm:$0xff] }
 0x8d8   : > { %v4268_v14 = vld [vmem:[#allocation20 + $0x254] sm:$0xff] }
 0x8d9   : > { %v14686_v29 = vpop.permute.xlu1 %5414  ;;  %v4186_v56 = vpop.permute.xlu0 %4185 }
 0x8da   : > { %4191 = vst.msk [vmem:[#allocation3 + $0x1b0] sm:$0xff] %vm1277_vm9, %v4186_v56  ;;  %4546 = vmatmul.mubr.bf16.gmra.mrb[116].mxu1 %v9773_v60  ;;  %v11629_v56 = vld [vmem:[#allocation20 + $0x124] ss:$44 sps:$4 sm:$0xff]  }
 0x8db   : > { %4553 = vmatprep.mubr.bf16.mxu1 %v11627_v8 }
 0x8dd   : > { %v5054_v5 = vpop.permute.xlu1 %5053  ;;  %v3710_v62 = vpop.permute.xlu0 %3709 }
 0x8de   : > { %5059 = vst.msk [vmem:[#allocation3 + $0x230] sm:$0xff] %vm1277_vm9, %v5054_v5  ;;  %v3715_v49 = vsel %vm1391_vm13, %v14247_v37, %v3710_v62  ;;  %v4254_v62 = vld [vmem:[#allocation20 + $0x120] sm:$0xff] }
 0x8df   : > { %3719 = vst.msk [vmem:[#allocation3 + $0x40] sm:$0xff] %vm1277_vm9, %v3715_v49  ;;  %v9763_v49 = vcombine.low %v4254_v62, %v4256_v6  ;;  %v4014_v6 = vld [vmem:[#allocation3 + $0x98] sm:$0xff] }
 0x8e1   : > { %v5066_v19 = vpop.permute.xlu1 %5065  ;;  %v3622_v10 = vpop.permute.xlu0 %3621  ;;  %v4295_v32 = vld [vmem:[#allocation3 + $0x1b0] sm:$0xff] }
 0x8e2   : > { %5071 = vst.msk [vmem:[#allocation3 + $0x240] sm:$0xff] %vm1277_vm9, %v5066_v19  ;;  %v3627_v44 = vsel %vm1299_vm15, %v14253_v40, %v3622_v10  ;;  %10372 = vmatpush3.bf16.msra.mxu0 %v4295_v32  ;;  %4554 = vmatmul.mubr.bf16.gmra.mrb[120].mxu1 %v9777_v15  ;;  %v4000_v19 = vld [vmem:[#allocation3 + $0x28] sm:$0xff] }
 0x8e3   : > { %3631 = vst.msk [vmem:[#allocation3] sm:$0xff] %vm1277_vm9, %v3627_v44  ;;  %10373 = vmatprep.subr.bf16.mxu0 %v4304_v17  ;;  %4851 = vmatprep.mubr.bf16.mxu1 %v11635_v43  ;;  %v11631_v32 = vld [vmem:[#allocation20 + $0x17c] ss:$44 sps:$4 sm:$0xff]  }
 0x8e4   : > { %v4258_v17 = vld [vmem:[#allocation20 + $0x178] sm:$0xff] }
 0x8e5   : > { %v5078_v20 = vpop.permute.xlu1 %5077  ;;  %v3732_v37 = vpop.permute.xlu0 %3731 }
 0x8e6   : > { %5083 = vst.msk [vmem:[#allocation3 + $0x250] sm:$0xff] %vm1277_vm9, %v5078_v20  ;;  %v3737_v53 = vsel %vm16498_vm12, %v14279_v57, %v3732_v37  ;;  %10374 = vmatpush3.bf16.msra.mxu0 %v4296_v35  ;;  %v4003_v9 = vld [vmem:[#allocation3 + $0x40] sm:$0xff]  ;;  %v4004_v57 = vld [vmem:[#allocation3 + $0x48] sm:$0xff]  ;;  %v4002_v35 = vld [vmem:[#allocation3 + $0x38] sm:$0xff]  ;;  %vm16502_vm12 = vcmask 7168  }
 0x8e7   : > { %3741 = vst.msk [vmem:[#allocation3 + $0x50] sm:$0xff] %vm1277_vm9, %v3737_v53  ;;  %10423 = vmatprep.subr.bf16.mxu1 %v4003_v9  ;;  %v4260_v20 = vld [vmem:[#allocation20 + $0x1a4] sm:$0xff] }
 0x8e9   : > { %v5090_v40 = vpop.permute.xlu1 %5089  ;;  %v3644_v31 = vpop.permute.xlu0 %3643  ;;  %4595 = vmatmul.mubr.bf16.vlgmr.msra.gmra.mrb[92].mxu0 %v11614_v33  ;;  %v9767_v33 = vcombine.low %v4258_v17, %v4260_v20  ;;  %v4024_v17 = vld [vmem:[#allocation3 + $0xe8] sm:$0xff] }
 0x8ea   : > { %5095 = vst.msk [vmem:[#allocation3 + $0x260] sm:$0xff] %vm1277_vm9, %v5090_v40  ;;  %v3649_v13 = vsel %vm1322_vm3, %v14285_v47, %v3644_v31  ;;  %v3995_v12 = vld [vmem:[#allocation3] sm:$0xff]  ;;  %4602 = vmatprep.mubr.bf16.mxu0 %v11621_v39 }
 0x8eb   : > { %3653 = vst.msk [vmem:[#allocation3 + $0x10] sm:$0xff] %vm1277_vm9, %v3649_v13  ;;  %10424 = vmatpush3.bf16.msra.mxu1 %v3995_v12  ;;  %v11633_v39 = vld [vmem:[#allocation20] ss:$44 sps:$4 sm:$0xff]   ;;  %v11638_v31 = vld [vmem:[#allocation20 + $0x5c] ss:$44 sps:$4 sm:$0xff]  }
 0x8ec   : > { %10425 = vmatprep.subr.bf16.mxu1 %v4004_v57  ;;  %v11636_v40 = vld [vmem:[#allocation20 + $0x1d4] ss:$44 sps:$4 sm:$0xff]   ;;  %v3975_v20 = vld [vmem:[#allocation20 + $0x108] sm:$0xff] }
 0x8ed   : > { %v3754_v38 = vpop.permute.xlu0 %3753 }
 0x8ee   : > { %v3759_v16 = vsel %vm1437_vm10, %v14313_v45, %v3754_v38  ;;  %v4005_v28 = vld [vmem:[#allocation3 + $0x50] sm:$0xff]  ;;  %v4006_v45 = vld [vmem:[#allocation3 + $0x58] sm:$0xff]  ;;  %v4012_v38 = vld [vmem:[#allocation3 + $0x88] sm:$0xff] }
 0x8ef   : > { %3763 = vst.msk [vmem:[#allocation3 + $0x60] sm:$0xff] %vm1277_vm9, %v3759_v16  ;;  %10426 = vmatpush3.bf16.msra.mxu1 %v3996_v11  ;;  %v11641_v16 = vld [vmem:[#allocation20 + $0x58] ss:$44 sps:$4 sm:$0xff]  }
 0x8f0   : > { %10427 = vmatprep.subr.bf16.mxu1 %v4005_v28  ;;  %v11642_v28 = vld [vmem:[#allocation20 + $0x22c] ss:$44 sps:$4 sm:$0xff]  }
 0x8f1   : > { %v3666_v47 = vpop.permute.xlu0 %3665  ;;  %4603 = vmatmul.mubr.bf16.gmra.mrb[96].mxu0 %v9755_v58  ;;  %v11640_v58 = vld [vmem:[#allocation20 + $0x1d0] ss:$44 sps:$4 sm:$0xff]  }
 0x8f2   : > { %v3671_v4 = vsel %vm1345_vm11, %v14319_v51, %v3666_v47  ;;  %v3997_v27 = vld [vmem:[#allocation3 + $0x10] sm:$0xff]  ;;  %4610 = vmatprep.mubr.bf16.mxu0 %v11625_v50  ;;  %v5396_v50 = vmax.bf16 %v14606_v36, %v5348_v7  ;;  %v5397_v47 = vmax.bf16 %v14606_v36, %v14405_v2 }
 0x8f3   : > { %3675 = vst.msk [vmem:[#allocation3 + $0x20] sm:$0xff] %vm1277_vm9, %v3671_v4  ;;  %10428 = vmatpush3.bf16.msra.mxu1 %v3997_v27  ;;  %v4266_v27 = vld [vmem:[#allocation20 + $0x228] sm:$0xff] }
 0x8f4   : > { %10429 = vmatprep.subr.bf16.mxu1 %v4006_v45  ;;  %v11650_v7 = vld [vmem:[#allocation20 + $0x28] ss:$44 sps:$4 sm:$0xff]  }
 0x8f5   : > { %v3776_v22 = vpop.permute.xlu0 %3775 }
 0x8f6   : > { %v3781_v54 = vsel %vm1460_vm6, %v14345_v30, %v3776_v22  ;;  %v4007_v60 = vld [vmem:[#allocation3 + $0x60] sm:$0xff]  ;;  %v4008_v30 = vld [vmem:[#allocation3 + $0x68] sm:$0xff] }
 0x8f7   : > { %3785 = vst.msk [vmem:[#allocation3 + $0x70] sm:$0xff] %vm1277_vm9, %v3781_v54  ;;  %10430 = vmatpush3.bf16.msra.mxu1 %v3998_v55  ;;  %v11644_v54 = vld [vmem:[#allocation20 + $0xb4] ss:$44 sps:$4 sm:$0xff]  }
 0x8f8   : > { %10431 = vmatprep.subr.bf16.mxu1 %v4007_v60  ;;  %v4022_v55 = vld [vmem:[#allocation3 + $0xd8] sm:$0xff]  ;;  %v3971_v60 = vld [vmem:[#allocation20 + $0xb0] sm:$0xff] }
 0x8f9   : > { %v3688_v51 = vpop.permute.xlu0 %3687  ;;  %4611 = vmatmul.mubr.bf16.gmra.mrb[100].mxu0 %v9759_v41  ;;  %v5115_v41 = vld [vmem:[#allocation3 + $0x210] sm:$0xff] }
 0x8fa   : > { %v3693_v8 = vsel %vm992_vm1, %v14353_v48, %v3688_v51  ;;  %v3999_v5 = vld [vmem:[#allocation3 + $0x20] sm:$0xff]  ;;  %4618 = vmatprep.mubr.bf16.mxu0 %v11629_v56 }
 0x8fb   : > { %3697 = vst.msk [vmem:[#allocation3 + $0x30] sm:$0xff] %vm1277_vm9, %v3693_v8  ;;  %10432 = vmatpush3.bf16.msra.mxu1 %v3999_v5  ;;  %v3973_v56 = vld [vmem:[#allocation20 + $0xdc] sm:$0xff]  ;;  %v9775_v5 = vcombine.low %v4266_v27, %v4268_v14 }
 0x8fc   : > { %10433 = vmatprep.subr.bf16.mxu1 %v4008_v30  ;;  %v9789_v30 = vcombine.low %v3971_v60, %v3973_v56  ;;  %v11664_v14 = vld [vmem:[#allocation20 + $0x1bc] ss:$44 sps:$4 sm:$0xff]   ;;  %v11663_v60 = vld [vmem:[#allocation20 + $0xd4] ss:$44 sps:$4 sm:$0xff]  }
 0x8fd   : > { %v3886_v21 = vpop.permute.xlu0 %3885 }
 0x8fe   : > { %v3891_v15 = vsel %vm1575_vm4, %v14383_v46, %v3886_v21  ;;  %v4009_v10 = vld [vmem:[#allocation3 + $0x70] sm:$0xff]  ;;  %v4010_v46 = vld [vmem:[#allocation3 + $0x78] sm:$0xff] }
 0x8ff   : > { %3895 = vst.msk [vmem:[#allocation3 + $0xc0] sm:$0xff] %vm1277_vm9, %v3891_v15  ;;  %10434 = vmatpush3.bf16.msra.mxu1 %v4000_v19  ;;  %v11646_v21 = vld [vmem:[#allocation20 + $0x284] ss:$44 sps:$4 sm:$0xff]   ;;  %v11648_v15 = vld [vmem:[#allocation20 + $0x10c] ss:$44 sps:$4 sm:$0xff]  }
 0x900   : > { %10435 = vmatprep.subr.bf16.mxu1 %v4009_v10  ;;  %v5350_v10 = vld [vmem:[#allocation4 + $0x70] sm:$0xff] }
 0x901   : > { %v3798_v48 = vpop.permute.xlu0 %3797  ;;  %4619 = vmatmul.mubr.bf16.gmra.mrb[104].mxu0 %v9763_v49  ;;  %v4023_v49 = vld [vmem:[#allocation3 + $0xe0] sm:$0xff] }
 0x902   : > { %v3803_v43 = vsel %vm1483_vm8, %v14389_v18, %v3798_v48  ;;  %v4001_v44 = vld [vmem:[#allocation3 + $0x30] sm:$0xff]  ;;  %4626 = vmatprep.mubr.bf16.mxu0 %v11631_v32  ;;  %v4270_v32 = vld [vmem:[#allocation20 + $0x280] sm:$0xff] }
 0x903   : > { %3807 = vst.msk [vmem:[#allocation3 + $0x80] sm:$0xff] %vm1277_vm9, %v3803_v43  ;;  %10436 = vmatpush3.bf16.msra.mxu1 %v4001_v44  ;;  %v4015_v48 = vld [vmem:[#allocation3 + $0xa0] sm:$0xff]  ;;  %v4272_v44 = vld [vmem:[#allocation20 + $0x2ac] sm:$0xff] }
 0x904   : > { %10437 = vmatprep.subr.bf16.mxu1 %v4010_v46  ;;  %v5117_v43 = vld [vmem:[#allocation3 + $0x220] sm:$0xff]  ;;  %v3977_v46 = vld [vmem:[#allocation20 + $0x134] sm:$0xff] }
 0x905   : > { %v3908_v37 = vpop.permute.xlu0 %3907 }
 0x906   : > { %v3913_v53 = vsel %vm16499_vm7, %v14522_v25, %v3908_v37  ;;  %v4019_v9 = vld [vmem:[#allocation3 + $0xc0] sm:$0xff]  ;;  %v4020_v25 = vld [vmem:[#allocation3 + $0xc8] sm:$0xff]  ;;  %vm16503_vm7 = vmmov %vm16502_vm12 }
 0x907   : > { %3917 = vst.msk [vmem:[#allocation3 + $0xd0] sm:$0xff] %vm1277_vm9, %v3913_v53  ;;  %10438 = vmatpush3.bf16.msra.mxu1 %v4002_v35  ;;  %10487 = vmatprep.subr.bf16.mxu0 %v4019_v9  ;;  %v9779_v35 = vcombine.low %v4270_v32, %v4272_v44  ;;  %v4016_v53 = vld [vmem:[#allocation3 + $0xa8] sm:$0xff]  ;;  %v9793_v9 = vcombine.low %v3975_v20, %v3977_v46  ;;  %v3989_v32 = vld [vmem:[#allocation20 + $0x23c] sm:$0xff] }
 0x908   : > { %5223 = vmatprep.subr.bf16.mxu1 %v12603_v0 }
 0x909   : > { %v3820_v18 = vpop.permute.xlu0 %3819  ;;  %4627 = vmatmul.mubr.bf16.gmra.mrb[108].mxu0 %v9767_v33 }
 0x90a   : > { %v3825_v13 = vsel %vm16500_vm0, %v14535_v24, %v3820_v18  ;;  %4852 = vmatmul.mubr.bf16.vlgmr.msra.gmra.mrb[124].mxu1 %v11633_v39  ;;  %v4011_v12 = vld [vmem:[#allocation3 + $0x80] sm:$0xff]  ;;  %4634 = vmatprep.mubr.bf16.mxu0 %v11636_v40  ;;  %v5114_v24 = vld [vmem:[#allocation3 + $0x208] sm:$0xff]  ;;  %v4025_v40 = vld [vmem:[#allocation3 + $0xf0] sm:$0xff] }
 0x90b   : > { %3829 = vst.msk [vmem:[#allocation3 + $0x90] sm:$0xff] %vm1277_vm9, %v3825_v13  ;;  %10488 = vmatpush3.bf16.msra.mxu0 %v4011_v12  ;;  %5224 = vmatpush1.bf16.msra.mxu1 %v5113_v23  ;;  %v11657_v39 = vld [vmem:[#allocation20 + $0xc] ss:$44 sps:$4 sm:$0xff]   ;;  %v11653_v12 = vld [vmem:[#allocation20 + $0x164] ss:$44 sps:$4 sm:$0xff]   ;;  %vm16504_vm0 = vmmov %vm16503_vm7 }
 0x90c   : > { %10489 = vmatprep.subr.bf16.mxu0 %v4020_v25  ;;  %5225 = vmatprep.subr.bf16.mxu1 %v12603_v0  ;;  %v4017_v23 = vld [vmem:[#allocation3 + $0xb0] sm:$0xff] }
 0x90d   : > { %v5032_v57 = vpop.permute.xlu0 %5031  ;;  %4859 = vmatprep.mubr.bf16.mxu1 %v11638_v31 }
 0x90e   : > { %5036 = vst.msk [vmem:[#allocation3 + $0x218] sm:$0xff] %vm1277_vm9, %v5032_v57  ;;  %v4021_v11 = vld [vmem:[#allocation3 + $0xd0] sm:$0xff] }
 0x90f   : > { %10490 = vmatpush3.bf16.msra.mxu0 %v4012_v38  ;;  %5226 = vmatpush1.bf16.msra.mxu1 %v5114_v24  ;;  %v3981_v38 = vld [vmem:[#allocation20 + $0x18c] sm:$0xff] }
 0x910   : > { %10491 = vmatprep.subr.bf16.mxu0 %v4021_v11  ;;  %5227 = vmatprep.subr.bf16.mxu1 %v12603_v0  ;;  %v11655_v11 = vld [vmem:[#allocation20 + $0x8] ss:$44 sps:$4 sm:$0xff]  }
 0x911   : > { %v5413_v4 = vpop.permute.xlu0 %5412  ;;  %4635 = vmatmul.mubr.bf16.gmra.mrb[112].mxu0 %v11640_v58  ;;  %v11652_v58 = vld [vmem:[#allocation20 + $0x24] ss:$44 sps:$4 sm:$0xff]  }
 0x912   : > { %v5436_v42 = vmax.bf16 %v5413_v4, %v5396_v50  ;;  %v5437_v45 = vmax.bf16 %v5413_v4, %v5397_v47  ;;  %4860 = vmatmul.mubr.bf16.gmra.mrb[128].mxu1 %v11641_v16  ;;  %v4013_v22 = vld [vmem:[#allocation3 + $0x90] sm:$0xff]  ;;  %4642 = vmatprep.mubr.bf16.mxu0 %v11642_v28  ;;  %v11658_v50 = vld [vmem:[#allocation20 + $0x80] ss:$44 sps:$4 sm:$0xff]   ;;  %v11660_v47 = vld [vmem:[#allocation20 + $0x7c] ss:$44 sps:$4 sm:$0xff]  }
 0x913   : > { %10492 = vmatpush3.bf16.msra.mxu0 %v4013_v22  ;;  %5228 = vmatpush1.bf16.msra.mxu1 %v5115_v41  ;;  %v3983_v22 = vld [vmem:[#allocation20 + $0x1b8] sm:$0xff]  ;;  %v3985_v41 = vld [vmem:[#allocation20 + $0x1e4] sm:$0xff] }
 0x914   : > { %10493 = vmatprep.subr.bf16.mxu0 %v4022_v55  ;;  %v5453_v2 = vsel %vm3048_vm2, %v5437_v45, 0  ;;  %v5452_v36 = vsel %vm3048_vm2, %v5436_v42, 0  ;;  %5229 = vmatprep.subr.bf16.mxu1 %v12603_v0  ;;  %v11666_v42 = vld [vmem:[#allocation20 + $0x64] ss:$44 sps:$4 sm:$0xff]  }
 0x915   : > { %5498 = vrot.lane.b32.xlu0 %v5453_v2, %s16444_s0  ;;  %5496 = vrot.lane.b32.xlu1 %v5452_v36, %s16444_s0  ;;  %v3956_v51 = vpop.permute.xlu0 %3955  ;;  %v5116_v8 = vld [vmem:[#allocation3 + $0x218] sm:$0xff]  ;;  %v3970_v55 = vld [vmem:[#allocation20 + $0x8c] sm:$0xff]  ;;  %v9801_v36 = vcombine.low %v3983_v22, %v3985_v41 }
 0x916   : > { %v3958_v62 = vsel %vm16497_vm5, %v14614_v34, %v3956_v51  ;;  %4867 = vmatprep.mubr.bf16.mxu1 %v11644_v54  ;;  %v11661_v45 = vld [vmem:[#allocation20 + $0xd8] ss:$44 sps:$4 sm:$0xff]   ;;  %vm16505_vm5 = vmmov %vm16504_vm0  ;;  %v5779_v41 = vld [vmem:[#allocation21 + $0x8] sm:$0xff] }
 0x917   : > { %3962 = vst.msk [vmem:[#allocation3 + $0xf8] sm:$0xff] %vm1277_vm9, %v3958_v62  ;;  %10494 = vmatpush3.bf16.msra.mxu0 %v4014_v6  ;;  %5230 = vmatpush1.bf16.msra.mxu1 %v5116_v8  ;;  %v3968_v54 = vld [vmem:[#allocation20 + $0x60] sm:$0xff]  ;;  %v5119_v2 = vld [vmem:[#allocation3 + $0x230] sm:$0xff]  ;;  %v5475_v62 = vpop.permute.xlu1 %5474 }
 0x918   : > { %10495 = vmatprep.subr.bf16.mxu0 %v4023_v49  ;;  %5231 = vmatprep.subr.bf16.mxu1 %v12603_v0  ;;  %v9787_v51 = vcombine.low %v3968_v54, %v3970_v55  ;;  %v11668_v8 = vld [vmem:[#allocation20 + $0x130] ss:$44 sps:$4 sm:$0xff]   ;;  %v3982_v22 = vld [vmem:[#allocation20 + $0x194] sm:$0xff] }
 0x919   : > { %v3868_v19 = vpop.permute.xlu0 %3867  ;;  %4643 = vmatmul.mubr.bf16.gmra.mrb[116].mxu0 %v9775_v5  ;;  %v11670_v5 = vld [vmem:[#allocation20 + $0x12c] ss:$44 sps:$4 sm:$0xff]  }
 0x91a   : > { %v3870_v34 = vsel %vm1205_vm14, %v14622_v26, %v3868_v19  ;;  %4868 = vmatmul.mubr.bf16.gmra.mrb[132].mxu1 %v9789_v30  ;;  %4650 = vmatprep.mubr.bf16.mxu0 %v11646_v21  ;;  %v11674_v30 = vld [vmem:[#allocation20 + $0x214] ss:$44 sps:$4 sm:$0xff]   ;;  %v11676_v21 = vld [vmem:[#allocation20 + $0xbc] ss:$44 sps:$4 sm:$0xff]  }
 0x91b   : > { %3874 = vst.msk [vmem:[#allocation3 + $0xb8] sm:$0xff] %vm1277_vm9, %v3870_v34  ;;  %10496 = vmatpush3.bf16.msra.mxu0 %v4015_v48  ;;  %5232 = vmatpush1.bf16.msra.mxu1 %v5117_v43  ;;  %v11671_v19 = vld [vmem:[#allocation20 + $0x188] ss:$44 sps:$4 sm:$0xff]   ;;  %v3972_v34 = vld [vmem:[#allocation20 + $0xb8] sm:$0xff]  ;;  %v11673_v43 = vld [vmem:[#allocation20 + $0x184] ss:$44 sps:$4 sm:$0xff]  }
 0x91c   : > { %10497 = vmatprep.subr.bf16.mxu0 %v4024_v17  ;;  %4875 = vmatprep.mubr.bf16.mxu1 %v11648_v15  ;;  %v3974_v48 = vld [vmem:[#allocation20 + $0xe4] sm:$0xff] }
 0x91d   : > { %v5375_v37 = vpop.permute.xlu0 %5374  ;;  %5233 = vmatprep.subr.bf16.mxu1 %v12603_v0  ;;  %v5121_v17 = vld [vmem:[#allocation3 + $0x240] sm:$0xff]  ;;  %v9791_v46 = vcombine.low %v3972_v34, %v3974_v48  ;;  %v5780_v34 = vld [vmem:[#allocation21 + $0x10] sm:$0xff] }
 0x91e   : > { %v5398_v33 = vmax.bf16 %v5375_v37, %v5350_v10  ;;  %v5399_v26 = vmax.bf16 %v5375_v37, %v14469_v63  ;;  %v4026_v57 = vld [vmem:[#allocation3 + $0xf8] sm:$0xff]  ;;  %v3987_v10 = vld [vmem:[#allocation20 + $0x210] sm:$0xff] }
 0x91f   : > { %10498 = vmatpush3.bf16.msra.mxu0 %v4016_v53  ;;  %v9805_v20 = vcombine.low %v3987_v10, %v3989_v32  ;;  %v11678_v37 = vld [vmem:[#allocation20 + $0x1e0] ss:$44 sps:$4 sm:$0xff]   ;;  %v11681_v53 = vld [vmem:[#allocation20 + $0x238] ss:$44 sps:$4 sm:$0xff]   ;;  %v11699_v32 = vld [vmem:[#allocation20 + $0x7c] ss:$44 sps:$4 sm:$0xff]  }
 0x920   : > { %10499 = vmatprep.subr.bf16.mxu0 %v4025_v40  ;;  %v5439_v18 = vmax.bf16 %v14686_v29, %v5399_v26  ;;  %v5438_v31 = vmax.bf16 %v14686_v29, %v5398_v33  ;;  %v3979_v29 = vld [vmem:[#allocation20 + $0x160] sm:$0xff]  ;;  %v5477_v33 = vpop.permute.xlu1 %5476  ;;  %v5781_v10 = vld [vmem:[#allocation21 + $0x18] sm:$0xff] }
 0x921   : > { %v5044_v13 = vpop.permute.xlu0 %5043  ;;  %4651 = vmatmul.mubr.bf16.gmra.mrb[120].mxu0 %v9779_v35  ;;  %v9797_v28 = vcombine.low %v3979_v29, %v3981_v38  ;;  %v11680_v35 = vld [vmem:[#allocation20 + $0x1dc] ss:$44 sps:$4 sm:$0xff]   ;;  %v5123_v38 = vld [vmem:[#allocation3 + $0x250] sm:$0xff] }
 0x922   : > { %5048 = vst.msk [vmem:[#allocation3 + $0x228] sm:$0xff] %vm1277_vm9, %v5044_v13  ;;  %4876 = vmatmul.mubr.bf16.gmra.mrb[136].mxu1 %v9793_v9  ;;  %v5455_v63 = vsel %vm3048_vm2, %v5439_v18, 0  ;;  %v5454_v25 = vsel %vm3048_vm2, %v5438_v31, 0  ;;  %4948 = vmatprep.mubr.bf16.mxu0 %v11657_v39  ;;  %v4018_v24 = vld [vmem:[#allocation3 + $0xb8] sm:$0xff]  ;;  %v3991_v9 = vld [vmem:[#allocation20 + $0x268] sm:$0xff] }
 0x923   : > { %10500 = vmatpush3.bf16.msra.mxu0 %v4017_v23  ;;  %5502 = vrot.lane.b32.xlu0 %v5455_v63, %s16444_s0  ;;  %v11684_v39 = vld [vmem:[#allocation20 + $0x26c] ss:$44 sps:$4 sm:$0xff]   ;;  %v11686_v13 = vld [vmem:[#allocation20 + $0x114] ss:$44 sps:$4 sm:$0xff]  }
 0x924   : > { %5500 = vrot.lane.b32.xlu1 %v5454_v25, %s16444_s0  ;;  %10501 = vmatprep.subr.bf16.mxu0 %v4026_v57  ;;  %v3976_v23 = vld [vmem:[#allocation20 + $0x110] sm:$0xff]  ;;  %v3978_v63 = vld [vmem:[#allocation20 + $0x13c] sm:$0xff] }
 0x925   : > { %v5056_v16 = vpop.permute.xlu0 %5055  ;;  %4883 = vmatprep.mubr.bf16.mxu1 %v11653_v12  ;;  %v3993_v12 = vld [vmem:[#allocation20 + $0x294] sm:$0xff] }
 0x926   : > { %5060 = vst.msk [vmem:[#allocation3 + $0x238] sm:$0xff] %vm1277_vm9, %v5056_v16  ;;  %v11683_v25 = vld [vmem:[#allocation20 + $0x234] ss:$44 sps:$4 sm:$0xff]   ;;  %v9795_v16 = vcombine.low %v3976_v23, %v3978_v63  ;;  %v11710_v23 = vld [vmem:[#allocation20 + $0x270] ss:$44 sps:$4 sm:$0xff]  }
 0x927   : > { %10502 = vmatpush3.bf16.msra.mxu0 %v4018_v24  ;;  %5618 = vrot.lane.b32.xlu0 %v11650_v7, %s16501_s27  ;;  %v5481_v7 = vpop.permute.xlu1 %5480  ;;  %v11688_v24 = vld [vmem:[#allocation20 + $0x290] ss:$44 sps:$4 sm:$0xff]  }
 0x928   : > { %5616 = vrot.lane.b32.xlu1 %v11652_v58, %s16501_s27  ;;  %v9809_v58 = vcombine.low %v3991_v9, %v3993_v12  ;;  %v11708_v9 = vld [vmem:[#allocation20 + $0x274] ss:$44 sps:$4 sm:$0xff]   ;;  %v5897_v63 = vld [vmem:[#allocation23 + $0x38] sm:$0xff] }
 0x929   : > { %v5068_v4 = vpop.permute.xlu0 %5067  ;;  %v5118_v27 = vld [vmem:[#allocation3 + $0x228] sm:$0xff] }
 0x92a   : > { %5072 = vst.msk [vmem:[#allocation3 + $0x248] sm:$0xff] %vm1277_vm9, %v5068_v4  ;;  %4884 = vmatmul.mubr.bf16.gmra.mrb[140].mxu1 %v9797_v28  ;;  %4949 = vmatmul.mubr.bf16.vlgmr.msra.gmra.mrb[124].mxu0 %v11655_v11  ;;  %v11690_v11 = vld [vmem:[#allocation20 + $0x28c] ss:$44 sps:$4 sm:$0xff]   ;;  %v5784_v12 = vld [vmem:[#allocation21 + $0x30] sm:$0xff] }
 0x92b   : > { %5234 = vmatpush1.bf16.msra.mxu1 %v5118_v27  ;;  %5622 = vrot.lane.b32.xlu0 %v11658_v50, %s16501_s27  ;;  %v5485_v28 = vpop.permute.xlu1 %5484 }
 0x92c   : > { %5620 = vrot.lane.b32.xlu1 %v11660_v47, %s16501_s27  ;;  %5235 = vmatprep.subr.bf16.mxu1 %v12603_v0  ;;  %v11691_v47 = vld [vmem:[#allocation20 + $0x16c] ss:$44 sps:$4 sm:$0xff]  }
 0x92d   : > { %v5080_v56 = vpop.permute.xlu0 %5079  ;;  %4891 = vmatprep.mubr.bf16.mxu1 %v11664_v14  ;;  %4956 = vmatprep.mubr.bf16.mxu0 %v11666_v42  ;;  %v5120_v15 = vld [vmem:[#allocation3 + $0x238] sm:$0xff]  ;;  %v11695_v42 = vld [vmem:[#allocation20 + $0x24] ss:$44 sps:$4 sm:$0xff]  }
 0x92e   : > { %5084 = vst.msk [vmem:[#allocation3 + $0x258] sm:$0xff] %vm1277_vm9, %v5080_v56 }
 0x92f   : > { %5236 = vmatpush1.bf16.msra.mxu1 %v5119_v2  ;;  %5626 = vrot.lane.b32.xlu0 %v11661_v45, %s16501_s27  ;;  %v3980_v45 = vld [vmem:[#allocation20 + $0x168] sm:$0xff] }
 0x930   : > { %5624 = vrot.lane.b32.xlu1 %v11663_v60, %s16501_s27  ;;  %5237 = vmatprep.subr.bf16.mxu1 %v12603_v0  ;;  %v5778_v60 = vld [vmem:[#allocation21] sm:$0xff] }
 0x931   : > { %v5473_v6 = vpop.permute.xlu0 %5472  ;;  %v5122_v18 = vld [vmem:[#allocation3 + $0x248] sm:$0xff]  ;;  %v5125_v2 = vld [vmem:[#allocation3 + $0x260] sm:$0xff] }
 0x932   : > { %v5504_v49 = vsel %vm16502_vm12, %v5473_v6, %v5475_v62  ;;  %4892 = vmatmul.mubr.bf16.gmra.mrb[144].mxu1 %v9801_v36  ;;  %4957 = vmatmul.mubr.bf16.gmra.mrb[128].mxu0 %v9787_v51  ;;  %vm16506_vm12 = vmmov %vm16504_vm0  ;;  %v9799_v51 = vcombine.low %v3980_v45, %v3982_v22  ;;  %v5890_v6 = vld [vmem:[#allocation23] sm:$0xff]  ;;  %v5903_v22 = vld [vmem:[#allocation23 + $0x68] sm:$0xff] }
 0x933   : > { %5520 = vst.msk [vmem:[#allocation3 + $0x270] sm:$0xff] %vm1277_vm9, %v5504_v49  ;;  %5238 = vmatpush1.bf16.msra.mxu1 %v5120_v15  ;;  %5630 = vrot.lane.b32.xlu0 %v11668_v8, %s16501_s27  ;;  %v5891_v8 = vld [vmem:[#allocation23 + $0x8] sm:$0xff]  ;;  %v5790_v45 = vld [vmem:[#allocation21 + $0x60] sm:$0xff] }
 0x934   : > { %5628 = vrot.lane.b32.xlu1 %v11670_v5, %s16501_s27  ;;  %5239 = vmatprep.subr.bf16.mxu1 %v12603_v0 }
 0x935   : > { %v5092_v44 = vpop.permute.xlu0 %5091  ;;  %4899 = vmatprep.mubr.bf16.mxu1 %v11674_v30  ;;  %4964 = vmatprep.mubr.bf16.mxu0 %v11676_v21  ;;  %v5124_v27 = vld [vmem:[#allocation3 + $0x258] sm:$0xff]  ;;  %v11696_v30 = vld [vmem:[#allocation20 + $0x1c4] ss:$44 sps:$4 sm:$0xff]  }
 0x936   : > { %5096 = vst.msk [vmem:[#allocation3 + $0x268] sm:$0xff] %vm1277_vm9, %v5092_v44  ;;  %v5893_v44 = vld [vmem:[#allocation23 + $0x18] sm:$0xff] }
 0x937   : > { %5240 = vmatpush1.bf16.msra.mxu1 %v5121_v17  ;;  %5634 = vrot.lane.b32.xlu0 %v11671_v19, %s16501_s27  ;;  %v5489_v54 = vpop.permute.xlu1 %5488  ;;  %v11693_v19 = vld [vmem:[#allocation20 + $0x20] ss:$44 sps:$4 sm:$0xff]   ;;  %v11702_v17 = vld [vmem:[#allocation20 + $0x21c] ss:$44 sps:$4 sm:$0xff]  }
 0x938   : > { %5632 = vrot.lane.b32.xlu1 %v11673_v43, %s16501_s27  ;;  %5241 = vmatprep.subr.bf16.mxu1 %v12603_v0  ;;  %v11698_v43 = vld [vmem:[#allocation20 + $0x1c0] ss:$44 sps:$4 sm:$0xff]  }
 0x939   : > { %v5479_v26 = vpop.permute.xlu0 %5478 }
 0x93a   : > { %v5505_v40 = vsel %vm16503_vm7, %v5477_v33, %v5479_v26  ;;  %4900 = vmatmul.mubr.bf16.gmra.mrb[148].mxu1 %v9805_v20  ;;  %4965 = vmatmul.mubr.bf16.gmra.mrb[132].mxu0 %v9791_v46  ;;  %v5544_v31 = vld [vmem:[#allocation3 + $0x270] sm:$0xff]  ;;  %vm16507_vm7 = vcmask 785408   ;;  %v5783_v33 = vld [vmem:[#allocation21 + $0x28] sm:$0xff]  ;;  %v5782_v26 = vld [vmem:[#allocation21 + $0x20] sm:$0xff] }
 0x93b   : > { %5521 = vst.msk [vmem:[#allocation3 + $0x278] sm:$0xff] %vm1277_vm9, %v5505_v40  ;;  %5242 = vmatpush1.bf16.msra.mxu1 %v5122_v18  ;;  %5638 = vrot.lane.b32.xlu0 %v11678_v37, %s16501_s27  ;;  %v5892_v20 = vld [vmem:[#allocation23 + $0x10] sm:$0xff]  ;;  %v11701_v37 = vld [vmem:[#allocation20 + $0x78] ss:$44 sps:$4 sm:$0xff]  }
 0x93c   : > { %5636 = vrot.lane.b32.xlu1 %v11680_v35, %s16501_s27  ;;  %10944 = vmatprep.subr.bf16.mxu0 %v5544_v31  ;;  %v11705_v35 = vld [vmem:[#allocation20 + $0xd4] ss:$44 sps:$4 sm:$0xff]   ;;  %v11707_v18 = vld [vmem:[#allocation20 + $0xd0] ss:$44 sps:$4 sm:$0xff]  }
 0x93d   : > { %10945 = vmatpush3.bf16.msra.mxu0 %v5544_v31  ;;  %5243 = vmatprep.subr.bf16.mxu1 %v12603_v0  ;;  %v5483_v57 = vpop.permute.xlu0 %5482  ;;  %v5126_v49 = vld [vmem:[#allocation3 + $0x268] sm:$0xff]  ;;  %v5894_v40 = vld [vmem:[#allocation23 + $0x20] sm:$0xff] }
 0x93e   : > { %v5506_v29 = vsel %vm16504_vm0, %v5481_v7, %v5483_v57  ;;  %4907 = vmatprep.mubr.bf16.mxu1 %v11684_v39  ;;  %4972 = vmatprep.mubr.bf16.mxu0 %v11686_v13  ;;  %v5895_v39 = vld [vmem:[#allocation23 + $0x28] sm:$0xff]  ;;  %v5785_v13 = vld [vmem:[#allocation21 + $0x38] sm:$0xff]  ;;  %v11714_v57 = vld [vmem:[#allocation20 + $0x184] ss:$44 sps:$4 sm:$0xff]  }
 0x93f   : > { %5522 = vst.msk [vmem:[#allocation3 + $0x280] sm:$0xff] %vm1277_vm9, %v5506_v29  ;;  %5244 = vmatpush1.bf16.msra.mxu1 %v5123_v38  ;;  %5642 = vrot.lane.b32.xlu0 %v11681_v53, %s16501_s27  ;;  %v11704_v53 = vld [vmem:[#allocation20 + $0x218] ss:$44 sps:$4 sm:$0xff]   ;;  %v11713_v7 = vld [vmem:[#allocation20 + $0x128] ss:$44 sps:$4 sm:$0xff]  }
 0x940   : > { %5640 = vrot.lane.b32.xlu1 %v11683_v25, %s16501_s27  ;;  %5245 = vmatprep.subr.bf16.mxu1 %v12603_v0  ;;  %v11711_v31 = vld [vmem:[#allocation20 + $0x12c] ss:$44 sps:$4 sm:$0xff]   ;;  %v5896_v25 = vld [vmem:[#allocation23 + $0x30] sm:$0xff]  ;;  %v5786_v38 = vld [vmem:[#allocation21 + $0x40] sm:$0xff] }
 0x941   : > { %v5487_v50 = vpop.permute.xlu0 %5486  ;;  %v5787_v29 = vld [vmem:[#allocation21 + $0x48] sm:$0xff] }
 0x942   : > { %v5507_v4 = vsel %vm16505_vm5, %v5485_v28, %v5487_v50  ;;  %4908 = vmatmul.mubr.bf16.gmra.mrb[152].mxu1 %v9809_v58  ;;  %4973 = vmatmul.mubr.bf16.gmra.mrb[136].mxu0 %v9795_v16  ;;  %v5545_v14 = vld [vmem:[#allocation3 + $0x278] sm:$0xff]  ;;  %vm16508_vm5 = vmmov %vm16507_vm7  ;;  %v5899_v58 = vld [vmem:[#allocation23 + $0x48] sm:$0xff] }
 0x943   : > { %5523 = vst.msk [vmem:[#allocation3 + $0x288] sm:$0xff] %vm1277_vm9, %v5507_v4  ;;  %5246 = vmatpush1.bf16.msra.mxu1 %v5124_v27  ;;  %5646 = vrot.lane.b32.xlu0 %v11688_v24, %s16501_s27  ;;  %v5898_v16 = vld [vmem:[#allocation23 + $0x40] sm:$0xff]  ;;  %v5789_v28 = vld [vmem:[#allocation21 + $0x58] sm:$0xff]  ;;  %v5788_v50 = vld [vmem:[#allocation21 + $0x50] sm:$0xff] }
 0x944   : > { %5644 = vrot.lane.b32.xlu1 %v11690_v11, %s16501_s27  ;;  %10946 = vmatprep.subr.bf16.mxu0 %v5545_v14  ;;  %v11716_v24 = vld [vmem:[#allocation20 + $0x180] ss:$44 sps:$4 sm:$0xff]   ;;  %v11717_v11 = vld [vmem:[#allocation20 + $0x1dc] ss:$44 sps:$4 sm:$0xff]   ;;  %v5900_v4 = vld [vmem:[#allocation23 + $0x50] sm:$0xff]  ;;  %s16527_s27 = smov 117  }
 0x945   : > { %10947 = vmatpush3.bf16.msra.mxu0 %v5545_v14  ;;  %5247 = vmatprep.subr.bf16.mxu1 %v12603_v0  ;;  %v5491_v55 = vpop.permute.xlu0 %5490  ;;  %v5493_v5 = vpop.permute.xlu1 %5492  ;;  %v11719_v27 = vld [vmem:[#allocation20 + $0x1d8] ss:$44 sps:$4 sm:$0xff]   ;;  %v11720_v14 = vld [vmem:[#allocation20 + $0x234] ss:$44 sps:$4 sm:$0xff]  }
 0x946   : > { %v5508_v56 = vsel %vm16506_vm12, %v5489_v54, %v5491_v55  ;;  %v5546_v36 = vld [vmem:[#allocation3 + $0x280] sm:$0xff]  ;;  %4980 = vmatprep.mubr.bf16.mxu0 %v11691_v47  ;;  %9829 = vmatprep.mubr.msk.bf16.mxu1 %vm16507_vm7, %v11695_v42  ;;  %vm16509_vm12 = vmmov %vm16508_vm5  ;;  %v5901_v47 = vld [vmem:[#allocation23 + $0x58] sm:$0xff] }
 0x947   : > { %5524 = vst.msk [vmem:[#allocation3 + $0x290] sm:$0xff] %vm1277_vm9, %v5508_v56  ;;  %5248 = vmatpush1.bf16.msra.mxu1 %v5125_v2  ;;  %5801 = vperm.xlu0 %11490, %v5779_v41   ;;  %vm16510_vm7 = vmmov %vm16508_vm5  ;;  %v5791_v42 = vld [vmem:[#allocation21 + $0x68] sm:$0xff]  ;;  %v5902_v41 = vld [vmem:[#allocation23 + $0x60] sm:$0xff] }
 0x948   : > { %5796 = vperm.xlu1 %11491, %v5778_v60   ;;  %10948 = vmatprep.subr.bf16.mxu0 %v5546_v36  ;;  %v11722_v54 = vld [vmem:[#allocation20 + $0x230] ss:$44 sps:$4 sm:$0xff]   ;;  %v11723_v55 = vld [vmem:[#allocation20 + $0x28c] ss:$44 sps:$4 sm:$0xff]  }
 0x949   : > { %10949 = vmatpush3.bf16.msra.mxu0 %v5546_v36  ;;  %5249 = vmatprep.subr.bf16.mxu1 %v12603_v0  ;;  %v5495_v62 = vpop.permute.xlu0 %5494  ;;  %v5793_v60 = vld [vmem:[#allocation21 + $0x78] sm:$0xff]  ;;  %v5792_v56 = vld [vmem:[#allocation21 + $0x70] sm:$0xff] }
 0x94a   : > { %v5509_v21 = vsel %vm16504_vm0, %v5493_v5, %v5495_v62  ;;  %4981 = vmatmul.mubr.bf16.gmra.mrb[140].mxu0 %v9799_v51  ;;  %v5547_v15 = vld [vmem:[#allocation3 + $0x288] sm:$0xff]  ;;  %vm16511_vm0 = vmmov %vm16508_vm5  ;;  %v5905_v5 = vld [vmem:[#allocation23 + $0x78] sm:$0xff] }
 0x94b   : > { %5525 = vst.msk [vmem:[#allocation3 + $0x298] sm:$0xff] %vm1277_vm9, %v5509_v21  ;;  %5250 = vmatpush1.bf16.msra.mxu1 %v5126_v49  ;;  %5913 = vperm.xlu0 %11490, %v5891_v8   ;;  %v11725_v21 = vld [vmem:[#allocation20 + $0x288] ss:$44 sps:$4 sm:$0xff]  }
 0x94c   : > { %5908 = vperm.xlu1 %11491, %v5890_v6   ;;  %10950 = vmatprep.subr.bf16.mxu0 %v5547_v15  ;;  %v5904_v6 = vld [vmem:[#allocation23 + $0x70] sm:$0xff] }
 0x94d   : > { %10951 = vmatpush3.bf16.msra.mxu0 %v5547_v15  ;;  %4988 = vmatprep.mubr.bf16.mxu0 %v11696_v30 }
 0x94e   : > { %5256 = vmatmul.mubr.bf16.vlgmr.msra.gmra.mrb[156].mxu1 %v11693_v19  ;;  %v5548_v48 = vld [vmem:[#allocation3 + $0x290] sm:$0xff] }
 0x94f   : > { %5811 = vperm.xlu0 %11490, %v5781_v10   ;;  %10952 = vmatprep.subr.bf16.mxu0 %v5548_v48 }
 0x950   : > { %5806 = vperm.xlu1 %11491, %v5780_v34   ;;  %9830 = vmatprep.mubr.msk.bf16.mxu1 %vm16508_vm5, %v11699_v32  ;;  %vm16512_vm5 = vmmov %vm16511_vm0 }
 0x951   : > { %10953 = vmatpush3.bf16.msra.mxu0 %v5548_v48 }
 0x952   : > { %4989 = vmatmul.mubr.bf16.gmra.mrb[144].mxu0 %v11698_v43  ;;  %v5549_v46 = vld [vmem:[#allocation3 + $0x298] sm:$0xff] }
 0x953   : > { %5923 = vperm.xlu0 %11490, %v5893_v44   ;;  %10954 = vmatprep.subr.bf16.mxu0 %v5549_v46 }
 0x954   : > { %5918 = vperm.xlu1 %11491, %v5892_v20   ;;  %4996 = vmatprep.mubr.bf16.mxu0 %v11702_v17 }
 0x955   : > { %10955 = vmatpush3.bf16.msra.mxu0 %v5549_v46 }
 0x956   : > { %5264 = vmatmul.mubr.bf16.gmra.mrb[160].mxu1 %v11701_v37 }
 0x957   : > { %5821 = vperm.xlu0 %11490, %v5783_v33   ;;  %9831 = vmatprep.mubr.msk.bf16.mxu1 %vm16509_vm12, %v11705_v35  ;;  %vm16513_vm12 = vmmov %vm16511_vm0 }
 0x958   : > { %5816 = vperm.xlu1 %11491, %v5782_v26  }
 0x95a   : > { %4997 = vmatmul.mubr.bf16.gmra.mrb[148].mxu0 %v11704_v53 }
 0x95b   : > { %5933 = vperm.xlu0 %11490, %v5895_v39   ;;  %5004 = vmatprep.mubr.bf16.mxu0 %v11708_v9 }
 0x95c   : > { %5928 = vperm.xlu1 %11491, %v5894_v40  }
 0x95e   : > { %5272 = vmatmul.mubr.bf16.gmra.mrb[164].mxu1 %v11707_v18 }
 0x95f   : > { %5831 = vperm.xlu0 %11490, %v5785_v13   ;;  %9832 = vmatprep.mubr.msk.bf16.mxu1 %vm16510_vm7, %v11711_v31  ;;  %vm16514_vm7 = vmmov %vm16511_vm0 }
 0x960   : > { %5826 = vperm.xlu1 %11491, %v5784_v12  }
 0x962   : > { %5005 = vmatmul.mubr.bf16.gmra.mrb[152].mxu0 %v11710_v23 }
 0x963   : > { %5943 = vperm.xlu0 %11490, %v5897_v63  }
 0x964   : > { %5938 = vperm.xlu1 %11491, %v5896_v25  }
 0x966   : > { %5280 = vmatmul.mubr.bf16.gmra.mrb[168].mxu1 %v11713_v7 }
 0x967   : > { %5841 = vperm.xlu0 %11490, %v5787_v29   ;;  %9833 = vmatprep.mubr.msk.bf16.mxu1 %vm16511_vm0, %v11714_v57  ;;  %vm16515_vm0 = vcmask 7168  }
 0x968   : > { %5836 = vperm.xlu1 %11491, %v5786_v38  }
 0x96b   : > { %5953 = vperm.xlu0 %11490, %v5899_v58  }
 0x96c   : > { %5948 = vperm.xlu1 %11491, %v5898_v16  }
 0x96e   : > { %5288 = vmatmul.mubr.bf16.gmra.mrb[172].mxu1 %v11716_v24 }
 0x96f   : > { %5851 = vperm.xlu0 %11490, %v5789_v28   ;;  %9834 = vmatprep.mubr.msk.bf16.mxu1 %vm16512_vm5, %v11717_v11  ;;  %vm16516_vm5 = vmmov %vm16515_vm0 }
 0x970   : > { %5846 = vperm.xlu1 %11491, %v5788_v50  }
 0x973   : > { %5963 = vperm.xlu0 %11490, %v5901_v47  }
 0x974   : > { %5958 = vperm.xlu1 %11491, %v5900_v4  }
 0x976   : > { %5296 = vmatmul.mubr.bf16.gmra.mrb[176].mxu1 %v11719_v27 }
 0x977   : > { %5861 = vperm.xlu0 %11490, %v5791_v42   ;;  %9835 = vmatprep.mubr.msk.bf16.mxu1 %vm16513_vm12, %v11720_v14  ;;  %vm16334_vm12 = vcmask 261120  }
 0x978   : > { %5856 = vperm.xlu1 %11491, %v5790_v45  }
 0x97b   : > { %5973 = vperm.xlu0 %11490, %v5903_v22  }
 0x97c   : > { %5968 = vperm.xlu1 %11491, %v5902_v41  }
 0x97d   : > { %v10311_v2 = vpop.f32.mrb[92].mxu1 }
 0x97e   : > { %5304 = vmatmul.mubr.bf16.gmra.mrb[180].mxu1 %v11722_v54  ;;  %v10312_v36 = vpop.f32.mrb[93].mxu1 }
 0x97f   : > { %5871 = vperm.xlu0 %11490, %v5793_v60   ;;  %9836 = vmatprep.mubr.msk.bf16.mxu1 %vm16514_vm7, %v11723_v55  ;;  %v14809_v51 = vadd.f32 %v10312_v36, %v10311_v2  ;;  %v10314_v8 = vpop.f32.mrb[94].mxu1  ;;  %vm16517_vm7 = vcmp.ne.s16.totalorder %v13747_v61, 0 }
 0x980   : > { %5866 = vperm.xlu1 %11491, %v5792_v56   ;;  %v10315_v62 = vpop.f32.mrb[95].mxu1 }
 0x981   : > { %v14811_v30 = vadd.f32 %v10315_v62, %v10314_v8 }
 0x983   : > { %5983 = vperm.xlu0 %11490, %v5905_v5  }
 0x984   : > { %5978 = vperm.xlu1 %11491, %v5904_v6  }
 0x985   : > { %v10317_v10 = vpop.f32.mrb[96].mxu1 }
 0x986   : > { %5312 = vmatmul.mubr.bf16.gmra.mrb[184].mxu1 %v11725_v21  ;;  %v10318_v32 = vpop.f32.mrb[97].mxu1 }
 0x987   : > { %v5497_v49 = vpop.permute.xlu1 %5496  ;;  %v5499_v15 = vpop.permute.xlu0 %5498  ;;  %v14815_v34 = vadd.f32 %v10318_v32, %v10317_v10 }
 0x988   : > { %v5510_v19 = vsel %vm16515_vm0, %v5497_v49, %v5499_v15  ;;  %v10320_v48 = vpop.f32.mrb[98].mxu1  ;;  %vm16518_vm0 = vmmov %vm16517_vm7 }
 0x989   : > { %5526 = vst.msk [vmem:[#allocation3 + $0x2a0] sm:$0xff] %vm1277_vm9, %v5510_v19  ;;  %v10321_v43 = vpop.f32.mrb[99].mxu1 }
 0x98a   : > { %v14817_v44 = vadd.f32 %v10321_v43, %v10320_v48 }
 0x98d   : > { %v10323_v17 = vpop.f32.mrb[100].mxu1 }
 0x98e   : > { %v10324_v46 = vpop.f32.mrb[101].mxu1 }
 0x98f   : > { %v14819_v37 = vadd.f32 %v10324_v46, %v10323_v17  ;;  %v10326_v35 = vpop.f32.mrb[102].mxu1 }
 0x990   : > { %v5550_v20 = vld [vmem:[#allocation3 + $0x2a0] sm:$0xff]  ;;  %v10327_v33 = vpop.f32.mrb[103].mxu1 }
 0x991   : > { %10956 = vmatprep.subr.bf16.mxu0 %v5550_v20  ;;  %v14821_v26 = vadd.f32 %v10327_v33, %v10326_v35 }
 0x992   : > { %10957 = vmatpush3.bf16.msra.mxu0 %v5550_v20 }
 0x995   : > { %v5503_v53 = vpop.permute.xlu0 %5502  ;;  %v10329_v40 = vpop.f32.mrb[104].mxu1 }
 0x996   : > { %v5501_v9 = vpop.permute.xlu1 %5500  ;;  %v10330_v18 = vpop.f32.mrb[105].mxu1 }
 0x997   : > { %v5511_v39 = vsel %vm16516_vm5, %v5501_v9, %v5503_v53  ;;  %v14825_v13 = vadd.f32 %v10330_v18, %v10329_v40  ;;  %v10332_v12 = vpop.f32.mrb[106].mxu1  ;;  %vm16519_vm5 = vmmov %vm16518_vm0 }
 0x998   : > { %5527 = vst.msk [vmem:[#allocation3 + $0x2a8] sm:$0xff] %vm1277_vm9, %v5511_v39  ;;  %v10333_v63 = vpop.f32.mrb[107].mxu1 }
 0x999   : > { %v5619_v31 = vpop.permute.xlu0 %5618  ;;  %v14828_v7 = vadd.f32 %v10333_v63, %v10332_v12 }
 0x99a   : > { %v5617_v23 = vpop.permute.xlu1 %5616 }
 0x99b   : > { %v5649_v25 = vsel %vm16334_vm12, %v5617_v23, %v5619_v31 }
 0x99c   : > { %10960 = vmatprep.mubr.bf16.mxu0 %v5649_v25 }
 0x99d   : > { %v5623_v57 = vpop.permute.xlu0 %5622  ;;  %v10335_v58 = vpop.f32.mrb[108].mxu1 }
 0x99e   : > { %v5621_v29 = vpop.permute.xlu1 %5620  ;;  %v10336_v16 = vpop.f32.mrb[109].mxu1 }
 0x99f   : > { %v5551_v38 = vld [vmem:[#allocation3 + $0x2a8] sm:$0xff]  ;;  %v5650_v24 = vsel %vm16334_vm12, %v5621_v29, %v5623_v57  ;;  %v14831_v28 = vadd.f32 %v10336_v16, %v10335_v58  ;;  %v10338_v50 = vpop.f32.mrb[110].mxu1 }
 0x9a0   : > { %10958 = vmatprep.subr.bf16.mxu0 %v5551_v38  ;;  %v10339_v4 = vpop.f32.mrb[111].mxu1 }
 0x9a1   : > { %10959 = vmatpush3.bf16.msra.mxu0 %v5551_v38  ;;  %v5627_v11 = vpop.permute.xlu0 %5626  ;;  %v14834_v14 = vadd.f32 %v10339_v4, %v10338_v50 }
 0x9a2   : > { %v5625_v47 = vpop.permute.xlu1 %5624 }
 0x9a3   : > { %v5651_v27 = vsel %vm16334_vm12, %v5625_v47, %v5627_v11 }
 0x9a4   : > { %10961 = vmatmul.mubr.bf16.vlgmr.msra.gmra.mrb[156].mxu0 %v5650_v24 }
 0x9a5   : > { %10964 = vmatprep.mubr.bf16.mxu0 %v5651_v27  ;;  %v5631_v42 = vpop.permute.xlu0 %5630  ;;  %v10341_v22 = vpop.f32.mrb[112].mxu1 }
 0x9a6   : > { %v5629_v45 = vpop.permute.xlu1 %5628  ;;  %v10342_v41 = vpop.f32.mrb[113].mxu1 }
 0x9a7   : > { %v5652_v54 = vsel %vm16334_vm12, %v5629_v45, %v5631_v42  ;;  %v14837_v60 = vadd.f32 %v10342_v41, %v10341_v22  ;;  %v10344_v56 = vpop.f32.mrb[114].mxu1  ;;  %v14856_v42 = vld [vmem:[#allocation2] sm:$0xff] }
 0x9a8   : > { %v10345_v36 = vpop.f32.mrb[115].mxu1  ;;  %6539 = vrot.lane.b32.xlu1 %v14856_v42, %s16473_s26  ;;  %6561 = vrot.lane.b32.xlu0 %v14856_v42, %s16441_s18 }
 0x9a9   : > { %v5635_v55 = vpop.permute.xlu0 %5634  ;;  %v14840_v5 = vadd.f32 %v10345_v36, %v10344_v56 }
 0x9aa   : > { %v5633_v2 = vpop.permute.xlu1 %5632 }
 0x9ab   : > { %v5653_v8 = vsel %vm16334_vm12, %v5633_v2, %v5635_v55 }
 0x9ac   : > { %10965 = vmatmul.mubr.bf16.gmra.mrb[160].mxu0 %v5652_v54  ;;  %6583 = vrot.lane.b32.xlu0 %v14856_v42, %s16444_s0 }
 0x9ad   : > { %10968 = vmatprep.mubr.bf16.mxu0 %v5653_v8  ;;  %v5639_v62 = vpop.permute.xlu0 %5638  ;;  %v10347_v21 = vpop.f32.mrb[116].mxu1 }
 0x9ae   : > { %v5637_v6 = vpop.permute.xlu1 %5636  ;;  %v10348_v49 = vpop.f32.mrb[117].mxu1 }
 0x9af   : > { %v5654_v15 = vsel %vm16334_vm12, %v5637_v6, %v5639_v62  ;;  %v14843_v10 = vadd.f32 %v10348_v49, %v10347_v21  ;;  %v10350_v32 = vpop.f32.mrb[118].mxu1 }
 0x9b0   : > { %v10351_v43 = vpop.f32.mrb[119].mxu1 }
 0x9b1   : > { %v5643_v19 = vpop.permute.xlu0 %5642  ;;  %v14846_v20 = vadd.f32 %v10351_v43, %v10350_v32 }
 0x9b2   : > { %v5641_v48 = vpop.permute.xlu1 %5640 }
 0x9b3   : > { %v5655_v17 = vsel %vm16334_vm12, %v5641_v48, %v5643_v19 }
 0x9b4   : > { %10969 = vmatmul.mubr.bf16.gmra.mrb[164].mxu0 %v5654_v15 }
 0x9b5   : > { %10972 = vmatprep.mubr.bf16.mxu0 %v5655_v17  ;;  %v5647_v35 = vpop.permute.xlu0 %5646  ;;  %v10353_v33 = vpop.f32.mrb[120].mxu1 }
 0x9b6   : > { %v5645_v46 = vpop.permute.xlu1 %5644  ;;  %v10354_v53 = vpop.f32.mrb[121].mxu1 }
 0x9b7   : > { %v5656_v9 = vsel %vm16334_vm12, %v5645_v46, %v5647_v35  ;;  %v14849_v39 = vadd.f32 %v10354_v53, %v10353_v33  ;;  %v10356_v40 = vpop.f32.mrb[122].mxu1 }
 0x9b8   : > { %v10357_v18 = vpop.f32.mrb[123].mxu1 }
 0x9b9   : > { %v14851_v31 = vadd.f32 %v10357_v18, %v10356_v40 }
 0x9bc   : > { %10973 = vmatmul.mubr.bf16.gmra.mrb[168].mxu0 %v5656_v9  ;;  %v10375_v12 = vpop.f32.mrb[92].mxu0 }
 0x9bd   : > { %v10376_v23 = vpop.f32.mrb[93].mxu0 }
 0x9be   : > { %v10377_v63 = vadd.f32 %v10376_v23, %v10375_v12  ;;  %v10378_v25 = vpop.f32.mrb[94].mxu0 }
 0x9bf   : > { %v10379_v57 = vpop.f32.mrb[95].mxu0 }
 0x9c0   : > { %v4597_v29 = vadd.f32 %v10377_v63, %v14809_v51  ;;  %v10380_v38 = vadd.f32 %v10379_v57, %v10378_v25 }
 0x9c2   : > { %v4600_v58 = vadd.f32 %v10380_v38, %v14811_v30  ;;  %v14863_v30 = vld [vmem:[#allocation2 + $0x10] sm:$0xff] }
 0x9c3   : > { %6543 = vrot.lane.b32.xlu1 %v14863_v30, %s16473_s26  ;;  %6127 = vrot.lane.b32.xlu0 %v14863_v30, %s16451_s13 }
 0x9c4   : > { %v10381_v16 = vpop.f32.mrb[96].mxu0 }
 0x9c5   : > { %v10382_v24 = vpop.f32.mrb[97].mxu0 }
 0x9c6   : > { %v10383_v11 = vadd.f32 %v10382_v24, %v10381_v16  ;;  %v10384_v50 = vpop.f32.mrb[98].mxu0 }
 0x9c7   : > { %v10385_v47 = vpop.f32.mrb[99].mxu0  ;;  %6565 = vrot.lane.b32.xlu1 %v14863_v30, %s16441_s18  ;;  %6145 = vrot.lane.b32.xlu0 %v14856_v42, %s16436_s3 }
 0x9c8   : > { %v4605_v4 = vadd.f32 %v10383_v11, %v14815_v34  ;;  %v10386_v27 = vadd.f32 %v10385_v47, %v10384_v50 }
 0x9ca   : > { %v4608_v45 = vadd.f32 %v10386_v27, %v14817_v44 }
 0x9cb   : > { %6587 = vrot.lane.b32.xlu1 %v14863_v30, %s16444_s0  ;;  %6149 = vrot.lane.b32.xlu0 %v14863_v30, %s16436_s3 }
 0x9cc   : > { %v10387_v51 = vpop.f32.mrb[100].mxu0 }
 0x9cd   : > { %v10388_v22 = vpop.f32.mrb[101].mxu0 }
 0x9ce   : > { %v10389_v41 = vadd.f32 %v10388_v22, %v10387_v51  ;;  %v10390_v54 = vpop.f32.mrb[102].mxu0 }
 0x9cf   : > { %v10391_v34 = vpop.f32.mrb[103].mxu0  ;;  %6211 = vrot.lane.b32.xlu1 %v14856_v42, %s16450_s15 }
 0x9d0   : > { %v14870_v44 = vadd.f32 %v10389_v41, %v14819_v37  ;;  %v10392_v55 = vadd.f32 %v10391_v34, %v10390_v54 }
 0x9d2   : > { %v14873_v56 = vadd.f32 %v10392_v55, %v14821_v26 }
 0x9d3   : > { %6123 = vrot.lane.b32.xlu1 %v14856_v42, %s16451_s13 }
 0x9d4   : > { %v10393_v2 = vpop.f32.mrb[104].mxu0 }
 0x9d5   : > { %v10394_v36 = vpop.f32.mrb[105].mxu0 }
 0x9d6   : > { %v10395_v8 = vadd.f32 %v10394_v36, %v10393_v2  ;;  %v10396_v62 = vpop.f32.mrb[106].mxu0 }
 0x9d7   : > { %v10397_v37 = vpop.f32.mrb[107].mxu0  ;;  %6387 = vrot.lane.b32.xlu1 %v14856_v42, %s16438_s7 }
 0x9d8   : > { %v14884_v26 = vadd.f32 %v10395_v8, %v14825_v13  ;;  %v10398_v6 = vadd.f32 %v10397_v37, %v10396_v62 }
 0x9da   : > { %v14887_v21 = vadd.f32 %v10398_v6, %v14828_v7 }
 0x9db   : > { %6215 = vrot.lane.b32.xlu1 %v14863_v30, %s16450_s15 }
 0x9dc   : > { %v10399_v49 = vpop.f32.mrb[108].mxu0 }
 0x9dd   : > { %v10439_v15 = vpop.f32.mrb[124].mxu1  ;;  %v10400_v19 = vpop.f32.mrb[109].mxu0 }
 0x9de   : > { %v10440_v32 = vpop.f32.mrb[125].mxu1  ;;  %v10401_v48 = vadd.f32 %v10400_v19, %v10399_v49  ;;  %v10402_v46 = vpop.f32.mrb[110].mxu0 }
 0x9df   : > { %v10441_v13 = vadd.f32 %v10440_v32, %v10439_v15  ;;  %v10442_v43 = vpop.f32.mrb[126].mxu1  ;;  %v10403_v53 = vpop.f32.mrb[111].mxu0  ;;  %6299 = vrot.lane.b32.xlu1 %v14856_v42, %s16453_s17 }
 0x9e0   : > { %v10443_v17 = vpop.f32.mrb[127].mxu1  ;;  %v14896_v7 = vadd.f32 %v10401_v48, %v14831_v28  ;;  %v10404_v9 = vadd.f32 %v10403_v53, %v10402_v46 }
 0x9e1   : > { %v14898_v35 = vadd.f32 %v10441_v13, %v4597_v29  ;;  %v10444_v33 = vadd.f32 %v10443_v17, %v10442_v43 }
 0x9e2   : > { %v14905_v18 = vadd.f32 %v10404_v9, %v14834_v14 }
 0x9e3   : > { %v14902_v40 = vadd.f32 %v10444_v33, %v4600_v58  ;;  %6391 = vrot.lane.b32.xlu1 %v14863_v30, %s16438_s7 }
 0x9e4   : > { %v10405_v12 = vpop.f32.mrb[112].mxu0 }
 0x9e5   : > { %v10445_v23 = vpop.f32.mrb[128].mxu1  ;;  %v10406_v63 = vpop.f32.mrb[113].mxu0 }
 0x9e6   : > { %v10446_v25 = vpop.f32.mrb[129].mxu1  ;;  %v10407_v28 = vadd.f32 %v10406_v63, %v10405_v12  ;;  %v10408_v24 = vpop.f32.mrb[114].mxu0 }
 0x9e7   : > { %v10447_v57 = vadd.f32 %v10446_v25, %v10445_v23  ;;  %v10448_v29 = vpop.f32.mrb[130].mxu1  ;;  %v10409_v14 = vpop.f32.mrb[115].mxu0  ;;  %6233 = vrot.lane.b32.xlu1 %v14856_v42, %s16435_s4 }
 0x9e8   : > { %v10449_v38 = vpop.f32.mrb[131].mxu1  ;;  %v14910_v16 = vadd.f32 %v10407_v28, %v14837_v60  ;;  %v10410_v50 = vadd.f32 %v10409_v14, %v10408_v24 }
 0x9e9   : > { %v14912_v58 = vadd.f32 %v10447_v57, %v4605_v4  ;;  %v10450_v11 = vadd.f32 %v10449_v38, %v10448_v29 }
 0x9ea   : > { %v14919_v27 = vadd.f32 %v10410_v50, %v14840_v5 }
 0x9eb   : > { %v14916_v47 = vadd.f32 %v10450_v11, %v4608_v45  ;;  %6303 = vrot.lane.b32.xlu1 %v14863_v30, %s16453_s17 }
 0x9ec   : > { %v10411_v51 = vpop.f32.mrb[116].mxu0 }
 0x9ed   : > { %v10451_v22 = vpop.f32.mrb[132].mxu1  ;;  %v10412_v41 = vpop.f32.mrb[117].mxu0 }
 0x9ee   : > { %v10452_v54 = vpop.f32.mrb[133].mxu1  ;;  %v10413_v60 = vadd.f32 %v10412_v41, %v10411_v51  ;;  %v10414_v36 = vpop.f32.mrb[118].mxu0 }
 0x9ef   : > { %v10453_v4 = vadd.f32 %v10452_v54, %v10451_v22  ;;  %v10454_v34 = vpop.f32.mrb[134].mxu1  ;;  %v10415_v8 = vpop.f32.mrb[119].mxu0  ;;  %6409 = vrot.lane.b32.xlu1 %v14856_v42, %s16455_s20 }
 0x9f0   : > { %v10455_v55 = vpop.f32.mrb[135].mxu1  ;;  %v14924_v2 = vadd.f32 %v10413_v60, %v14843_v10  ;;  %v10416_v62 = vadd.f32 %v10415_v8, %v10414_v36 }
 0x9f1   : > { %v14927_v45 = vadd.f32 %v10453_v4, %v14870_v44  ;;  %v10456_v5 = vadd.f32 %v10455_v55, %v10454_v34 }
 0x9f2   : > { %v14935_v6 = vadd.f32 %v10416_v62, %v14846_v20 }
 0x9f3   : > { %v14932_v37 = vadd.f32 %v10456_v5, %v14873_v56  ;;  %6237 = vrot.lane.b32.xlu1 %v14863_v30, %s16435_s4 }
 0x9f4   : > { %v10417_v49 = vpop.f32.mrb[120].mxu0 }
 0x9f5   : > { %v10457_v15 = vpop.f32.mrb[136].mxu1  ;;  %v10418_v10 = vpop.f32.mrb[121].mxu0 }
 0x9f6   : > { %v10458_v19 = vpop.f32.mrb[137].mxu1  ;;  %v10419_v32 = vadd.f32 %v10418_v10, %v10417_v49  ;;  %v10420_v17 = vpop.f32.mrb[122].mxu0 }
 0x9f7   : > { %v10459_v44 = vadd.f32 %v10458_v19, %v10457_v15  ;;  %v10460_v48 = vpop.f32.mrb[138].mxu1  ;;  %v10421_v46 = vpop.f32.mrb[123].mxu0  ;;  %6321 = vrot.lane.b32.xlu1 %v14856_v42, %s16456_s21 }
 0x9f8   : > { %v10461_v13 = vpop.f32.mrb[139].mxu1  ;;  %v14940_v43 = vadd.f32 %v10419_v32, %v14849_v39  ;;  %v10422_v33 = vadd.f32 %v10421_v46, %v10420_v17 }
 0x9f9   : > { %v14943_v56 = vadd.f32 %v10459_v44, %v14884_v26  ;;  %v10462_v20 = vadd.f32 %v10461_v13, %v10460_v48 }
 0x9fa   : > { %v14951_v9 = vadd.f32 %v10422_v33, %v14851_v31 }
 0x9fb   : > { %v14948_v53 = vadd.f32 %v10462_v20, %v14887_v21  ;;  %6413 = vrot.lane.b32.xlu1 %v14863_v30, %s16455_s20 }
 0x9fd   : > { %v10463_v12 = vpop.f32.mrb[140].mxu1  ;;  %v10503_v23 = vpop.f32.mrb[124].mxu0 }
 0x9fe   : > { %v10464_v39 = vpop.f32.mrb[141].mxu1  ;;  %v10504_v63 = vpop.f32.mrb[125].mxu0 }
 0x9ff   : > { %v10465_v26 = vadd.f32 %v10464_v39, %v10463_v12  ;;  %v10505_v25 = vadd.f32 %v10504_v63, %v10503_v23  ;;  %v10466_v28 = vpop.f32.mrb[142].mxu1  ;;  %v10506_v57 = vpop.f32.mrb[126].mxu0  ;;  %6255 = vrot.lane.b32.xlu1 %v14856_v42, %s16443_s30 }
 0xa00   : > { %v10467_v38 = vpop.f32.mrb[143].mxu1  ;;  %v10507_v21 = vpop.f32.mrb[127].mxu0 }
 0xa01   : > { %v14956_v29 = vadd.f32 %v10465_v26, %v14896_v7  ;;  %v14959_v24 = vadd.f32 %v10505_v25, %v14898_v35  ;;  %v10468_v31 = vadd.f32 %v10467_v38, %v10466_v28  ;;  %v10508_v11 = vadd.f32 %v10507_v21, %v10506_v57 }
 0xa03   : > { %v14964_v14 = vadd.f32 %v10468_v31, %v14905_v18  ;;  %v14967_v50 = vadd.f32 %v10508_v11, %v14902_v40 }
 0xa05   : > { %v10469_v51 = vpop.f32.mrb[144].mxu1  ;;  %v10509_v22 = vpop.f32.mrb[128].mxu0 }
 0xa06   : > { %v10470_v7 = vpop.f32.mrb[145].mxu1  ;;  %v10510_v41 = vpop.f32.mrb[129].mxu0 }
 0xa07   : > { %v10471_v35 = vadd.f32 %v10470_v7, %v10469_v51  ;;  %v10511_v54 = vadd.f32 %v10510_v41, %v10509_v22  ;;  %v10472_v60 = vpop.f32.mrb[146].mxu1  ;;  %v10512_v4 = vpop.f32.mrb[130].mxu0 }
 0xa08   : > { %v10473_v34 = vpop.f32.mrb[147].mxu1  ;;  %v10513_v55 = vpop.f32.mrb[131].mxu0 }
 0xa09   : > { %v4894_v36 = vadd.f32 %v10471_v35, %v14910_v16  ;;  %v10474_v18 = vadd.f32 %v10473_v34, %v10472_v60  ;;  %v10514_v5 = vadd.f32 %v10513_v55, %v10512_v4  ;;  %v4959_v40 = vadd.f32 %v10511_v54, %v14912_v58 }
 0xa0b   : > { %v4897_v8 = vadd.f32 %v10474_v18, %v14919_v27  ;;  %v4962_v62 = vadd.f32 %v10514_v5, %v14916_v47  ;;  %v11726_v18 = vld [vmem:[#allocation24] sm:$0xff]  }
 0xa0c   : > { %10992 = vmatprep.mubr.bf16.mxu0 %v11726_v18 }
 0xa0d   : > { %v10475_v49 = vpop.f32.mrb[148].mxu1  ;;  %v10515_v15 = vpop.f32.mrb[132].mxu0 }
 0xa0e   : > { %v10476_v10 = vpop.f32.mrb[149].mxu1  ;;  %v10516_v19 = vpop.f32.mrb[133].mxu0 }
 0xa0f   : > { %v10477_v32 = vadd.f32 %v10476_v10, %v10475_v49  ;;  %v10517_v44 = vadd.f32 %v10516_v19, %v10515_v15  ;;  %v10478_v48 = vpop.f32.mrb[150].mxu1  ;;  %v10518_v13 = vpop.f32.mrb[134].mxu0 }
 0xa10   : > { %v10479_v16 = vpop.f32.mrb[151].mxu1  ;;  %v10519_v17 = vpop.f32.mrb[135].mxu0 }
 0xa11   : > { %v4902_v20 = vadd.f32 %v10477_v32, %v14924_v2  ;;  %v10480_v58 = vadd.f32 %v10479_v16, %v10478_v48  ;;  %v10520_v46 = vadd.f32 %v10519_v17, %v10518_v13  ;;  %v4967_v33 = vadd.f32 %v10517_v44, %v14927_v45 }
 0xa13   : > { %v4905_v27 = vadd.f32 %v10480_v58, %v14935_v6  ;;  %v4970_v47 = vadd.f32 %v10520_v46, %v14932_v37 }
 0xa15   : > { %v10481_v12 = vpop.f32.mrb[152].mxu1  ;;  %v10521_v23 = vpop.f32.mrb[136].mxu0 }
 0xa16   : > { %v10482_v39 = vpop.f32.mrb[153].mxu1  ;;  %v10522_v63 = vpop.f32.mrb[137].mxu0 }
 0xa17   : > { %v10483_v26 = vadd.f32 %v10482_v39, %v10481_v12  ;;  %v10523_v25 = vadd.f32 %v10522_v63, %v10521_v23  ;;  %v10484_v28 = vpop.f32.mrb[154].mxu1  ;;  %v10524_v57 = vpop.f32.mrb[138].mxu0 }
 0xa18   : > { %v10485_v38 = vpop.f32.mrb[155].mxu1  ;;  %v10525_v21 = vpop.f32.mrb[139].mxu0 }
 0xa19   : > { %v4910_v2 = vadd.f32 %v10483_v26, %v14940_v43  ;;  %v10486_v31 = vadd.f32 %v10485_v38, %v10484_v28  ;;  %v10526_v11 = vadd.f32 %v10525_v21, %v10524_v57  ;;  %v4975_v45 = vadd.f32 %v10523_v25, %v14943_v56 }
 0xa1b   : > { %v4913_v6 = vadd.f32 %v10486_v31, %v14951_v9  ;;  %v4978_v37 = vadd.f32 %v10526_v11, %v14948_v53 }
 0xa1d   : > { %v10527_v51 = vpop.f32.mrb[140].mxu0 }
 0xa1e   : > { %v10528_v22 = vpop.f32.mrb[141].mxu0 }
 0xa1f   : > { %v10529_v7 = vadd.f32 %v10528_v22, %v10527_v51  ;;  %v10530_v41 = vpop.f32.mrb[142].mxu0  ;;  %v15001_v51 = vpop.permute.xlu1 %5796 }
 0xa20   : > { %v10531_v35 = vpop.f32.mrb[143].mxu0 }
 0xa21   : > { %v10532_v54 = vadd.f32 %v10531_v35, %v10530_v41  ;;  %v5257_v60 = vpop.f32.mrb[156].mxu1  ;;  %v4983_v4 = vadd.f32 %v10529_v7, %v14956_v29 }
 0xa22   : > { %v14987_v34 = vadd.f32 %v5257_v60, %v14959_v24  ;;  %v5259_v43 = vpop.f32.mrb[157].mxu1 }
 0xa23   : > { %v5260_v55 = vpop.f32.mrb[158].mxu1  ;;  %v4986_v56 = vadd.f32 %v10532_v54, %v14964_v14  ;;  %v5909_v43 = vpop.permute.xlu1 %5908 }
 0xa24   : > { %v14991_v9 = vadd.f32 %v5260_v55, %v14967_v50  ;;  %v5262_v53 = vpop.f32.mrb[159].mxu1 }
 0xa25   : > { %v10533_v5 = vpop.f32.mrb[144].mxu0 }
 0xa26   : > { %v10534_v49 = vpop.f32.mrb[145].mxu0 }
 0xa27   : > { %v10535_v15 = vadd.f32 %v10534_v49, %v10533_v5  ;;  %v10536_v10 = vpop.f32.mrb[146].mxu0 }
 0xa28   : > { %v10537_v19 = vpop.f32.mrb[147].mxu0 }
 0xa29   : > { %v10538_v32 = vadd.f32 %v10537_v19, %v10536_v10  ;;  %v5265_v29 = vpop.f32.mrb[160].mxu1  ;;  %v4991_v44 = vadd.f32 %v10535_v15, %v4894_v36 }
 0xa2a   : > { %v14993_v24 = vadd.f32 %v5265_v29, %v4959_v40  ;;  %v5267_v48 = vpop.f32.mrb[161].mxu1 }
 0xa2b   : > { %v5268_v13 = vpop.f32.mrb[162].mxu1  ;;  %v4994_v16 = vadd.f32 %v10538_v32, %v4897_v8 }
 0xa2c   : > { %v14995_v14 = vadd.f32 %v5268_v13, %v4962_v62  ;;  %v5270_v17 = vpop.f32.mrb[163].mxu1 }
 0xa2d   : > { %v10539_v50 = vpop.f32.mrb[148].mxu0 }
 0xa2e   : > { %v10540_v58 = vpop.f32.mrb[149].mxu0 }
 0xa2f   : > { %v10541_v46 = vadd.f32 %v10540_v58, %v10539_v50  ;;  %v10542_v12 = vpop.f32.mrb[150].mxu0 }
 0xa30   : > { %v10543_v23 = vpop.f32.mrb[151].mxu0 }
 0xa31   : > { %v10544_v39 = vadd.f32 %v10543_v23, %v10542_v12  ;;  %v5273_v63 = vpop.f32.mrb[164].mxu1  ;;  %v4999_v26 = vadd.f32 %v10541_v46, %v4902_v20 }
 0xa32   : > { %v14997_v25 = vadd.f32 %v5273_v63, %v4967_v33  ;;  %v5275_v28 = vpop.f32.mrb[165].mxu1  ;;  %v15005_v33 = vpop.permute.xlu0 %5801 }
 0xa33   : > { %v5276_v36 = vpop.f32.mrb[166].mxu1  ;;  %v5002_v40 = vadd.f32 %v10544_v39, %v4905_v27 }
 0xa34   : > { %v14999_v57 = vadd.f32 %v5276_v36, %v4970_v47  ;;  %v5278_v38 = vpop.f32.mrb[167].mxu1 }
 0xa35   : > { %v10545_v8 = vpop.f32.mrb[152].mxu0 }
 0xa36   : > { %v10546_v62 = vpop.f32.mrb[153].mxu0  ;;  %v5914_v55 = vpop.permute.xlu0 %5913 }
 0xa37   : > { %v10547_v21 = vadd.f32 %v10546_v62, %v10545_v8  ;;  %v10548_v31 = vpop.f32.mrb[154].mxu0 }
 0xa38   : > { %v10549_v11 = vpop.f32.mrb[155].mxu0 }
 0xa39   : > { %v10550_v22 = vadd.f32 %v10549_v11, %v10548_v31  ;;  %v5281_v7 = vpop.f32.mrb[168].mxu1  ;;  %v5007_v41 = vadd.f32 %v10547_v21, %v4910_v2 }
 0xa3a   : > { %v15003_v35 = vadd.f32 %v5281_v7, %v4975_v45  ;;  %v5283_v20 = vpop.f32.mrb[169].mxu1  ;;  %v5807_v45 = vpop.permute.xlu1 %5806 }
 0xa3b   : > { %v5284_v54 = vpop.f32.mrb[170].mxu1  ;;  %v5010_v27 = vadd.f32 %v10550_v22, %v4913_v6  ;;  %v5812_v10 = vpop.permute.xlu0 %5811 }
 0xa3c   : > { %v15007_v47 = vadd.f32 %v5284_v54, %v4978_v37  ;;  %v5286_v60 = vpop.f32.mrb[171].mxu1 }
 0xa3e   : > { %v5919_v6 = vpop.permute.xlu1 %5918 }
 0xa3f   : > { %v5924_v17 = vpop.permute.xlu0 %5923 }
 0xa41   : > { %v5289_v18 = vpop.f32.mrb[172].mxu1 }
 0xa42   : > { %v15009_v53 = vadd.f32 %v5289_v18, %v4983_v4  ;;  %v5291_v5 = vpop.f32.mrb[173].mxu1  ;;  %v5817_v50 = vpop.permute.xlu1 %5816 }
 0xa43   : > { %v5292_v49 = vpop.f32.mrb[174].mxu1 }
 0xa44   : > { %v15011_v15 = vadd.f32 %v5292_v49, %v4986_v56  ;;  %v5294_v2 = vpop.f32.mrb[175].mxu1  ;;  %v5822_v56 = vpop.permute.xlu0 %5821 }
 0xa46   : > { %v5929_v63 = vpop.permute.xlu1 %5928 }
 0xa49   : > { %v5297_v19 = vpop.f32.mrb[176].mxu1 }
 0xa4a   : > { %v15013_v32 = vadd.f32 %v5297_v19, %v4991_v44  ;;  %v5299_v29 = vpop.f32.mrb[177].mxu1  ;;  %v15021_v44 = vpop.permute.xlu0 %5933 }
 0xa4b   : > { %v5300_v37 = vpop.f32.mrb[178].mxu1  ;;  %v5827_v21 = vpop.permute.xlu1 %5826 }
 0xa4c   : > { %v15015_v48 = vadd.f32 %v5300_v37, %v4994_v16  ;;  %v5302_v13 = vpop.f32.mrb[179].mxu1 }
 0xa4f   : > { %v5939_v31 = vpop.permute.xlu1 %5938 }
 0xa51   : > { %v5305_v4 = vpop.f32.mrb[180].mxu1 }
 0xa52   : > { %v15017_v58 = vadd.f32 %v5305_v4, %v4999_v26  ;;  %v5307_v46 = vpop.f32.mrb[181].mxu1  ;;  %v5832_v26 = vpop.permute.xlu0 %5831 }
 0xa53   : > { %v5308_v12 = vpop.f32.mrb[182].mxu1  ;;  %v15027_v22 = vpop.permute.xlu1 %5836 }
 0xa54   : > { %v15019_v23 = vadd.f32 %v5308_v12, %v5002_v40  ;;  %v5310_v39 = vpop.f32.mrb[183].mxu1 }
 0xa56   : > { %v5944_v11 = vpop.permute.xlu0 %5943 }
 0xa57   : > { %v15031_v7 = vpop.permute.xlu1 %5948 }
 0xa59   : > { %v5313_v28 = vpop.f32.mrb[184].mxu1 }
 0xa5a   : > { %v15023_v36 = vadd.f32 %v5313_v28, %v5007_v41  ;;  %v5315_v16 = vpop.f32.mrb[185].mxu1  ;;  %v15029_v40 = vpop.permute.xlu0 %5841 }
 0xa5b   : > { %v5316_v38 = vpop.f32.mrb[186].mxu1  ;;  %v5847_v54 = vpop.permute.xlu1 %5846 }
 0xa5c   : > { %v15025_v8 = vadd.f32 %v5316_v38, %v5010_v27  ;;  %v5318_v62 = vpop.f32.mrb[187].mxu1 }
 0xa5e   : > { %v15033_v20 = vpop.permute.xlu0 %5953 }
 0xa5f   : > { %v5959_v37 = vpop.permute.xlu1 %5958 }
 0xa62   : > { %v15035_v41 = vpop.permute.xlu0 %5851 }
 0xa66   : > { %v15042_v39 = vpop.permute.xlu0 %5963 }
 0xa77   : > { %v10962_v60 = vpop.f32.mrb[156].mxu0 }
 0xa78   : > { %v5764_v27 = vadd.f32 %v10962_v60, %v14993_v24  ;;  %v5699_v18 = vpop.f32.mrb[157].mxu0 }
 0xa79   : > { %v5762_v5 = vadd.f32 %v5699_v18, %v14987_v34  ;;  %v10963_v49 = vpop.f32.mrb[158].mxu0 }
 0xa7a   : > { %v5876_v2 = vmul.f32 %v5807_v45, %v5764_v27  ;;  %v5765_v19 = vadd.f32 %v10963_v49, %v14995_v14  ;;  %v5702_v29 = vpop.f32.mrb[159].mxu0  ;;  %v15046_v27 = vpop.permute.xlu1 %5856 }
 0xa7b   : > { %v5874_v13 = vmul.f32 %v15001_v51, %v5762_v5  ;;  %v5763_v4 = vadd.f32 %v5702_v29, %v14991_v9 }
 0xa7c   : > { %v5988_v46 = vadd.f32 %v5919_v6, %v5876_v2  ;;  %v5877_v12 = vmul.f32 %v5812_v10, %v5765_v19 }
 0xa7d   : > { %v5986_v28 = vadd.f32 %v5909_v43, %v5874_v13  ;;  %v5875_v24 = vmul.f32 %v15005_v33, %v5763_v4 }
 0xa7e   : > { %v5989_v16 = vadd.f32 %v5924_v17, %v5877_v12  ;;  %v6004_v62 = vmax.f32 %v5988_v46, 0.0  ;;  %v15050_v17 = vpop.permute.xlu0 %5861 }
 0xa7f   : > { %v5987_v38 = vadd.f32 %v5914_v55, %v5875_v24  ;;  %v10966_v34 = vpop.f32.mrb[160].mxu0  ;;  %v6002_v51 = vmax.f32 %v5986_v28, 0.0 }
 0xa80   : > { %v6005_v45 = vmax.f32 %v5989_v16, 0.0  ;;  %v5768_v14 = vadd.f32 %v10966_v34, %v15003_v35  ;;  %v5715_v60 = vpop.f32.mrb[161].mxu0 }
 0xa81   : > { %v6003_v18 = vmax.f32 %v5987_v38, 0.0  ;;  %v5766_v9 = vadd.f32 %v5715_v60, %v14997_v25  ;;  %v10967_v10 = vpop.f32.mrb[162].mxu0 }
 0xa82   : > { %v5880_v6 = vmul.f32 %v5827_v21, %v5768_v14  ;;  %v5769_v43 = vadd.f32 %v10967_v10, %v15007_v47  ;;  %v5718_v5 = vpop.f32.mrb[163].mxu0  ;;  %v6019_v33 = vpack.c.bf16 %v6005_v45, %v6004_v62  ;;  %v15063_v46 = vpop.permute.xlu0 %5973 }
 0xa83   : > { %v5878_v55 = vmul.f32 %v5817_v50, %v5766_v9  ;;  %v5767_v49 = vadd.f32 %v5718_v5, %v14999_v57  ;;  %v6018_v2 = vpack.c.bf16 %v6003_v18, %v6002_v51  ;;  %v15059_v50 = vpop.permute.xlu1 %5968 }
 0xa84   : > { %v5992_v35 = vadd.f32 %v5939_v31, %v5880_v6  ;;  %v5881_v19 = vmul.f32 %v5832_v26, %v5769_v43  ;;  %v6100_v29 = vsel %vm16517_vm7, %v6019_v33, 4286644096  ;;  %vm16520_vm7 = vmmov %vm16518_vm0 }
 0xa85   : > { %v5990_v13 = vadd.f32 %v5929_v63, %v5878_v55  ;;  %v5879_v4 = vmul.f32 %v5822_v56, %v5767_v49  ;;  %10976 = vmatprep.subr.bf16.mxu0 %v6018_v2  ;;  %v6099_v25 = vsel %vm16518_vm0, %v6018_v2, 4286644096  ;;  %6108 = vst.msk [vmem:[#allocation4 + $0x18] sm:$0xff] %vm1277_vm9, %v6100_v29 }
 0xa86   : > { %v5993_v47 = vadd.f32 %v5944_v11, %v5881_v19  ;;  %6107 = vst.msk [vmem:[#allocation4 + $0x8] sm:$0xff] %vm1277_vm9, %v6099_v25  ;;  %10977 = vmatpush3.bf16.msra.mxu0 %v6018_v2  ;;  %v6008_v26 = vmax.f32 %v5992_v35, 0.0 }
 0xa87   : > { %v5991_v57 = vadd.f32 %v15021_v44, %v5879_v4  ;;  %v10970_v21 = vpop.f32.mrb[164].mxu0  ;;  %10978 = vmatprep.subr.bf16.mxu0 %v6019_v33  ;;  %v6006_v12 = vmax.f32 %v5990_v13, 0.0  ;;  %v5867_v18 = vpop.permute.xlu1 %5866 }
 0xa88   : > { %v6009_v31 = vmax.f32 %v5993_v47, 0.0  ;;  %v5772_v56 = vadd.f32 %v10970_v21, %v15013_v32  ;;  %v5731_v63 = vpop.f32.mrb[165].mxu0 }
 0xa89   : > { %v6007_v28 = vmax.f32 %v5991_v57, 0.0  ;;  %v5770_v11 = vadd.f32 %v5731_v63, %v15009_v53  ;;  %v10971_v24 = vpop.f32.mrb[166].mxu0 }
 0xa8a   : > { %v5884_v16 = vmul.f32 %v5847_v54, %v5772_v56  ;;  %v5773_v38 = vadd.f32 %v10971_v24, %v15015_v48  ;;  %v5734_v34 = vpop.f32.mrb[167].mxu0  ;;  %10979 = vmatpush3.bf16.msra.mxu0 %v6019_v33  ;;  %v6021_v44 = vpack.c.bf16 %v6009_v31, %v6008_v26 }
 0xa8b   : > { %v5882_v62 = vmul.f32 %v15027_v22, %v5770_v11  ;;  %v5771_v45 = vadd.f32 %v5734_v34, %v15011_v15  ;;  %v6020_v14 = vpack.c.bf16 %v6007_v28, %v6006_v12  ;;  %v5872_v22 = vpop.permute.xlu0 %5871 }
 0xa8c   : > { %v5996_v32 = vadd.f32 %v5959_v37, %v5884_v16  ;;  %v5885_v60 = vmul.f32 %v15035_v41, %v5773_v38  ;;  %v6102_v51 = vsel %vm16519_vm5, %v6021_v44, 4286644096  ;;  %v15088_v55 = vld [vmem:[#allocation4 + $0x18] sm:$0xff]  ;;  %vm16521_vm5 = vmmov %vm16518_vm0 }
 0xa8d   : > { %v5994_v53 = vadd.f32 %v15031_v7, %v5882_v62  ;;  %v5883_v54 = vmul.f32 %v15029_v40, %v5771_v45  ;;  %10980 = vmatprep.subr.bf16.mxu0 %v6020_v14  ;;  %v6101_v48 = vsel %vm16520_vm7, %v6020_v14, 4286644096  ;;  %v15076_v9 = vld [vmem:[#allocation4 + $0x8] sm:$0xff]  ;;  %6110 = vst.msk [vmem:[#allocation4 + $0x38] sm:$0xff] %vm1277_vm9, %v6102_v51  ;;  %vm16522_vm7 = vmmov %vm16518_vm0 }
 0xa8e   : > { %v5997_v15 = vadd.f32 %v15042_v39, %v5885_v60  ;;  %6109 = vst.msk [vmem:[#allocation4 + $0x28] sm:$0xff] %vm1277_vm9, %v6101_v48  ;;  %7904 = vrot.lane.b32.xlu0 %v15076_v9, %s16454_s6  ;;  %7864 = vrot.lane.b32.xlu1 %v15076_v9, %s16463_s25  ;;  %v6012_v41 = vmax.f32 %v5996_v32, 0.0 }
 0xa8f   : > { %v5995_v40 = vadd.f32 %v15033_v20, %v5883_v54  ;;  %10981 = vmatpush3.bf16.msra.mxu0 %v6020_v14  ;;  %v10974_v7 = vpop.f32.mrb[168].mxu0  ;;  %v6010_v39 = vmax.f32 %v5994_v53, 0.0  ;;  %v5979_v20 = vpop.permute.xlu1 %5978 }
 0xa90   : > { %v6013_v37 = vmax.f32 %v5997_v15, 0.0  ;;  %v5776_v10 = vadd.f32 %v10974_v7, %v15023_v36  ;;  %10982 = vmatprep.subr.bf16.mxu0 %v6021_v44  ;;  %v5747_v6 = vpop.f32.mrb[169].mxu0  ;;  %v5984_v25 = vpop.permute.xlu0 %5983 }
 0xa91   : > { %v6011_v43 = vmax.f32 %v5995_v40, 0.0  ;;  %v5774_v5 = vadd.f32 %v5747_v6, %v15017_v58  ;;  %v10975_v33 = vpop.f32.mrb[170].mxu0 }
 0xa92   : > { %v5888_v49 = vmul.f32 %v5867_v18, %v5776_v10  ;;  %v5777_v2 = vadd.f32 %v10975_v33, %v15025_v8  ;;  %v5750_v35 = vpop.f32.mrb[171].mxu0  ;;  %7906 = vrot.lane.b32.xlu0 %v15088_v55, %s16454_s6  ;;  %7866 = vrot.lane.b32.xlu1 %v15088_v55, %s16463_s25  ;;  %v6023_v36 = vpack.c.bf16 %v6013_v37, %v6012_v41 }
 0xa93   : > { %v5886_v19 = vmul.f32 %v15046_v27, %v5774_v5  ;;  %v5775_v29 = vadd.f32 %v5750_v35, %v15019_v23  ;;  %10983 = vmatpush3.bf16.msra.mxu0 %v6021_v44  ;;  %v6022_v58 = vpack.c.bf16 %v6011_v43, %v6010_v39  ;;  %v15128_v60 = vpop.permute.xlu1 %6539 }
 0xa94   : > { %v6000_v13 = vadd.f32 %v5979_v20, %v5888_v49  ;;  %v5889_v4 = vmul.f32 %v5872_v22, %v5777_v2  ;;  %v6104_v8 = vsel %vm16518_vm0, %v6023_v36, 4286644096  ;;  %v15212_v37 = vld [vmem:[#allocation4 + $0x38] sm:$0xff]  ;;  %v15232_v43 = vpop.permute.xlu0 %6561 }
 0xa95   : > { %v5998_v47 = vadd.f32 %v15059_v50, %v5886_v19  ;;  %v5887_v57 = vmul.f32 %v15050_v17, %v5775_v29  ;;  %10984 = vmatprep.subr.bf16.mxu0 %v6022_v58  ;;  %v6103_v21 = vsel %vm16521_vm5, %v6022_v58, 4286644096  ;;  %v15103_v26 = vld [vmem:[#allocation4 + $0x28] sm:$0xff]  ;;  %6112 = vst.msk [vmem:[#allocation4 + $0x58] sm:$0xff] %vm1277_vm9, %v6104_v8  ;;  %vm16523_vm5 = vcmp.eq.s32.totalorder %v13415_v59, 1 }
 0xa96   : > { %v6001_v23 = vadd.f32 %v5984_v25, %v5889_v4  ;;  %6111 = vst.msk [vmem:[#allocation4 + $0x48] sm:$0xff] %vm1277_vm9, %v6103_v21  ;;  %7908 = vrot.lane.b32.xlu0 %v15103_v26, %s16454_s6  ;;  %7868 = vrot.lane.b32.xlu1 %v15103_v26, %s16463_s25  ;;  %v6016_v17 = vmax.f32 %v6000_v13, 0.0 }
 0xa97   : > { %v5999_v27 = vadd.f32 %v15063_v46, %v5887_v57  ;;  %10985 = vmatpush3.bf16.msra.mxu0 %v6022_v58  ;;  %v6014_v31 = vmax.f32 %v5998_v47, 0.0  ;;  %v11727_v46 = vld [vmem:[#allocation24 + $0x8] sm:$0xff]   ;;  %v15142_v59 = vpop.permute.xlu1 %6543  ;;  %v11871_v57 = vld [vmem:[#allocation2 + $0x10] sm:$0xff] }
 0xa98   : > { %v6017_v50 = vmax.f32 %v6001_v23, 0.0  ;;  %10986 = vmatprep.subr.bf16.mxu0 %v6023_v36  ;;  %v15244_v33 = vpop.permute.xlu0 %6583 }
 0xa99   : > { %v6015_v56 = vmax.f32 %v5999_v27, 0.0 }
 0xa9a   : > { %v6025_v63 = vpack.c.bf16 %v6017_v50, %v6016_v17 }
 0xa9b   : > { %10987 = vmatpush3.bf16.msra.mxu0 %v6023_v36  ;;  %v6024_v12 = vpack.c.bf16 %v6015_v56, %v6014_v31  ;;  %v15148_v53 = vpop.permute.xlu1 %6565  ;;  %v11730_v31 = vld [vmem:[#allocation26 + $0x14] ss:$44 sps:$4 sm:$0xff]  }
 0xa9c   : > { %v6106_v28 = vsel %vm16522_vm7, %v6025_v63, 4286644096  ;;  %vm16524_vm7 = vmmov %vm16523_vm5  ;;  %v15254_v35 = vpop.permute.xlu0 %6127  ;;  %v15280_v58 = vld [vmem:[#allocation4 + $0x58] sm:$0xff]  ;;  %7001 = vmatprep.mubr.bf16.mxu1 %v11730_v31 }
 0xa9d   : > { %10988 = vmatprep.subr.bf16.mxu0 %v6024_v12  ;;  %v6105_v11 = vsel %vm16518_vm0, %v6024_v12, 4286644096  ;;  %6114 = vst.msk [vmem:[#allocation4 + $0x78] sm:$0xff] %vm1277_vm9, %v6106_v28  ;;  %vm16525_vm0 = vmmov %vm16523_vm5  ;;  %v15250_v49 = vld [vmem:[#allocation4 + $0x48] sm:$0xff] }
 0xa9e   : > { %6113 = vst.msk [vmem:[#allocation4 + $0x68] sm:$0xff] %vm1277_vm9, %v6105_v11  ;;  %vm16526_vm12 = vmmov %vm16525_vm0 }
 0xa9f   : > { %10989 = vmatpush3.bf16.msra.mxu0 %v6024_v12  ;;  %v15158_v54 = vpop.permute.xlu1 %6587 }
 0xaa0   : > { %10990 = vmatprep.subr.bf16.mxu0 %v6025_v63  ;;  %v15266_v20 = vpop.permute.xlu0 %6145 }
 0xaa3   : > { %10991 = vmatpush3.bf16.msra.mxu0 %v6025_v63  ;;  %v15164_v48 = vpop.permute.xlu1 %6211 }
 0xaa4   : > { %v15274_v29 = vpop.permute.xlu0 %6149 }
 0xaa5   : > { %v15322_v63 = vld [vmem:[#allocation4 + $0x68] sm:$0xff] }
 0xaa6   : > { %10993 = vmatmul.mubr.bf16.vlgmr.msra.gmra.mrb[172].mxu0 %v11727_v46  ;;  %v11733_v46 = vld [vmem:[#allocation26 + $0x1c] ss:$44 sps:$4 sm:$0xff]  }
 0xaa7   : > { %v15174_v15 = vpop.permute.xlu1 %6123  ;;  %7098 = vmatprep.mubr.bf16.mxu0 %v11733_v46 }
 0xaab   : > { %v15180_v22 = vpop.permute.xlu1 %6387 }
 0xaaf   : > { %v15190_v40 = vpop.permute.xlu1 %6215 }
 0xab3   : > { %v15196_v7 = vpop.permute.xlu1 %6299 }
 0xab7   : > { %v15206_v41 = vpop.permute.xlu1 %6391 }
 0xabb   : > { %v15214_v10 = vpop.permute.xlu1 %6233 }
 0xabf   : > { %v15224_v6 = vpop.permute.xlu1 %6303 }
 0xac3   : > { %v15230_v39 = vpop.permute.xlu1 %6409 }
 0xac7   : > { %v15242_v5 = vpop.permute.xlu1 %6237 }
 0xacb   : > { %v15252_v2 = vpop.permute.xlu1 %6321 }
 0xacf   : > { %v15264_v36 = vpop.permute.xlu1 %6413 }
 0xad3   : > { %v15272_v19 = vpop.permute.xlu1 %6255 }
 0xb00   : > { %v15286_v13 = vpop.permute.xlu1 %7864  ;;  %v15288_v4 = vpop.permute.xlu0 %7904 }
 0xb04   : > { %v15294_v8 = vpop.permute.xlu1 %7866  ;;  %v15296_v25 = vpop.permute.xlu0 %7906 }
 0xb08   : > { %v15307_v47 = vpop.permute.xlu0 %7908 }
 0xb79   : > { %v10994_v24 = vpop.f32.mrb[172].mxu0 }
 0xb7a   : > { %v6076_v16 = vpop.f32.mrb[173].mxu0  ;;  %v6093_v34 = vsel %vm16523_vm5, %v10994_v24, 0.0  ;;  %vm16534_vm5 = vcmask 15360  }
 0xb7b   : > { %v10995_v38 = vpop.f32.mrb[174].mxu0  ;;  %v6091_v62 = vsel %vm16525_vm0, %v6076_v16, 0.0  ;;  %vm16536_vm0 = vcmask 113664  }
 0xb7c   : > { %v6094_v44 = vsel %vm16524_vm7, %v10995_v38, 0.0  ;;  %v6079_v61 = vpop.f32.mrb[175].mxu0  ;;  %vm16535_vm7 = vcmask 7168  }
 0xb7d   : > { %v6096_v45 = vpack.c.bf16 %v6094_v44, %v6093_v34  ;;  %v6092_v14 = vsel %vm16526_vm12, %v6079_v61, 0.0  ;;  %vm16533_vm12 = vcmask 23552  }
 0xb7e   : > { %v6095_v32 = vpack.c.bf16 %v6092_v14, %v6091_v62 }
 0xb7f   : > { %6098 = vst.msk [vmem:[#allocation2 + $0x18] sm:$0xff] %vm1277_vm9, %v6096_v45 }
 0xb80   : > { %6097 = vst.msk [vmem:[#allocation2 + $0x8] sm:$0xff] %vm1277_vm9, %v6095_v32 }
 0xb86   : > { %v15130_v51 = vld [vmem:[#allocation2 + $0x18] sm:$0xff] }
 0xb87   : > { %6607 = vrot.lane.b32.xlu1 %v15130_v51, %s16463_s25  ;;  %v15134_v18 = vld [vmem:[#allocation2 + $0x8] sm:$0xff]  ;;  %6600 = vst.msk [vmem:[#allocation3 + $0x138] sm:$0xff] %vm1277_vm9, %v15130_v51  ;;  %6545 = vrot.lane.b32.xlu0 %v15130_v51, %s16473_s26 }
 0xb88   : > { %6599 = vst.msk [vmem:[#allocation3 + $0x130] sm:$0xff] %vm1277_vm9, %v15134_v18 }
 0xb8b   : > { %6703 = vrot.lane.b32.xlu1 %v15130_v51, %s16437_s8  ;;  %6567 = vrot.lane.b32.xlu0 %v15130_v51, %s16441_s18 }
 0xb8f   : > { %6655 = vrot.lane.b32.xlu1 %v15130_v51, %s16442_s9  ;;  %6589 = vrot.lane.b32.xlu0 %v15130_v51, %s16444_s0 }
 0xb93   : > { %6619 = vrot.lane.b32.xlu1 %v15130_v51, %s16454_s6  ;;  %6691 = vrot.lane.b32.xlu0 %v15130_v51, %s16449_s14 }
 0xb97   : > { %6715 = vrot.lane.b32.xlu1 %v15130_v51, %s16440_s22  ;;  %6217 = vrot.lane.b32.xlu0 %v15130_v51, %s16450_s15 }
 0xb9b   : > { %6667 = vrot.lane.b32.xlu1 %v15130_v51, %s16445_s10  ;;  %6393 = vrot.lane.b32.xlu0 %v15130_v51, %s16438_s7 }
 0xb9f   : > { %6631 = vrot.lane.b32.xlu1 %v15130_v51, %s16439_s5  ;;  %6305 = vrot.lane.b32.xlu0 %v15130_v51, %s16453_s17 }
 0xba3   : > { %6727 = vrot.lane.b32.xlu1 %v15130_v51, %s16527_s27  ;;  %6239 = vrot.lane.b32.xlu0 %v15130_v51, %s16435_s4 }
 0xba7   : > { %6679 = vrot.lane.b32.xlu1 %v15130_v51, %s16528_s12  ;;  %6415 = vrot.lane.b32.xlu0 %v15130_v51, %s16455_s20 }
 0xbab   : > { %6643 = vrot.lane.b32.xlu1 %v15130_v51, %s16529_s2  ;;  %6541 = vrot.lane.b32.xlu0 %v15134_v18, %s16473_s26  ;;  %s16531_s26 = smov 5  }
 0xbaf   : > { %6739 = vrot.lane.b32.xlu1 %v15130_v51, %s16530_s29  ;;  %6327 = vrot.lane.b32.xlu0 %v15130_v51, %s16456_s21 }
 0xbb3   : > { %6129 = vrot.lane.b32.xlu1 %v15130_v51, %s16451_s13  ;;  %6701 = vrot.lane.b32.xlu0 %v15134_v18, %s16437_s8 }
 0xbb7   : > { %6151 = vrot.lane.b32.xlu1 %v15130_v51, %s16436_s3  ;;  %6653 = vrot.lane.b32.xlu0 %v15134_v18, %s16442_s9 }
 0xbbb   : > { %6605 = vrot.lane.b32.xlu1 %v15134_v18, %s16463_s25  ;;  %6167 = vrot.lane.b32.xlu0 %v14856_v42, %s16446_s23 }
 0xbbf   : > { %6325 = vrot.lane.b32.xlu1 %v14863_v30, %s16456_s21  ;;  %7910 = vrot.lane.b32.xlu0 %v15212_v37, %s16454_s6 }
 0xbc3   : > { %6563 = vrot.lane.b32.xlu1 %v15134_v18, %s16441_s18  ;;  %6617 = vrot.lane.b32.xlu0 %v15134_v18, %s16454_s6 }
 0xbc7   : > { %7870 = vrot.lane.b32.xlu1 %v15212_v37, %s16463_s25  ;;  %6713 = vrot.lane.b32.xlu0 %v15134_v18, %s16440_s22 }
 0xbcb   : > { %6585 = vrot.lane.b32.xlu1 %v15134_v18, %s16444_s0  ;;  %6665 = vrot.lane.b32.xlu0 %v15134_v18, %s16445_s10  ;;  %s16532_s10 = smov 9  }
 0xbcf   : > { %6431 = vrot.lane.b32.xlu1 %v14856_v42, %s16531_s26  ;;  %6261 = vrot.lane.b32.xlu0 %v15130_v51, %s16443_s30 }
 0xbd3   : > { %6259 = vrot.lane.b32.xlu1 %v14863_v30, %s16443_s30  ;;  %6171 = vrot.lane.b32.xlu0 %v14863_v30, %s16446_s23 }
 0xbd7   : > { %6343 = vrot.lane.b32.xlu1 %v14856_v42, %s16532_s10  ;;  %7912 = vrot.lane.b32.xlu0 %v15250_v49, %s16454_s6 }
 0xbdb   : > { %7872 = vrot.lane.b32.xlu1 %v15250_v49, %s16463_s25  ;;  %6437 = vrot.lane.b32.xlu0 %v15130_v51, %s16531_s26 }
 0xbdf   : > { %6173 = vrot.lane.b32.xlu1 %v15130_v51, %s16446_s23  ;;  %6349 = vrot.lane.b32.xlu0 %v15130_v51, %s16532_s10 }
 0xbe3   : > { %6435 = vrot.lane.b32.xlu1 %v14863_v30, %s16531_s26  ;;  %6189 = vrot.lane.b32.xlu0 %v14856_v42, %s16458_s24 }
 0xbe7   : > { %6277 = vrot.lane.b32.xlu1 %v14856_v42, %s16457_s19  ;;  %7914 = vrot.lane.b32.xlu0 %v15280_v58, %s16454_s6  ;;  %v11870_v42 = vld [vmem:[#allocation2] sm:$0xff] }
 0xbeb   : > { %6347 = vrot.lane.b32.xlu1 %v14863_v30, %s16532_s10  ;;  %6283 = vrot.lane.b32.xlu0 %v15130_v51, %s16457_s19  ;;  %v15305_v30 = vpop.permute.xlu1 %7868 }
 0xbef   : > { %7874 = vrot.lane.b32.xlu1 %v15280_v58, %s16463_s25  ;;  %6629 = vrot.lane.b32.xlu0 %v15134_v18, %s16439_s5 }
 0xbf3   : > { %6453 = vrot.lane.b32.xlu1 %v11870_v42, %s16452_s16  ;;  %6725 = vrot.lane.b32.xlu0 %v15134_v18, %s16527_s27 }
 0xbf7   : > { %6281 = vrot.lane.b32.xlu1 %v11871_v57, %s16457_s19  ;;  %6677 = vrot.lane.b32.xlu0 %v15134_v18, %s16528_s12  ;;  %s16539_s12 = smov 115  }
 0xbf9   : > { %v6608_v21 = vpop.permute.xlu1 %6607  ;;  %v6546_v23 = vpop.permute.xlu0 %6545 }
 0xbfa   : > { %6612 = vst.msk [vmem:[#allocation3 + $0x148] sm:$0xff] %vm1277_vm9, %v6608_v21  ;;  %v6548_v27 = vsel %vm16533_vm12, %v15142_v59, %v6546_v23  ;;  %vm16537_vm12 = vcmask 48128   ;;  %v15377_v23 = vld [vmem:[#allocation4 + $0x78] sm:$0xff] }
 0xbfb   : > { %6552 = vst.msk [vmem:[#allocation3 + $0x108] sm:$0xff] %vm1277_vm9, %v6548_v27  ;;  %6365 = vrot.lane.b32.xlu1 %v11870_v42, %s16461_s1  ;;  %6641 = vrot.lane.b32.xlu0 %v15134_v18, %s16529_s2  ;;  %v7889_v42 = vmax.bf16 %v15286_v13, %v15076_v9  ;;  %s16628_s2 = sld [smem:[#allocation99_spill]] }
 0xbfd   : > { %v6704_v17 = vpop.permute.xlu1 %6703  ;;  %v6568_v50 = vpop.permute.xlu0 %6567  ;;  %v7929_v27 = vmax.bf16 %v15288_v4, %v7889_v42 }
 0xbfe   : > { %6708 = vst.msk [vmem:[#allocation3 + $0x1c8] sm:$0xff] %vm1277_vm9, %v6704_v17  ;;  %v6570_v56 = vsel %vm16534_vm5, %v15148_v53, %v6568_v50  ;;  %vm16538_vm5 = vcmask 23552  }
 0xbff   : > { %6574 = vst.msk [vmem:[#allocation3 + $0x118] sm:$0xff] %vm1277_vm9, %v6570_v56  ;;  %7876 = vrot.lane.b32.xlu1 %v15322_v63, %s16463_s25  ;;  %6737 = vrot.lane.b32.xlu0 %v15134_v18, %s16530_s29  ;;  %v7945_v56 = vsel %vm3048_vm2, %v7929_v27, 0 }
 0xc01   : > { %v6656_v12 = vpop.permute.xlu1 %6655  ;;  %v6590_v28 = vpop.permute.xlu0 %6589 }
 0xc02   : > { %6660 = vst.msk [vmem:[#allocation3 + $0x188] sm:$0xff] %vm1277_vm9, %v6656_v12  ;;  %v6592_v11 = vsel %vm16535_vm7, %v15158_v54, %v6590_v28  ;;  %vm16540_vm7 = vcmask 80896  }
 0xc03   : > { %6596 = vst.msk [vmem:[#allocation3 + $0x128] sm:$0xff] %vm1277_vm9, %v6592_v11  ;;  %6689 = vrot.lane.b32.xlu0 %v15134_v18, %s16449_s14  ;;  %6147 = vrot.lane.b32.xlu1 %v15134_v18, %s16436_s3  ;;  %s16544_s14 = smov 111  }
 0xc05   : > { %v6620_v24 = vpop.permute.xlu1 %6619  ;;  %v6692_v16 = vpop.permute.xlu0 %6691 }
 0xc06   : > { %6624 = vst.msk [vmem:[#allocation3 + $0x158] sm:$0xff] %vm1277_vm9, %v6620_v24  ;;  %6696 = vst.msk [vmem:[#allocation3 + $0x1b8] sm:$0xff] %vm1277_vm9, %v6692_v16  ;;  %v7893_v16 = vmax.bf16 %v15305_v30, %v15103_v26 }
 0xc07   : > { %6193 = vrot.lane.b32.xlu0 %v11871_v57, %s16458_s24  ;;  %6195 = vrot.lane.b32.xlu1 %v15130_v51, %s16458_s24 }
 0xc08   : > { %v7933_v26 = vmax.bf16 %v15307_v47, %v7893_v16 }
 0xc09   : > { %v6716_v38 = vpop.permute.xlu1 %6715  ;;  %v6218_v34 = vpop.permute.xlu0 %6217 }
 0xc0a   : > { %6720 = vst.msk [vmem:[#allocation3 + $0x1d8] sm:$0xff] %vm1277_vm9, %v6716_v38  ;;  %v6220_v44 = vsel %vm1391_vm13, %v15190_v40, %v6218_v34 }
 0xc0b   : > { %6224 = vst.msk [vmem:[#allocation3 + $0x48] sm:$0xff] %vm1277_vm9, %v6220_v44  ;;  %6213 = vrot.lane.b32.xlu0 %v15134_v18, %s16450_s15  ;;  %6169 = vrot.lane.b32.xlu1 %v15134_v18, %s16446_s23  ;;  %s16546_s15 = smov 110  }
 0xc0d   : > { %v6668_v61 = vpop.permute.xlu1 %6667  ;;  %v6394_v62 = vpop.permute.xlu0 %6393 }
 0xc0e   : > { %6672 = vst.msk [vmem:[#allocation3 + $0x198] sm:$0xff] %vm1277_vm9, %v6668_v61  ;;  %v6396_v45 = vsel %vm1575_vm4, %v15206_v41, %v6394_v62 }
 0xc0f   : > { %6400 = vst.msk [vmem:[#allocation3 + $0xc8] sm:$0xff] %vm1277_vm9, %v6396_v45  ;;  %6457 = vrot.lane.b32.xlu1 %v11871_v57, %s16452_s16  ;;  %6125 = vrot.lane.b32.xlu0 %v15134_v18, %s16451_s13  ;;  %s16542_s13 = smov 112  }
 0xc11   : > { %v6632_v14 = vpop.permute.xlu1 %6631  ;;  %v6306_v32 = vpop.permute.xlu0 %6305 }
 0xc12   : > { %6636 = vst.msk [vmem:[#allocation3 + $0x168] sm:$0xff] %vm1277_vm9, %v6632_v14  ;;  %v6308_v59 = vsel %vm1483_vm8, %v15224_v6, %v6306_v32  ;;  %v7949_v32 = vsel %vm3048_vm2, %v7933_v26, 0 }
 0xc13   : > { %6312 = vst.msk [vmem:[#allocation3 + $0x88] sm:$0xff] %vm1277_vm9, %v6308_v59  ;;  %6191 = vrot.lane.b32.xlu1 %v15134_v18, %s16458_s24  ;;  %6389 = vrot.lane.b32.xlu0 %v15134_v18, %s16438_s7  ;;  %v6802_v59 = vld [vmem:[#allocation3 + $0x1c8] sm:$0xff]  ;;  %s12648_s7 = smov [#allocation39]  }
 0xc15   : > { %v6728_v53 = vpop.permute.xlu1 %6727  ;;  %v6240_v54 = vpop.permute.xlu0 %6239 }
 0xc16   : > { %6732 = vst.msk [vmem:[#allocation3 + $0x1e8] sm:$0xff] %vm1277_vm9, %v6728_v53  ;;  %v6242_v40 = vsel %vm16536_vm0, %v15242_v5, %v6240_v54  ;;  %vm16541_vm0 = vcmask 15360  }
 0xc17   : > { %6246 = vst.msk [vmem:[#allocation3 + $0x58] sm:$0xff] %vm1277_vm9, %v6242_v40  ;;  %6369 = vrot.lane.b32.xlu1 %v11871_v57, %s16461_s1  ;;  %6301 = vrot.lane.b32.xlu0 %v15134_v18, %s16453_s17  ;;  %s16608_s17 = sld [smem:[#allocation64_spill]] }
 0xc19   : > { %v6680_v41 = vpop.permute.xlu1 %6679  ;;  %v6416_v6 = vpop.permute.xlu0 %6415 }
 0xc1a   : > { %6684 = vst.msk [vmem:[#allocation3 + $0x1a8] sm:$0xff] %vm1277_vm9, %v6680_v41  ;;  %v6418_v21 = vsel %vm16537_vm12, %v15264_v36, %v6416_v6  ;;  %v7842_v36 = vld [vmem:[#allocation4 + $0x10] sm:$0xff]  ;;  %v6794_v41 = vld [vmem:[#allocation3 + $0x188] sm:$0xff]  ;;  %vm16543_vm12 = vcmask 7168  }
 0xc1b   : > { %6422 = vst.msk [vmem:[#allocation3 + $0xd8] sm:$0xff] %vm1277_vm9, %v6418_v21  ;;  %7878 = vrot.lane.b32.xlu1 %v15377_v23, %s16463_s25  ;;  %6235 = vrot.lane.b32.xlu0 %v15134_v18, %s16435_s4  ;;  %v7890_v31 = vmax.bf16 %v15294_v8, %v7842_v36  ;;  %v7846_v21 = vld [vmem:[#allocation4 + $0x30] sm:$0xff]  ;;  %s12439_s4 = sshll.u32 %s12648_s7, 4  ;;  %s12440_s4 = int_to_ptr.vmem [resolvable:$false] %s12439_s4 }
 0xc1c   : > { %s12441_s18 = scalar_lea.vmem %s12440_s4, 4096 }
 0xc1d   : > { %v6644_v5 = vpop.permute.xlu1 %6643  ;;  %v6542_v57 = vpop.permute.xlu0 %6541  ;;  %v7930_v28 = vmax.bf16 %v15296_v25, %v7890_v31  ;;  %s9621_s29 = sshll.u32 %s16608_s17, 7  ;;  %s9262_s9 = scalar_lea.sflag [#allocation40], %s16608_s17 }
 0xc1e   : > { %6648 = vst.msk [vmem:[#allocation3 + $0x178] sm:$0xff] %vm1277_vm9, %v6644_v5  ;;  %v6547_v9 = vsel %vm16538_vm5, %v15128_v60, %v6542_v57  ;;  %v6786_v5 = vld [vmem:[#allocation3 + $0x148] sm:$0xff]  ;;  %vm16545_vm5 = vcmask 39936  }
 0xc1f   : > { %6551 = vst.msk [vmem:[#allocation3 + $0x100] sm:$0xff] %vm1277_vm9, %v6547_v9  ;;  %7521 = vrot.lane.b32.xlu1 %v15134_v18, %s16539_s12  ;;  %7916 = vrot.lane.b32.xlu0 %v15322_v63, %s16454_s6  ;;  %v6778_v9 = vld [vmem:[#allocation3 + $0x108] sm:$0xff] }
 0xc21   : > { %v6740_v17 = vpop.permute.xlu1 %6739  ;;  %v6328_v50 = vpop.permute.xlu0 %6327 }
 0xc22   : > { %6744 = vst.msk [vmem:[#allocation3 + $0x1f8] sm:$0xff] %vm1277_vm9, %v6740_v17 }
 0xc23   : > { %6411 = vrot.lane.b32.xlu0 %v15134_v18, %s16455_s20  ;;  %7978 = vrot.lane.b32.xlu1 %v7945_v56, %s16444_s0  ;;  %s16623_s20 = sld [smem:[#allocation58_spill]] }
 0xc25   : > { %v6130_v60 = vpop.permute.xlu1 %6129  ;;  %v6702_v12 = vpop.permute.xlu0 %6701 }
 0xc26   : > { %v6132_v11 = vsel %vm1299_vm15, %v15254_v35, %v6130_v60  ;;  %6707 = vst.msk [vmem:[#allocation3 + $0x1c0] sm:$0xff] %vm1277_vm9, %v6702_v12  ;;  %v7946_v35 = vsel %vm3048_vm2, %v7930_v28, 0  ;;  %v6777_v42 = vld [vmem:[#allocation3 + $0x100] sm:$0xff]  ;;  %v6788_v28 = vld [vmem:[#allocation3 + $0x158] sm:$0xff] }
 0xc27   : > { %6136 = vst.msk [vmem:[#allocation3 + $0x8] sm:$0xff] %vm1277_vm9, %v6132_v11  ;;  %6323 = vrot.lane.b32.xlu0 %v15134_v18, %s16456_s21  ;;  %7533 = vrot.lane.b32.xlu1 %v15134_v18, %s16484_s11  ;;  %s16626_s21 = sld [smem:[#allocation62_spill]] }
 0xc29   : > { %v6152_v46 = vpop.permute.xlu1 %6151  ;;  %v6654_v24 = vpop.permute.xlu0 %6653  ;;  %s10016_s27 = sshll.u32 %s16623_s20, 11 }
 0xc2a   : > { %v6154_v38 = vsel %vm1322_vm3, %v15274_v29, %v6152_v46  ;;  %6659 = vst.msk [vmem:[#allocation3 + $0x180] sm:$0xff] %vm1277_vm9, %v6654_v24  ;;  %v6780_v24 = vld [vmem:[#allocation3 + $0x118] sm:$0xff]  ;;  %s16090_s3 = scalar_lea.hbm %s16628_s2, %s10016_s27 }
 0xc2b   : > { %6158 = vst.msk [vmem:[#allocation3 + $0x18] sm:$0xff] %vm1277_vm9, %v6154_v38  ;;  %6257 = vrot.lane.b32.xlu0 %v15134_v18, %s16443_s30  ;;  %7980 = vrot.lane.b32.xlu1 %v7946_v35, %s16444_s0  ;;  %s16629_s30 = smov %s16628_s2 }
 0xc2d   : > { %v6606_v34 = vpop.permute.xlu1 %6605  ;;  %v15420_v44 = vpop.permute.xlu0 %6167  ;;  %v6801_v61 = vld [vmem:[#allocation3 + $0x1c0] sm:$0xff]  ;;  %p16630_p13 = scmp.ne.s32.totalorder %s16626_s21, 0 }
 0xc2e   : > { %6611 = vst.msk [vmem:[#allocation3 + $0x140] sm:$0xff] %vm1277_vm9, %v6606_v34  ;;  %10641 = vmatprep.subr.bf16.mxu0 %v6801_v61  ;;  %v6804_v61 = vld [vmem:[#allocation3 + $0x1d8] sm:$0xff] }
 0xc2f   : > { %6459 = vrot.lane.b32.xlu0 %v15130_v51, %s16452_s16  ;;  %7545 = vrot.lane.b32.xlu1 %v15134_v18, %s16485_s28 }
 0xc31   : > { %v6326_v29 = vpop.permute.xlu1 %6325  ;;  %v15428_v62 = vpop.permute.xlu0 %7910  ;;  %v6793_v45 = vld [vmem:[#allocation3 + $0x180] sm:$0xff] }
 0xc32   : > { %v6330_v14 = vsel %vm16540_vm7, %v6326_v29, %v6328_v50  ;;  %10642 = vmatpush3.bf16.msra.mxu0 %v6793_v45  ;;  %v6796_v45 = vld [vmem:[#allocation3 + $0x198] sm:$0xff]  ;;  %vm16547_vm7 = vcmask 72704  }
 0xc33   : > { %6334 = vst.msk [vmem:[#allocation3 + $0x98] sm:$0xff] %vm1277_vm9, %v6330_v14  ;;  %6433 = vrot.lane.b32.xlu0 %v15134_v18, %s16531_s26  ;;  %7986 = vrot.lane.b32.xlu1 %v7949_v32, %s16444_s0 }
 0xc34   : > { %10643 = vmatprep.subr.bf16.mxu0 %v6802_v59 }
 0xc35   : > { %v6564_v53 = vpop.permute.xlu1 %6563  ;;  %v6618_v54 = vpop.permute.xlu0 %6617  ;;  %v6785_v40 = vld [vmem:[#allocation3 + $0x140] sm:$0xff] }
 0xc36   : > { %v6569_v6 = vsel %vm16541_vm0, %v15232_v43, %v6564_v53  ;;  %6623 = vst.msk [vmem:[#allocation3 + $0x150] sm:$0xff] %vm1277_vm9, %v6618_v54  ;;  %10577 = vmatprep.subr.bf16.mxu1 %v6785_v40  ;;  %10644 = vmatpush3.bf16.msra.mxu0 %v6794_v41  ;;  %v7840_v53 = vld [vmem:[#allocation4] sm:$0xff] }
 0xc37   : > { %6573 = vst.msk [vmem:[#allocation3 + $0x110] sm:$0xff] %vm1277_vm9, %v6569_v6  ;;  %6345 = vrot.lane.b32.xlu0 %v15134_v18, %s16532_s10  ;;  %7557 = vrot.lane.b32.xlu1 %v15134_v18, %s16542_s13  ;;  %v7888_v6 = vmax.bf16 %v15286_v13, %v7840_v53 }
 0xc38   : > { %10578 = vmatpush3.bf16.msra.mxu1 %v6777_v42 }
 0xc39   : > { %10579 = vmatprep.subr.bf16.mxu1 %v6786_v5  ;;  %v15445_v57 = vpop.permute.xlu1 %7870  ;;  %v6714_v43 = vpop.permute.xlu0 %6713 }
 0xc3a   : > { %v7894_v27 = vmax.bf16 %v15445_v57, %v7846_v21  ;;  %6719 = vst.msk [vmem:[#allocation3 + $0x1d0] sm:$0xff] %vm1277_vm9, %v6714_v43  ;;  %v7928_v43 = vmax.bf16 %v15288_v4, %v7888_v6 }
 0xc3b   : > { %6279 = vrot.lane.b32.xlu0 %v15134_v18, %s16457_s19  ;;  %s16051_s19 = scalar_lea.vmem [#allocation39], %s9621_s29 }
 0xc3c   : > { %10580 = vmatpush3.bf16.msra.mxu1 %v6778_v9  ;;  %v7934_v36 = vmax.bf16 %v15428_v62, %v7894_v27  ;;  %v7944_v4 = vsel %vm3048_vm2, %v7928_v43, 0 }
 0xc3d   : > { %v6586_v17 = vpop.permute.xlu1 %6585  ;;  %v6666_v50 = vpop.permute.xlu0 %6665  ;;  %v6787_v31 = vld [vmem:[#allocation3 + $0x150] sm:$0xff] }
 0xc3e   : > { %v6591_v56 = vsel %vm16543_vm12, %v15244_v33, %v6586_v17  ;;  %6671 = vst.msk [vmem:[#allocation3 + $0x190] sm:$0xff] %vm1277_vm9, %v6666_v50  ;;  %10581 = vmatprep.subr.bf16.mxu1 %v6787_v31  ;;  %v7950_v60 = vsel %vm3048_vm2, %v7934_v36, 0  ;;  %v6779_v12 = vld [vmem:[#allocation3 + $0x110] sm:$0xff]  ;;  %v7891_v36 = vmax.bf16 %v15294_v8, %v15088_v55  ;;  %v7850_v55 = vld [vmem:[#allocation4 + $0x50] sm:$0xff] }
 0xc3f   : > { %6595 = vst.msk [vmem:[#allocation3 + $0x120] sm:$0xff] %vm1277_vm9, %v6591_v56  ;;  %6455 = vrot.lane.b32.xlu0 %v15134_v18, %s16452_s16  ;;  %7988 = vrot.lane.b32.xlu1 %v7950_v60, %s16444_s0  ;;  %v7844_v17 = vld [vmem:[#allocation4 + $0x20] sm:$0xff]  ;;  %s16556_s16 = smov 32  }
 0xc40   : > { %10582 = vmatpush3.bf16.msra.mxu1 %v6779_v12  ;;  %v7931_v56 = vmax.bf16 %v15296_v25, %v7891_v36  ;;  %v7892_v60 = vmax.bf16 %v15305_v30, %v7844_v17  ;;  %v6806_v36 = vld [vmem:[#allocation3 + $0x1e8] sm:$0xff] }
 0xc41   : > { %10583 = vmatprep.subr.bf16.mxu1 %v6788_v28  ;;  %v15461_v11 = vpop.permute.xlu1 %6431  ;;  %v6262_v33 = vpop.permute.xlu0 %6261  ;;  %v6803_v46 = vld [vmem:[#allocation3 + $0x1d0] sm:$0xff] }
 0xc42   : > { %10645 = vmatprep.subr.bf16.mxu0 %v6803_v46  ;;  %v7947_v25 = vsel %vm3048_vm2, %v7931_v56, 0 }
 0xc43   : > { %6367 = vrot.lane.b32.xlu0 %v15134_v18, %s16461_s1  ;;  %7569 = vrot.lane.b32.xlu1 %v15134_v18, %s16544_s14 }
 0xc44   : > { %10584 = vmatpush3.bf16.msra.mxu1 %v6780_v24 }
 0xc45   : > { %v6260_v16 = vpop.permute.xlu1 %6259  ;;  %v6172_v38 = vpop.permute.xlu0 %6171  ;;  %v6795_v35 = vld [vmem:[#allocation3 + $0x190] sm:$0xff] }
 0xc46   : > { %v6264_v34 = vsel %vm1437_vm10, %v6260_v16, %v6262_v33  ;;  %10646 = vmatpush3.bf16.msra.mxu0 %v6795_v35  ;;  %v7932_v33 = vmax.bf16 %v15307_v47, %v7892_v60  ;;  %v6781_v53 = vld [vmem:[#allocation3 + $0x120] sm:$0xff]  ;;  %v6792_v60 = vld [vmem:[#allocation3 + $0x178] sm:$0xff] }
 0xc47   : > { %6268 = vst.msk [vmem:[#allocation3 + $0x68] sm:$0xff] %vm1277_vm9, %v6264_v34  ;;  %6371 = vrot.lane.b32.xlu0 %v15130_v51, %s16461_s1  ;;  %10647 = vmatprep.subr.bf16.mxu0 %v6804_v61  ;;  %v7848_v34 = vld [vmem:[#allocation4 + $0x40] sm:$0xff] }
 0xc48   : > { %v7948_v47 = vsel %vm3048_vm2, %v7932_v33, 0  ;;  %v6784_v33 = vld [vmem:[#allocation3 + $0x138] sm:$0xff] }
 0xc49   : > { %v15471_v26 = vpop.permute.xlu1 %6343  ;;  %v15473_v29 = vpop.permute.xlu0 %7912 }
 0xc4a   : > { %10648 = vmatpush3.bf16.msra.mxu0 %v6796_v45 }
 0xc4b   : > { %7918 = vrot.lane.b32.xlu0 %v15377_v23, %s16454_s6 }
 0xc4d   : > { %v15477_v14 = vpop.permute.xlu1 %7872  ;;  %v6438_v32 = vpop.permute.xlu0 %6437 }
 0xc4e   : > { %v7897_v59 = vmax.bf16 %v15477_v14, %v15250_v49 }
 0xc4f   : > { %7523 = vrot.lane.b32.xlu0 %v15130_v51, %s16539_s12 }
 0xc50   : > { %v7937_v54 = vmax.bf16 %v15473_v29, %v7897_v59  ;;  %v7896_v59 = vmax.bf16 %v15477_v14, %v7848_v34 }
 0xc51   : > { %v6174_v40 = vpop.permute.xlu1 %6173  ;;  %v6350_v41 = vpop.permute.xlu0 %6349 }
 0xc52   : > { %v6176_v42 = vsel %vm1345_vm11, %v6172_v38, %v6174_v40  ;;  %v7953_v21 = vsel %vm3048_vm2, %v7937_v54, 0  ;;  %v7895_v38 = vmax.bf16 %v15445_v57, %v15212_v37  ;;  %v6790_v54 = vld [vmem:[#allocation3 + $0x168] sm:$0xff]  ;;  %v7936_v6 = vmax.bf16 %v15473_v29, %v7896_v59  ;;  %v11739_v59 = vld [vmem:[#allocation26 + $0xc4] ss:$44 sps:$4 sm:$0xff]  }
 0xc53   : > { %6180 = vst.msk [vmem:[#allocation3 + $0x28] sm:$0xff] %vm1277_vm9, %v6176_v42  ;;  %7535 = vrot.lane.b32.xlu0 %v15130_v51, %s16484_s11  ;;  %7994 = vrot.lane.b32.xlu1 %v7953_v21, %s16444_s0  ;;  %s16548_s11 = smov 109   ;;  %v6782_v42 = vld [vmem:[#allocation3 + $0x128] sm:$0xff] }
 0xc54   : > { %v7935_v57 = vmax.bf16 %v15428_v62, %v7895_v38 }
 0xc55   : > { %v6436_v49 = vpop.permute.xlu1 %6435  ;;  %v15492_v5 = vpop.permute.xlu0 %6189 }
 0xc56   : > { %v6440_v27 = vsel %vm16545_vm5, %v6436_v49, %v6438_v32  ;;  %v7951_v62 = vsel %vm3048_vm2, %v7935_v57, 0 }
 0xc57   : > { %6444 = vst.msk [vmem:[#allocation3 + $0xe8] sm:$0xff] %vm1277_vm9, %v6440_v27  ;;  %7547 = vrot.lane.b32.xlu0 %v15130_v51, %s16485_s28  ;;  %7581 = vrot.lane.b32.xlu1 %v15134_v18, %s16546_s15  ;;  %v7952_v27 = vsel %vm3048_vm2, %v7936_v6, 0  ;;  %s9288_s28 = sshll.u32 %s16051_s19, 4  ;;  %s16092_s28 = int_to_ptr.vmem [resolvable:$true] %s9288_s28 }
 0xc58   : > { %s12435_s5 = scalar_lea.vmem %s16092_s28, 2048  ;;  %p12442_p9 = scmp.lt.s32.totalorder %s16092_s28, %s12440_s4 }
 0xc59   : > { %v15501_v13 = vpop.permute.xlu1 %6277  ;;  %v15503_v9 = vpop.permute.xlu0 %7914  ;;  %p12436_p11 = scmp.ne.s32.totalorder %s16092_s28, %s12435_s5  ;;  %p12443_p1 = scmp.lt.s32.totalorder %s12441_s18, %s12435_s5 }
 0xc5b   : > { %7976 = vrot.lane.b32.xlu0 %v7944_v4, %s16444_s0  ;;  %p12437_p4 = pnand %p12436_p11, %p16630_p13  ;;  %p12444_p3 = por %p12443_p1, %p12442_p9 }
 0xc5d   : > { %v6348_v50 = vpop.permute.xlu1 %6347  ;;  %v6284_v31 = vpop.permute.xlu0 %6283  ;;  %p12438_p6 = pneg %p12437_p4 }
 0xc5e   : > { %v6352_v12 = vsel %vm16547_vm7, %v6348_v50, %v6350_v41  ;;  %v6798_v50 = vld [vmem:[#allocation3 + $0x1a8] sm:$0xff] }
 0xc5f   : > { %6356 = vst.msk [vmem:[#allocation3 + $0xa8] sm:$0xff] %vm1277_vm9, %v6352_v12  ;;  %7559 = vrot.lane.b32.xlu0 %v15130_v51, %s16542_s13  ;;  %p12445_p7 = pnand %p12444_p3, %p12438_p6 }
 0xc61   : > { %v7875_v8 = vpop.permute.xlu1 %7874  ;;  %v6630_v28 = vpop.permute.xlu0 %6629 }
 0xc62   : > { %v7898_v46 = vmax.bf16 %v7875_v8, %v7850_v55  ;;  %6635 = vst.msk [vmem:[#allocation3 + $0x160] sm:$0xff] %vm1277_vm9, %v6630_v28  ;;  %v7899_v43 = vmax.bf16 %v7875_v8, %v15280_v58  ;;  %v6783_v58 = vld [vmem:[#allocation3 + $0x130] sm:$0xff] }
 0xc63   : > { %7982 = vrot.lane.b32.xlu0 %v7947_v25, %s16444_s0 }
 0xc64   : > { %v7938_v30 = vmax.bf16 %v15503_v9, %v7898_v46  ;;  %v7939_v56 = vmax.bf16 %v15503_v9, %v7899_v43  ;;  %v11728_v46 = vld [vmem:[#allocation26 + $0x10] ss:$44 sps:$4 sm:$0xff]  }
 0xc65   : > { %v15522_v24 = vpop.permute.xlu1 %6453  ;;  %v6726_v16 = vpop.permute.xlu0 %6725  ;;  %v6508_v43 = vld [vmem:[#allocation3 + $0x48] sm:$0xff] }
 0xc66   : > { %6731 = vst.msk [vmem:[#allocation3 + $0x1e0] sm:$0xff] %vm1277_vm9, %v6726_v16  ;;  %v7954_v35 = vsel %vm3048_vm2, %v7938_v30, 0  ;;  %v7955_v28 = vsel %vm3048_vm2, %v7939_v56, 0 }
 0xc67   : > { %7984 = vrot.lane.b32.xlu0 %v7948_v47, %s16444_s0  ;;  %7996 = vrot.lane.b32.xlu1 %v7954_v35, %s16444_s0  ;;  %v6808_v47 = vld [vmem:[#allocation3 + $0x1f8] sm:$0xff] }
 0xc69   : > { %v6282_v61 = vpop.permute.xlu1 %6281  ;;  %v6678_v45 = vpop.permute.xlu0 %6677  ;;  %v6789_v32 = vld [vmem:[#allocation3 + $0x160] sm:$0xff] }
 0xc6a   : > { %v6286_v37 = vsel %vm1460_vm6, %v6282_v61, %v6284_v31  ;;  %6683 = vst.msk [vmem:[#allocation3 + $0x1a0] sm:$0xff] %vm1277_vm9, %v6678_v45  ;;  %10585 = vmatprep.subr.bf16.mxu1 %v6789_v32  ;;  %v6800_v61 = vld [vmem:[#allocation3 + $0x1b8] sm:$0xff]  ;;  %v11731_v45 = vld [vmem:[#allocation26 + $0x18] ss:$44 sps:$4 sm:$0xff]  }
 0xc6b   : > { %6290 = vst.msk [vmem:[#allocation3 + $0x78] sm:$0xff] %vm1277_vm9, %v6286_v37  ;;  %7571 = vrot.lane.b32.xlu0 %v15130_v51, %s16544_s14  ;;  %7593 = vrot.lane.b32.xlu1 %v15134_v18, %s16548_s11  ;;  %v11736_v32 = vld [vmem:[#allocation26 + $0x68] ss:$44 sps:$4 sm:$0xff]  }
 0xc6c   : > { %10586 = vmatpush3.bf16.msra.mxu1 %v6781_v53 }
 0xc6d   : > { %10587 = vmatprep.subr.bf16.mxu1 %v6790_v54  ;;  %v15542_v14 = vpop.permute.xlu1 %6365  ;;  %v6642_v40 = vpop.permute.xlu0 %6641  ;;  %v6805_v41 = vld [vmem:[#allocation3 + $0x1e0] sm:$0xff] }
 0xc6e   : > { %6647 = vst.msk [vmem:[#allocation3 + $0x170] sm:$0xff] %vm1277_vm9, %v6642_v40  ;;  %10649 = vmatprep.subr.bf16.mxu0 %v6805_v41  ;;  %v6750_v41 = vld [vmem:[#allocation26 + $0x70] sm:$0xff] }
 0xc6f   : > { %7990 = vrot.lane.b32.xlu0 %v7951_v62, %s16444_s0  ;;  %v6752_v62 = vld [vmem:[#allocation26 + $0x9c] sm:$0xff] }
 0xc70   : > { %10588 = vmatpush3.bf16.msra.mxu1 %v6782_v42  ;;  %v9861_v42 = vcombine.low %v6750_v41, %v6752_v62 }
 0xc71   : > { %v15549_v18 = vpop.permute.xlu1 %7876  ;;  %v6738_v21 = vpop.permute.xlu0 %6737  ;;  %v6797_v49 = vld [vmem:[#allocation3 + $0x1a0] sm:$0xff] }
 0xc72   : > { %6743 = vst.msk [vmem:[#allocation3 + $0x1f0] sm:$0xff] %vm1277_vm9, %v6738_v21  ;;  %10650 = vmatpush3.bf16.msra.mxu0 %v6797_v49  ;;  %v11742_v49 = vld [vmem:[#allocation26 + $0xcc] ss:$44 sps:$4 sm:$0xff]  }
 0xc73   : > { %7992 = vrot.lane.b32.xlu0 %v7952_v27, %s16444_s0  ;;  %10651 = vmatprep.subr.bf16.mxu0 %v6806_v36  ;;  %v11744_v27 = vld [vmem:[#allocation26 + $0x11c] ss:$44 sps:$4 sm:$0xff]  }
 0xc74   : > { %v7852_v36 = vld [vmem:[#allocation4 + $0x60] sm:$0xff] }
 0xc75   : > { %v6148_v29 = vpop.permute.xlu1 %6147  ;;  %v6690_v4 = vpop.permute.xlu0 %6689  ;;  %v6791_v17 = vld [vmem:[#allocation3 + $0x170] sm:$0xff]  ;;  %v7900_v56 = vmax.bf16 %v15549_v18, %v7852_v36  ;;  %v6526_v36 = vld [vmem:[#allocation3 + $0xd8] sm:$0xff] }
 0xc76   : > { %v6153_v31 = vsel %vm1322_vm3, %v15266_v20, %v6148_v29  ;;  %6695 = vst.msk [vmem:[#allocation3 + $0x1b0] sm:$0xff] %vm1277_vm9, %v6690_v4  ;;  %10589 = vmatprep.subr.bf16.mxu1 %v6791_v17  ;;  %10652 = vmatpush3.bf16.msra.mxu0 %v6798_v50  ;;  %v6500_v50 = vld [vmem:[#allocation3 + $0x8] sm:$0xff]  ;;  %vm16553_vm3 = vmmov %vm16545_vm5 }
 0xc77   : > { %6157 = vst.msk [vmem:[#allocation3 + $0x10] sm:$0xff] %vm1277_vm9, %v6153_v31  ;;  %7583 = vrot.lane.b32.xlu0 %v15130_v51, %s16546_s15  ;;  %10590 = vmatpush3.bf16.msra.mxu1 %v6783_v58  ;;  %v11734_v51 = vld [vmem:[#allocation26 + $0x6c] ss:$44 sps:$4 sm:$0xff]  }
 0xc78   : > { %10591 = vmatprep.subr.bf16.mxu1 %v6792_v60  ;;  %v6756_v58 = vld [vmem:[#allocation26 + $0xf4] sm:$0xff]  ;;  %v7901_v60 = vmax.bf16 %v15549_v18, %v15322_v63  ;;  %v11747_v63 = vld [vmem:[#allocation26 + $0x124] ss:$44 sps:$4 sm:$0xff]  }
 0xc79   : > { %v6196_v12 = vpop.permute.xlu1 %6195  ;;  %v6194_v55 = vpop.permute.xlu0 %6193  ;;  %v6807_v8 = vld [vmem:[#allocation3 + $0x1f0] sm:$0xff] }
 0xc7a   : > { %v6198_v20 = vsel %vm992_vm1, %v6194_v55, %v6196_v12  ;;  %10653 = vmatprep.subr.bf16.mxu0 %v6807_v8 }
 0xc7b   : > { %6202 = vst.msk [vmem:[#allocation3 + $0x38] sm:$0xff] %vm1277_vm9, %v6198_v20  ;;  %7998 = vrot.lane.b32.xlu0 %v7955_v28, %s16444_s0  ;;  %10592 = vmatpush3.bf16.msra.mxu1 %v6784_v33  ;;  %v11746_v33 = vld [vmem:[#allocation26 + $0x118] ss:$44 sps:$4 sm:$0xff]  }
 0xc7d   : > { %v6170_v9 = vpop.permute.xlu1 %6169  ;;  %v6214_v25 = vpop.permute.xlu0 %6213  ;;  %v6799_v30 = vld [vmem:[#allocation3 + $0x1b0] sm:$0xff] }
 0xc7e   : > { %v6175_v16 = vsel %vm1345_vm11, %v15420_v44, %v6170_v9  ;;  %v6219_v38 = vsel %vm1391_vm13, %v15164_v48, %v6214_v25  ;;  %10654 = vmatpush3.bf16.msra.mxu0 %v6799_v30  ;;  %7002 = vmatmul.mubr.bf16.vlgmr.msra.gmra.mrb[188].mxu1 %v11728_v46  ;;  %v11737_v48 = vld [vmem:[#allocation26 + $0x74] ss:$44 sps:$4 sm:$0xff]   ;;  %vm16550_vm11 = vcmask 48128   ;;  %vm16551_vm13 = vcmask 80896  }
 0xc7f   : > { %6179 = vst.msk [vmem:[#allocation3 + $0x20] sm:$0xff] %vm1277_vm9, %v6175_v16  ;;  %6223 = vst.msk [vmem:[#allocation3 + $0x40] sm:$0xff] %vm1277_vm9, %v6219_v38  ;;  %10655 = vmatprep.subr.bf16.mxu0 %v6808_v47  ;;  %7009 = vmatprep.mubr.bf16.mxu1 %v11734_v51  ;;  %v6524_v46 = vld [vmem:[#allocation3 + $0xc8] sm:$0xff] }
 0xc80   : > { %v6516_v38 = vld [vmem:[#allocation3 + $0x88] sm:$0xff] }
 0xc81   : > { %v15574_v35 = vpop.permute.xlu1 %6457  ;;  %v6126_v34 = vpop.permute.xlu0 %6125  ;;  %v11749_v47 = vld [vmem:[#allocation26 + $0x174] ss:$44 sps:$4 sm:$0xff]  }
 0xc82   : > { %v6131_v44 = vsel %vm1299_vm15, %v15174_v15, %v6126_v34  ;;  %10656 = vmatpush3.bf16.msra.mxu0 %v6800_v61  ;;  %v6501_v34 = vld [vmem:[#allocation3 + $0x10] sm:$0xff]  ;;  %vm16552_vm15 = vcmask 31744  }
 0xc83   : > { %6135 = vst.msk [vmem:[#allocation3] sm:$0xff] %vm1277_vm9, %v6131_v44  ;;  %v6758_v61 = vld [vmem:[#allocation26 + $0x120] sm:$0xff]  ;;  %v6510_v44 = vld [vmem:[#allocation3 + $0x58] sm:$0xff] }
 0xc85   : > { %v6192_v37 = vpop.permute.xlu1 %6191  ;;  %v6390_v57 = vpop.permute.xlu0 %6389  ;;  %7099 = vmatmul.mubr.bf16.vlgmr.msra.gmra.mrb[176].mxu0 %v11731_v45  ;;  %v6760_v45 = vld [vmem:[#allocation26 + $0x14c] sm:$0xff] }
 0xc86   : > { %v6197_v53 = vsel %vm992_vm1, %v15492_v5, %v6192_v37  ;;  %v6395_v54 = vsel %vm1575_vm4, %v15180_v22, %v6390_v57  ;;  %v6507_v40 = vld [vmem:[#allocation3 + $0x40] sm:$0xff]  ;;  %7010 = vmatmul.mubr.bf16.gmra.mrb[192].mxu1 %v11736_v32  ;;  %7106 = vmatprep.mubr.bf16.mxu0 %v11737_v48  ;;  %v11741_v22 = vld [vmem:[#allocation26 + $0xc0] ss:$44 sps:$4 sm:$0xff]   ;;  %vm16549_vm1 = vcmask 113664   ;;  %v9869_v37 = vcombine.low %v6758_v61, %v6760_v45  ;;  %vm16554_vm4 = vmmov %vm16547_vm7 }
 0xc87   : > { %6201 = vst.msk [vmem:[#allocation3 + $0x30] sm:$0xff] %vm1277_vm9, %v6197_v53  ;;  %6399 = vst.msk [vmem:[#allocation3 + $0xc0] sm:$0xff] %vm1277_vm9, %v6395_v54  ;;  %10705 = vmatprep.subr.bf16.mxu1 %v6507_v40  ;;  %7017 = vmatprep.mubr.bf16.mxu1 %v11739_v59  ;;  %v7590_v32 = vld [vmem:[#allocation2 + $0x18] sm:$0xff]  ;;  %v11766_v45 = vld [vmem:[#allocation26 + $0x278] ss:$44 sps:$4 sm:$0xff]   ;;  %vm16563_vm7 = vcmask 785408  }
 0xc88   : > { %v11751_v57 = vld [vmem:[#allocation26 + $0x170] ss:$44 sps:$4 sm:$0xff]   ;;  %v11754_v40 = vld [vmem:[#allocation26 + $0x1cc] ss:$44 sps:$4 sm:$0xff]  }
 0xc89   : > { %v15585_v15 = vpop.permute.xlu1 %6369  ;;  %v6302_v6 = vpop.permute.xlu0 %6301  ;;  %v6502_v53 = vld [vmem:[#allocation3 + $0x18] sm:$0xff] }
 0xc8a   : > { %v6307_v5 = vsel %vm1483_vm8, %v15196_v7, %v6302_v6  ;;  %v6499_v21 = vld [vmem:[#allocation3] sm:$0xff]  ;;  %v6754_v7 = vld [vmem:[#allocation26 + $0xc8] sm:$0xff]  ;;  %vm16555_vm8 = vmmov %vm16552_vm15 }
 0xc8b   : > { %6311 = vst.msk [vmem:[#allocation3 + $0x80] sm:$0xff] %vm1277_vm9, %v6307_v5  ;;  %10706 = vmatpush3.bf16.msra.mxu1 %v6499_v21  ;;  %v9865_v28 = vcombine.low %v6754_v7, %v6756_v58  ;;  %v11752_v54 = vld [vmem:[#allocation26 + $0x17c] ss:$44 sps:$4 sm:$0xff]  }
 0xc8c   : > { %10707 = vmatprep.subr.bf16.mxu1 %v6508_v43  ;;  %v6764_v5 = vld [vmem:[#allocation26 + $0x1a4] sm:$0xff] }
 0xc8d   : > { %v15590_v29 = vpop.permute.xlu1 %7878  ;;  %v6236_v4 = vpop.permute.xlu0 %6235  ;;  %7107 = vmatmul.mubr.bf16.gmra.mrb[180].mxu0 %v9861_v42 }
 0xc8e   : > { %v6241_v17 = vsel %vm16549_vm1, %v15214_v10, %v6236_v4  ;;  %v6523_v31 = vld [vmem:[#allocation3 + $0xc0] sm:$0xff]  ;;  %7018 = vmatmul.mubr.bf16.gmra.mrb[196].mxu1 %v11741_v22  ;;  %7114 = vmatprep.mubr.bf16.mxu0 %v11742_v49 }
 0xc8f   : > { %6245 = vst.msk [vmem:[#allocation3 + $0x50] sm:$0xff] %vm1277_vm9, %v6241_v17  ;;  %10708 = vmatpush3.bf16.msra.mxu1 %v6500_v50  ;;  %10769 = vmatprep.subr.bf16.mxu0 %v6523_v31  ;;  %v11757_v4 = vld [vmem:[#allocation26 + $0x1d4] ss:$44 sps:$4 sm:$0xff]   ;;  %v11759_v31 = vld [vmem:[#allocation26 + $0x224] ss:$44 sps:$4 sm:$0xff]  }
 0xc90   : > { %7025 = vmatprep.mubr.bf16.mxu1 %v11744_v27 }
 0xc91   : > { %v7522_v12 = vpop.permute.xlu1 %7521  ;;  %v7917_v55 = vpop.permute.xlu0 %7916 }
 0xc92   : > { %7527 = vst.msk [vmem:[#allocation3 + $0x200] sm:$0xff] %vm1277_vm9, %v7522_v12  ;;  %v7940_v10 = vmax.bf16 %v7917_v55, %v7900_v56  ;;  %v7941_v8 = vmax.bf16 %v7917_v55, %v7901_v60  ;;  %v6515_v20 = vld [vmem:[#allocation3 + $0x80] sm:$0xff]  ;;  %v6518_v56 = vld [vmem:[#allocation3 + $0x98] sm:$0xff]  ;;  %v6768_v12 = vld [vmem:[#allocation26 + $0x1fc] sm:$0xff] }
 0xc93   : > { %10770 = vmatpush3.bf16.msra.mxu0 %v6515_v20  ;;  %v6766_v60 = vld [vmem:[#allocation26 + $0x1d0] sm:$0xff]  ;;  %v6512_v55 = vld [vmem:[#allocation3 + $0x68] sm:$0xff] }
 0xc94   : > { %10771 = vmatprep.subr.bf16.mxu0 %v6524_v46  ;;  %v7957_v51 = vsel %vm3048_vm2, %v7941_v8, 0  ;;  %v7956_v9 = vsel %vm3048_vm2, %v7940_v10, 0  ;;  %v9877_v20 = vcombine.low %v6766_v60, %v6768_v12  ;;  %v11762_v46 = vld [vmem:[#allocation26 + $0x22c] ss:$44 sps:$4 sm:$0xff]   ;;  %v11773_v60 = vld [vmem:[#allocation26 + $0x8] ss:$44 sps:$4 sm:$0xff]  }
 0xc95   : > { %v15603_v18 = vpop.permute.xlu1 %7978  ;;  %8002 = vrot.lane.b32.xlu1 %v7957_v51, %s16444_s0  ;;  %8000 = vrot.lane.b32.xlu0 %v7956_v9, %s16444_s0  ;;  %v6412_v25 = vpop.permute.xlu0 %6411  ;;  %v11764_v51 = vld [vmem:[#allocation26 + $0x27c] ss:$44 sps:$4 sm:$0xff]  }
 0xc96   : > { %v6417_v30 = vsel %vm16550_vm11, %v15230_v39, %v6412_v25  ;;  %7115 = vmatmul.mubr.bf16.gmra.mrb[184].mxu0 %v9865_v28  ;;  %v6509_v16 = vld [vmem:[#allocation3 + $0x50] sm:$0xff]  ;;  %7026 = vmatmul.mubr.bf16.gmra.mrb[200].mxu1 %v11746_v33  ;;  %v6504_v33 = vld [vmem:[#allocation3 + $0x28] sm:$0xff]  ;;  %vm16565_vm11 = vmmov %vm16563_vm7 }
 0xc97   : > { %6421 = vst.msk [vmem:[#allocation3 + $0xd0] sm:$0xff] %vm1277_vm9, %v6417_v30  ;;  %10709 = vmatprep.subr.bf16.mxu1 %v6509_v16  ;;  %10772 = vmatpush3.bf16.msra.mxu0 %v6516_v38  ;;  %v11761_v28 = vld [vmem:[#allocation26 + $0x220] ss:$44 sps:$4 sm:$0xff]  }
 0xc98   : > { %10710 = vmatpush3.bf16.msra.mxu1 %v6501_v34  ;;  %7122 = vmatprep.mubr.bf16.mxu0 %v11747_v63  ;;  %v6770_v30 = vld [vmem:[#allocation26 + $0x228] sm:$0xff] }
 0xc99   : > { %v7534_v48 = vpop.permute.xlu1 %7533  ;;  %10711 = vmatprep.subr.bf16.mxu1 %v6510_v44  ;;  %7595 = vrot.lane.b32.xlu0 %v7590_v32, %s16548_s11  ;;  %v6324_v39 = vpop.permute.xlu0 %6323  ;;  %v11767_v44 = vld [vmem:[#allocation26 + $0x284] ss:$44 sps:$4 sm:$0xff]  }
 0xc9a   : > { %7539 = vst.msk [vmem:[#allocation3 + $0x210] sm:$0xff] %vm1277_vm9, %v7534_v48  ;;  %v6329_v59 = vsel %vm16551_vm13, %v15252_v2, %v6324_v39  ;;  %7033 = vmatprep.mubr.bf16.mxu1 %v11749_v47  ;;  %v6762_v2 = vld [vmem:[#allocation26 + $0x178] sm:$0xff]  ;;  %v11772_v39 = vld [vmem:[#allocation26 + $0x4] ss:$44 sps:$4 sm:$0xff]   ;;  %vm16566_vm13 = vmmov %vm16563_vm7 }
 0xc9b   : > { %6333 = vst.msk [vmem:[#allocation3 + $0x90] sm:$0xff] %vm1277_vm9, %v6329_v59  ;;  %v9873_v27 = vcombine.low %v6762_v2, %v6764_v5  ;;  %v11770_v2 = vld [vmem:[#allocation26] ss:$44 sps:$4 sm:$0xff]  }
 0xc9c   : > { %10712 = vmatpush3.bf16.msra.mxu1 %v6502_v53  ;;  %v6514_v53 = vld [vmem:[#allocation3 + $0x78] sm:$0xff] }
 0xc9d   : > { %v15615_v41 = vpop.permute.xlu1 %7980  ;;  %v6258_v62 = vpop.permute.xlu0 %6257 }
 0xc9e   : > { %v6263_v6 = vsel %vm1437_vm10, %v15272_v19, %v6258_v62  ;;  %7123 = vmatmul.mubr.bf16.gmra.mrb[188].mxu0 %v9869_v37  ;;  %v6525_v42 = vld [vmem:[#allocation3 + $0xd0] sm:$0xff]  ;;  %7034 = vmatmul.mubr.bf16.gmra.mrb[204].mxu1 %v11751_v57 }
 0xc9f   : > { %6267 = vst.msk [vmem:[#allocation3 + $0x60] sm:$0xff] %vm1277_vm9, %v6263_v6  ;;  %10773 = vmatprep.subr.bf16.mxu0 %v6525_v42  ;;  %7130 = vmatprep.mubr.bf16.mxu0 %v11752_v54  ;;  %v11756_v19 = vld [vmem:[#allocation26 + $0x1c8] ss:$44 sps:$4 sm:$0xff]   ;;  %v11769_v6 = vld [vmem:[#allocation26 + $0x280] ss:$44 sps:$4 sm:$0xff]  }
 0xca0   : > { %7041 = vmatprep.mubr.bf16.mxu1 %v11754_v40  ;;  %v6505_v57 = vld [vmem:[#allocation3 + $0x30] sm:$0xff]  ;;  %v7854_v54 = vld [vmem:[#allocation4 + $0x70] sm:$0xff]  ;;  %v6506_v42 = vld [vmem:[#allocation3 + $0x38] sm:$0xff] }
 0xca1   : > { %v7546_v21 = vpop.permute.xlu1 %7545  ;;  %v6460_v22 = vpop.permute.xlu0 %6459  ;;  %v7902_v5 = vmax.bf16 %v15590_v29, %v7854_v54 }
 0xca2   : > { %7551 = vst.msk [vmem:[#allocation3 + $0x220] sm:$0xff] %vm1277_vm9, %v7546_v21  ;;  %v6462_v49 = vsel %vm16552_vm15, %v15574_v35, %v6460_v22  ;;  %v6517_v43 = vld [vmem:[#allocation3 + $0x90] sm:$0xff]  ;;  %v6503_v35 = vld [vmem:[#allocation3 + $0x20] sm:$0xff]  ;;  %v7903_v21 = vmax.bf16 %v15590_v29, %v15377_v23  ;;  %vm16567_vm15 = vmmov %vm16563_vm7 }
 0xca3   : > { %6466 = vst.msk [vmem:[#allocation3 + $0xf8] sm:$0xff] %vm1277_vm9, %v6462_v49  ;;  %10774 = vmatpush3.bf16.msra.mxu0 %v6517_v43  ;;  %v6471_v29 = vld [vmem:[#allocation26 + $0x58] sm:$0xff] }
 0xca4   : > { %10775 = vmatprep.subr.bf16.mxu0 %v6526_v36 }
 0xca5   : > { %v15624_v17 = vpop.permute.xlu1 %7986  ;;  %v6434_v50 = vpop.permute.xlu0 %6433 }
 0xca6   : > { %v6439_v7 = vsel %vm16553_vm3, %v15461_v11, %v6434_v50  ;;  %7131 = vmatmul.mubr.bf16.gmra.mrb[192].mxu0 %v9873_v27  ;;  %v6511_v58 = vld [vmem:[#allocation3 + $0x60] sm:$0xff]  ;;  %7042 = vmatmul.mubr.bf16.gmra.mrb[208].mxu1 %v11756_v19  ;;  %v11779_v19 = vld [vmem:[#allocation26 + $0x5c] ss:$44 sps:$4 sm:$0xff]   ;;  %vm16568_vm3 = vmmov %vm16563_vm7 }
 0xca7   : > { %6443 = vst.msk [vmem:[#allocation3 + $0xe0] sm:$0xff] %vm1277_vm9, %v6439_v7  ;;  %10713 = vmatprep.subr.bf16.mxu1 %v6511_v58  ;;  %10776 = vmatpush3.bf16.msra.mxu0 %v6518_v56  ;;  %v11775_v27 = vld [vmem:[#allocation26 + $0xc] ss:$44 sps:$4 sm:$0xff]   ;;  %v11776_v58 = vld [vmem:[#allocation26 + $0x28] ss:$44 sps:$4 sm:$0xff]  }
 0xca8   : > { %10714 = vmatpush3.bf16.msra.mxu1 %v6503_v35  ;;  %7138 = vmatprep.mubr.bf16.mxu0 %v11757_v4  ;;  %v7617_v4 = vld [vmem:[#allocation3 + $0x200] sm:$0xff] }
 0xca9   : > { %v7558_v10 = vpop.permute.xlu1 %7557  ;;  %10715 = vmatprep.subr.bf16.mxu1 %v6512_v55  ;;  %v6346_v8 = vpop.permute.xlu0 %6345  ;;  %7049 = vmatprep.mubr.bf16.mxu1 %v11759_v31  ;;  %v6473_v31 = vld [vmem:[#allocation26 + $0x84] sm:$0xff]  ;;  %v11789_v55 = vld [vmem:[#allocation26 + $0xb4] ss:$44 sps:$4 sm:$0xff]  }
 0xcaa   : > { %7563 = vst.msk [vmem:[#allocation3 + $0x230] sm:$0xff] %vm1277_vm9, %v7558_v10  ;;  %v6351_v11 = vsel %vm16554_vm4, %v15471_v26, %v6346_v8  ;;  %v6772_v26 = vld [vmem:[#allocation26 + $0x254] sm:$0xff]  ;;  %v6530_v36 = vld [vmem:[#allocation3 + $0xf8] sm:$0xff]  ;;  %v9891_v12 = vcombine.low %v6471_v29, %v6473_v31 }
 0xcab   : > { %6355 = vst.msk [vmem:[#allocation3 + $0xa0] sm:$0xff] %vm1277_vm9, %v6351_v11  ;;  %v9881_v61 = vcombine.low %v6770_v30, %v6772_v26  ;;  %v11778_v56 = vld [vmem:[#allocation26 + $0x24] ss:$44 sps:$4 sm:$0xff]   ;;  %v11781_v11 = vld [vmem:[#allocation26 + $0x80] ss:$44 sps:$4 sm:$0xff]  }
 0xcac   : > { %10716 = vmatpush3.bf16.msra.mxu1 %v6504_v33  ;;  %v6474_v33 = vld [vmem:[#allocation26 + $0x8c] sm:$0xff] }
 0xcad   : > { %v6280_v9 = vpop.permute.xlu0 %6279  ;;  %v11791_v26 = vld [vmem:[#allocation26 + $0xb0] ss:$44 sps:$4 sm:$0xff]   ;;  %v11816_v31 = vld [vmem:[#allocation26 + $0x28c] ss:$44 sps:$4 sm:$0xff]  }
 0xcae   : > { %v6285_v63 = vsel %vm1460_vm6, %v15501_v13, %v6280_v9  ;;  %7139 = vmatmul.mubr.bf16.gmra.mrb[196].mxu0 %v9877_v20  ;;  %v6527_v25 = vld [vmem:[#allocation3 + $0xe0] sm:$0xff]  ;;  %7050 = vmatmul.mubr.bf16.gmra.mrb[212].mxu1 %v11761_v28  ;;  %v6528_v13 = vld [vmem:[#allocation3 + $0xe8] sm:$0xff]  ;;  %vm16557_vm6 = vmmov %vm16543_vm12 }
 0xcaf   : > { %6289 = vst.msk [vmem:[#allocation3 + $0x70] sm:$0xff] %vm1277_vm9, %v6285_v63  ;;  %10777 = vmatprep.subr.bf16.mxu0 %v6527_v25  ;;  %7146 = vmatprep.mubr.bf16.mxu0 %v11762_v46  ;;  %v11783_v20 = vld [vmem:[#allocation26 + $0x7c] ss:$44 sps:$4 sm:$0xff]   ;;  %v6472_v28 = vld [vmem:[#allocation26 + $0x60] sm:$0xff]  ;;  %v7621_v54 = vld [vmem:[#allocation3 + $0x220] sm:$0xff] }
 0xcb0   : > { %7057 = vmatprep.mubr.bf16.mxu1 %v11764_v51  ;;  %v11786_v63 = vld [vmem:[#allocation26 + $0xd8] ss:$44 sps:$4 sm:$0xff]   ;;  %v11788_v25 = vld [vmem:[#allocation26 + $0xd4] ss:$44 sps:$4 sm:$0xff]   ;;  %v9893_v30 = vcombine.low %v6472_v28, %v6474_v33  ;;  %v11814_v29 = vld [vmem:[#allocation26 + $0x290] ss:$44 sps:$4 sm:$0xff]  }
 0xcb1   : > { %v15636_v16 = vpop.permute.xlu1 %7988  ;;  %v6456_v38 = vpop.permute.xlu0 %6455  ;;  %v11821_v28 = vld [vmem:[#allocation26 + $0x1b8] ss:$44 sps:$4 sm:$0xff]  }
 0xcb2   : > { %v6461_v47 = vsel %vm16555_vm8, %v15522_v24, %v6456_v38  ;;  %v6519_v34 = vld [vmem:[#allocation3 + $0xa0] sm:$0xff]  ;;  %v6520_v24 = vld [vmem:[#allocation3 + $0xa8] sm:$0xff]  ;;  %vm16570_vm8 = vmmov %vm16568_vm3 }
 0xcb3   : > { %6465 = vst.msk [vmem:[#allocation3 + $0xf0] sm:$0xff] %vm1277_vm9, %v6461_v47  ;;  %10778 = vmatpush3.bf16.msra.mxu0 %v6519_v34  ;;  %v11795_v38 = vld [vmem:[#allocation26 + $0xbc] ss:$44 sps:$4 sm:$0xff]   ;;  %v11800_v47 = vld [vmem:[#allocation26 + $0x10c] ss:$44 sps:$4 sm:$0xff]  }
 0xcb4   : > { %10779 = vmatprep.subr.bf16.mxu0 %v6528_v13  ;;  %v11794_v13 = vld [vmem:[#allocation26 + $0x12c] ss:$44 sps:$4 sm:$0xff]   ;;  %v11822_v33 = vld [vmem:[#allocation26 + $0x1c4] ss:$44 sps:$4 sm:$0xff]  }
 0xcb5   : > { %v7570_v32 = vpop.permute.xlu1 %7569  ;;  %v6368_v48 = vpop.permute.xlu0 %6367 }
 0xcb6   : > { %7575 = vst.msk [vmem:[#allocation3 + $0x240] sm:$0xff] %vm1277_vm9, %v7570_v32  ;;  %v6373_v59 = vsel %vm1205_vm14, %v15542_v14, %v6368_v48  ;;  %7147 = vmatmul.mubr.bf16.gmra.mrb[200].mxu0 %v9881_v61  ;;  %v6513_v37 = vld [vmem:[#allocation3 + $0x70] sm:$0xff]  ;;  %7058 = vmatmul.mubr.bf16.gmra.mrb[216].mxu1 %v11766_v45  ;;  %v11792_v45 = vld [vmem:[#allocation26 + $0x130] ss:$44 sps:$4 sm:$0xff]  }
 0xcb7   : > { %6377 = vst.msk [vmem:[#allocation3 + $0xb0] sm:$0xff] %vm1277_vm9, %v6373_v59  ;;  %10717 = vmatprep.subr.bf16.mxu1 %v6513_v37  ;;  %10780 = vmatpush3.bf16.msra.mxu0 %v6520_v24  ;;  %v7619_v61 = vld [vmem:[#allocation3 + $0x210] sm:$0xff]  ;;  %v6476_v32 = vld [vmem:[#allocation26 + $0xb8] sm:$0xff] }
 0xcb8   : > { %10718 = vmatpush3.bf16.msra.mxu1 %v6505_v57  ;;  %7154 = vmatprep.mubr.bf16.mxu0 %v11767_v44  ;;  %v6478_v48 = vld [vmem:[#allocation26 + $0xe4] sm:$0xff] }
 0xcb9   : > { %10719 = vmatprep.subr.bf16.mxu1 %v6514_v53  ;;  %v6372_v40 = vpop.permute.xlu0 %6371  ;;  %7355 = vmatprep.mubr.bf16.mxu1 %v11772_v39  ;;  %v11797_v37 = vld [vmem:[#allocation26 + $0x188] ss:$44 sps:$4 sm:$0xff]   ;;  %v11799_v24 = vld [vmem:[#allocation26 + $0x184] ss:$44 sps:$4 sm:$0xff]  }
 0xcba   : > { %v6374_v62 = vsel %vm1205_vm14, %v15585_v15, %v6372_v40  ;;  %v6529_v14 = vld [vmem:[#allocation3 + $0xf0] sm:$0xff] }
 0xcbb   : > { %6378 = vst.msk [vmem:[#allocation3 + $0xb8] sm:$0xff] %vm1277_vm9, %v6374_v62  ;;  %10781 = vmatprep.subr.bf16.mxu0 %v6529_v14  ;;  %v11802_v57 = vld [vmem:[#allocation26 + $0x108] ss:$44 sps:$4 sm:$0xff]   ;;  %v11803_v40 = vld [vmem:[#allocation26 + $0x1e0] ss:$44 sps:$4 sm:$0xff]  }
 0xcbc   : > { %10720 = vmatpush3.bf16.msra.mxu1 %v6506_v42  ;;  %v11805_v62 = vld [vmem:[#allocation26 + $0x1dc] ss:$44 sps:$4 sm:$0xff]   ;;  %v11806_v42 = vld [vmem:[#allocation26 + $0x114] ss:$44 sps:$4 sm:$0xff]  }
 0xcbd   : > { %v7919_v22 = vpop.permute.xlu0 %7918  ;;  %7727 = vmatprep.subr.bf16.mxu1 %v12603_v0 }
 0xcbe   : > { %v7942_v49 = vmax.bf16 %v7919_v22, %v7902_v5  ;;  %v7943_v43 = vmax.bf16 %v7919_v22, %v7903_v21  ;;  %7155 = vmatmul.mubr.bf16.gmra.mrb[204].mxu0 %v11769_v6  ;;  %v6521_v15 = vld [vmem:[#allocation3 + $0xb0] sm:$0xff] }
 0xcbf   : > { %10782 = vmatpush3.bf16.msra.mxu0 %v6521_v15  ;;  %7356 = vmatmul.mubr.bf16.vlgmr.msra.gmra.mrb[220].mxu1 %v11770_v2  ;;  %v6480_v2 = vld [vmem:[#allocation26 + $0x110] sm:$0xff]  ;;  %v6482_v5 = vld [vmem:[#allocation26 + $0x13c] sm:$0xff] }
 0xcc0   : > { %10783 = vmatprep.subr.bf16.mxu0 %v6530_v36  ;;  %7728 = vmatpush1.bf16.msra.mxu1 %v7617_v4  ;;  %v7959_v50 = vsel %vm3048_vm2, %v7943_v43, 0  ;;  %v7958_v23 = vsel %vm3048_vm2, %v7942_v49, 0  ;;  %vm16558_vm2 = vmmov %vm16557_vm6  ;;  %v11811_v21 = vld [vmem:[#allocation26 + $0x164] ss:$44 sps:$4 sm:$0xff]   ;;  %v11810_v15 = vld [vmem:[#allocation26 + $0x234] ss:$44 sps:$4 sm:$0xff]  }
 0xcc1   : > { %8006 = vrot.lane.b32.xlu0 %v7959_v50, %s16444_s0  ;;  %8004 = vrot.lane.b32.xlu1 %v7958_v23, %s16444_s0  ;;  %v7524_v7 = vpop.permute.xlu0 %7523  ;;  %v11808_v43 = vld [vmem:[#allocation26 + $0x238] ss:$44 sps:$4 sm:$0xff]   ;;  %vm16559_vm10 = vmmov %vm16558_vm2  ;;  %v11813_v36 = vld [vmem:[#allocation26 + $0x160] ss:$44 sps:$4 sm:$0xff]  }
 0xcc2   : > { %7528 = vst.msk [vmem:[#allocation3 + $0x208] sm:$0xff] %vm1277_vm9, %v7524_v7  ;;  %v6522_v35 = vld [vmem:[#allocation3 + $0xb8] sm:$0xff]  ;;  %7452 = vmatprep.mubr.bf16.mxu0 %v11775_v27  ;;  %7363 = vmatprep.mubr.bf16.mxu1 %v11779_v19  ;;  %v9901_v19 = vcombine.low %v6480_v2, %v6482_v5  ;;  %v7623_v23 = vld [vmem:[#allocation3 + $0x230] sm:$0xff]  ;;  %vm16560_vm0 = vmmov %vm16558_vm2 }
 0xcc3   : > { %10784 = vmatpush3.bf16.msra.mxu0 %v6522_v35  ;;  %7729 = vmatprep.subr.bf16.mxu1 %v12603_v0  ;;  %v11817_v7 = vld [vmem:[#allocation26 + $0x16c] ss:$44 sps:$4 sm:$0xff]   ;;  %v11819_v35 = vld [vmem:[#allocation26 + $0x1bc] ss:$44 sps:$4 sm:$0xff]   ;;  %vm16561_vm12 = vmmov %vm16560_vm0 }
 0xcc4   : > { %vm16562_vm5 = vmmov %vm16560_vm0  ;;  %v8285_v5 = vld [vmem:[#allocation27 + $0x20] sm:$0xff] }
 0xcc5   : > { %v15660_v10 = vpop.permute.xlu1 %7994  ;;  %8122 = vrot.lane.b32.xlu0 %v11776_v58, %s16556_s16  ;;  %8120 = vrot.lane.b32.xlu1 %v11778_v56, %s16556_s16  ;;  %v7536_v8 = vpop.permute.xlu0 %7535  ;;  %v6484_v58 = vld [vmem:[#allocation26 + $0x168] sm:$0xff]  ;;  %v6486_v56 = vld [vmem:[#allocation26 + $0x194] sm:$0xff]  ;;  %vm16564_vm1 = vmmov %vm16560_vm0 }
 0xcc6   : > { %7540 = vst.msk [vmem:[#allocation3 + $0x218] sm:$0xff] %vm1277_vm9, %v7536_v8  ;;  %7453 = vmatmul.mubr.bf16.vlgmr.msra.gmra.mrb[208].mxu0 %v11773_v60  ;;  %v8282_v8 = vld [vmem:[#allocation27 + $0x8] sm:$0xff]  ;;  %vm16569_vm4 = vmmov %vm16560_vm0 }
 0xcc7   : > { %7364 = vmatmul.mubr.bf16.gmra.mrb[224].mxu1 %v9891_v12  ;;  %7460 = vmatprep.mubr.bf16.mxu0 %v11784_v52 }
 0xcc8   : > { %7371 = vmatprep.mubr.bf16.mxu1 %v11789_v55 }
 0xcc9   : > { %v7582_v46 = vpop.permute.xlu1 %7581  ;;  %8126 = vrot.lane.b32.xlu0 %v11781_v11, %s16556_s16  ;;  %8124 = vrot.lane.b32.xlu1 %v11783_v20, %s16556_s16  ;;  %v7548_v51 = vpop.permute.xlu0 %7547  ;;  %v7618_v9 = vld [vmem:[#allocation3 + $0x208] sm:$0xff]  ;;  %v9905_v20 = vcombine.low %v6484_v58, %v6486_v56  ;;  %v8703_v58 = vld [vmem:[#allocation32 + $0x28] sm:$0xff] }
 0xcca   : > { %7587 = vst.msk [vmem:[#allocation3 + $0x250] sm:$0xff] %vm1277_vm9, %v7582_v46  ;;  %7552 = vst.msk [vmem:[#allocation3 + $0x228] sm:$0xff] %vm1277_vm9, %v7548_v51  ;;  %7730 = vmatpush1.bf16.msra.mxu1 %v7618_v9  ;;  %v8281_v11 = vld [vmem:[#allocation27] sm:$0xff] }
 0xccb   : > { %7731 = vmatprep.subr.bf16.mxu1 %v12603_v0  ;;  %v11824_v46 = vld [vmem:[#allocation26 + $0x214] ss:$44 sps:$4 sm:$0xff]  }
 0xccd   : > { %8130 = vrot.lane.b32.xlu0 %v11786_v63, %s16556_s16  ;;  %8128 = vrot.lane.b32.xlu1 %v11788_v25, %s16556_s16  ;;  %v7977_v34 = vpop.permute.xlu0 %7976  ;;  %v7620_v59 = vld [vmem:[#allocation3 + $0x218] sm:$0xff]  ;;  %v8393_v25 = vld [vmem:[#allocation29] sm:$0xff] }
 0xcce   : > { %v8008_v44 = vsel %vm16557_vm6, %v7977_v34, %v15603_v18  ;;  %7461 = vmatmul.mubr.bf16.gmra.mrb[212].mxu0 %v9893_v30  ;;  %7732 = vmatpush1.bf16.msra.mxu1 %v7619_v61  ;;  %v9897_v18 = vcombine.low %v6476_v32, %v6478_v48  ;;  %v8394_v63 = vld [vmem:[#allocation29 + $0x8] sm:$0xff]  ;;  %v6488_v30 = vld [vmem:[#allocation26 + $0x1c0] sm:$0xff]  ;;  %v8283_v61 = vld [vmem:[#allocation27 + $0x10] sm:$0xff]  ;;  %vm16571_vm6 = vcmask 261120  }
 0xccf   : > { %8024 = vst.msk [vmem:[#allocation3 + $0x270] sm:$0xff] %vm1277_vm9, %v8008_v44  ;;  %7372 = vmatmul.mubr.bf16.gmra.mrb[228].mxu1 %v11791_v26  ;;  %7733 = vmatprep.subr.bf16.mxu1 %v12603_v0  ;;  %v6490_v26 = vld [vmem:[#allocation26 + $0x1ec] sm:$0xff]  ;;  %v8698_v34 = vld [vmem:[#allocation32] sm:$0xff] }
 0xcd0   : > { %7468 = vmatprep.mubr.bf16.mxu0 %v11795_v38  ;;  %7379 = vmatprep.mubr.bf16.mxu1 %v11800_v47  ;;  %v8699_v48 = vld [vmem:[#allocation32 + $0x8] sm:$0xff] }
 0xcd1   : > { %8134 = vrot.lane.b32.xlu0 %v11792_v45, %s16556_s16  ;;  %8132 = vrot.lane.b32.xlu1 %v11794_v13, %s16556_s16  ;;  %v7560_v39 = vpop.permute.xlu0 %7559  ;;  %v7622_v49 = vld [vmem:[#allocation3 + $0x228] sm:$0xff]  ;;  %v9909_v45 = vcombine.low %v6488_v30, %v6490_v26  ;;  %v7627_v32 = vld [vmem:[#allocation3 + $0x250] sm:$0xff] }
 0xcd2   : > { %7564 = vst.msk [vmem:[#allocation3 + $0x238] sm:$0xff] %vm1277_vm9, %v7560_v39  ;;  %7734 = vmatpush1.bf16.msra.mxu1 %v7620_v59  ;;  %v11826_v13 = vld [vmem:[#allocation26 + $0x210] ss:$44 sps:$4 sm:$0xff]   ;;  %v11847_v30 = vld [vmem:[#allocation26 + $0x12c] ss:$44 sps:$4 sm:$0xff]   ;;  %v8706_v26 = vld [vmem:[#allocation32 + $0x40] sm:$0xff] }
 0xcd3   : > { %7735 = vmatprep.subr.bf16.mxu1 %v12603_v0 }
 0xcd5   : > { %8138 = vrot.lane.b32.xlu0 %v11797_v37, %s16556_s16  ;;  %8136 = vrot.lane.b32.xlu1 %v11799_v24, %s16556_s16  ;;  %v7983_v53 = vpop.permute.xlu0 %7982  ;;  %v8284_v37 = vld [vmem:[#allocation27 + $0x18] sm:$0xff] }
 0xcd6   : > { %v8009_v14 = vsel %vm16558_vm2, %v15615_v41, %v7983_v53  ;;  %7469 = vmatmul.mubr.bf16.gmra.mrb[216].mxu0 %v9897_v18  ;;  %7736 = vmatpush1.bf16.msra.mxu1 %v7621_v54  ;;  %v8048_v6 = vld [vmem:[#allocation3 + $0x270] sm:$0xff]  ;;  %v11830_v18 = vld [vmem:[#allocation26 + $0x26c] ss:$44 sps:$4 sm:$0xff]   ;;  %v8395_v54 = vld [vmem:[#allocation29 + $0x10] sm:$0xff] }
 0xcd7   : > { %8025 = vst.msk [vmem:[#allocation3 + $0x278] sm:$0xff] %vm1277_vm9, %v8009_v14  ;;  %10996 = vmatprep.subr.bf16.mxu0 %v8048_v6  ;;  %7380 = vmatmul.mubr.bf16.gmra.mrb[232].mxu1 %v11802_v57  ;;  %v11827_v24 = vld [vmem:[#allocation26 + $0x21c] ss:$44 sps:$4 sm:$0xff]   ;;  %v11833_v14 = vld [vmem:[#allocation26 + $0x274] ss:$44 sps:$4 sm:$0xff]   ;;  %vm16572_vm2 = vmmov %vm16571_vm6 }
 0xcd8   : > { %10997 = vmatpush3.bf16.msra.mxu0 %v8048_v6  ;;  %7737 = vmatprep.subr.bf16.mxu1 %v12603_v0  ;;  %v8396_v53 = vld [vmem:[#allocation29 + $0x18] sm:$0xff] }
 0xcd9   : > { %v15686_v22 = vpop.permute.xlu1 %7996  ;;  %8142 = vrot.lane.b32.xlu0 %v11803_v40, %s16556_s16  ;;  %8140 = vrot.lane.b32.xlu1 %v11805_v62, %s16556_s16  ;;  %v7985_v41 = vpop.permute.xlu0 %7984  ;;  %v7624_v12 = vld [vmem:[#allocation3 + $0x238] sm:$0xff]  ;;  %v11829_v40 = vld [vmem:[#allocation26 + $0x218] ss:$44 sps:$4 sm:$0xff]  }
 0xcda   : > { %v8010_v27 = vsel %vm16559_vm10, %v7985_v41, %v15624_v17  ;;  %7738 = vmatpush1.bf16.msra.mxu1 %v7622_v49  ;;  %7476 = vmatprep.mubr.bf16.mxu0 %v11806_v42  ;;  %v11832_v62 = vld [vmem:[#allocation26 + $0x268] ss:$44 sps:$4 sm:$0xff]   ;;  %v8826_v41 = vld [vmem:[#allocation33] sm:$0xff]  ;;  %v11835_v49 = vld [vmem:[#allocation26 + $0x270] ss:$44 sps:$4 sm:$0xff]   ;;  %vm16573_vm10 = vcmask 1043456  }
 0xcdb   : > { %8026 = vst.msk [vmem:[#allocation3 + $0x280] sm:$0xff] %vm1277_vm9, %v8010_v27  ;;  %7739 = vmatprep.subr.bf16.mxu1 %v12603_v0  ;;  %7387 = vmatprep.mubr.bf16.mxu1 %v11811_v21  ;;  %v8700_v42 = vld [vmem:[#allocation32 + $0x10] sm:$0xff]  ;;  %v8398_v27 = vld [vmem:[#allocation29 + $0x28] sm:$0xff] }
 0xcdc   : > { %v11838_v21 = vld [vmem:[#allocation26 + $0x24] ss:$44 sps:$4 sm:$0xff]  }
 0xcdd   : > { %v7594_v4 = vpop.permute.xlu1 %7593  ;;  %8146 = vrot.lane.b32.xlu0 %v11808_v43, %s16556_s16  ;;  %8144 = vrot.lane.b32.xlu1 %v11810_v15, %s16556_s16  ;;  %v7572_v50 = vpop.permute.xlu0 %7571  ;;  %v8827_v43 = vld [vmem:[#allocation33 + $0x8] sm:$0xff]  ;;  %v8701_v15 = vld [vmem:[#allocation32 + $0x18] sm:$0xff] }
 0xcde   : > { %7599 = vst.msk [vmem:[#allocation3 + $0x260] sm:$0xff] %vm1277_vm9, %v7594_v4  ;;  %7576 = vst.msk [vmem:[#allocation3 + $0x248] sm:$0xff] %vm1277_vm9, %v7572_v50  ;;  %7477 = vmatmul.mubr.bf16.gmra.mrb[220].mxu0 %v9901_v19  ;;  %7740 = vmatpush1.bf16.msra.mxu1 %v7623_v23  ;;  %v8049_v17 = vld [vmem:[#allocation3 + $0x278] sm:$0xff]  ;;  %v8397_v19 = vld [vmem:[#allocation29 + $0x20] sm:$0xff] }
 0xcdf   : > { %10998 = vmatprep.subr.bf16.mxu0 %v8049_v17  ;;  %7388 = vmatmul.mubr.bf16.gmra.mrb[236].mxu1 %v11813_v36  ;;  %v8702_v36 = vld [vmem:[#allocation32 + $0x20] sm:$0xff]  ;;  %v8287_v4 = vld [vmem:[#allocation27 + $0x30] sm:$0xff] }
 0xce0   : > { %10999 = vmatpush3.bf16.msra.mxu0 %v8049_v17  ;;  %7741 = vmatprep.subr.bf16.mxu1 %v12603_v0 }
 0xce1   : > { %8150 = vrot.lane.b32.xlu0 %v11814_v29, %s16556_s16  ;;  %8148 = vrot.lane.b32.xlu1 %v11816_v31, %s16556_s16  ;;  %v7991_v60 = vpop.permute.xlu0 %7990  ;;  %v8828_v31 = vld [vmem:[#allocation33 + $0x10] sm:$0xff] }
 0xce2   : > { %v8011_v52 = vsel %vm16560_vm0, %v15636_v16, %v7991_v60  ;;  %7742 = vmatpush1.bf16.msra.mxu1 %v7624_v12  ;;  %v8050_v55 = vld [vmem:[#allocation3 + $0x280] sm:$0xff]  ;;  %7484 = vmatprep.mubr.bf16.mxu0 %v11817_v7  ;;  %vm16574_vm0 = vmmov %vm16568_vm3 }
 0xce3   : > { %8027 = vst.msk [vmem:[#allocation3 + $0x288] sm:$0xff] %vm1277_vm9, %v8011_v52  ;;  %11000 = vmatprep.subr.bf16.mxu0 %v8050_v55  ;;  %7743 = vmatprep.subr.bf16.mxu1 %v12603_v0  ;;  %v7625_v16 = vld [vmem:[#allocation3 + $0x240] sm:$0xff]  ;;  %v11836_v52 = vld [vmem:[#allocation26 + $0x20] ss:$44 sps:$4 sm:$0xff]  }
 0xce4   : > { %11001 = vmatpush3.bf16.msra.mxu0 %v8050_v55  ;;  %7395 = vmatprep.mubr.bf16.mxu1 %v11819_v35  ;;  %v8829_v7 = vld [vmem:[#allocation33 + $0x18] sm:$0xff]  ;;  %v8399_v60 = vld [vmem:[#allocation29 + $0x30] sm:$0xff] }
 0xce5   : > { %8304 = vperm.xlu0 %11490, %v8282_v8   ;;  %8299 = vperm.xlu1 %11491, %v8281_v11   ;;  %v7993_v51 = vpop.permute.xlu0 %7992  ;;  %v7626_v47 = vld [vmem:[#allocation3 + $0x248] sm:$0xff]  ;;  %v7629_v6 = vld [vmem:[#allocation3 + $0x260] sm:$0xff] }
 0xce6   : > { %v8012_v9 = vsel %vm16561_vm12, %v7993_v51, %v15660_v10  ;;  %7485 = vmatmul.mubr.bf16.gmra.mrb[224].mxu0 %v9905_v20  ;;  %7744 = vmatpush1.bf16.msra.mxu1 %v7625_v16  ;;  %v8400_v35 = vld [vmem:[#allocation29 + $0x38] sm:$0xff]  ;;  %v8704_v8 = vld [vmem:[#allocation32 + $0x30] sm:$0xff]  ;;  %v8289_v11 = vld [vmem:[#allocation27 + $0x40] sm:$0xff] }
 0xce7   : > { %8028 = vst.msk [vmem:[#allocation3 + $0x290] sm:$0xff] %vm1277_vm9, %v8012_v9  ;;  %7396 = vmatmul.mubr.bf16.gmra.mrb[240].mxu1 %v11821_v28  ;;  %7745 = vmatprep.subr.bf16.mxu1 %v12603_v0  ;;  %v11841_v55 = vld [vmem:[#allocation26 + $0x7c] ss:$44 sps:$4 sm:$0xff]   ;;  %v8830_v28 = vld [vmem:[#allocation33 + $0x20] sm:$0xff]  ;;  %vm16575_vm12 = vmmov %vm16572_vm2 }
 0xce8   : > { %7492 = vmatprep.mubr.bf16.mxu0 %v11822_v33  ;;  %7403 = vmatprep.mubr.bf16.mxu1 %v11824_v46  ;;  %v8290_v20 = vld [vmem:[#allocation27 + $0x48] sm:$0xff]  ;;  %v11839_v33 = vld [vmem:[#allocation26 + $0x78] ss:$44 sps:$4 sm:$0xff]   ;;  %v11844_v46 = vld [vmem:[#allocation26 + $0xd4] ss:$44 sps:$4 sm:$0xff]  }
 0xce9   : > { %8416 = vperm.xlu0 %11490, %v8394_v63   ;;  %8411 = vperm.xlu1 %11491, %v8393_v25   ;;  %v7584_v38 = vpop.permute.xlu0 %7583  ;;  %v8831_v51 = vld [vmem:[#allocation33 + $0x28] sm:$0xff]  ;;  %v8705_v16 = vld [vmem:[#allocation32 + $0x38] sm:$0xff]  ;;  %v8401_v63 = vld [vmem:[#allocation29 + $0x40] sm:$0xff] }
 0xcea   : > { %7588 = vst.msk [vmem:[#allocation3 + $0x258] sm:$0xff] %vm1277_vm9, %v7584_v38  ;;  %7746 = vmatpush1.bf16.msra.mxu1 %v7626_v47  ;;  %v8051_v10 = vld [vmem:[#allocation3 + $0x288] sm:$0xff]  ;;  %v8402_v9 = vld [vmem:[#allocation29 + $0x48] sm:$0xff]  ;;  %v8291_v38 = vld [vmem:[#allocation27 + $0x50] sm:$0xff] }
 0xceb   : > { %11002 = vmatprep.subr.bf16.mxu0 %v8051_v10  ;;  %7747 = vmatprep.subr.bf16.mxu1 %v12603_v0  ;;  %v11842_v25 = vld [vmem:[#allocation26 + $0xd0] ss:$44 sps:$4 sm:$0xff]  }
 0xcec   : > { %11003 = vmatpush3.bf16.msra.mxu0 %v8051_v10  ;;  %v8292_v47 = vld [vmem:[#allocation27 + $0x58] sm:$0xff]  ;;  %v8832_v10 = vld [vmem:[#allocation33 + $0x30] sm:$0xff] }
 0xced   : > { %8716 = vperm.xlu0 %11490, %v8698_v34   ;;  %8309 = vperm.xlu1 %11491, %v8283_v61   ;;  %v7999_v44 = vpop.permute.xlu0 %7998  ;;  %v11845_v34 = vld [vmem:[#allocation26 + $0x128] ss:$44 sps:$4 sm:$0xff]   ;;  %v11850_v61 = vld [vmem:[#allocation26 + $0x184] ss:$44 sps:$4 sm:$0xff]  }
 0xcee   : > { %v8013_v39 = vsel %vm16562_vm5, %v15686_v22, %v7999_v44  ;;  %7493 = vmatmul.mubr.bf16.gmra.mrb[228].mxu0 %v9909_v45  ;;  %7748 = vmatpush1.bf16.msra.mxu1 %v7627_v32  ;;  %v8052_v59 = vld [vmem:[#allocation3 + $0x290] sm:$0xff]  ;;  %v8833_v45 = vld [vmem:[#allocation33 + $0x38] sm:$0xff]  ;;  %v8403_v32 = vld [vmem:[#allocation29 + $0x50] sm:$0xff] }
 0xcef   : > { %8029 = vst.msk [vmem:[#allocation3 + $0x298] sm:$0xff] %vm1277_vm9, %v8013_v39  ;;  %11004 = vmatprep.subr.bf16.mxu0 %v8052_v59  ;;  %7404 = vmatmul.mubr.bf16.gmra.mrb[244].mxu1 %v11826_v13  ;;  %v8286_v22 = vld [vmem:[#allocation27 + $0x28] sm:$0xff]  ;;  %v8404_v44 = vld [vmem:[#allocation29 + $0x58] sm:$0xff]  ;;  %vm16576_vm5 = vmmov %vm16572_vm2 }
 0xcf0   : > { %11005 = vmatpush3.bf16.msra.mxu0 %v8052_v59  ;;  %7749 = vmatprep.subr.bf16.mxu1 %v12603_v0  ;;  %v8707_v13 = vld [vmem:[#allocation32 + $0x48] sm:$0xff] }
 0xcf1   : > { %8721 = vperm.xlu0 %11490, %v8699_v48   ;;  %8314 = vperm.xlu1 %11491, %v8284_v37   ;;  %v7628_v57 = vld [vmem:[#allocation3 + $0x258] sm:$0xff] }
 0xcf2   : > { %7750 = vmatpush1.bf16.msra.mxu1 %v7628_v57  ;;  %7500 = vmatprep.mubr.bf16.mxu0 %v11827_v24  ;;  %v11848_v59 = vld [vmem:[#allocation26 + $0x180] ss:$44 sps:$4 sm:$0xff]   ;;  %v11853_v24 = vld [vmem:[#allocation26 + $0x1dc] ss:$44 sps:$4 sm:$0xff]  }
 0xcf3   : > { %7751 = vmatprep.subr.bf16.mxu1 %v12603_v0  ;;  %7411 = vmatprep.mubr.bf16.mxu1 %v11830_v18  ;;  %v8708_v18 = vld [vmem:[#allocation32 + $0x50] sm:$0xff]  ;;  %v8293_v57 = vld [vmem:[#allocation27 + $0x60] sm:$0xff] }
 0xcf5   : > { %8426 = vperm.xlu0 %11490, %v8396_v53   ;;  %8421 = vperm.xlu1 %11491, %v8395_v54  }
 0xcf6   : > { %7501 = vmatmul.mubr.bf16.gmra.mrb[232].mxu0 %v11829_v40  ;;  %7752 = vmatpush1.bf16.msra.mxu1 %v7629_v6  ;;  %v8053_v2 = vld [vmem:[#allocation3 + $0x298] sm:$0xff]  ;;  %v11851_v6 = vld [vmem:[#allocation26 + $0x1d8] ss:$44 sps:$4 sm:$0xff]  }
 0xcf7   : > { %11006 = vmatprep.subr.bf16.mxu0 %v8053_v2  ;;  %7412 = vmatmul.mubr.bf16.gmra.mrb[248].mxu1 %v11832_v62  ;;  %v8294_v62 = vld [vmem:[#allocation27 + $0x68] sm:$0xff] }
 0xcf8   : > { %11007 = vmatpush3.bf16.msra.mxu0 %v8053_v2  ;;  %7508 = vmatprep.mubr.bf16.mxu0 %v11833_v14  ;;  %v8834_v14 = vld [vmem:[#allocation33 + $0x40] sm:$0xff] }
 0xcf9   : > { %8726 = vperm.xlu0 %11490, %v8700_v42   ;;  %8319 = vperm.xlu1 %11491, %v8285_v5  }
 0xcfa   : > { %7753 = vmatprep.subr.bf16.mxu1 %v12603_v0  ;;  %9935 = vmatprep.mubr.msk.bf16.mxu1 %vm16563_vm7, %v11838_v21  ;;  %v8288_v0 = vld [vmem:[#allocation27 + $0x38] sm:$0xff]  ;;  %v11856_v21 = vld [vmem:[#allocation26 + $0x234] ss:$44 sps:$4 sm:$0xff]   ;;  %vm16577_vm7 = vmmov %vm16574_vm0 }
 0xcfd   : > { %8324 = vperm.xlu0 %11490, %v8286_v22   ;;  %8844 = vperm.xlu1 %11491, %v8826_v41   ;;  %v8835_v22 = vld [vmem:[#allocation33 + $0x48] sm:$0xff]  ;;  %v8709_v41 = vld [vmem:[#allocation32 + $0x58] sm:$0xff] }
 0xcfe   : > { %7509 = vmatmul.mubr.bf16.gmra.mrb[236].mxu0 %v11835_v49 }
 0xd01   : > { %8849 = vperm.xlu0 %11490, %v8827_v43   ;;  %8731 = vperm.xlu1 %11491, %v8701_v15  }
 0xd05   : > { %8436 = vperm.xlu0 %11490, %v8398_v27   ;;  %8431 = vperm.xlu1 %11491, %v8397_v19   ;;  %v11872_v27 = vld [vmem:[#allocation5] sm:$0xf] }
 0xd07   : > { %v8003_v50 = vpop.permute.xlu1 %8002  ;;  %v8001_v23 = vpop.permute.xlu0 %8000 }
 0xd08   : > { %v8014_v29 = vsel %vm16564_vm1, %v8001_v23, %v8003_v50  ;;  %v11854_v50 = vld [vmem:[#allocation26 + $0x230] ss:$44 sps:$4 sm:$0xff]   ;;  %vm16578_vm1 = vmmov %vm16572_vm2 }
 0xd09   : > { %8030 = vst.msk [vmem:[#allocation3 + $0x2a0] sm:$0xff] %vm1277_vm9, %v8014_v29  ;;  %8736 = vperm.xlu0 %11490, %v8702_v36   ;;  %8329 = vperm.xlu1 %11491, %v8287_v4   ;;  %v8406_v36 = vld [vmem:[#allocation29 + $0x68] sm:$0xff]  ;;  %v8405_v4 = vld [vmem:[#allocation29 + $0x60] sm:$0xff] }
 0xd0b   : > { %v7596_v17 = vpop.permute.xlu0 %7595 }
 0xd0c   : > { %7600 = vst.msk [vmem:[#allocation3 + $0x268] sm:$0xff] %vm1277_vm9, %v7596_v17  ;;  %v8295_v17 = vld [vmem:[#allocation27 + $0x70] sm:$0xff] }
 0xd0d   : > { %8334 = vperm.xlu0 %11490, %v8288_v0   ;;  %8854 = vperm.xlu1 %11491, %v8828_v31   ;;  %v11859_v0 = vld [vmem:[#allocation26 + $0x28c] ss:$44 sps:$4 sm:$0xff]   ;;  %v8710_v31 = vld [vmem:[#allocation32 + $0x60] sm:$0xff] }
 0xd10   : > { %v8054_v56 = vld [vmem:[#allocation3 + $0x2a0] sm:$0xff] }
 0xd11   : > { %8859 = vperm.xlu0 %11490, %v8829_v7   ;;  %8741 = vperm.xlu1 %11491, %v8703_v58  }
 0xd12   : > { %11008 = vmatprep.subr.bf16.mxu0 %v8054_v56 }
 0xd13   : > { %11009 = vmatpush3.bf16.msra.mxu0 %v8054_v56  ;;  %v7630_v12 = vld [vmem:[#allocation3 + $0x268] sm:$0xff] }
 0xd14   : > { %7754 = vmatpush1.bf16.msra.mxu1 %v7630_v12  ;;  %v11857_v12 = vld [vmem:[#allocation26 + $0x288] ss:$44 sps:$4 sm:$0xff]  }
 0xd15   : > { %8446 = vperm.xlu0 %11490, %v8400_v35   ;;  %8441 = vperm.xlu1 %11491, %v8399_v60   ;;  %v8296_v60 = vld [vmem:[#allocation27 + $0x78] sm:$0xff] }
 0xd17   : > { %7760 = vmatmul.mubr.bf16.vlgmr.msra.gmra.mrb[252].mxu1 %v11836_v52 }
 0xd18   : > { %9936 = vmatprep.mubr.msk.bf16.mxu1 %vm16565_vm11, %v11841_v55  ;;  %vm16579_vm11 = vmmov %vm16578_vm1 }
 0xd19   : > { %8746 = vperm.xlu0 %11490, %v8704_v8   ;;  %8339 = vperm.xlu1 %11491, %v8289_v11   ;;  %v8711_v8 = vld [vmem:[#allocation32 + $0x68] sm:$0xff]  ;;  %v8837_v11 = vld [vmem:[#allocation33 + $0x58] sm:$0xff] }
 0xd1d   : > { %8344 = vperm.xlu0 %11490, %v8290_v20   ;;  %8864 = vperm.xlu1 %11491, %v8830_v28  }
 0xd1f   : > { %7768 = vmatmul.mubr.bf16.gmra.mrb[0].mxu1 %v11839_v33 }
 0xd20   : > { %9937 = vmatprep.mubr.msk.bf16.mxu1 %vm16566_vm13, %v11844_v46  ;;  %vm16580_vm13 = vmmov %vm16578_vm1 }
 0xd21   : > { %8869 = vperm.xlu0 %11490, %v8831_v51   ;;  %8751 = vperm.xlu1 %11491, %v8705_v16   ;;  %v8407_v16 = vld [vmem:[#allocation29 + $0x70] sm:$0xff] }
 0xd25   : > { %8456 = vperm.xlu0 %11490, %v8402_v9   ;;  %8451 = vperm.xlu1 %11491, %v8401_v63   ;;  %v8408_v9 = vld [vmem:[#allocation29 + $0x78] sm:$0xff] }
 0xd27   : > { %7776 = vmatmul.mubr.bf16.gmra.mrb[4].mxu1 %v11842_v25 }
 0xd28   : > { %9938 = vmatprep.mubr.msk.bf16.mxu1 %vm16567_vm15, %v11847_v30  ;;  %vm16581_vm15 = vmmov %vm16578_vm1 }
 0xd29   : > { %8756 = vperm.xlu0 %11490, %v8706_v26   ;;  %8349 = vperm.xlu1 %11491, %v8291_v38  }
 0xd2d   : > { %8354 = vperm.xlu0 %11490, %v8292_v47   ;;  %8874 = vperm.xlu1 %11491, %v8832_v10   ;;  %v8712_v10 = vld [vmem:[#allocation32 + $0x70] sm:$0xff] }
 0xd2f   : > { %7784 = vmatmul.mubr.bf16.gmra.mrb[8].mxu1 %v11845_v34  ;;  %v8838_v34 = vld [vmem:[#allocation33 + $0x60] sm:$0xff] }
 0xd30   : > { %9939 = vmatprep.mubr.msk.bf16.mxu1 %vm16568_vm3, %v11850_v61  ;;  %vm12647_vm3 = vmmov 0  }
 0xd31   : > { %8879 = vperm.xlu0 %11490, %v8833_v45   ;;  %8761 = vperm.xlu1 %11491, %v8707_v13   ;;  %v11860_v13 = vld [vmem:[#allocation30] sm:$0xff]  }
 0xd33   : > { %v8005_v48 = vpop.permute.xlu1 %8004  ;;  %v8007_v39 = vpop.permute.xlu0 %8006 }
 0xd34   : > { %v8015_v37 = vsel %vm16569_vm4, %v8005_v48, %v8007_v39  ;;  %v8713_v39 = vld [vmem:[#allocation32 + $0x78] sm:$0xff]  ;;  %vm16610_vm4 = vcmask 15360  }
 0xd35   : > { %8031 = vst.msk [vmem:[#allocation3 + $0x2a8] sm:$0xff] %vm1277_vm9, %v8015_v37  ;;  %8466 = vperm.xlu0 %11490, %v8404_v44   ;;  %8461 = vperm.xlu1 %11491, %v8403_v32  }
 0xd37   : > { %7792 = vmatmul.mubr.bf16.gmra.mrb[12].mxu1 %v11848_v59  ;;  %v8121_v53 = vpop.permute.xlu1 %8120  ;;  %v8123_v54 = vpop.permute.xlu0 %8122  ;;  %v8839_v59 = vld [vmem:[#allocation33 + $0x68] sm:$0xff] }
 0xd38   : > { %9940 = vmatprep.mubr.msk.bf16.mxu1 %vm16570_vm8, %v11853_v24  ;;  %v8152_v40 = vsel %vm16571_vm6, %v8121_v53, %v8123_v54  ;;  %vm16611_vm8 = vmmov %vm16610_vm4 }
 0xd39   : > { %8766 = vperm.xlu0 %11490, %v8708_v18   ;;  %8359 = vperm.xlu1 %11491, %v8293_v57   ;;  %vm16613_vm6 = vmmov %vm16610_vm4 }
 0xd3a   : > { %11012 = vmatprep.mubr.bf16.mxu0 %v8152_v40 }
 0xd3b   : > { %v8125_v42 = vpop.permute.xlu1 %8124  ;;  %v8127_v2 = vpop.permute.xlu0 %8126 }
 0xd3c   : > { %v8055_v5 = vld [vmem:[#allocation3 + $0x2a8] sm:$0xff]  ;;  %v8153_v49 = vsel %vm16572_vm2, %v8125_v42, %v8127_v2  ;;  %v8840_v42 = vld [vmem:[#allocation33 + $0x70] sm:$0xff]  ;;  %vm16614_vm2 = vmmov %vm16610_vm4 }
 0xd3d   : > { %8364 = vperm.xlu0 %11490, %v8294_v62   ;;  %8884 = vperm.xlu1 %11491, %v8834_v14   ;;  %v8841_v2 = vld [vmem:[#allocation33 + $0x78] sm:$0xff] }
 0xd3e   : > { %11010 = vmatprep.subr.bf16.mxu0 %v8055_v5 }
 0xd3f   : > { %11011 = vmatpush3.bf16.msra.mxu0 %v8055_v5  ;;  %7800 = vmatmul.mubr.bf16.gmra.mrb[16].mxu1 %v11851_v6  ;;  %v8129_v43 = vpop.permute.xlu1 %8128  ;;  %v8131_v15 = vpop.permute.xlu0 %8130  ;;  %v11861_v5 = vld [vmem:[#allocation30 + $0x8] sm:$0xff]  }
 0xd40   : > { %11193 = vmatprep.subr.msk.bf16.mxu0 %vm16573_vm10, %v11872_v27  ;;  %9941 = vmatprep.mubr.msk.bf16.mxu1 %vm16574_vm0, %v11856_v21  ;;  %v8154_v19 = vsel %vm16575_vm12, %v8129_v43, %v8131_v15  ;;  %v9178_v15 = vld [vmem:[#allocation36] sm:$0x3f]  ;;  %vm16615_vm10 = vmmov %vm16614_vm2 }
 0xd41   : > { %8889 = vperm.xlu0 %11490, %v8835_v22   ;;  %8771 = vperm.xlu1 %11491, %v8709_v41   ;;  %v11862_v22 = vld [vmem:[#allocation30 + $0x10] sm:$0xff]   ;;  %vm16616_vm0 = vmmov %vm16614_vm2 }
 0xd42   : > { %11013 = vmatmul.mubr.bf16.vlgmr.msra.gmra.mrb[240].mxu0 %v8153_v49  ;;  %vm16617_vm12 = vmmov %vm16616_vm0 }
 0xd43   : > { %11029 = vmatpush3.bf16.msra.mxu0 %v13429_v1  ;;  %v8133_v23 = vpop.permute.xlu1 %8132  ;;  %v8135_v29 = vpop.permute.xlu0 %8134  ;;  %11016 = vmatprep.mubr.bf16.mxu0 %v8154_v19  ;;  %v8836_v1 = vld [vmem:[#allocation33 + $0x50] sm:$0xff] }
 0xd44   : > { %v8155_v7 = vsel %vm16576_vm5, %v8133_v23, %v8135_v29  ;;  %vm16618_vm5 = vmmov %vm16616_vm0 }
 0xd45   : > { %8476 = vperm.xlu0 %11490, %v8406_v36   ;;  %8471 = vperm.xlu1 %11491, %v8405_v4  }
 0xd47   : > { %7808 = vmatmul.mubr.bf16.gmra.mrb[20].mxu1 %v11854_v50  ;;  %v8137_v58 = vpop.permute.xlu1 %8136  ;;  %v8139_v56 = vpop.permute.xlu0 %8138 }
 0xd48   : > { %9942 = vmatprep.mubr.msk.bf16.mxu1 %vm16577_vm7, %v11859_v0  ;;  %v8156_v35 = vsel %vm16578_vm1, %v8137_v58, %v8139_v56  ;;  %v11864_v56 = vld [vmem:[#allocation30 + $0x20] sm:$0xff]   ;;  %vm16619_vm7 = vmmov %vm16616_vm0 }
 0xd49   : > { %8776 = vperm.xlu0 %11490, %v8710_v31   ;;  %8369 = vperm.xlu1 %11491, %v8295_v17   ;;  %v11863_v17 = vld [vmem:[#allocation30 + $0x18] sm:$0xff]   ;;  %vm16620_vm1 = vmmov %vm16616_vm0 }
 0xd4a   : > { %11017 = vmatmul.mubr.bf16.gmra.mrb[244].mxu0 %v8155_v7 }
 0xd4b   : > { %v8141_v52 = vpop.permute.xlu1 %8140  ;;  %v8143_v55 = vpop.permute.xlu0 %8142  ;;  %11020 = vmatprep.mubr.bf16.mxu0 %v8156_v35 }
 0xd4c   : > { %v8157_v20 = vsel %vm16579_vm11, %v8141_v52, %v8143_v55  ;;  %vm16621_vm11 = vmmov %vm16616_vm0 }
 0xd4d   : > { %8894 = vperm.xlu1 %11491, %v8836_v1   ;;  %8374 = vperm.xlu0 %11490, %v8296_v60  }
 0xd4f   : > { %7816 = vmatmul.mubr.bf16.gmra.mrb[24].mxu1 %v11857_v12  ;;  %v8145_v28 = vpop.permute.xlu1 %8144  ;;  %v8147_v33 = vpop.permute.xlu0 %8146 }
 0xd50   : > { %v8158_v46 = vsel %vm16580_vm13, %v8145_v28, %v8147_v33  ;;  %vm16622_vm13 = vmmov %vm16616_vm0 }
 0xd51   : > { %8781 = vperm.xlu1 %11491, %v8711_v8   ;;  %8899 = vperm.xlu0 %11490, %v8837_v11   ;;  %v10593_v51 = vpop.f32.mrb[188].mxu1 }
 0xd52   : > { %11021 = vmatmul.mubr.bf16.gmra.mrb[248].mxu0 %v8157_v20  ;;  %v10594_v63 = vpop.f32.mrb[189].mxu1 }
 0xd53   : > { %v8149_v25 = vpop.permute.xlu1 %8148  ;;  %11024 = vmatprep.mubr.bf16.mxu0 %v8158_v46  ;;  %v10595_v30 = vadd.f32 %v10594_v63, %v10593_v51  ;;  %v8151_v26 = vpop.permute.xlu0 %8150  ;;  %v11865_v46 = vld [vmem:[#allocation30 + $0x28] sm:$0xff]  }
 0xd54   : > { %v10596_v38 = vpop.f32.mrb[190].mxu1  ;;  %v8159_v45 = vsel %vm16581_vm15, %v8149_v25, %v8151_v26  ;;  %vm16624_vm15 = vmmov %vm16616_vm0 }
 0xd55   : > { %8481 = vperm.xlu1 %11491, %v8407_v16   ;;  %8486 = vperm.xlu0 %11490, %v8408_v9   ;;  %v10597_v47 = vpop.f32.mrb[191].mxu1  ;;  %v11866_v9 = vld [vmem:[#allocation30 + $0x30] sm:$0xff]  }
 0xd56   : > { %v10598_v61 = vadd.f32 %v10597_v47, %v10596_v38 }
 0xd58   : > { %v10657_v44 = vpop.f32.mrb[176].mxu0 }
 0xd59   : > { %8786 = vperm.xlu1 %11491, %v8712_v10   ;;  %8904 = vperm.xlu0 %11490, %v8838_v34   ;;  %v10599_v32 = vpop.f32.mrb[192].mxu1  ;;  %v10658_v48 = vpop.f32.mrb[177].mxu0 }
 0xd5a   : > { %11025 = vmatmul.mubr.bf16.gmra.mrb[252].mxu0 %v8159_v45  ;;  %v10600_v37 = vpop.f32.mrb[193].mxu1  ;;  %v10659_v24 = vadd.f32 %v10658_v48, %v10657_v44  ;;  %v10660_v18 = vpop.f32.mrb[178].mxu0 }
 0xd5b   : > { %11030 = vmatprep.mubr.msk.bf16.mxu0 %vm1205_vm14, %v11860_v13  ;;  %v10601_v57 = vadd.f32 %v10600_v37, %v10599_v32  ;;  %v10602_v53 = vpop.f32.mrb[194].mxu1  ;;  %v10661_v54 = vpop.f32.mrb[179].mxu0  ;;  %v11867_v32 = vld [vmem:[#allocation30 + $0x38] sm:$0xff]  }
 0xd5c   : > { %v15741_v40 = vadd.f32 %v10659_v24, %v10595_v30  ;;  %v10603_v62 = vpop.f32.mrb[195].mxu1  ;;  %v10662_v14 = vadd.f32 %v10661_v54, %v10660_v18 }
 0xd5d   : > { %8791 = vperm.xlu1 %11491, %v8713_v39   ;;  %8909 = vperm.xlu0 %11490, %v8839_v59   ;;  %v10604_v6 = vadd.f32 %v10603_v62, %v10602_v53 }
 0xd5e   : > { %v15743_v21 = vadd.f32 %v10662_v14, %v10598_v61 }
 0xd60   : > { %v10663_v41 = vpop.f32.mrb[180].mxu0 }
 0xd61   : > { %8914 = vperm.xlu1 %11491, %v8840_v42   ;;  %8919 = vperm.xlu0 %11490, %v8841_v2   ;;  %v10605_v49 = vpop.f32.mrb[196].mxu1  ;;  %v10664_v43 = vpop.f32.mrb[181].mxu0 }
 0xd62   : > { %11031 = vmatmul.mubr.msk.bf16.vlgmr.msra.gmra.mrb[0].mxu0 %vm1205_vm14, %v11861_v5  ;;  %v10606_v27 = vpop.f32.mrb[197].mxu1  ;;  %v10665_v19 = vadd.f32 %v10664_v43, %v10663_v41  ;;  %v10666_v36 = vpop.f32.mrb[182].mxu0 }
 0xd63   : > { %11034 = vmatprep.mubr.msk.bf16.mxu0 %vm1205_vm14, %v11862_v22  ;;  %v10607_v4 = vadd.f32 %v10606_v27, %v10605_v49  ;;  %v10608_v50 = vpop.f32.mrb[198].mxu1  ;;  %v10667_v23 = vpop.f32.mrb[183].mxu0 }
 0xd64   : > { %v15747_v29 = vadd.f32 %v10665_v19, %v10601_v57  ;;  %v10668_v0 = vadd.f32 %v10667_v23, %v10666_v36  ;;  %v10609_v31 = vpop.f32.mrb[199].mxu1 }
 0xd65   : > { %9181 = vperm.xlu1 %11491, %v9178_v15   ;;  %v10610_v7 = vadd.f32 %v10609_v31, %v10608_v50 }
 0xd66   : > { %v15749_v58 = vadd.f32 %v10668_v0, %v10604_v6 }
 0xd69   : > { %v10611_v35 = vpop.f32.mrb[200].mxu1  ;;  %v10669_v1 = vpop.f32.mrb[184].mxu0 }
 0xd6a   : > { %11035 = vmatmul.mubr.msk.bf16.gmra.mrb[4].mxu0 %vm1205_vm14, %v11863_v17  ;;  %v10612_v60 = vpop.f32.mrb[201].mxu1  ;;  %v10670_v12 = vpop.f32.mrb[185].mxu0  ;;  %v8954_v17 = vld [vmem:[#allocation11] sm:$0xff] }
 0xd6b   : > { %11038 = vmatprep.mubr.msk.bf16.mxu0 %vm1205_vm14, %v11864_v56  ;;  %v10613_v52 = vadd.f32 %v10612_v60, %v10611_v35  ;;  %v10614_v55 = vpop.f32.mrb[202].mxu1  ;;  %v10671_v8 = vadd.f32 %v10670_v12, %v10669_v1  ;;  %v10672_v11 = vpop.f32.mrb[186].mxu0 }
 0xd6c   : > { %v10615_v28 = vpop.f32.mrb[203].mxu1  ;;  %v10673_v33 = vpop.f32.mrb[187].mxu0 }
 0xd6d   : > { %v15753_v20 = vadd.f32 %v10671_v8, %v10607_v4  ;;  %v10616_v51 = vadd.f32 %v10615_v28, %v10614_v55  ;;  %v10674_v16 = vadd.f32 %v10673_v33, %v10672_v11  ;;  %v15770_v60 = vpop.permute.xlu1 %8299 }
 0xd6f   : > { %v15755_v63 = vadd.f32 %v10674_v16, %v10610_v7  ;;  %v8955_v7 = vld [vmem:[#allocation11 + $0x8] sm:$0xff] }
 0xd70   : > { %v11123_v1 = vpack.c.bf16 %v8955_v7, %v8954_v17 }
 0xd71   : > { %v10617_v25 = vpop.f32.mrb[204].mxu1  ;;  %v10675_v30 = vpop.f32.mrb[188].mxu0 }
 0xd72   : > { %11039 = vmatmul.mubr.msk.bf16.gmra.mrb[8].mxu0 %vm1205_vm14, %v11865_v46  ;;  %v10618_v26 = vpop.f32.mrb[205].mxu1  ;;  %v10676_v38 = vpop.f32.mrb[189].mxu0  ;;  %11124 = vmatprep.subr.bf16.mxu1 %v11123_v1 }
 0xd73   : > { %11042 = vmatprep.mubr.msk.bf16.mxu0 %vm1205_vm14, %v11866_v9  ;;  %v10619_v47 = vadd.f32 %v10618_v26, %v10617_v25  ;;  %v10620_v10 = vpop.f32.mrb[206].mxu1  ;;  %v10677_v34 = vadd.f32 %v10676_v38, %v10675_v30  ;;  %v10678_v61 = vpop.f32.mrb[190].mxu0  ;;  %11126 = vmatpush3.bf16.msra.mxu1 %v11123_v1  ;;  %v8956_v30 = vld [vmem:[#allocation11 + $0x10] sm:$0xff]  ;;  %v8957_v26 = vld [vmem:[#allocation11 + $0x18] sm:$0xff] }
 0xd74   : > { %v10621_v13 = vpop.f32.mrb[207].mxu1  ;;  %v10679_v44 = vpop.f32.mrb[191].mxu0 }
 0xd75   : > { %v15759_v45 = vadd.f32 %v10677_v34, %v10613_v52  ;;  %v10622_v48 = vadd.f32 %v10621_v13, %v10620_v10  ;;  %v10680_v39 = vadd.f32 %v10679_v44, %v10678_v61  ;;  %v11127_v10 = vpack.c.bf16 %v8957_v26, %v8956_v30  ;;  %v15776_v34 = vpop.permute.xlu0 %8304  ;;  %v15780_v13 = vpop.permute.xlu1 %8411  ;;  %v8958_v26 = vld [vmem:[#allocation11 + $0x20] sm:$0xff] }
 0xd77   : > { %v15761_v59 = vadd.f32 %v10680_v39, %v10616_v51  ;;  %11128 = vmatprep.subr.bf16.mxu1 %v11127_v10 }
 0xd78   : > { %11130 = vmatpush3.bf16.msra.mxu1 %v11127_v10 }
 0xd79   : > { %v10623_v37 = vpop.f32.mrb[208].mxu1  ;;  %v10681_v24 = vpop.f32.mrb[192].mxu0 }
 0xd7a   : > { %11043 = vmatmul.mubr.msk.bf16.gmra.mrb[12].mxu0 %vm1205_vm14, %v11867_v32  ;;  %v10624_v18 = vpop.f32.mrb[209].mxu1  ;;  %v10682_v57 = vpop.f32.mrb[193].mxu0  ;;  %vm9011_vm14 = vcmask 1045504  }
 0xd7b   : > { %v10625_v53 = vadd.f32 %v10624_v18, %v10623_v37  ;;  %v10626_v54 = vpop.f32.mrb[210].mxu1  ;;  %v10683_v62 = vadd.f32 %v10682_v57, %v10681_v24  ;;  %v10684_v14 = vpop.f32.mrb[194].mxu0 }
 0xd7c   : > { %v10627_v42 = vpop.f32.mrb[211].mxu1  ;;  %v10685_v2 = vpop.f32.mrb[195].mxu0 }
 0xd7d   : > { %v15764_v6 = vadd.f32 %v10683_v62, %v10619_v47  ;;  %v10628_v5 = vadd.f32 %v10627_v42, %v10626_v54  ;;  %v10686_v22 = vadd.f32 %v10685_v2, %v10684_v14 }
 0xd7f   : > { %v15766_v41 = vadd.f32 %v10686_v22, %v10622_v48 }
 0xd81   : > { %v10629_v49 = vpop.f32.mrb[212].mxu1  ;;  %v10687_v43 = vpop.f32.mrb[196].mxu0 }
 0xd82   : > { %v10630_v15 = vpop.f32.mrb[213].mxu1  ;;  %v10688_v27 = vpop.f32.mrb[197].mxu0 }
 0xd83   : > { %v10631_v19 = vadd.f32 %v10630_v15, %v10629_v49  ;;  %v10632_v36 = vpop.f32.mrb[214].mxu1  ;;  %v10689_v4 = vadd.f32 %v10688_v27, %v10687_v43  ;;  %v10690_v50 = vpop.f32.mrb[198].mxu0 }
 0xd84   : > { %v10633_v0 = vpop.f32.mrb[215].mxu1  ;;  %v10691_v31 = vpop.f32.mrb[199].mxu0 }
 0xd85   : > { %v15768_v23 = vadd.f32 %v10689_v4, %v10625_v53  ;;  %v10634_v56 = vadd.f32 %v10633_v0, %v10632_v36  ;;  %v10692_v35 = vadd.f32 %v10691_v31, %v10690_v50  ;;  %v15789_v49 = vpop.permute.xlu1 %8309 }
 0xd87   : > { %v15772_v12 = vadd.f32 %v10692_v35, %v10628_v5  ;;  %v15785_v5 = vpop.permute.xlu0 %8416 }
 0xd89   : > { %v10635_v52 = vpop.f32.mrb[216].mxu1  ;;  %v10693_v55 = vpop.f32.mrb[200].mxu0 }
 0xd8a   : > { %v10636_v8 = vpop.f32.mrb[217].mxu1  ;;  %v10694_v11 = vpop.f32.mrb[201].mxu0 }
 0xd8b   : > { %v10637_v28 = vadd.f32 %v10636_v8, %v10635_v52  ;;  %v10638_v33 = vpop.f32.mrb[218].mxu1  ;;  %v10695_v46 = vadd.f32 %v10694_v11, %v10693_v55  ;;  %v10696_v51 = vpop.f32.mrb[202].mxu0 }
 0xd8c   : > { %v10639_v9 = vpop.f32.mrb[219].mxu1  ;;  %v10697_v25 = vpop.f32.mrb[203].mxu0 }
 0xd8d   : > { %v15774_v16 = vadd.f32 %v10695_v46, %v10631_v19  ;;  %v10640_v38 = vadd.f32 %v10639_v9, %v10638_v33  ;;  %v10698_v47 = vadd.f32 %v10697_v25, %v10696_v51  ;;  %v15797_v55 = vpop.permute.xlu0 %8716 }
 0xd8f   : > { %v15778_v61 = vadd.f32 %v10698_v47, %v10634_v56 }
 0xd91   : > { %v10699_v44 = vpop.f32.mrb[204].mxu0 }
 0xd92   : > { %v10721_v32 = vpop.f32.mrb[220].mxu1  ;;  %v10700_v48 = vpop.f32.mrb[205].mxu0 }
 0xd93   : > { %v10722_v39 = vpop.f32.mrb[221].mxu1  ;;  %v10701_v37 = vadd.f32 %v10700_v48, %v10699_v44  ;;  %v10702_v24 = vpop.f32.mrb[206].mxu0 }
 0xd94   : > { %v10723_v18 = vadd.f32 %v10722_v39, %v10721_v32  ;;  %v10724_v53 = vpop.f32.mrb[222].mxu1  ;;  %v10703_v54 = vpop.f32.mrb[207].mxu0 }
 0xd95   : > { %v15782_v57 = vadd.f32 %v10701_v37, %v10637_v28  ;;  %v10725_v14 = vpop.f32.mrb[223].mxu1  ;;  %v10704_v42 = vadd.f32 %v10703_v54, %v10702_v24  ;;  %v15807_v37 = vpop.permute.xlu0 %8721 }
 0xd96   : > { %v7358_v62 = vadd.f32 %v10723_v18, %v15741_v40  ;;  %v10726_v2 = vadd.f32 %v10725_v14, %v10724_v53 }
 0xd97   : > { %v15787_v22 = vadd.f32 %v10704_v42, %v10640_v38 }
 0xd98   : > { %v7361_v43 = vadd.f32 %v10726_v2, %v15743_v21  ;;  %v15799_v21 = vpop.permute.xlu1 %8314 }
 0xd99   : > { %v10785_v15 = vpop.f32.mrb[208].mxu0 }
 0xd9a   : > { %v10786_v27 = vpop.f32.mrb[209].mxu0  ;;  %v10727_v19 = vpop.f32.mrb[224].mxu1 }
 0xd9b   : > { %v10787_v36 = vadd.f32 %v10786_v27, %v10785_v15  ;;  %v10788_v4 = vpop.f32.mrb[210].mxu0  ;;  %v10728_v50 = vpop.f32.mrb[225].mxu1 }
 0xd9c   : > { %v10789_v0 = vpop.f32.mrb[211].mxu0  ;;  %v10729_v31 = vadd.f32 %v10728_v50, %v10727_v19  ;;  %v10730_v17 = vpop.f32.mrb[226].mxu1 }
 0xd9d   : > { %v10790_v40 = vadd.f32 %v10789_v0, %v10788_v4  ;;  %v15792_v7 = vadd.f32 %v10787_v36, %v7358_v62  ;;  %v10731_v35 = vpop.f32.mrb[227].mxu1  ;;  %v15809_v24 = vpop.permute.xlu1 %8421  ;;  %v8960_v36 = vld [vmem:[#allocation11 + $0x30] sm:$0xff]  ;;  %v8961_v4 = vld [vmem:[#allocation11 + $0x38] sm:$0xff] }
 0xd9e   : > { %v7366_v56 = vadd.f32 %v10729_v31, %v15747_v29  ;;  %v10732_v1 = vadd.f32 %v10731_v35, %v10730_v17  ;;  %v8959_v29 = vld [vmem:[#allocation11 + $0x28] sm:$0xff]  ;;  %v11135_v31 = vpack.c.bf16 %v8961_v4, %v8960_v36  ;;  %v15817_v17 = vpop.permute.xlu0 %8426 }
 0xd9f   : > { %v15795_v52 = vadd.f32 %v10790_v40, %v7361_v43  ;;  %v11131_v44 = vpack.c.bf16 %v8959_v29, %v8958_v26 }
 0xda0   : > { %v7369_v8 = vadd.f32 %v10732_v1, %v15749_v58 }
 0xda1   : > { %v10791_v11 = vpop.f32.mrb[212].mxu0  ;;  %11132 = vmatprep.subr.bf16.mxu1 %v11131_v44 }
 0xda2   : > { %v10792_v28 = vpop.f32.mrb[213].mxu0  ;;  %v10733_v33 = vpop.f32.mrb[228].mxu1  ;;  %11134 = vmatpush3.bf16.msra.mxu1 %v11131_v44 }
 0xda3   : > { %v10793_v46 = vadd.f32 %v10792_v28, %v10791_v11  ;;  %v10794_v51 = vpop.f32.mrb[214].mxu0  ;;  %v10734_v9 = vpop.f32.mrb[229].mxu1  ;;  %11136 = vmatprep.subr.bf16.mxu1 %v11135_v31 }
 0xda4   : > { %v10795_v25 = vpop.f32.mrb[215].mxu0  ;;  %v10735_v30 = vadd.f32 %v10734_v9, %v10733_v33  ;;  %v10736_v47 = vpop.f32.mrb[230].mxu1 }
 0xda5   : > { %v10796_v38 = vadd.f32 %v10795_v25, %v10794_v51  ;;  %v15802_v10 = vadd.f32 %v10793_v46, %v7366_v56  ;;  %v10737_v48 = vpop.f32.mrb[231].mxu1  ;;  %v15819_v56 = vpop.permute.xlu1 %8319 }
 0xda6   : > { %v7374_v32 = vadd.f32 %v10735_v30, %v15753_v20  ;;  %v10738_v39 = vadd.f32 %v10737_v48, %v10736_v47  ;;  %11138 = vmatpush3.bf16.msra.mxu1 %v11135_v31 }
 0xda7   : > { %v15805_v58 = vadd.f32 %v10796_v38, %v7369_v8 }
 0xda8   : > { %v7377_v18 = vadd.f32 %v10738_v39, %v15755_v63 }
 0xda9   : > { %v10797_v53 = vpop.f32.mrb[216].mxu0  ;;  %v15829_v44 = vpop.permute.xlu1 %8844 }
 0xdaa   : > { %v10798_v54 = vpop.f32.mrb[217].mxu0  ;;  %v10739_v62 = vpop.f32.mrb[232].mxu1 }
 0xdab   : > { %v10799_v14 = vadd.f32 %v10798_v54, %v10797_v53  ;;  %v10800_v42 = vpop.f32.mrb[218].mxu0  ;;  %v10740_v2 = vpop.f32.mrb[233].mxu1 }
 0xdac   : > { %v10801_v43 = vpop.f32.mrb[219].mxu0  ;;  %v10741_v20 = vadd.f32 %v10740_v2, %v10739_v62  ;;  %v10742_v27 = vpop.f32.mrb[234].mxu1 }
 0xdad   : > { %v10802_v15 = vadd.f32 %v10801_v43, %v10800_v42  ;;  %v15812_v19 = vadd.f32 %v10799_v14, %v7374_v32  ;;  %v10743_v0 = vpop.f32.mrb[235].mxu1 }
 0xdae   : > { %v7382_v50 = vadd.f32 %v10741_v20, %v15759_v45  ;;  %v10744_v40 = vadd.f32 %v10743_v0, %v10742_v27  ;;  %v8962_v27 = vld [vmem:[#allocation11 + $0x40] sm:$0x3f] }
 0xdaf   : > { %v15815_v63 = vadd.f32 %v10802_v15, %v7377_v18  ;;  %11062 = vmatprep.subr.msk.mxu1 %vm9011_vm14, %v8962_v27 }
 0xdb0   : > { %v7385_v35 = vadd.f32 %v10744_v40, %v15761_v59  ;;  %v15827_v59 = vpop.permute.xlu0 %8726  ;;  %11063 = vmatpush3.msk.msra.mxu1 %vm9011_vm14, %v8962_v27  ;;  %vm16625_vm14 = vmmov %vm16616_vm0 }
 0xdb1   : > { %v10803_v1 = vpop.f32.mrb[220].mxu0 }
 0xdb2   : > { %v10804_v8 = vpop.f32.mrb[221].mxu0  ;;  %v10745_v11 = vpop.f32.mrb[236].mxu1 }
 0xdb3   : > { %v10805_v28 = vadd.f32 %v10804_v8, %v10803_v1  ;;  %v10806_v33 = vpop.f32.mrb[222].mxu0  ;;  %v10746_v46 = vpop.f32.mrb[237].mxu1 }
 0xdb4   : > { %v10807_v45 = vpop.f32.mrb[223].mxu0  ;;  %v10747_v51 = vadd.f32 %v10746_v46, %v10745_v11  ;;  %v10748_v25 = vpop.f32.mrb[238].mxu1 }
 0xdb5   : > { %v10808_v9 = vadd.f32 %v10807_v45, %v10806_v33  ;;  %v15822_v30 = vadd.f32 %v10805_v28, %v7382_v50  ;;  %v10749_v29 = vpop.f32.mrb[239].mxu1  ;;  %v15839_v50 = vpop.permute.xlu1 %8731 }
 0xdb6   : > { %v7390_v26 = vadd.f32 %v10747_v51, %v15764_v6  ;;  %v10750_v38 = vadd.f32 %v10749_v29, %v10748_v25 }
 0xdb7   : > { %v15825_v47 = vadd.f32 %v10808_v9, %v7385_v35 }
 0xdb8   : > { %v7393_v32 = vadd.f32 %v10750_v38, %v15766_v41  ;;  %v15837_v41 = vpop.permute.xlu0 %8324 }
 0xdb9   : > { %v10809_v48 = vpop.f32.mrb[224].mxu0 }
 0xdba   : > { %v10810_v39 = vpop.f32.mrb[225].mxu0  ;;  %v10751_v18 = vpop.f32.mrb[240].mxu1 }
 0xdbb   : > { %v10811_v53 = vadd.f32 %v10810_v39, %v10809_v48  ;;  %v10812_v54 = vpop.f32.mrb[226].mxu0  ;;  %v10752_v62 = vpop.f32.mrb[241].mxu1 }
 0xdbc   : > { %v10813_v14 = vpop.f32.mrb[227].mxu0  ;;  %v10753_v42 = vadd.f32 %v10752_v62, %v10751_v18  ;;  %v10754_v6 = vpop.f32.mrb[242].mxu1 }
 0xdbd   : > { %v10814_v2 = vadd.f32 %v10813_v14, %v10812_v54  ;;  %v15832_v43 = vadd.f32 %v10811_v53, %v7390_v26  ;;  %v10755_v15 = vpop.f32.mrb[243].mxu1  ;;  %v15844_v51 = vpop.permute.xlu0 %8849 }
 0xdbe   : > { %v7398_v20 = vadd.f32 %v10753_v42, %v15768_v23  ;;  %v10756_v36 = vadd.f32 %v10755_v15, %v10754_v6 }
 0xdbf   : > { %v15835_v4 = vadd.f32 %v10814_v2, %v7393_v32 }
 0xdc0   : > { %v7401_v0 = vadd.f32 %v10756_v36, %v15772_v12  ;;  %v15849_v12 = vpop.permute.xlu1 %8431 }
 0xdc1   : > { %v10815_v31 = vpop.f32.mrb[228].mxu0  ;;  %v15852_v62 = vpop.permute.xlu0 %8436 }
 0xdc2   : > { %v10816_v40 = vpop.f32.mrb[229].mxu0  ;;  %v10757_v35 = vpop.f32.mrb[244].mxu1 }
 0xdc3   : > { %v10817_v1 = vadd.f32 %v10816_v40, %v10815_v31  ;;  %v10818_v8 = vpop.f32.mrb[230].mxu0  ;;  %v10758_v23 = vpop.f32.mrb[245].mxu1 }
 0xdc4   : > { %v10819_v11 = vpop.f32.mrb[231].mxu0  ;;  %v10759_v28 = vadd.f32 %v10758_v23, %v10757_v35  ;;  %v10760_v46 = vpop.f32.mrb[246].mxu1 }
 0xdc5   : > { %v10820_v33 = vadd.f32 %v10819_v11, %v10818_v8  ;;  %v15842_v45 = vadd.f32 %v10817_v1, %v7398_v20  ;;  %v10761_v25 = vpop.f32.mrb[247].mxu1  ;;  %v15856_v20 = vpop.permute.xlu1 %8329 }
 0xdc6   : > { %v7406_v9 = vadd.f32 %v10759_v28, %v15774_v16  ;;  %v10762_v26 = vadd.f32 %v10761_v25, %v10760_v46  ;;  %v15862_v40 = vpop.permute.xlu0 %8736 }
 0xdc7   : > { %v15847_v29 = vadd.f32 %v10820_v33, %v7401_v0 }
 0xdc8   : > { %v7409_v38 = vadd.f32 %v10762_v26, %v15778_v61 }
 0xdc9   : > { %v10821_v32 = vpop.f32.mrb[232].mxu0  ;;  %v15864_v23 = vpop.permute.xlu1 %8854 }
 0xdca   : > { %v10822_v48 = vpop.f32.mrb[233].mxu0  ;;  %v10763_v39 = vpop.f32.mrb[248].mxu1 }
 0xdcb   : > { %v10823_v18 = vadd.f32 %v10822_v48, %v10821_v32  ;;  %v10824_v53 = vpop.f32.mrb[234].mxu0  ;;  %v10764_v54 = vpop.f32.mrb[249].mxu1 }
 0xdcc   : > { %v10825_v14 = vpop.f32.mrb[235].mxu0  ;;  %v10765_v42 = vadd.f32 %v10764_v54, %v10763_v39  ;;  %v10766_v16 = vpop.f32.mrb[250].mxu1 }
 0xdcd   : > { %v10826_v2 = vadd.f32 %v10825_v14, %v10824_v53  ;;  %v15854_v6 = vadd.f32 %v10823_v18, %v7406_v9  ;;  %v10767_v27 = vpop.f32.mrb[251].mxu1  ;;  %v15872_v9 = vpop.permute.xlu1 %8741 }
 0xdce   : > { %v7414_v15 = vadd.f32 %v10765_v42, %v15782_v57  ;;  %v10768_v61 = vadd.f32 %v10767_v27, %v10766_v16  ;;  %v15870_v57 = vpop.permute.xlu0 %8334  ;;  %16582 = vst [vmem:[#allocation65_spill] sm:$0xff] %v15872_v9 }
 0xdcf   : > { %v15859_v36 = vadd.f32 %v10826_v2, %v7409_v38 }
 0xdd0   : > { %v7417_v0 = vadd.f32 %v10768_v61, %v15787_v22 }
 0xdd1   : > { %v10827_v31 = vpop.f32.mrb[236].mxu0  ;;  %v15876_v22 = vpop.permute.xlu1 %8441 }
 0xdd2   : > { %v10828_v35 = vpop.f32.mrb[237].mxu0  ;;  %v15874_v25 = vpop.permute.xlu0 %8859 }
 0xdd3   : > { %v10829_v1 = vadd.f32 %v10828_v35, %v10827_v31  ;;  %v10830_v8 = vpop.f32.mrb[238].mxu0 }
 0xdd4   : > { %v10831_v11 = vpop.f32.mrb[239].mxu0 }
 0xdd5   : > { %v10832_v28 = vadd.f32 %v10831_v11, %v10830_v8  ;;  %v15866_v33 = vadd.f32 %v10829_v1, %v7414_v15  ;;  %v15880_v38 = vpop.permute.xlu1 %8339 }
 0xdd6   : > { %v15878_v26 = vpop.permute.xlu0 %8446 }
 0xdd7   : > { %v15868_v46 = vadd.f32 %v10832_v28, %v7417_v0 }
 0xdd9   : > { %v15885_v53 = vpop.permute.xlu1 %8864 }
 0xdda   : > { %v15882_v32 = vpop.permute.xlu0 %8746  ;;  %16583 = vst [vmem:[#allocation66_spill] sm:$0xff] %v15885_v53 }
 0xddd   : > { %v15890_v16 = vpop.permute.xlu1 %8751 }
 0xdde   : > { %v15888_v2 = vpop.permute.xlu0 %8344 }
 0xddf   : > { %16584 = vst [vmem:[#allocation67_spill] sm:$0xff] %v15888_v2 }
 0xde1   : > { %v15896_v1 = vpop.permute.xlu1 %8451 }
 0xde2   : > { %16586 = vst [vmem:[#allocation69_spill] sm:$0xff] %v15896_v1 }
 0xdea   : > { %v7761_v48 = vpop.f32.mrb[252].mxu1 }
 0xdeb   : > { %v7824_v39 = vadd.f32 %v7761_v48, %v15792_v7  ;;  %v7763_v18 = vpop.f32.mrb[253].mxu1  ;;  %v15894_v7 = vpop.permute.xlu0 %8869 }
 0xdec   : > { %v7764_v54 = vpop.f32.mrb[254].mxu1  ;;  %16585 = vst [vmem:[#allocation68_spill] sm:$0xff] %v15894_v7 }
 0xded   : > { %v7825_v14 = vadd.f32 %v7764_v54, %v15795_v52  ;;  %v7766_v42 = vpop.f32.mrb[255].mxu1 }
 0xdef   : > { %v15899_v28 = vpop.permute.xlu0 %8456 }
 0xdf0   : > { %16587 = vst [vmem:[#allocation70_spill] sm:$0xff] %v15899_v28 }
 0xdf2   : > { %v7769_v15 = vpop.f32.mrb[0].mxu1 }
 0xdf3   : > { %v7826_v27 = vadd.f32 %v7769_v15, %v15802_v10  ;;  %v7771_v61 = vpop.f32.mrb[1].mxu1  ;;  %v15902_v10 = vpop.permute.xlu1 %8349 }
 0xdf4   : > { %v7772_v0 = vpop.f32.mrb[2].mxu1  ;;  %v15904_v42 = vpop.permute.xlu0 %8756 }
 0xdf5   : > { %v7827_v31 = vadd.f32 %v7772_v0, %v15805_v58  ;;  %v7774_v35 = vpop.f32.mrb[3].mxu1  ;;  %16588 = vst [vmem:[#allocation71_spill] sm:$0xff] %v15904_v42 }
 0xdf7   : > { %v15907_v0 = vpop.permute.xlu1 %8874 }
 0xdf8   : > { %16589 = vst [vmem:[#allocation72_spill] sm:$0xff] %v15907_v0 }
 0xdfa   : > { %v7777_v8 = vpop.f32.mrb[4].mxu1 }
 0xdfb   : > { %v7828_v52 = vadd.f32 %v7777_v8, %v15812_v19  ;;  %v7779_v11 = vpop.f32.mrb[5].mxu1  ;;  %v15912_v3 = vpop.permute.xlu1 %8761 }
 0xdfc   : > { %v7780_v48 = vpop.f32.mrb[6].mxu1  ;;  %v15910_v11 = vpop.permute.xlu0 %8354  ;;  %16590 = vst [vmem:[#allocation73_spill] sm:$0xff] %v15912_v3 }
 0xdfd   : > { %v7829_v18 = vadd.f32 %v7780_v48, %v15815_v63  ;;  %v7782_v54 = vpop.f32.mrb[7].mxu1 }
 0xe02   : > { %v7785_v58 = vpop.f32.mrb[8].mxu1 }
 0xe03   : > { %v7830_v15 = vadd.f32 %v7785_v58, %v15822_v30  ;;  %v7787_v61 = vpop.f32.mrb[9].mxu1  ;;  %v15916_v30 = vpop.permute.xlu0 %8879 }
 0xe04   : > { %v7788_v35 = vpop.f32.mrb[10].mxu1  ;;  %16591 = vst [vmem:[#allocation74_spill] sm:$0xff] %v15916_v30  ;;  %v15918_v58 = vpop.permute.xlu1 %8461 }
 0xe05   : > { %v7831_v19 = vadd.f32 %v7788_v35, %v15825_v47  ;;  %v7790_v8 = vpop.f32.mrb[11].mxu1 }
 0xe07   : > { %v15921_v8 = vpop.permute.xlu0 %8466 }
 0xe08   : > { %16592 = vst [vmem:[#allocation75_spill] sm:$0xff] %v15921_v8 }
 0xe0a   : > { %v7793_v63 = vpop.f32.mrb[12].mxu1 }
 0xe0b   : > { %v7832_v48 = vadd.f32 %v7793_v63, %v15832_v43  ;;  %v7795_v54 = vpop.f32.mrb[13].mxu1  ;;  %v15924_v63 = vpop.permute.xlu1 %8359 }
 0xe0c   : > { %v7796_v7 = vpop.f32.mrb[14].mxu1  ;;  %16593 = vst [vmem:[#allocation76_spill] sm:$0xff] %v15924_v63  ;;  %v15926_v2 = vpop.permute.xlu0 %8766 }
 0xe0d   : > { %v7833_v42 = vadd.f32 %v7796_v7, %v15835_v4  ;;  %v7798_v28 = vpop.f32.mrb[15].mxu1 }
 0xe0f   : > { %v15929_v8 = vpop.permute.xlu1 %8884 }
 0xe10   : > { %16594 = vst [vmem:[#allocation77_spill] sm:$0xff] %v15929_v8 }
 0xe12   : > { %v7801_v61 = vpop.f32.mrb[16].mxu1 }
 0xe13   : > { %v7834_v47 = vadd.f32 %v7801_v61, %v15842_v45  ;;  %v7803_v35 = vpop.f32.mrb[17].mxu1  ;;  %v15936_v8 = vpop.permute.xlu1 %8771 }
 0xe14   : > { %v7804_v0 = vpop.f32.mrb[18].mxu1 }
 0xe15   : > { %v7835_v3 = vadd.f32 %v7804_v0, %v15847_v29  ;;  %v11014_v53 = vpop.f32.mrb[240].mxu0  ;;  %v7806_v43 = vpop.f32.mrb[19].mxu1 }
 0xe16   : > { %v8267_v54 = vadd.f32 %v11014_v53, %v7826_v27  ;;  %v8202_v4 = vpop.f32.mrb[241].mxu0 }
 0xe17   : > { %v8265_v7 = vadd.f32 %v8202_v4, %v7824_v39  ;;  %v11015_v28 = vpop.f32.mrb[242].mxu0 }
 0xe18   : > { %v8268_v30 = vadd.f32 %v11015_v28, %v7827_v31  ;;  %v8205_v1 = vpop.f32.mrb[243].mxu0  ;;  %v15932_v31 = vpop.permute.xlu0 %8364 }
 0xe19   : > { %v8266_v9 = vadd.f32 %v8205_v1, %v7825_v14 }
 0xe1a   : > { %v7809_v45 = vpop.f32.mrb[20].mxu1 }
 0xe1b   : > { %v7836_v61 = vadd.f32 %v7809_v45, %v15854_v6  ;;  %v7811_v35 = vpop.f32.mrb[21].mxu1 }
 0xe1c   : > { %v7812_v29 = vpop.f32.mrb[22].mxu1 }
 0xe1d   : > { %v7837_v0 = vadd.f32 %v7812_v29, %v15859_v36  ;;  %v11018_v43 = vpop.f32.mrb[244].mxu0  ;;  %v7814_v63 = vpop.f32.mrb[23].mxu1 }
 0xe1e   : > { %v8271_v53 = vadd.f32 %v11018_v43, %v7830_v15  ;;  %v8218_v27 = vpop.f32.mrb[245].mxu0 }
 0xe1f   : > { %v8269_v39 = vadd.f32 %v8218_v27, %v7828_v52  ;;  %v11019_v4 = vpop.f32.mrb[246].mxu0 }
 0xe20   : > { %v8383_v14 = vmul.f32 %v15856_v20, %v8271_v53  ;;  %v8272_v1 = vadd.f32 %v11019_v4, %v7831_v19  ;;  %v8221_v28 = vpop.f32.mrb[247].mxu0 }
 0xe21   : > { %v8381_v6 = vmul.f32 %v15819_v56, %v8269_v39  ;;  %v8270_v45 = vadd.f32 %v8221_v28, %v7829_v18  ;;  %v15947_v18 = vpop.permute.xlu0 %8889 }
 0xe22   : > { %v7817_v35 = vpop.f32.mrb[24].mxu1 }
 0xe23   : > { %v15939_v36 = vadd.f32 %v15849_v12, %v8381_v6  ;;  %v8382_v15 = vmul.f32 %v15837_v41, %v8270_v45  ;;  %v7838_v52 = vadd.f32 %v7817_v35, %v15866_v33  ;;  %v7819_v63 = vpop.f32.mrb[25].mxu1  ;;  %v15949_v41 = vpop.permute.xlu1 %8471  ;;  %v8379_v45 = vmul.f32 %v15789_v49, %v8267_v54 }
 0xe24   : > { %v7820_v29 = vpop.f32.mrb[26].mxu1  ;;  %v8380_v63 = vmul.f32 %v15799_v21, %v8268_v30 }
 0xe25   : > { %v15944_v43 = vadd.f32 %v15852_v62, %v8382_v15  ;;  %v7839_v20 = vadd.f32 %v7820_v29, %v15868_v46  ;;  %v11022_v19 = vpop.f32.mrb[248].mxu0  ;;  %v7822_v56 = vpop.f32.mrb[27].mxu1  ;;  %v8491_v54 = vadd.f32 %v15809_v24, %v8379_v45 }
 0xe26   : > { %v8275_v53 = vadd.f32 %v11022_v19, %v7834_v47  ;;  %v8234_v27 = vpop.f32.mrb[249].mxu0  ;;  %v15953_v6 = vpop.permute.xlu0 %8476  ;;  %v8377_v47 = vmul.f32 %v15770_v60, %v8265_v7  ;;  %v8378_v19 = vmul.f32 %v15776_v34, %v8266_v9  ;;  %v8492_v60 = vadd.f32 %v15817_v17, %v8380_v63 }
 0xe27   : > { %v8273_v39 = vadd.f32 %v8234_v27, %v7832_v48  ;;  %v11023_v12 = vpop.f32.mrb[250].mxu0  ;;  %v15958_v15 = vpop.permute.xlu1 %8369  ;;  %v8507_v30 = vmax.f32 %v8491_v54, 0.0  ;;  %v8384_v34 = vmul.f32 %v15870_v57, %v8272_v1 }
 0xe28   : > { %v8276_v4 = vadd.f32 %v11023_v12, %v7835_v3  ;;  %v8237_v28 = vpop.f32.mrb[251].mxu0 }
 0xe29   : > { %v15951_v33 = vadd.f32 %v8237_v28, %v7833_v42  ;;  %v8508_v28 = vmax.f32 %v8492_v60, 0.0  ;;  %v8496_v57 = vadd.f32 %v15878_v26, %v8384_v34  ;;  %v16597_v34 = vld [vmem:[#allocation69_spill] sm:$0xff] }
 0xe2a   : > { %v15969_v49 = vpop.permute.xlu0 %8776 }
 0xe2b   : > { %v15974_v7 = vpop.permute.xlu1 %8894 }
 0xe2d   : > { %v11026_v62 = vpop.f32.mrb[252].mxu0 }
 0xe2e   : > { %v15956_v46 = vadd.f32 %v11026_v62, %v7838_v52  ;;  %v8250_v35 = vpop.f32.mrb[253].mxu0  ;;  %v8489_v52 = vadd.f32 %v15780_v13, %v8377_v47  ;;  %v15980_v24 = vpop.permute.xlu0 %8374 }
 0xe2f   : > { %v15961_v48 = vadd.f32 %v8250_v35, %v7836_v61  ;;  %v11027_v3 = vpop.f32.mrb[254].mxu0  ;;  %v8490_v61 = vadd.f32 %v15785_v5, %v8378_v19  ;;  %v8495_v5 = vadd.f32 %v15876_v22, %v8383_v14 }
 0xe30   : > { %v15964_v29 = vadd.f32 %v11027_v3, %v7839_v20  ;;  %v8253_v42 = vpop.f32.mrb[255].mxu0  ;;  %v8505_v9 = vmax.f32 %v8489_v52, 0.0  ;;  %v15985_v3 = vpop.permute.xlu1 %8781  ;;  %v8388_v52 = vmul.f32 %v15910_v11, %v8276_v4  ;;  %v8510_v11 = vmax.f32 %v15944_v43, 0.0  ;;  %v16595_v4 = vld [vmem:[#allocation67_spill] sm:$0xff]  ;;  %v16599_v43 = vld [vmem:[#allocation66_spill] sm:$0xff] }
 0xe31   : > { %v15967_v56 = vadd.f32 %v8253_v42, %v7837_v0  ;;  %v8506_v35 = vmax.f32 %v8490_v61, 0.0  ;;  %v8387_v42 = vmul.f32 %v15902_v10, %v8275_v53  ;;  %v8511_v22 = vmax.f32 %v8495_v5, 0.0 }
 0xe32   : > { %v15992_v54 = vpop.permute.xlu0 %8899  ;;  %v8512_v53 = vmax.f32 %v8496_v57, 0.0 }
 0xe35   : > { %v11032_v21 = vpop.f32.mrb[0].mxu0 }
 0xe36   : > { %v8796_v20 = vmul.f32 %v11032_v21, %v15827_v59  ;;  %v8635_v27 = vpop.f32.mrb[1].mxu0 }
 0xe37   : > { %v8794_v0 = vmul.f32 %v15797_v55, %v8635_v27  ;;  %v11033_v12 = vpop.f32.mrb[2].mxu0  ;;  %v16596_v27 = vld [vmem:[#allocation65_spill] sm:$0xff] }
 0xe38   : > { %v8812_v13 = vadd.f32 %v8796_v20, %v8507_v30  ;;  %v8797_v17 = vmul.f32 %v11033_v12, %v15839_v50  ;;  %v8638_v62 = vpop.f32.mrb[3].mxu0 }
 0xe39   : > { %v8810_v45 = vadd.f32 %v8794_v0, %v8505_v9  ;;  %v8795_v59 = vmul.f32 %v15807_v37, %v8638_v62  ;;  %v8385_v37 = vmul.f32 %v15880_v38, %v8273_v39  ;;  %v16598_v0 = vld [vmem:[#allocation75_spill] sm:$0xff]  ;;  %v16600_v62 = vld [vmem:[#allocation72_spill] sm:$0xff] }
 0xe3a   : > { %v8813_v47 = vadd.f32 %v8797_v17, %v8508_v28  ;;  %v8924_v63 = vadd.f32 %v15864_v23, %v8812_v13  ;;  %v8500_v12 = vadd.f32 %v16598_v0, %v8388_v52  ;;  %v16604_v52 = vld [vmem:[#allocation74_spill] sm:$0xff] }
 0xe3b   : > { %v8922_v55 = vadd.f32 %v15829_v44, %v8810_v45  ;;  %v8811_v1 = vadd.f32 %v8795_v59, %v8506_v35  ;;  %v8509_v44 = vmax.f32 %v15939_v36, 0.0  ;;  %v8499_v36 = vadd.f32 %v15918_v58, %v8387_v42  ;;  %v8487_v58 = vpop.permute.xlu0 %8486  ;;  %v16602_v59 = vld [vmem:[#allocation68_spill] sm:$0xff] }
 0xe3c   : > { %v8925_v23 = vadd.f32 %v15874_v25, %v8813_v47  ;;  %v8940_v21 = vmax.f32 %v8924_v63, 0.0  ;;  %v8386_v25 = vmul.f32 %v16595_v4, %v15951_v33  ;;  %v8497_v9 = vadd.f32 %v16597_v34, %v8385_v37  ;;  %v16601_v33 = vld [vmem:[#allocation70_spill] sm:$0xff]  ;;  %v16607_v4 = vld [vmem:[#allocation77_spill] sm:$0xff] }
 0xe3d   : > { %v8938_v50 = vmax.f32 %v8922_v55, 0.0  ;;  %v8923_v19 = vadd.f32 %v15844_v51, %v8811_v1  ;;  %v11036_v14 = vpop.f32.mrb[4].mxu0  ;;  %v8515_v57 = vmax.f32 %v8499_v36, 0.0  ;;  %v8391_v1 = vmul.f32 %v15958_v15, %v15956_v46 }
 0xe3e   : > { %v8800_v26 = vmul.f32 %v11036_v14, %v15882_v32  ;;  %v8651_v60 = vpop.f32.mrb[5].mxu0  ;;  %v8482_v32 = vpop.permute.xlu1 %8481  ;;  %v8498_v45 = vadd.f32 %v16601_v33, %v8386_v25  ;;  %v8513_v42 = vmax.f32 %v8497_v9, 0.0  ;;  %v16603_v14 = vld [vmem:[#allocation76_spill] sm:$0xff]  ;;  %v8392_v46 = vmul.f32 %v15980_v24, %v15964_v29 }
 0xe3f   : > { %v8939_v61 = vmax.f32 %v8923_v19, 0.0  ;;  %v8798_v10 = vmul.f32 %v15862_v40, %v8651_v60  ;;  %v11037_v51 = vpop.f32.mrb[6].mxu0  ;;  %11064 = vmatprep.mubr.msk.f32.mxu1 %vm1277_vm9, %v8938_v50  ;;  %v8516_v19 = vmax.f32 %v8500_v12, 0.0  ;;  %v8389_v37 = vmul.f32 %v16603_v14, %v15961_v48  ;;  %v16605_v60 = vld [vmem:[#allocation71_spill] sm:$0xff] }
 0xe40   : > { %v8816_v30 = vadd.f32 %v8800_v26, %v8511_v22  ;;  %v8801_v38 = vmul.f32 %v11037_v51, %v15890_v16  ;;  %v8654_v39 = vpop.f32.mrb[7].mxu0  ;;  %v8941_v16 = vmax.f32 %v8925_v23, 0.0  ;;  %v8390_v51 = vmul.f32 %v15932_v31, %v15967_v56 }
 0xe41   : > { %v8814_v20 = vadd.f32 %v8798_v10, %v8509_v44  ;;  %v8799_v40 = vmul.f32 %v16596_v27, %v8654_v39  ;;  %11065 = vmatmul.mubr.msk.f32.vlgmr.msra.gmra.mrb[28].mxu1 %vm1277_vm9, %v8939_v61  ;;  %v8503_v39 = vadd.f32 %v8482_v32, %v8391_v1  ;;  %v8501_v29 = vadd.f32 %v15949_v41, %v8389_v37 }
 0xe42   : > { %v8817_v13 = vadd.f32 %v8801_v38, %v8512_v53  ;;  %11067 = vmatprep.mubr.msk.f32.mxu1 %vm1277_vm9, %v8940_v21  ;;  %v8928_v5 = vadd.f32 %v16600_v62, %v8816_v30  ;;  %v8787_v22 = vpop.permute.xlu1 %8786  ;;  %v8514_v21 = vmax.f32 %v8498_v45, 0.0  ;;  %v16606_v30 = vld [vmem:[#allocation73_spill] sm:$0xff]  ;;  %v8502_v27 = vadd.f32 %v15953_v6, %v8390_v51 }
 0xe43   : > { %v8926_v28 = vadd.f32 %v16599_v43, %v8814_v20  ;;  %v8815_v17 = vadd.f32 %v8799_v40, %v8510_v11  ;;  %v8905_v11 = vpop.permute.xlu0 %8904  ;;  %v8504_v20 = vadd.f32 %v8487_v58, %v8392_v46  ;;  %v8519_v32 = vmax.f32 %v8503_v39, 0.0 }
 0xe44   : > { %v8929_v26 = vadd.f32 %v16604_v52, %v8817_v13  ;;  %v8944_v15 = vmax.f32 %v8928_v5, 0.0  ;;  %v8518_v33 = vmax.f32 %v8502_v27, 0.0  ;;  %v16609_v14 = vmov 0.0  }
 0xe45   : > { %v8942_v35 = vmax.f32 %v8926_v28, 0.0  ;;  %v8927_v47 = vadd.f32 %v16602_v59, %v8815_v17  ;;  %v11040_v55 = vpop.f32.mrb[8].mxu0  ;;  %11068 = vmatmul.mubr.msk.f32.gmra.mrb[30].mxu1 %vm1277_vm9, %v8941_v16  ;;  %v8517_v16 = vmax.f32 %v8501_v29, 0.0  ;;  %v8520_v58 = vmax.f32 %v8504_v20, 0.0  ;;  %11120 = vmatprep.mubr.msk.f32.mxu0 %vm12647_vm3, %v16609_v14  ;;  %vm16627_vm3 = vmmov %vm16616_vm0 }
 0xe46   : > { %v8804_v63 = vmul.f32 %v11040_v55, %v15926_v2  ;;  %v8667_v50 = vpop.f32.mrb[9].mxu0  ;;  %v8945_v24 = vmax.f32 %v8929_v26, 0.0  ;;  %v8792_v56 = vpop.permute.xlu1 %8791 }
 0xe47   : > { %v8943_v44 = vmax.f32 %v8927_v47, 0.0  ;;  %v8802_v23 = vmul.f32 %v16605_v60, %v8667_v50  ;;  %v11041_v61 = vpop.f32.mrb[10].mxu0  ;;  %11070 = vmatprep.mubr.msk.f32.mxu1 %vm1277_vm9, %v8942_v35 }
 0xe48   : > { %v8820_v2 = vadd.f32 %v8804_v63, %v8515_v57  ;;  %v8805_v10 = vmul.f32 %v11041_v61, %v15936_v8  ;;  %v8670_v53 = vpop.f32.mrb[11].mxu0 }
 0xe49   : > { %v8818_v48 = vadd.f32 %v8802_v23, %v8513_v42  ;;  %v8803_v38 = vmul.f32 %v16606_v30, %v8670_v53  ;;  %11071 = vmatmul.mubr.msk.f32.gmra.mrb[32].mxu1 %vm1277_vm9, %v8943_v44 }
 0xe4a   : > { %v8821_v36 = vadd.f32 %v8805_v10, %v8516_v19  ;;  %11073 = vmatprep.mubr.msk.f32.mxu1 %vm1277_vm9, %v8944_v15  ;;  %v8932_v31 = vadd.f32 %v15974_v7, %v8820_v2  ;;  %v8910_v7 = vpop.permute.xlu0 %8909  ;;  %v8915_v35 = vpop.permute.xlu1 %8914 }
 0xe4b   : > { %v8930_v8 = vadd.f32 %v16607_v4, %v8818_v48  ;;  %v8819_v25 = vadd.f32 %v8803_v38, %v8514_v21 }
 0xe4c   : > { %v8933_v41 = vadd.f32 %v15992_v54, %v8821_v36  ;;  %v8948_v6 = vmax.f32 %v8932_v31, 0.0 }
 0xe4d   : > { %v8946_v40 = vmax.f32 %v8930_v8, 0.0  ;;  %v8931_v34 = vadd.f32 %v15947_v18, %v8819_v25  ;;  %v11044_v9 = vpop.f32.mrb[12].mxu0  ;;  %11074 = vmatmul.mubr.msk.f32.gmra.mrb[34].mxu1 %vm1277_vm9, %v8945_v24  ;;  %v9177_v25 = vld [vmem:[#allocation35] sm:$0x3f] }
 0xe4e   : > { %v8808_v0 = vmul.f32 %v11044_v9, %v8787_v22  ;;  %v8683_v12 = vpop.f32.mrb[13].mxu0  ;;  %v8920_v63 = vpop.permute.xlu0 %8919  ;;  %v12646_v22 = vmov 0.0|0.0  }
 0xe4f   : > { %v8947_v13 = vmax.f32 %v8931_v34, 0.0  ;;  %v8806_v43 = vmul.f32 %v15969_v49, %v8683_v12  ;;  %v11045_v28 = vpop.f32.mrb[14].mxu0  ;;  %11076 = vmatprep.mubr.msk.f32.mxu1 %vm1277_vm9, %v8946_v40  ;;  %v8949_v49 = vmax.f32 %v8933_v41, 0.0  ;;  %11139 = vmatprep.subr.bf16.mxu0 %v12646_v22 }
 0xe50   : > { %v8824_v17 = vadd.f32 %v8808_v0, %v8519_v32  ;;  %v8809_v18 = vmul.f32 %v11045_v28, %v8792_v56  ;;  %v8686_v62 = vpop.f32.mrb[15].mxu0 }
 0xe51   : > { %v8822_v5 = vadd.f32 %v8806_v43, %v8517_v16  ;;  %v8807_v45 = vmul.f32 %v15985_v3, %v8686_v62  ;;  %11077 = vmatmul.mubr.msk.f32.gmra.mrb[36].mxu1 %vm1277_vm9, %v8947_v13 }
 0xe52   : > { %v8825_v54 = vadd.f32 %v8809_v18, %v8520_v58  ;;  %11079 = vmatprep.mubr.msk.f32.mxu1 %vm1277_vm9, %v8948_v6  ;;  %v8936_v57 = vadd.f32 %v8915_v35, %v8824_v17 }
 0xe53   : > { %v8934_v59 = vadd.f32 %v8905_v11, %v8822_v5  ;;  %v8823_v47 = vadd.f32 %v8807_v45, %v8518_v33 }
 0xe54   : > { %v8937_v42 = vadd.f32 %v8920_v63, %v8825_v54  ;;  %v8952_v3 = vmax.f32 %v8936_v57, 0.0 }
 0xe55   : > { %v8950_v55 = vmax.f32 %v8934_v59, 0.0  ;;  %v8935_v1 = vadd.f32 %v8910_v7, %v8823_v47  ;;  %11080 = vmatmul.mubr.msk.f32.gmra.mrb[38].mxu1 %vm1277_vm9, %v8949_v49 }
 0xe56   : > { %v8953_v19 = vmax.f32 %v8937_v42, 0.0 }
 0xe57   : > { %v8951_v50 = vmax.f32 %v8935_v1, 0.0  ;;  %11082 = vmatprep.mubr.msk.f32.mxu1 %vm1277_vm9, %v8950_v55 }
 0xe59   : > { %11083 = vmatmul.mubr.msk.f32.gmra.mrb[40].mxu1 %vm1277_vm9, %v8951_v50 }
 0xe5a   : > { %11085 = vmatprep.mubr.msk.f32.mxu1 %vm1277_vm9, %v8952_v3 }
 0xe5d   : > { %11086 = vmatmul.mubr.msk.f32.gmra.mrb[42].mxu1 %vm1277_vm9, %v8953_v19  ;;  %vm16612_vm9 = vmmov %vm16610_vm4 }
 0xf14   : > { %v11066_v37 = vpop.f32.mrb[28].mxu1 }
 0xf15   : > { %9162 = vst.msk [vmem:[%s16051_s19 + $0x8] sm:$0xff] %vm16610_vm4, %v11066_v37  ;;  %v9081_v52 = vpop.f32.mrb[29].mxu1 }
 0xf16   : > { %9161 = vst.msk [vmem:[%s16051_s19] sm:$0xff] %vm16611_vm8, %v9081_v52  ;;  %v11140_v26 = vpack.c.bf16 %v11066_v37, %v9081_v52 }
 0xf18   : > { %v11069_v44 = vpop.f32.mrb[30].mxu1  ;;  %11141 = vmatpush3.bf16.msra.mxu0 %v11140_v26 }
 0xf19   : > { %9164 = vst.msk [vmem:[%s16051_s19 + $0x18] sm:$0xff] %vm16612_vm9, %v11069_v44  ;;  %v9091_v60 = vpop.f32.mrb[31].mxu1  ;;  %11142 = vmatprep.subr.bf16.mxu0 %v12646_v22 }
 0xf1a   : > { %9163 = vst.msk [vmem:[%s16051_s19 + $0x10] sm:$0xff] %vm16613_vm6, %v9091_v60  ;;  %v11143_v23 = vpack.c.bf16 %v11069_v44, %v9091_v60 }
 0xf1c   : > { %v11072_v61 = vpop.f32.mrb[32].mxu1  ;;  %11144 = vmatpush3.bf16.msra.mxu0 %v11143_v23 }
 0xf1d   : > { %9166 = vst.msk [vmem:[%s16051_s19 + $0x28] sm:$0xff] %vm16614_vm2, %v11072_v61  ;;  %v9101_v46 = vpop.f32.mrb[33].mxu1  ;;  %11145 = vmatprep.subr.bf16.mxu0 %v12646_v22 }
 0xf1e   : > { %9165 = vst.msk [vmem:[%s16051_s19 + $0x20] sm:$0xff] %vm16615_vm10, %v9101_v46  ;;  %v11146_v15 = vpack.c.bf16 %v11072_v61, %v9101_v46 }
 0xf20   : > { %v11075_v2 = vpop.f32.mrb[34].mxu1  ;;  %11147 = vmatpush3.bf16.msra.mxu0 %v11146_v15 }
 0xf21   : > { %9168 = vst.msk [vmem:[%s16051_s19 + $0x38] sm:$0xff] %vm16616_vm0, %v11075_v2  ;;  %v9111_v10 = vpop.f32.mrb[35].mxu1  ;;  %11148 = vmatprep.subr.bf16.mxu0 %v12646_v22 }
 0xf22   : > { %9167 = vst.msk [vmem:[%s16051_s19 + $0x30] sm:$0xff] %vm16617_vm12, %v9111_v10  ;;  %v11149_v53 = vpack.c.bf16 %v11075_v2, %v9111_v10 }
 0xf24   : > { %v11078_v51 = vpop.f32.mrb[36].mxu1  ;;  %11150 = vmatpush3.bf16.msra.mxu0 %v11149_v53 }
 0xf25   : > { %9170 = vst.msk [vmem:[%s16051_s19 + $0x48] sm:$0xff] %vm16618_vm5, %v11078_v51  ;;  %v9121_v48 = vpop.f32.mrb[37].mxu1  ;;  %11151 = vmatprep.subr.bf16.mxu0 %v12646_v22 }
 0xf26   : > { %9169 = vst.msk [vmem:[%s16051_s19 + $0x40] sm:$0xff] %vm16619_vm7, %v9121_v48  ;;  %v11152_v21 = vpack.c.bf16 %v11078_v51, %v9121_v48 }
 0xf28   : > { %v11081_v30 = vpop.f32.mrb[38].mxu1  ;;  %11153 = vmatpush3.bf16.msra.mxu0 %v11152_v21 }
 0xf29   : > { %9172 = vst.msk [vmem:[%s16051_s19 + $0x58] sm:$0xff] %vm16620_vm1, %v11081_v30  ;;  %v9131_v38 = vpop.f32.mrb[39].mxu1  ;;  %11154 = vmatprep.subr.bf16.mxu0 %v12646_v22 }
 0xf2a   : > { %9171 = vst.msk [vmem:[%s16051_s19 + $0x50] sm:$0xff] %vm16621_vm11, %v9131_v38  ;;  %v11155_v11 = vpack.c.bf16 %v11081_v30, %v9131_v38 }
 0xf2c   : > { %v11084_v39 = vpop.f32.mrb[40].mxu1  ;;  %11156 = vmatpush3.bf16.msra.mxu0 %v11155_v11 }
 0xf2d   : > { %9174 = vst.msk [vmem:[%s16051_s19 + $0x68] sm:$0xff] %vm16622_vm13, %v11084_v39  ;;  %v9141_v36 = vpop.f32.mrb[41].mxu1  ;;  %11157 = vmatprep.subr.bf16.mxu0 %v12646_v22 }
 0xf2e   : > { %9173 = vst.msk [vmem:[%s16051_s19 + $0x60] sm:$0xff] %vm16624_vm15, %v9141_v36  ;;  %v11158_v29 = vpack.c.bf16 %v11084_v39, %v9141_v36 }
 0xf30   : > { %v11087_v24 = vpop.f32.mrb[42].mxu1  ;;  %11159 = vmatpush3.bf16.msra.mxu0 %v11158_v29 }
 0xf31   : > { %9176 = vst.msk [vmem:[%s16051_s19 + $0x78] sm:$0xff] %vm16625_vm14, %v11087_v24  ;;  %v9151_v4 = vpop.f32.mrb[43].mxu1  ;;  %11160 = vmatprep.subr.bf16.mxu0 %v12646_v22 }
 0xf32   : > { %9175 = vst.msk [vmem:[%s16051_s19 + $0x70] sm:$0xff] %vm16627_vm3, %v9151_v4  ;;  %v11161_v8 = vpack.c.bf16 %v11087_v24, %v9151_v4 }
 0xf34   : > { %11162 = vmatpush3.bf16.msra.mxu0 %v11161_v8 }
 0xf37   : > { %11121 = vmatmul.mubr.f32.vlgmr.msra.gmra.mrb[16].mxu0 %v9177_v25 }
 0xf38   : > { %12448 = shalt.err (!%p12445_p7)
}
 0xf39   : > { %s12449_s6 = scalar_lea.hbm %s16090_s3, 2048  ;;  %s12453_s22 = scalar_lea.hbm %s16629_s30, 6144 }
 0xf3a   : > { %p12450_p5 = scmp.ne.s32.totalorder %s16090_s3, %s12449_s6  ;;  %p12454_p8 = scmp.lt.u32.totalorder %s16090_s3, %s16629_s30 }
 0xf3b   : > { %p12455_p10 = scmp.lt.u32.totalorder %s12453_s22, %s12449_s6  ;;  %p12457_p11 = scmp.lt.u32.totalorder %s12449_s6, %s16090_s3 }
 0xf3c   : > { %p12451_p0 = pnand %p12450_p5, %p16630_p13 }
 0xf3d   : > { %p12456_p12 = por %p12455_p10, %p12454_p8 }
 0xf3e   : > { %p12452_p2 = pneg %p12451_p0 }
 0xf3f   : > { %p12458_p4 = por %p12457_p11, %p12456_p12 }
 0xf41   : > { %p12459_p6 = pnand %p12458_p4, %p12452_p2 }
 0xf43   : > { %12462 = shalt.err (!%p12459_p6)
}
 0xf44   : > { %s12649_s10 = smov 128   ;;  %s9620_s12 = sshll.u32 %s16608_s17, 3  ;;  %v9182_v20 = vpop.permute.xlu1 %9181  ;;  %vm9254_vm4 = vcmask 13312  }
 0xf45   : > { %11273 = dma.vmem_to_hbm [thread:$0]  (%p16630_p13), %s16092_s28, 2048, %s16090_s3, %s9262_s9, %s12649_s10, %s12649_s10, %s16461_s1  }
 0xf46   : > { %s9994_s13 = sshll.u32 %s16623_s20, 7  ;;  %s948_s14 = scalar_lea.vmem [#allocation38], %s9620_s12 }
 0xf47   : > { %s9275_s15 = sshll.u32 %s948_s14, 4  ;;  %s16631_s29 = sld [smem:[#allocation98_spill]]  ;;  %s16126_s15 = int_to_ptr.vmem [resolvable:$true] %s9275_s15 }
 0xf48   : > { %s9257_s1 = scalar_lea.sflag [#allocation8], %s16608_s17  ;;  %s12463_s20 = scalar_lea.vmem %s16126_s15, 128 }
 0xf49   : > { %p12464_p9 = scmp.ne.s32.totalorder %s16126_s15, %s12463_s20  ;;  %s12650_s27 = smov [#allocation38]  }
 0xf4a   : > { %s12467_s28 = sshll.u32 %s12650_s27, 4  ;;  %s12468_s28 = int_to_ptr.vmem [resolvable:$false] %s12467_s28 }
 0xf4b   : > { %p12465_p1 = pnand %p12464_p9, %p16630_p13  ;;  %s12469_s25 = scalar_lea.vmem %s12468_s28, 256 }
 0xf4c   : > { %p12470_p7 = scmp.lt.s32.totalorder %s16126_s15, %s12468_s28  ;;  %p12471_p5 = scmp.lt.s32.totalorder %s12469_s25, %s12463_s20 }
 0xf4d   : > { %s16124_s19 = scalar_lea.hbm %s16631_s29, %s9994_s13  ;;  %p12466_p3 = pneg %p12465_p1 }
 0xf4e   : > { %p12472_p0 = por %p12471_p5, %p12470_p7 }
 0xf50   : > { %p12473_p2 = pnand %p12472_p0, %p12466_p3 }
0x100a   : > { %v9250_v31 = vpop.f32.mrb[16].mxu0 }
0x100b   : > { %v9251_v56 = vadd.f32 %v9250_v31, %v9182_v20  ;;  %v11122_v27 = vpop.f32.mrb[17].mxu0 }
0x100d   : > { %9255 = vst.msk [vmem:[%s948_s14] sm:$0x3f] %vm9254_vm4, %v9251_v56 }
0x100e   : > { %12476 = shalt.err (!%p12473_p2)
}
0x100f   : > { %s12477_s17 = scalar_lea.hbm %s16124_s19, 128  ;;  %s12481_s3 = scalar_lea.hbm %s16631_s29, 384 }
0x1010   : > { %p12478_p8 = scmp.ne.s32.totalorder %s16124_s19, %s12477_s17  ;;  %p12482_p11 = scmp.lt.u32.totalorder %s16124_s19, %s16631_s29 }
0x1011   : > { %p12483_p4 = scmp.lt.u32.totalorder %s12481_s3, %s12477_s17  ;;  %p12485_p9 = scmp.lt.u32.totalorder %s12477_s17, %s16124_s19 }
0x1012   : > { %p12479_p10 = pnand %p12478_p8, %p16630_p13 }
0x1013   : > { %p12484_p6 = por %p12483_p4, %p12482_p11 }
0x1014   : > { %p12480_p12 = pneg %p12479_p10 }
0x1015   : > { %p12486_p1 = por %p12485_p9, %p12484_p6 }
0x1017   : > { %p12487_p3 = pnand %p12486_p1, %p12480_p12 }
0x1019   : > { %12490 = shalt.err (!%p12487_p3)
}
0x101a   : > { %11272 = dma.vmem_to_hbm [thread:$0]  (%p16630_p13), %s16126_s15, 128, %s16124_s19, %s9257_s1  }
0x101b PF: > { %s16632_s7 = sld [smem:[#allocation57_spill]]  ;;  %s16633_s4 = sld [smem:[#allocation54_spill]] }
0x101c   : > { %s16634_s18 = sld [smem:[#allocation63_spill]] }
0x1021   : > { %p11384_p7 = scmp.ge.s32.totalorder %s16632_s7, 2  ;;  %s9303_s6 = sand.u32 1, %s16633_s4  }
0x1022   : > { %p16635_p5 = scmp.ne.s32.totalorder %s16634_s18, 0  ;;  %s9304_s0 = scalar_lea.sflag [#allocation8], %s9303_s6 }
0x1024   : > { %p11339_p0 = pnand %p11384_p7, %p16635_p5 }
0x1026   : > { %12552 = dma.done.wait (!%p11339_p0), %s9304_s0, 128  }
0x1027   : > { %12554 = vsyncadd (!%p11339_p0), %s9304_s0, 4294967168  ;;  %s9313_s23 = scalar_lea.sflag [#allocation40], %s9303_s6 }
0x1028   : > { %12556 = dma.done.wait (!%p11339_p0), %s9313_s23, 2048  }
0x1029   : > { %12558 = vsyncadd (!%p11339_p0), %s9313_s23, 4294965248  ;;  %s16636_s27 = sld [smem:[#allocation60_spill]]  ;;  %s16637_s2 = sld [smem:[#allocation55_spill]] }
0x102a   : > { %s16638_s25 = sld [smem:[#allocation56_spill]]  ;;  %s16639_s26 = sld [smem:[#allocation61_spill]] }
0x102f   : > { %p48_p13 = scmp.ge.s32.totalorder %s16636_s27, 5  }
0x1031   :  { %50 = sbr.rel (!%p48_p13) target bundleno = 40 (0x28), region = 239 }
0x1038   :  { %9318 = vsyncpa [#allocation7], 1 }
0x1039   :  { %9320 = vsyncpa [#allocation7 + $0x1], 1 }
0x103a   :  { %9321 = vsyncpa [#allocation10], 1 }
0x103b   :  { %9322 = vsyncpa [#allocation13], 1 }
0x103c   :  { %9323 = vsyncpa [#allocation16], 1 }
0x103d   :  { %9324 = vsyncpa [#allocation19], 1 }
0x103e   :  { %9325 = vsyncpa [#allocation22], 1 }
0x103f   :  { %9326 = vsyncpa [#allocation25], 1 }
0x1040   :  { %9327 = vsyncpa [#allocation28], 1 }
0x1041   :  { %9328 = vsyncpa [#allocation31], 1 }
0x1042   :  { %9329 = vsyncpa [#allocation34], 1 }
0x1043   :  { %9330 = vsyncpa [#allocation37], 1 }
0x1044   :  { %9331 = vsyncpa [#allocation8], 1 }
0x1045   :  { %9333 = vsyncpa [#allocation8 + $0x1], 1 }
0x1046   :  { %9334 = vsyncpa [#allocation40], 1 }
0x1047   :  { %9336 = vsyncpa [#allocation40 + $0x1], 1 }

</bundles_post_ra>
